<compile_context>
chip_gen: v6e
topology: v6e:2x2x1
jax: 0.10.0
libtpu: 0.0.40
codegen_flags: <defaults>
</compile_context>

<pallas_src>
import jax
import jax.numpy as jnp
from jax.experimental import pallas as pl
from jax.experimental.pallas import tpu as pltpu


def _attention_kernel(enc_ref, mask_ref, cov_ref, sz_ref,
                      w_ref, wcw_ref, wcb_ref, v_ref,
                      a_ref, ncov_ref):
    f32 = jnp.float32
    cdt = enc_ref.dtype                     # compute dtype for the tanh chain
    bb, L, D = enc_ref.shape

    # Fused decoder + topic projection: ONE (bb,F)x(F,D) MXU matmul, with the
    # w_c bias folded in (constant over L, so it is added per (b,d)).
    proj = jnp.dot(sz_ref[...], w_ref[...], preferred_element_type=f32)   # (bb, D)
    proj = (proj[:, None, :] + wcb_ref[...]).astype(cdt)                  # (bb, 1, D)

    # Coverage column derived from the single lane-dense row with one small
    # XLU transpose (no second, 128x lane-padded HBM/VMEM coverage stream).
    cov_row = cov_ref[...]                                                # (bb, 1, L) f32
    cov_col = jnp.swapaxes(cov_row, 1, 2).astype(cdt)                     # (bb, L, 1)

    # Fused elementwise chain -> a single live (bb, L, D) slab; tanh on the EUP.
    t = jnp.tanh(enc_ref[...] + proj + cov_col * wcw_ref[...])            # (bb, L, D) cdt

    # e_t = v . tanh(.) produced directly as a lane-dense (bb, 1, L) row.
    v3 = jnp.broadcast_to(v_ref[...], (bb, 1, D))
    e = jnp.einsum('bqd,bkd->bqk', v3, t, preferred_element_type=f32)     # (bb, 1, L) f32

    # Masked softmax over L (the lane axis).  Large finite negative instead of
    # -inf: masked lanes still underflow to exp()==0, while a fully-masked row
    # gives uniform weights instead of NaN.
    e = jnp.where(mask_ref[...] == 0.0, -1e30, e)
    m = jnp.max(e, axis=-1, keepdims=True)
    p = jnp.exp(e - m)
    a = p / jnp.sum(p, axis=-1, keepdims=True)                            # (bb, 1, L) f32

    a_ref[...] = a.astype(a_ref.dtype)
    ncov_ref[...] = (cov_row + a).astype(ncov_ref.dtype)


def _attention_kernel_fallback(enc_ref, mask_ref, covc_ref, covr_ref, sz_ref,
                               w_ref, wcw_ref, wcb_ref, v_ref,
                               a_ref, ncov_ref):
    # Safety net for Mosaic versions lacking in-kernel transpose / expand_dims
    # support: identical math, but coverage arrives pre-transposed and the
    # projection uses a replicated-weight batched einsum.  Only used if the
    # main kernel fails to lower.
    f32 = jnp.float32
    bb, L, D = enc_ref.shape
    F = sz_ref.shape[-1]
    w = jnp.broadcast_to(w_ref[...].astype(f32), (bb, F, D))
    proj = jnp.einsum('bqf,bfd->bqd', sz_ref[...].astype(f32), w,
                      preferred_element_type=f32) + wcb_ref[...]
    t = jnp.tanh(enc_ref[...].astype(f32) + proj
                 + covc_ref[...].astype(f32) * wcw_ref[...].astype(f32))
    v3 = jnp.broadcast_to(v_ref[...].astype(f32), (bb, 1, D))
    e = jnp.einsum('bqd,bkd->bqk', v3, t, preferred_element_type=f32)
    e = jnp.where(mask_ref[...] == 0.0, -1e30, e)
    p = jnp.exp(e - jnp.max(e, axis=-1, keepdims=True))
    a = p / jnp.sum(p, axis=-1, keepdims=True)
    a_ref[...] = a.astype(a_ref.dtype)
    ncov_ref[...] = (covr_ref[...].astype(f32) + a).astype(ncov_ref.dtype)


def _round_up(x, m):
    return -(-x // m) * m


def _pick_batch_block(B, L, D, itemsize, target_bytes=1 << 20, min_grid=4):
    """~0.5-2 MiB encoder blocks keep the HBM pipeline near roofline, >=min_grid
    grid steps give BlockSpec something to overlap, and bb stays a multiple of
    8 (sublane alignment of the (bb, F) projection block) unless bb == B."""
    if B % 8 != 0:
        return B                       # tiny / odd batches: one full block
    cap = min(max(1, target_bytes // max(1, L * D * itemsize)),
              max(1, B // min(min_grid, B)))
    bb = min(B, max(8, cap - cap % 8))
    while B % bb:
        bb -= 8
    return max(bb, 8)


def _vmem_limit_bytes(bb, L, D, F, enc_itemsize):
    lane_L, lane_D = _round_up(L, 128), _round_up(D, 128)
    sub_L = _round_up(L, 8)
    row = bb * 8 * lane_L * 4                      # (bb,1,L) f32, sublane-padded
    enc = bb * sub_L * lane_D * enc_itemsize
    sz = _round_up(bb, 8) * _round_up(F, 128) * 4
    weights = _round_up(F, 8) * lane_D * 4 + 3 * 8 * lane_D * 4
    temps = 3 * bb * sub_L * lane_D * 4            # live slabs inside the kernel
    est = 2 * (enc + 5 * row + sz) + weights + temps   # x2: double-buffered streams
    return int(min(64 << 20, max(16 << 20, 2 * est)))


def attention_pallas(encoder_features, mask, s, coverage, hidden_z,
                     w_s, w_c_w, w_c_b, w_z, v_w, *, batch_block=None):
    """Forward pass of `Attention` (use_coverage=True, eval-mode dropout).

    encoder_features: (B, L, D), D = 2*hidden_dim (f32, or bf16 on v6e/v7x)
    mask, coverage  : (B, L)
    s               : (B, D)
    hidden_z        : (B, T)
    w_s: (D, D)  w_c_w: (D, 1)  w_c_b: (D,)  w_z: (D, T)  v_w: (1, D)
    returns (a_t, next_coverage), both (B, L) float32.
    """
    B, L, D = encoder_features.shape
    T = hidden_z.shape[-1]
    F = D + T
    f32 = jnp.float32
    cdt = encoder_features.dtype          # tanh/matmul dtype (keep f32 on v5e)

    bb = batch_block if batch_block is not None else _pick_batch_block(
        B, L, D, encoder_features.dtype.itemsize)
    assert B % bb == 0, "batch_block must divide B"
    nb = B // bb

    # ---- layout plumbing (cheap XLA reshapes, outside the kernel) ----
    mask_row = mask.astype(f32).reshape(B, 1, L)               # lane-dense row
    cov_row = coverage.astype(f32).reshape(B, 1, L)            # lane-dense row
    sz = jnp.concatenate([s, hidden_z], axis=-1).astype(cdt)   # (B, F)
    # PyTorch Linear weights are (out, in): y = x @ W.T -> fused (F, D) weight.
    w_sz = jnp.concatenate([w_s.T, w_z.T], axis=0).astype(cdt)  # (F, D)
    wcw = w_c_w.reshape(1, 1, D).astype(cdt)
    wcb = w_c_b.reshape(1, 1, D).astype(f32)
    v_row = v_w.reshape(1, 1, D).astype(cdt)

    row3 = lambda i: (i, 0, 0)
    one3 = lambda i: (0, 0, 0)
    out_shape = (jax.ShapeDtypeStruct((B, 1, L), f32),
                 jax.ShapeDtypeStruct((B, 1, L), f32))
    out_specs = (pl.BlockSpec((bb, 1, L), row3),
                 pl.BlockSpec((bb, 1, L), row3))
    params = pltpu.CompilerParams(
        dimension_semantics=("parallel",),
        vmem_limit_bytes=_vmem_limit_bytes(bb, L, D, F,
                                           encoder_features.dtype.itemsize))

    def run_fused():
        return pl.pallas_call(
            _attention_kernel,
            out_shape=out_shape,
            grid=(nb,),
            in_specs=[
                pl.BlockSpec((bb, L, D), row3),           # encoder_features
                pl.BlockSpec((bb, 1, L), row3),           # mask (lane-dense row)
                pl.BlockSpec((bb, 1, L), row3),           # coverage (single stream)
                pl.BlockSpec((bb, F), lambda i: (i, 0)),  # [s | hidden_z]
                pl.BlockSpec((F, D), lambda i: (0, 0)),   # fused [w_s^T ; w_z^T]
                pl.BlockSpec((1, 1, D), one3),            # w_c weight row
                pl.BlockSpec((1, 1, D), one3),            # w_c bias row
                pl.BlockSpec((1, 1, D), one3),            # v row
            ],
            out_specs=out_specs,
            compiler_params=params,
        )(encoder_features, mask_row, cov_row, sz, w_sz, wcw, wcb, v_row)

    def run_fallback():
        cov_col = coverage.astype(f32).reshape(B, L, 1)
        return pl.pallas_call(
            _attention_kernel_fallback,
            out_shape=out_shape,
            grid=(nb,),
            in_specs=[
                pl.BlockSpec((bb, L, D), row3),
                pl.BlockSpec((bb, 1, L), row3),
                pl.BlockSpec((bb, L, 1), row3),
                pl.BlockSpec((bb, 1, L), row3),
                pl.BlockSpec((bb, 1, F), row3),
                pl.BlockSpec((1, F, D), one3),
                pl.BlockSpec((1, 1, D), one3),
                pl.BlockSpec((1, 1, D), one3),
                pl.BlockSpec((1, 1, D), one3),
            ],
            out_specs=out_specs,
            compiler_params=params,
        )(encoder_features, mask_row, cov_col, cov_row, sz.reshape(B, 1, F),
          w_sz.reshape(1, F, D), wcw, wcb, v_row)

    try:
        a3, ncov3 = run_fused()
    except Exception:  # pragma: no cover — older Mosaic without transpose/expand
        a3, ncov3 = run_fallback()

    return a3.reshape(B, L), ncov3.reshape(B, L)


def attention_ref(encoder_features, mask, s, coverage, hidden_z,
                  w_s, w_c_w, w_c_b, w_z, v_w):
    # Pure-JAX reference mirroring the PyTorch forward (dropout = identity).
    dec = s @ w_s.T
    hid = hidden_z @ w_z.T
    cov_feat = coverage[..., None] * w_c_w.reshape(-1) + w_c_b
    attn = encoder_features + dec[:, None, :] + cov_feat + hid[:, None, :]
    e = jnp.squeeze(jnp.tanh(attn) @ v_w.T, axis=-1)
    e = jnp.where(mask == 0, -jnp.inf, e)
    a = jax.nn.softmax(e, axis=-1)
    return a, coverage + a


if __name__ == "__main__":
    # config: hidden_dim=64 -> D=128, topic=8, use_coverage=True.
    # L and D are multiples of 128 so every block is lane-dense; B=32 gives
    # nb=4 pipelined "parallel" blocks of bb=8 (even nb for v7x's two cores).
    B, L, hidden_dim, topic = 32, 128, 64, 8
    D = 2 * hidden_dim

    key = jax.random.PRNGKey(0)
    ks = jax.random.split(key, 10)

    encoder_features = jax.random.normal(ks[0], (B, L, D), jnp.float32)
    s = jax.random.normal(ks[1], (B, D), jnp.float32)
    coverage = jax.random.uniform(ks[2], (B, L), jnp.float32)
    hidden_z = jax.random.normal(ks[3], (B, topic), jnp.float32)
    # mask: 1 for valid tokens, 0 for padding (no fully-masked rows)
    lengths = L - (jnp.arange(B) % 4) * (L // 8)
    mask = (jnp.arange(L)[None, :] < lengths[:, None]).astype(jnp.float32)

    def init(k, shape, fan_in):   # torch.nn.Linear-style uniform init
        bound = 1.0 / (fan_in ** 0.5)
        return jax.random.uniform(k, shape, jnp.float32, -bound, bound)

    w_s = init(ks[4], (D, D), D)           # Linear(D, D, bias=False).weight
    w_c_w = init(ks[5], (D, 1), 1)         # Linear(1, D).weight
    w_c_b = init(ks[6], (D,), 1)           # Linear(1, D).bias
    w_z = init(ks[7], (D, topic), topic)   # Linear(topic, D, bias=False).weight
    v_w = init(ks[8], (1, D), D)           # Linear(D, 1, bias=False).weight

    a_t, next_cov = attention_pallas(encoder_features, mask, s, coverage,
                                     hidden_z, w_s, w_c_w, w_c_b, w_z, v_w)
    jax.block_until_ready((a_t, next_cov))

    a_ref, cov_ref = attention_ref(encoder_features, mask, s, coverage,
                                   hidden_z, w_s, w_c_w, w_c_b, w_z, v_w)

    assert a_t.shape == (B, L) and next_cov.shape == (B, L)
    assert jnp.allclose(a_t, a_ref, atol=1e-4, rtol=1e-4), "a_t mismatch"
    assert jnp.allclose(next_cov, cov_ref, atol=1e-4, rtol=1e-4), "coverage mismatch"
    assert jnp.allclose(jnp.sum(a_t, -1), jnp.ones((B,)), atol=1e-5), "softmax not normalized"

    print("KERNEL_OK")
</pallas_src>

<mosaic_0001>
module attributes {stable_mosaic.version = 11 : i64} {
  func.func @_attention_kernel(%arg0: i32, %arg1: memref<8x128x128xf32, #tpu.memory_space<vmem>>, %arg2: memref<8x1x128xf32, #tpu.memory_space<vmem>>, %arg3: memref<8x1x128xf32, #tpu.memory_space<vmem>>, %arg4: memref<8x136xf32, #tpu.memory_space<vmem>>, %arg5: memref<136x128xf32, #tpu.memory_space<vmem>>, %arg6: memref<1x1x128xf32, #tpu.memory_space<vmem>>, %arg7: memref<1x1x128xf32, #tpu.memory_space<vmem>>, %arg8: memref<1x1x128xf32, #tpu.memory_space<vmem>>, %arg9: memref<8x1x128xf32, #tpu.memory_space<vmem>>, %arg10: memref<8x1x128xf32, #tpu.memory_space<vmem>>) attributes {dimension_semantics = [#tpu.dimension_semantics<parallel>], iteration_bounds = array<i64: 4>, scalar_prefetch = 0 : i64, scratch_operands = 0 : i64, tpu.core_type = #tpu.core_type<tc>, window_params = [{transform_indices = @transform_0, window_bounds = array<i64: 8, 128, 128>}, {transform_indices = @transform_1, window_bounds = array<i64: 8, 1, 128>}, {transform_indices = @transform_2, window_bounds = array<i64: 8, 1, 128>}, {transform_indices = @transform_3, window_bounds = array<i64: 8, 136>}, {pipeline_mode = #tpu.pipeline_mode<synchronous>, transform_indices = @transform_4, window_bounds = array<i64: 136, 128>}, {pipeline_mode = #tpu.pipeline_mode<synchronous>, transform_indices = @transform_5, window_bounds = array<i64: 1, 1, 128>}, {pipeline_mode = #tpu.pipeline_mode<synchronous>, transform_indices = @transform_6, window_bounds = array<i64: 1, 1, 128>}, {pipeline_mode = #tpu.pipeline_mode<synchronous>, transform_indices = @transform_7, window_bounds = array<i64: 1, 1, 128>}, {transform_indices = @transform_8, window_bounds = array<i64: 8, 1, 128>}, {transform_indices = @transform_9, window_bounds = array<i64: 8, 1, 128>}]} {
    %c0 = arith.constant 0 : index
    %c0_0 = arith.constant 0 : index
    %0 = vector.load %arg4[%c0, %c0_0] : memref<8x136xf32, #tpu.memory_space<vmem>>, vector<8x136xf32>
    %c0_1 = arith.constant 0 : index
    %c0_2 = arith.constant 0 : index
    %1 = vector.load %arg5[%c0_1, %c0_2] : memref<136x128xf32, #tpu.memory_space<vmem>>, vector<136x128xf32>
    %cst = arith.constant dense<0.000000e+00> : vector<8x128xf32>
    %2 = tpu.matmul %0, %1, %cst {dimension_numbers = #tpu.dot_dimension_numbers<[1], [0], [0], [1], [0, 0, 1, 1], [], []>} : vector<8x136xf32>, vector<136x128xf32>, vector<8x128xf32> -> vector<8x128xf32>
    %3 = vector.shape_cast %2 : vector<8x128xf32> to vector<8x1x128xf32>
    %c0_3 = arith.constant 0 : index
    %c0_4 = arith.constant 0 : index
    %c0_5 = arith.constant 0 : index
    %4 = vector.load %arg7[%c0_3, %c0_4, %c0_5] : memref<1x1x128xf32, #tpu.memory_space<vmem>>, vector<1x1x128xf32>
    %5 = vector.broadcast %4 : vector<1x1x128xf32> to vector<8x1x128xf32>
    %6 = arith.addf %3, %5 : vector<8x1x128xf32>
    %c0_6 = arith.constant 0 : index
    %c0_7 = arith.constant 0 : index
    %c0_8 = arith.constant 0 : index
    %7 = vector.load %arg3[%c0_6, %c0_7, %c0_8] : memref<8x1x128xf32, #tpu.memory_space<vmem>>, vector<8x1x128xf32>
    %8 = tpu.transpose %7, [0, 2, 1] : vector<8x1x128xf32> -> vector<8x128x1xf32>
    %c0_9 = arith.constant 0 : index
    %c0_10 = arith.constant 0 : index
    %c0_11 = arith.constant 0 : index
    %9 = vector.load %arg1[%c0_9, %c0_10, %c0_11] : memref<8x128x128xf32, #tpu.memory_space<vmem>>, vector<8x128x128xf32>
    %10 = vector.broadcast %6 : vector<8x1x128xf32> to vector<8x128x128xf32>
    %11 = arith.addf %9, %10 : vector<8x128x128xf32>
    %c0_12 = arith.constant 0 : index
    %c0_13 = arith.constant 0 : index
    %c0_14 = arith.constant 0 : index
    %12 = vector.load %arg6[%c0_12, %c0_13, %c0_14] : memref<1x1x128xf32, #tpu.memory_space<vmem>>, vector<1x1x128xf32>
    %13 = vector.broadcast %8 : vector<8x128x1xf32> to vector<8x128x128xf32>
    %14 = vector.broadcast %12 : vector<1x1x128xf32> to vector<8x128x128xf32>
    %15 = arith.mulf %13, %14 : vector<8x128x128xf32>
    %16 = arith.addf %11, %15 : vector<8x128x128xf32>
    %17 = math.tanh %16 : vector<8x128x128xf32>
    %c0_15 = arith.constant 0 : index
    %c0_16 = arith.constant 0 : index
    %c0_17 = arith.constant 0 : index
    %18 = vector.load %arg8[%c0_15, %c0_16, %c0_17] : memref<1x1x128xf32, #tpu.memory_space<vmem>>, vector<1x1x128xf32>
    %19 = vector.shape_cast %18 : vector<1x1x128xf32> to vector<1x1x128xf32>
    %20 = vector.broadcast %19 : vector<1x1x128xf32> to vector<8x1x128xf32>
    "tpu.trace_start"() <{level = 10 : i32, message = "bqd,bkd->bqk"}> : () -> ()
    %cst_18 = arith.constant dense<0.000000e+00> : vector<8x1x128xf32>
    %21 = tpu.matmul %20, %17, %cst_18 {dimension_numbers = #tpu.dot_dimension_numbers<[2], [2], [1], [1], [0, 0, 0, 1, 1, 1], [0], [0]>} : vector<8x1x128xf32>, vector<8x128x128xf32>, vector<8x1x128xf32> -> vector<8x1x128xf32>
    "tpu.trace_stop"() : () -> ()
    %c0_19 = arith.constant 0 : index
    %c0_20 = arith.constant 0 : index
    %c0_21 = arith.constant 0 : index
    %22 = vector.load %arg2[%c0_19, %c0_20, %c0_21] : memref<8x1x128xf32, #tpu.memory_space<vmem>>, vector<8x1x128xf32>
    %cst_22 = arith.constant 0.000000e+00 : f32
    %23 = vector.broadcast %cst_22 : f32 to vector<8x1x128xf32>
    %24 = arith.cmpf oeq, %22, %23 : vector<8x1x128xf32>
    %cst_23 = arith.constant -1.000000e+30 : f32
    %25 = vector.broadcast %cst_23 : f32 to vector<8x1x128xf32>
    %26 = arith.select %24, %25, %21 : vector<8x1x128xi1>, vector<8x1x128xf32>
    %cst_24 = arith.constant dense<0xFF800000> : vector<8x1xf32>
    %27 = vector.multi_reduction <maximumf>, %26, %cst_24 [2] : vector<8x1x128xf32> to vector<8x1xf32>
    %28 = vector.shape_cast %27 : vector<8x1xf32> to vector<8x1x1xf32>
    %29 = vector.broadcast %28 : vector<8x1x1xf32> to vector<8x1x128xf32>
    %30 = arith.subf %26, %29 : vector<8x1x128xf32>
    %31 = math.exp %30 : vector<8x1x128xf32>
    %cst_25 = arith.constant dense<0.000000e+00> : vector<8x1xf32>
    %32 = vector.multi_reduction <add>, %31, %cst_25 [2] : vector<8x1x128xf32> to vector<8x1xf32>
    %33 = vector.shape_cast %32 : vector<8x1xf32> to vector<8x1x1xf32>
    %34 = vector.broadcast %33 : vector<8x1x1xf32> to vector<8x1x128xf32>
    %35 = arith.divf %31, %34 : vector<8x1x128xf32>
    %c0_26 = arith.constant 0 : index
    %c0_27 = arith.constant 0 : index
    %c0_28 = arith.constant 0 : index
    %36 = vector.load %arg9[%c0_26, %c0_27, %c0_28] : memref<8x1x128xf32, #tpu.memory_space<vmem>>, vector<8x1x128xf32>
    tpu.vector_store %arg9[%c0_26, %c0_27, %c0_28], %35 {strides = array<i32>} : memref<8x1x128xf32, #tpu.memory_space<vmem>>, vector<8x1x128xf32>,
    %37 = arith.addf %7, %35 : vector<8x1x128xf32>
    %c0_29 = arith.constant 0 : index
    %c0_30 = arith.constant 0 : index
    %c0_31 = arith.constant 0 : index
    %38 = vector.load %arg10[%c0_29, %c0_30, %c0_31] : memref<8x1x128xf32, #tpu.memory_space<vmem>>, vector<8x1x128xf32>
    tpu.vector_store %arg10[%c0_29, %c0_30, %c0_31], %37 {strides = array<i32>} : memref<8x1x128xf32, #tpu.memory_space<vmem>>, vector<8x1x128xf32>,
    return
  }
  func.func @transform_0(%arg0: i32) -> (i32, i32, i32) {
    %c0_i32 = arith.constant 0 : i32
    %c0_i32_0 = arith.constant 0 : i32
    %c0_i32_1 = arith.constant 0 : i32
    return %arg0, %c0_i32, %c0_i32_0 : i32, i32, i32
  }
  func.func @transform_1(%arg0: i32) -> (i32, i32, i32) {
    %c0_i32 = arith.constant 0 : i32
    %c0_i32_0 = arith.constant 0 : i32
    %c0_i32_1 = arith.constant 0 : i32
    return %arg0, %c0_i32, %c0_i32_0 : i32, i32, i32
  }
  func.func @transform_2(%arg0: i32) -> (i32, i32, i32) {
    %c0_i32 = arith.constant 0 : i32
    %c0_i32_0 = arith.constant 0 : i32
    %c0_i32_1 = arith.constant 0 : i32
    return %arg0, %c0_i32, %c0_i32_0 : i32, i32, i32
  }
  func.func @transform_3(%arg0: i32) -> (i32, i32) {
    %c0_i32 = arith.constant 0 : i32
    %c0_i32_0 = arith.constant 0 : i32
    return %arg0, %c0_i32 : i32, i32
  }
  func.func @transform_4(%arg0: i32) -> (i32, i32) {
    %c0_i32 = arith.constant 0 : i32
    %c0_i32_0 = arith.constant 0 : i32
    %c0_i32_1 = arith.constant 0 : i32
    return %c0_i32, %c0_i32_0 : i32, i32
  }
  func.func @transform_5(%arg0: i32) -> (i32, i32, i32) {
    %c0_i32 = arith.constant 0 : i32
    %c0_i32_0 = arith.constant 0 : i32
    %c0_i32_1 = arith.constant 0 : i32
    %c0_i32_2 = arith.constant 0 : i32
    return %c0_i32, %c0_i32_0, %c0_i32_1 : i32, i32, i32
  }
  func.func @transform_6(%arg0: i32) -> (i32, i32, i32) {
    %c0_i32 = arith.constant 0 : i32
    %c0_i32_0 = arith.constant 0 : i32
    %c0_i32_1 = arith.constant 0 : i32
    %c0_i32_2 = arith.constant 0 : i32
    return %c0_i32, %c0_i32_0, %c0_i32_1 : i32, i32, i32
  }
  func.func @transform_7(%arg0: i32) -> (i32, i32, i32) {
    %c0_i32 = arith.constant 0 : i32
    %c0_i32_0 = arith.constant 0 : i32
    %c0_i32_1 = arith.constant 0 : i32
    %c0_i32_2 = arith.constant 0 : i32
    return %c0_i32, %c0_i32_0, %c0_i32_1 : i32, i32, i32
  }
  func.func @transform_8(%arg0: i32) -> (i32, i32, i32) {
    %c0_i32 = arith.constant 0 : i32
    %c0_i32_0 = arith.constant 0 : i32
    %c0_i32_1 = arith.constant 0 : i32
    return %arg0, %c0_i32, %c0_i32_0 : i32, i32, i32
  }
  func.func @transform_9(%arg0: i32) -> (i32, i32, i32) {
    %c0_i32 = arith.constant 0 : i32
    %c0_i32_0 = arith.constant 0 : i32
    %c0_i32_1 = arith.constant 0 : i32
    return %arg0, %c0_i32, %c0_i32_0 : i32, i32, i32
  }
}

module attributes {stable_mosaic.version = 11 : i64} {
  func.func @_attention_kernel_fallback(%arg0: i32, %arg1: memref<8x128x128xf32, #tpu.memory_space<vmem>>, %arg2: memref<8x1x128xf32, #tpu.memory_space<vmem>>, %arg3: memref<8x128x1xf32, #tpu.memory_space<vmem>>, %arg4: memref<8x1x128xf32, #tpu.memory_space<vmem>>, %arg5: memref<8x1x136xf32, #tpu.memory_space<vmem>>, %arg6: memref<1x136x128xf32, #tpu.memory_space<vmem>>, %arg7: memref<1x1x128xf32, #tpu.memory_space<vmem>>, %arg8: memref<1x1x128xf32, #tpu.memory_space<vmem>>, %arg9: memref<1x1x128xf32, #tpu.memory_space<vmem>>, %arg10: memref<8x1x128xf32, #tpu.memory_space<vmem>>, %arg11: memref<8x1x128xf32, #tpu.memory_space<vmem>>) attributes {dimension_semantics = [#tpu.dimension_semantics<parallel>], iteration_bounds = array<i64: 4>, scalar_prefetch = 0 : i64, scratch_operands = 0 : i64, tpu.core_type = #tpu.core_type<tc>, window_params = [{transform_indices = @transform_0, window_bounds = array<i64: 8, 128, 128>}, {transform_indices = @transform_1, window_bounds = array<i64: 8, 1, 128>}, {transform_indices = @transform_2, window_bounds = array<i64: 8, 128, 1>}, {transform_indices = @transform_3, window_bounds = array<i64: 8, 1, 128>}, {transform_indices = @transform_4, window_bounds = array<i64: 8, 1, 136>}, {pipeline_mode = #tpu.pipeline_mode<synchronous>, transform_indices = @transform_5, window_bounds = array<i64: 1, 136, 128>}, {pipeline_mode = #tpu.pipeline_mode<synchronous>, transform_indices = @transform_6, window_bounds = array<i64: 1, 1, 128>}, {pipeline_mode = #tpu.pipeline_mode<synchronous>, transform_indices = @transform_7, window_bounds = array<i64: 1, 1, 128>}, {pipeline_mode = #tpu.pipeline_mode<synchronous>, transform_indices = @transform_8, window_bounds = array<i64: 1, 1, 128>}, {transform_indices = @transform_9, window_bounds = array<i64: 8, 1, 128>}, {transform_indices = @transform_10, window_bounds = array<i64: 8, 1, 128>}]} {
    %c0 = arith.constant 0 : index
    %c0_0 = arith.constant 0 : index
    %c0_1 = arith.constant 0 : index
    %0 = vector.load %arg6[%c0, %c0_0, %c0_1] : memref<1x136x128xf32, #tpu.memory_space<vmem>>, vector<1x136x128xf32>
    %1 = vector.shape_cast %0 : vector<1x136x128xf32> to vector<1x136x128xf32>
    %2 = vector.broadcast %1 : vector<1x136x128xf32> to vector<8x136x128xf32>
    %c0_2 = arith.constant 0 : index
    %c0_3 = arith.constant 0 : index
    %c0_4 = arith.constant 0 : index
    %3 = vector.load %arg5[%c0_2, %c0_3, %c0_4] : memref<8x1x136xf32, #tpu.memory_space<vmem>>, vector<8x1x136xf32>
    "tpu.trace_start"() <{level = 10 : i32, message = "bqf,bfd->bqd"}> : () -> ()
    %cst = arith.constant dense<0.000000e+00> : vector<8x1x128xf32>
    %4 = tpu.matmul %3, %2, %cst {dimension_numbers = #tpu.dot_dimension_numbers<[2], [1], [1], [2], [0, 0, 0, 1, 1, 2], [0], [0]>} : vector<8x1x136xf32>, vector<8x136x128xf32>, vector<8x1x128xf32> -> vector<8x1x128xf32>
    "tpu.trace_stop"() : () -> ()
    %c0_5 = arith.constant 0 : index
    %c0_6 = arith.constant 0 : index
    %c0_7 = arith.constant 0 : index
    %5 = vector.load %arg8[%c0_5, %c0_6, %c0_7] : memref<1x1x128xf32, #tpu.memory_space<vmem>>, vector<1x1x128xf32>
    %6 = vector.broadcast %5 : vector<1x1x128xf32> to vector<8x1x128xf32>
    %7 = arith.addf %4, %6 : vector<8x1x128xf32>
    %c0_8 = arith.constant 0 : index
    %c0_9 = arith.constant 0 : index
    %c0_10 = arith.constant 0 : index
    %8 = vector.load %arg1[%c0_8, %c0_9, %c0_10] : memref<8x128x128xf32, #tpu.memory_space<vmem>>, vector<8x128x128xf32>
    %9 = vector.broadcast %7 : vector<8x1x128xf32> to vector<8x128x128xf32>
    %10 = arith.addf %8, %9 : vector<8x128x128xf32>
    %c0_11 = arith.constant 0 : index
    %c0_12 = arith.constant 0 : index
    %c0_13 = arith.constant 0 : index
    %11 = vector.load %arg3[%c0_11, %c0_12, %c0_13] : memref<8x128x1xf32, #tpu.memory_space<vmem>>, vector<8x128x1xf32>
    %c0_14 = arith.constant 0 : index
    %c0_15 = arith.constant 0 : index
    %c0_16 = arith.constant 0 : index
    %12 = vector.load %arg7[%c0_14, %c0_15, %c0_16] : memref<1x1x128xf32, #tpu.memory_space<vmem>>, vector<1x1x128xf32>
    %13 = vector.broadcast %11 : vector<8x128x1xf32> to vector<8x128x128xf32>
    %14 = vector.broadcast %12 : vector<1x1x128xf32> to vector<8x128x128xf32>
    %15 = arith.mulf %13, %14 : vector<8x128x128xf32>
    %16 = arith.addf %10, %15 : vector<8x128x128xf32>
    %17 = math.tanh %16 : vector<8x128x128xf32>
    %c0_17 = arith.constant 0 : index
    %c0_18 = arith.constant 0 : index
    %c0_19 = arith.constant 0 : index
    %18 = vector.load %arg9[%c0_17, %c0_18, %c0_19] : memref<1x1x128xf32, #tpu.memory_space<vmem>>, vector<1x1x128xf32>
    %19 = vector.shape_cast %18 : vector<1x1x128xf32> to vector<1x1x128xf32>
    %20 = vector.broadcast %19 : vector<1x1x128xf32> to vector<8x1x128xf32>
    "tpu.trace_start"() <{level = 10 : i32, message = "bqd,bkd->bqk"}> : () -> ()
    %cst_20 = arith.constant dense<0.000000e+00> : vector<8x1x128xf32>
    %21 = tpu.matmul %20, %17, %cst_20 {dimension_numbers = #tpu.dot_dimension_numbers<[2], [2], [1], [1], [0, 0, 0, 1, 1, 1], [0], [0]>} : vector<8x1x128xf32>, vector<8x128x128xf32>, vector<8x1x128xf32> -> vector<8x1x128xf32>
    "tpu.trace_stop"() : () -> ()
    %c0_21 = arith.constant 0 : index
    %c0_22 = arith.constant 0 : index
    %c0_23 = arith.constant 0 : index
    %22 = vector.load %arg2[%c0_21, %c0_22, %c0_23] : memref<8x1x128xf32, #tpu.memory_space<vmem>>, vector<8x1x128xf32>
    %cst_24 = arith.constant 0.000000e+00 : f32
    %23 = vector.broadcast %cst_24 : f32 to vector<8x1x128xf32>
    %24 = arith.cmpf oeq, %22, %23 : vector<8x1x128xf32>
    %cst_25 = arith.constant -1.000000e+30 : f32
    %25 = vector.broadcast %cst_25 : f32 to vector<8x1x128xf32>
    %26 = arith.select %24, %25, %21 : vector<8x1x128xi1>, vector<8x1x128xf32>
    %cst_26 = arith.constant dense<0xFF800000> : vector<8x1xf32>
    %27 = vector.multi_reduction <maximumf>, %26, %cst_26 [2] : vector<8x1x128xf32> to vector<8x1xf32>
    %28 = vector.shape_cast %27 : vector<8x1xf32> to vector<8x1x1xf32>
    %29 = vector.broadcast %28 : vector<8x1x1xf32> to vector<8x1x128xf32>
    %30 = arith.subf %26, %29 : vector<8x1x128xf32>
    %31 = math.exp %30 : vector<8x1x128xf32>
    %cst_27 = arith.constant dense<0.000000e+00> : vector<8x1xf32>
    %32 = vector.multi_reduction <add>, %31, %cst_27 [2] : vector<8x1x128xf32> to vector<8x1xf32>
    %33 = vector.shape_cast %32 : vector<8x1xf32> to vector<8x1x1xf32>
    %34 = vector.broadcast %33 : vector<8x1x1xf32> to vector<8x1x128xf32>
    %35 = arith.divf %31, %34 : vector<8x1x128xf32>
    %c0_28 = arith.constant 0 : index
    %c0_29 = arith.constant 0 : index
    %c0_30 = arith.constant 0 : index
    %36 = vector.load %arg10[%c0_28, %c0_29, %c0_30] : memref<8x1x128xf32, #tpu.memory_space<vmem>>, vector<8x1x128xf32>
    tpu.vector_store %arg10[%c0_28, %c0_29, %c0_30], %35 {strides = array<i32>} : memref<8x1x128xf32, #tpu.memory_space<vmem>>, vector<8x1x128xf32>,
    %c0_31 = arith.constant 0 : index
    %c0_32 = arith.constant 0 : index
    %c0_33 = arith.constant 0 : index
    %37 = vector.load %arg4[%c0_31, %c0_32, %c0_33] : memref<8x1x128xf32, #tpu.memory_space<vmem>>, vector<8x1x128xf32>
    %38 = arith.addf %37, %35 : vector<8x1x128xf32>
    %c0_34 = arith.constant 0 : index
    %c0_35 = arith.constant 0 : index
    %c0_36 = arith.constant 0 : index
    %39 = vector.load %arg11[%c0_34, %c0_35, %c0_36] : memref<8x1x128xf32, #tpu.memory_space<vmem>>, vector<8x1x128xf32>
    tpu.vector_store %arg11[%c0_34, %c0_35, %c0_36], %38 {strides = array<i32>} : memref<8x1x128xf32, #tpu.memory_space<vmem>>, vector<8x1x128xf32>,
    return
  }
  func.func @transform_0(%arg0: i32) -> (i32, i32, i32) {
    %c0_i32 = arith.constant 0 : i32
    %c0_i32_0 = arith.constant 0 : i32
    %c0_i32_1 = arith.constant 0 : i32
    return %arg0, %c0_i32, %c0_i32_0 : i32, i32, i32
  }
  func.func @transform_1(%arg0: i32) -> (i32, i32, i32) {
    %c0_i32 = arith.constant 0 : i32
    %c0_i32_0 = arith.constant 0 : i32
    %c0_i32_1 = arith.constant 0 : i32
    return %arg0, %c0_i32, %c0_i32_0 : i32, i32, i32
  }
  func.func @transform_2(%arg0: i32) -> (i32, i32, i32) {
    %c0_i32 = arith.constant 0 : i32
    %c0_i32_0 = arith.constant 0 : i32
    %c0_i32_1 = arith.constant 0 : i32
    return %arg0, %c0_i32, %c0_i32_0 : i32, i32, i32
  }
  func.func @transform_3(%arg0: i32) -> (i32, i32, i32) {
    %c0_i32 = arith.constant 0 : i32
    %c0_i32_0 = arith.constant 0 : i32
    %c0_i32_1 = arith.constant 0 : i32
    return %arg0, %c0_i32, %c0_i32_0 : i32, i32, i32
  }
  func.func @transform_4(%arg0: i32) -> (i32, i32, i32) {
    %c0_i32 = arith.constant 0 : i32
    %c0_i32_0 = arith.constant 0 : i32
    %c0_i32_1 = arith.constant 0 : i32
    return %arg0, %c0_i32, %c0_i32_0 : i32, i32, i32
  }
  func.func @transform_5(%arg0: i32) -> (i32, i32, i32) {
    %c0_i32 = arith.constant 0 : i32
    %c0_i32_0 = arith.constant 0 : i32
    %c0_i32_1 = arith.constant 0 : i32
    %c0_i32_2 = arith.constant 0 : i32
    return %c0_i32, %c0_i32_0, %c0_i32_1 : i32, i32, i32
  }
  func.func @transform_6(%arg0: i32) -> (i32, i32, i32) {
    %c0_i32 = arith.constant 0 : i32
    %c0_i32_0 = arith.constant 0 : i32
    %c0_i32_1 = arith.constant 0 : i32
    %c0_i32_2 = arith.constant 0 : i32
    return %c0_i32, %c0_i32_0, %c0_i32_1 : i32, i32, i32
  }
  func.func @transform_7(%arg0: i32) -> (i32, i32, i32) {
    %c0_i32 = arith.constant 0 : i32
    %c0_i32_0 = arith.constant 0 : i32
    %c0_i32_1 = arith.constant 0 : i32
    %c0_i32_2 = arith.constant 0 : i32
    return %c0_i32, %c0_i32_0, %c0_i32_1 : i32, i32, i32
  }
  func.func @transform_8(%arg0: i32) -> (i32, i32, i32) {
    %c0_i32 = arith.constant 0 : i32
    %c0_i32_0 = arith.constant 0 : i32
    %c0_i32_1 = arith.constant 0 : i32
    %c0_i32_2 = arith.constant 0 : i32
    return %c0_i32, %c0_i32_0, %c0_i32_1 : i32, i32, i32
  }
  func.func @transform_9(%arg0: i32) -> (i32, i32, i32) {
    %c0_i32 = arith.constant 0 : i32
    %c0_i32_0 = arith.constant 0 : i32
    %c0_i32_1 = arith.constant 0 : i32
    return %arg0, %c0_i32, %c0_i32_0 : i32, i32, i32
  }
  func.func @transform_10(%arg0: i32) -> (i32, i32, i32) {
    %c0_i32 = arith.constant 0 : i32
    %c0_i32_0 = arith.constant 0 : i32
    %c0_i32_1 = arith.constant 0 : i32
    return %arg0, %c0_i32, %c0_i32_0 : i32, i32, i32
  }
}

</mosaic_0001>

<bundles_post_ra>
// kernel: tpu_custom_call.1
= control target key start
LH: loop header
LB: loop body
LE: loop exit
PB: predicated region body
PF: predicated region fallthrough
CT: control target
= control target key end

     0   :  { %s6003_s0 = inlined_call_operand.hbm [shape: f32[32,128,128], index: 0, kind: input, shape index: {}]   ;;  %s6004_s1 = inlined_call_operand.hbm [shape: f32[32,1,128], index: 1, kind: input, shape index: {}]   ;;  %s6005_s2 = inlined_call_operand.hbm [shape: f32[32,1,128], index: 2, kind: input, shape index: {}]   ;;  %s6006_s3 = inlined_call_operand.hbm [shape: f32[32,136], index: 3, kind: input, shape index: {}]   ;;  %s6007_s4 = inlined_call_operand.hbm [shape: f32[136,128], index: 4, kind: input, shape index: {}]   ;;  %s6008_s5 = inlined_call_operand.hbm [shape: f32[1,1,128], index: 5, kind: input, shape index: {}]   ;;  %s6009_s6 = inlined_call_operand.hbm [shape: f32[1,1,128], index: 6, kind: input, shape index: {}]   ;;  %s6010_s7 = inlined_call_operand.hbm [shape: f32[1,1,128], index: 7, kind: input, shape index: {}]   ;;  %s6011_s8 = inlined_call_operand.hbm [shape: f32[32,1,128], index: 8, kind: output, shape index: {0}]   ;;  %s6012_s9 = inlined_call_operand.hbm [shape: f32[32,1,128], index: 9, kind: output, shape index: {1}]  }
   0x1   :  { %6036 = sst [smem:[#allocation44_spill]] %s6004_s1 }
   0x2   :  { %6037 = sst [smem:[#allocation45_spill]] %s6007_s4 }
   0x3   :  { %6038 = sst [smem:[#allocation46_spill]] %s6008_s5 }
   0x4   :  { %6039 = sst [smem:[#allocation47_spill]] %s6012_s9 }
   0x5   :  { %15 = vsyncpa [#allocation3], 0 }
   0x6   :  { %17 = vsyncpa [#allocation3 + $0x1], 0 }
   0x7   :  { %18 = vsyncpa [#allocation6], 0 }
   0x8   :  { %20 = vsyncpa [#allocation6 + $0x1], 0 }
   0x9   :  { %21 = vsyncpa [#allocation9], 0 }
   0xa   :  { %23 = vsyncpa [#allocation9 + $0x1], 0 }
   0xb   :  { %24 = vsyncpa [#allocation12], 0 }
   0xc   :  { %25 = vsyncpa [#allocation15], 0 }
   0xd   :  { %26 = vsyncpa [#allocation4], 0 }
   0xe   :  { %28 = vsyncpa [#allocation4 + $0x1], 0 }
   0xf   :  { %29 = vsyncpa [#allocation18], 0 }
  0x10   :  { %31 = vsyncpa [#allocation18 + $0x1], 0  ;;  %s4520_s30 = smov 0   ;;  %s4522_s10 = smov 0  }
  0x11   :  { %s4524_s11 = smov 0   ;;  %s4526_s12 = smov 0  }
  0x12 LB: > { %6040 = sst [smem:[#allocation27_spill]] %s4436_s30  ;;  %s4541_s13 = sadd.s32 4294967295, %s4448_s12   ;;  %s4448_s12 = sphi %s4526_s12, %s6102_s12   ;;  %s4444_s11 = sphi %s4524_s11, %s6104_s11   ;;  %s4440_s10 = sphi %s4522_s10, %s6106_s10   ;;  %s4436_s30 = sphi %s4520_s30, %s6105_s30  }
  0x13   : > { %6041 = sst [smem:[#allocation28_spill]] %s4444_s11  ;;  %s3236_s14 = sadd.s32 4294967294, %s4448_s12  }
  0x14   : > { %p57_p0 = scmp.ne.s32.totalorder %s4440_s10, %s4436_s30  ;;  %p6018_p1 = scmp.eq.s32.totalorder %s4541_s13, 0 }
  0x15   : > { %p243_p2 = scmp.eq.s32.totalorder %s4541_s13, 3  ;;  %p249_p3 = scmp.eq.s32.totalorder %s3236_s14, 3 }
  0x16   : > { %p4550_p4 = por %p6018_p1, %p57_p0  ;;  %p3237_p5 = scmp.ge.s32.totalorder %s4448_s12, 1 }
  0x17   : > { %p4555_p6 = por %p249_p3, %p57_p0  ;;  %p282_p7 = scmp.lt.s32.totalorder %s4448_s12, 5 }
  0x18   : > { %s6042_s15 = scalar_select %p4550_p4, 1, 0 }
  0x19   : > { %s6043_s16 = scalar_select %p4555_p6, 1, 0 }
  0x1a   : > { %p4560_p8 = pnand %p3237_p5, %p282_p7  ;;  %s4450_s18 = smov [#allocation10]  }
  0x1b   : > { %6044 = sst [smem:[#allocation29_spill]] %s6043_s16  ;;  %s294_s19 = sshll.u32 %s4450_s18, 4  ;;  %s295_s19 = int_to_ptr.vmem [resolvable:$true] %s294_s19 }
  0x1c   : > { %s6045_s17 = scalar_select %p4560_p8, 1, 0 }
  0x1d   : > { %p3728_p9 = pneg %p4560_p8  ;;  %s4451_s21 = smov [#allocation11]  }
  0x1e   : > { %s308_s22 = sshll.u32 %s4451_s21, 4  ;;  %s4129_s23 = scalar_lea.vmem %s295_s19, 2176  ;;  %s309_s22 = int_to_ptr.vmem [resolvable:$true] %s308_s22 }
  0x1f   : > { %p4568_p10 = pnand %p3728_p9, %p6018_p1  ;;  %p4130_p12 = scmp.ne.s32.totalorder %s295_s19, %s4129_s23 }
  0x20   : > { %p4137_p3 = scmp.lt.s32.totalorder %s295_s19, %s295_s19  ;;  %p4138_p5 = scmp.lt.s32.totalorder %s4129_s23, %s4129_s23 }
  0x21   : > { %s6046_s20 = scalar_select %p4568_p10, 1, 0 }
  0x22   : > { %p6019_p11 = pneg %p4568_p10  ;;  %p4139_p7 = por %p4138_p5, %p4137_p3 }
  0x24   : > { %p4132_p13 = pnand %p4130_p12, %p6019_p11 }
  0x26   : > { %p4133_p0 = pneg %p4132_p13 }
  0x28   : > { %p4140_p9 = pnand %p4139_p7, %p4133_p0 }
  0x2a   : > { %4143 = shalt.err (!%p4140_p9)
}
  0x2b   : > { %s6013_s24 = smov 128   ;;  %s6014_s25 = smov 8  }
  0x2c   : > { %s6047_s4 = sld [smem:[#allocation45_spill]]  ;;  %s4155_s28 = scalar_lea.vmem %s309_s22, 16 }
  0x2d   : > { %p4156_p12 = scmp.ne.s32.totalorder %s309_s22, %s4155_s28  ;;  %s4162_s29 = scalar_lea.vmem %s309_s22, 32 }
  0x2e   : > { %p4163_p0 = scmp.lt.s32.totalorder %s309_s22, %s309_s22  ;;  %p4164_p5 = scmp.lt.s32.totalorder %s4162_s29, %s4155_s28 }
  0x2f   : > { %p4158_p13 = pnand %p4156_p12, %p6019_p11 }
  0x30   : > { %p4165_p7 = por %p4164_p5, %p4163_p0 }
  0x31   : > { %p4159_p3 = pneg %p4158_p13 }
  0x32   : > { %3731 = dma.hbm_to_vmem [thread:$0]  (!%p4568_p10), %s6047_s4, 2176, %s295_s19, [#allocation9], %s6013_s24, %s6013_s24, %s6014_s25  }
  0x33   : > { %p4166_p9 = pnand %p4165_p7, %p4159_p3 }
  0x35   : > { %4169 = shalt.err (!%p4166_p9)
}
  0x36   : > { %s6048_s5 = sld [smem:[#allocation46_spill]]  ;;  %s4594_s19 = sadd.s32 1, %s4448_s12  }
  0x37   : > { %6049 = sst [smem:[#allocation30_spill]] %s4594_s19  ;;  %s44_s21 = sadd.s32 1, %s4444_s11 }
  0x38   : > { %s41_s23 = ssub.s32 %s4448_s12, %s4594_s19  ;;  %p51_p12 = scmp.ne.s32.totalorder %s4444_s11, %s4440_s10 }
  0x39   : > { %p42_p13 = scmp.eq.s32.totalorder %s41_s23, 0  ;;  %p52_p3 = scmp.eq.s32.totalorder %s4448_s12, 0 }
  0x3a   : > { %p4604_p0 = por %p243_p2, %p51_p12  ;;  %p3765_p5 = scmp.lt.s32.totalorder %s4448_s12, 4 }
  0x3b   : > { %s4610_s27 = scalar_select %p42_p13, %s4444_s11, %s44_s21  }
  0x3c   : > { %3734 = dma.hbm_to_vmem [thread:$0]  (!%p4568_p10), %s6048_s5, 16, %s309_s22, [#allocation12]  }
  0x3d   : > { %s6050_s26 = scalar_select %p4604_p0, 1, 0 }
  0x3e   : > { %6051 = sst [smem:[#allocation31_spill]] %s4610_s27  ;;  %p53_p7 = por %p52_p3, %p51_p12 }
  0x3f   : > { %s4613_s22 = sand.u32 1, %s4444_s11   ;;  %s6020_s28 = sand.u32 1, %s4448_s12  }
  0x40   : > { %s6016_s29 = sshll.u32 %s4613_s22, 3  ;;  %p4617_p9 = pnand %p3765_p5, %p53_p7 }
  0x41   : > { %s6017_s18 = sshll.u32 %s4448_s12, 7  ;;  %s6053_s1 = sld [smem:[#allocation44_spill]] }
  0x42   : > { %s367_s21 = scalar_lea.vmem [#allocation5], %s6016_s29  ;;  %s4635_s5 = scalar_lea.sflag [#allocation6], %s6020_s28 }
  0x43   : > { %s374_s4 = sshll.u32 %s367_s21, 4  ;;  %p4641_p12 = pneg %p4617_p9  ;;  %s4631_s4 = int_to_ptr.vmem [resolvable:$true] %s374_s4 }
  0x47   : > { %s4627_s25 = scalar_lea.hbm %s6053_s1, %s6017_s18  ;;  %s4175_s21 = scalar_lea.hbm %s6053_s1, 512 }
  0x48   : > { %s4170_s27 = scalar_lea.hbm %s4627_s25, 128  ;;  %p4176_p5 = scmp.lt.s32.totalorder %s4627_s25, %s6053_s1 }
  0x49   : > { %p4171_p2 = scmp.ne.s32.totalorder %s4627_s25, %s4170_s27  ;;  %p4177_p7 = scmp.lt.s32.totalorder %s4175_s21, %s4170_s27 }
  0x4b   : > { %p4173_p13 = pnand %p4641_p12, %p4171_p2  ;;  %p4178_p1 = por %p4177_p7, %p4176_p5 }
  0x4d   : > { %p4174_p3 = pneg %p4173_p13 }
  0x4f   : > { %p4179_p11 = pnand %p4178_p1, %p4174_p3 }
  0x51   : > { %4182 = shalt.err (!%p4179_p11)
}
  0x52   : > { %s4183_s28 = scalar_lea.vmem %s4631_s4, 128  ;;  %s4454_s19 = smov [#allocation5]  }
  0x53   : > { %p4184_p6 = scmp.ne.s32.totalorder %s4631_s4, %s4183_s28  ;;  %s4188_s24 = sshll.u32 %s4454_s19, 4  ;;  %s4189_s24 = int_to_ptr.vmem [resolvable:$false] %s4188_s24 }
  0x54   : > { %s4190_s23 = scalar_lea.vmem %s4189_s24, 256  ;;  %p4191_p0 = scmp.lt.s32.totalorder %s4631_s4, %s4189_s24 }
  0x55   : > { %p4186_p2 = pnand %p4184_p6, %p4641_p12  ;;  %p4192_p4 = scmp.lt.s32.totalorder %s4190_s23, %s4183_s28 }
  0x57   : > { %p4187_p13 = pneg %p4186_p2  ;;  %p4193_p8 = por %p4192_p4, %p4191_p0 }
  0x59   : > { %p4194_p10 = pnand %p4193_p8, %p4187_p13 }
  0x5b   : > { %4197 = shalt.err (!%p4194_p10)
}
  0x5c   : > { %s6031_s27 = smov 16   ;;  %s4456_s29 = smov 1  }
  0x5d   : > { %3747 = dma.hbm_to_vmem [thread:$0]  (!%p4617_p9), %s4627_s25, 128, %s4631_s4, %s4635_s5, %s6031_s27, %s6031_s27, %s4456_s29  }
  0x5e   : > { %s6055_s19 = sshll.u32 %s4448_s12, 7  ;;  %s6056_s24 = sshll.u32 %s4613_s22, 3 }
  0x5f   : > { %s4672_s21 = scalar_lea.hbm %s6005_s2, %s6055_s19  ;;  %s388_s23 = scalar_lea.vmem [#allocation7], %s6056_s24 }
  0x60   : > { %s395_s1 = sshll.u32 %s388_s23, 4  ;;  %s4457_s16 = smov [#allocation13]   ;;  %s4676_s1 = int_to_ptr.vmem [resolvable:$true] %s395_s1 }
  0x61   : > { %s319_s30 = sshll.u32 %s4457_s16, 4  ;;  %p6057_p4 = scmp.ne.s32.totalorder %s6046_s20, 0  ;;  %s320_s30 = int_to_ptr.vmem [resolvable:$true] %s319_s30 }
  0x62   : > { %s4209_s9 = scalar_lea.vmem %s320_s30, 16  ;;  %s4216_s4 = scalar_lea.vmem %s320_s30, 32 }
  0x63   : > { %p4210_p1 = scmp.ne.s32.totalorder %s320_s30, %s4209_s9  ;;  %p6058_p6 = pneg %p6057_p4 }
  0x64   : > { %p4217_p11 = scmp.lt.s32.totalorder %s320_s30, %s320_s30  ;;  %p4218_p0 = scmp.lt.s32.totalorder %s4216_s4, %s4209_s9 }
  0x65   : > { %p4212_p8 = pnand %p4210_p1, %p6058_p6 }
  0x66   : > { %p4219_p3 = por %p4218_p0, %p4217_p11 }
  0x67   : > { %p4213_p10 = pneg %p4212_p8 }
  0x69   : > { %p4220_p5 = pnand %p4219_p3, %p4213_p10 }
  0x6b   : > { %4223 = shalt.err (!%p4220_p5)
}
  0x6c   : > { %3737 = dma.hbm_to_vmem [thread:$0]  (!%p6057_p4), %s6009_s6, 16, %s320_s30, [#allocation12]  }
  0x6d   : > { %s4458_s16 = smov [#allocation14]   ;;  %s3243_s28 = sshll.u32 %s4613_s22, 10 }
  0x6e   : > { %s330_s18 = sshll.u32 %s4458_s16, 4  ;;  %p6059_p2 = pmov %p6058_p6  ;;  %s331_s18 = int_to_ptr.vmem [resolvable:$true] %s330_s18 }
  0x6f   : > { %s4235_s24 = scalar_lea.vmem %s331_s18, 16  ;;  %s4242_s9 = scalar_lea.vmem %s331_s18, 32 }
  0x70   : > { %p4236_p7 = scmp.ne.s32.totalorder %s331_s18, %s4235_s24  ;;  %p4243_p6 = scmp.lt.s32.totalorder %s331_s18, %s331_s18 }
  0x71   : > { %p4244_p8 = scmp.lt.s32.totalorder %s4242_s9, %s4235_s24 }
  0x72   : > { %p4238_p13 = pnand %p4236_p7, %p6059_p2 }
  0x73   : > { %p4245_p10 = por %p4244_p8, %p4243_p6 }
  0x74   : > { %p4239_p1 = pneg %p4238_p13 }
  0x76   : > { %p4246_p11 = pnand %p4245_p10, %p4239_p1 }
  0x78   : > { %4249 = shalt.err (!%p4246_p11)
}
  0x79   : > { %3740 = dma.hbm_to_vmem [thread:$0]  (!%p6057_p4), %s6010_s7, 16, %s331_s18, [#allocation15]  }
  0x7a   : > { %s3278_s4 = sshll.u32 %s4448_s12, 14  ;;  %s345_s24 = scalar_lea.vmem [#allocation2], %s3243_s28 }
  0x7b   : > { %s4699_s16 = scalar_lea.hbm %s6003_s0, %s3278_s4  ;;  %s353_s9 = sshll.u32 %s345_s24, 4  ;;  %s4701_s9 = int_to_ptr.vmem [resolvable:$true] %s353_s9 }
  0x7c   : > { %s342_s20 = scalar_lea.sflag [#allocation3], %s4613_s22  ;;  %s4250_s27 = scalar_lea.hbm %s4699_s16, 16384 }
  0x7d   : > { %p4251_p0 = scmp.ne.s32.totalorder %s4699_s16, %s4250_s27  ;;  %s4255_s30 = scalar_lea.hbm %s6003_s0, 65536 }
  0x7e   : > { %p4256_p4 = scmp.lt.s32.totalorder %s4699_s16, %s6003_s0  ;;  %p4257_p7 = scmp.lt.s32.totalorder %s4255_s30, %s4250_s27 }
  0x7f   : > { %p4253_p3 = pnand %p4251_p0, %p4641_p12 }
  0x80   : > { %p4258_p2 = por %p4257_p7, %p4256_p4 }
  0x81   : > { %p4254_p5 = pneg %p4253_p3 }
  0x83   : > { %p4259_p13 = pnand %p4258_p2, %p4254_p5 }
  0x85   : > { %4262 = shalt.err (!%p4259_p13)
}
  0x86   : > { %s4263_s28 = scalar_lea.vmem %s4701_s9, 16384  ;;  %s4459_s19 = smov [#allocation2]  }
  0x87   : > { %p4264_p1 = scmp.ne.s32.totalorder %s4701_s9, %s4263_s28  ;;  %s4268_s24 = sshll.u32 %s4459_s19, 4  ;;  %s4269_s24 = int_to_ptr.vmem [resolvable:$false] %s4268_s24 }
  0x88   : > { %s4270_s18 = scalar_lea.vmem %s4269_s24, 32768  ;;  %p4271_p10 = scmp.lt.s32.totalorder %s4701_s9, %s4269_s24 }
  0x89   : > { %p4266_p6 = pnand %p4264_p1, %p4641_p12  ;;  %p4272_p11 = scmp.lt.s32.totalorder %s4270_s18, %s4263_s28 }
  0x8b   : > { %p4267_p8 = pneg %p4266_p6  ;;  %p4273_p0 = por %p4272_p11, %p4271_p10 }
  0x8d   : > { %p4274_p3 = pnand %p4273_p0, %p4267_p8 }
  0x8f   : > { %4277 = shalt.err (!%p4274_p3)
}
  0x90   : > { %s6060_s27 = smov 8   ;;  %s6061_s23 = smov 128  }
  0x91   : > { %3744 = dma.hbm_to_vmem [thread:$0]  (!%p4617_p9), %s4699_s16, 16384, %s4701_s9, %s342_s20, %s6061_s23, %s6061_s23, %s6060_s27  }
  0x92   : > { %s4278_s30 = scalar_lea.hbm %s4672_s21, 128  ;;  %s4283_s28 = scalar_lea.hbm %s6005_s2, 512 }
  0x93   : > { %p4279_p5 = scmp.ne.s32.totalorder %s4672_s21, %s4278_s30  ;;  %p4284_p2 = scmp.lt.s32.totalorder %s4672_s21, %s6005_s2 }
  0x94   : > { %p4285_p13 = scmp.lt.s32.totalorder %s4283_s28, %s4278_s30 }
  0x95   : > { %p4281_p4 = pnand %p4279_p5, %p4641_p12 }
  0x96   : > { %p4286_p1 = por %p4285_p13, %p4284_p2 }
  0x97   : > { %p4282_p7 = pneg %p4281_p4 }
  0x99   : > { %p4287_p6 = pnand %p4286_p1, %p4282_p7 }
  0x9b   : > { %4290 = shalt.err (!%p4287_p6)
}
  0x9c   : > { %s4291_s16 = scalar_lea.vmem %s4676_s1, 128  ;;  %s4460_s9 = smov [#allocation7]  }
  0x9d   : > { %p4292_p8 = scmp.ne.s32.totalorder %s4676_s1, %s4291_s16  ;;  %s4296_s20 = sshll.u32 %s4460_s9, 4  ;;  %s4297_s20 = int_to_ptr.vmem [resolvable:$false] %s4296_s20 }
  0x9e   : > { %s4298_s18 = scalar_lea.vmem %s4297_s20, 256  ;;  %p4299_p0 = scmp.lt.s32.totalorder %s4676_s1, %s4297_s20 }
  0x9f   : > { %p4294_p10 = pnand %p4292_p8, %p4641_p12  ;;  %p4300_p3 = scmp.lt.s32.totalorder %s4298_s18, %s4291_s16 }
  0xa1   : > { %p4295_p11 = pneg %p4294_p10  ;;  %p4301_p5 = por %p4300_p3, %p4299_p0 }
  0xa3   : > { %p4302_p4 = pnand %p4301_p5, %p4295_p11 }
  0xa5   : > { %4305 = shalt.err (!%p4302_p4)
}
  0xa6   : > { %s6062_s27 = smov 16   ;;  %s3253_s23 = sshll.u32 %s4613_s22, 4 }
  0xa7   : > { %3750 = dma.hbm_to_vmem [thread:$0]  (!%p4617_p9), %s4672_s21, 128, %s4676_s1, %s4635_s5, %s6062_s27, %s6062_s27, %s4456_s29  }
  0xa8   : > { %s3281_s30 = sshll.u32 %s4448_s12, 8  ;;  %s409_s19 = scalar_lea.vmem [#allocation8], %s3253_s23 }
  0xa9   : > { %s4756_s28 = scalar_lea.hbm %s6006_s3, %s3281_s30  ;;  %s417_s24 = sshll.u32 %s409_s19, 4  ;;  %s418_s24 = int_to_ptr.vmem [resolvable:$true] %s417_s24 }
  0xaa   : > { %s6063_s16 = sand.u32 1, %s4448_s12   ;;  %s4306_s20 = scalar_lea.hbm %s4756_s28, 256 }
  0xab   : > { %s406_s9 = scalar_lea.sflag [#allocation9], %s6063_s16  ;;  %p4307_p7 = scmp.ne.s32.totalorder %s4756_s28, %s4306_s20 }
  0xac   : > { %s4311_s22 = scalar_lea.hbm %s6006_s3, 1024  ;;  %p4312_p1 = scmp.lt.s32.totalorder %s4756_s28, %s6006_s3 }
  0xad   : > { %p4309_p2 = pnand %p4307_p7, %p4641_p12  ;;  %p4313_p6 = scmp.lt.s32.totalorder %s4311_s22, %s4306_s20 }
  0xaf   : > { %p4310_p13 = pneg %p4309_p2  ;;  %p4314_p8 = por %p4313_p6, %p4312_p1 }
  0xb1   : > { %p4315_p10 = pnand %p4314_p8, %p4310_p13 }
  0xb3   : > { %4318 = shalt.err (!%p4315_p10)
}
  0xb4   : > { %s4319_s18 = scalar_lea.vmem %s418_s24, 256  ;;  %s4461_s27 = smov [#allocation8]  }
  0xb5   : > { %p4320_p11 = scmp.ne.s32.totalorder %s418_s24, %s4319_s18  ;;  %s4324_s23 = sshll.u32 %s4461_s27, 4  ;;  %s4325_s23 = int_to_ptr.vmem [resolvable:$false] %s4324_s23 }
  0xb6   : > { %s4326_s30 = scalar_lea.vmem %s4325_s23, 512  ;;  %p4327_p5 = scmp.lt.s32.totalorder %s418_s24, %s4325_s23 }
  0xb7   : > { %p4322_p0 = pnand %p4320_p11, %p4641_p12  ;;  %p4328_p4 = scmp.lt.s32.totalorder %s4326_s30, %s4319_s18 }
  0xb9   : > { %p4323_p3 = pneg %p4322_p0  ;;  %p4329_p7 = por %p4328_p4, %p4327_p5 }
  0xbb   : > { %p4330_p2 = pnand %p4329_p7, %p4323_p3 }
  0xbd   : > { %4333 = shalt.err (!%p4330_p2)
}
  0xbe   : > { %3753 = dma.hbm_to_vmem [thread:$0]  (!%p4617_p9), %s4756_s28, 256, %s418_s24, %s406_s9  }
  0xbf   : > { %p6064_p13 = scmp.ne.s32.totalorder %s6045_s17, 0 }
  0xc1   : > { %426 = sbr.rel (%p6064_p13) target bundleno = 1595 (0x63b), region = 52 }
  0xc6   : > { %s4779_s11 = sand.u32 1, %s4440_s10   ;;  %p6065_p12 = scmp.ne.s32.totalorder %s6042_s15, 0 }
  0xc7   : > { %s3257_s25 = sshll.u32 %s4779_s11, 10  ;;  %s429_s4 = scalar_lea.sflag [#allocation3], %s4779_s11 }
  0xc8   : > { %s4783_s19 = scalar_lea.vmem [#allocation2], %s3257_s25 }
  0xc9   : > { %4403 = dma.done.wait (%p6065_p12), %s429_s4, 16384  }
  0xca   : > { %4405 = vsyncadd (%p6065_p12), %s429_s4, 4294950912  ;;  %s437_s17 = sand.u32 1, %s4541_s13   ;;  %s4791_s14 = sshll.u32 %s4779_s11, 3 }
  0xcb   : > { %s438_s28 = scalar_lea.sflag [#allocation6], %s437_s17  ;;  %s4794_s24 = scalar_lea.vmem [#allocation5], %s4791_s14 }
  0xcc   : > { %4407 = dma.done.wait (%p6065_p12), %s438_s28, 256  }
  0xcd   : > { %4409 = vsyncadd (%p6065_p12), %s438_s28, 4294967040  ;;  %s3260_s16 = sshll.u32 %s4779_s11, 4  ;;  %s4802_s9 = scalar_lea.vmem [#allocation7], %s4791_s14 }
  0xce   : > { %s456_s20 = scalar_lea.sflag [#allocation9], %s437_s17  ;;  %s4804_s1 = scalar_lea.vmem [#allocation8], %s3260_s16 }
  0xcf   : > { %4411 = dma.done.wait (%p6065_p12), %s456_s20, 256  }
  0xd0   : > { %4413 = vsyncadd (%p6065_p12), %s456_s20, 4294967040  ;;  %p6066_p9 = scmp.eq.s32.totalorder %s4541_s13, 0 }
  0xd2   : > { %4415 = dma.done.wait (%p6066_p9), [#allocation9], 2176   ;;  %p6067_p1 = pmov %p6066_p9 }
  0xd4   : > { %4417 = vsyncadd (%p6067_p1), [#allocation9], 4294965120  ;;  %p6068_p6 = pmov %p6067_p1 }
  0xd5   : > { %p6069_p8 = pmov %p6067_p1 }
  0xd6   : > { %4419 = dma.done.wait (%p6068_p6), [#allocation12], 32  }
  0xd7   : > { %4421 = vsyncadd (%p6069_p8), [#allocation12], 4294967264  ;;  %p6070_p10 = pmov %p6067_p1 }
  0xd8   : > { %p6071_p11 = pmov %p6067_p1 }
  0xd9   : > { %4423 = dma.done.wait (%p6070_p10), [#allocation15], 16  }
  0xda   : > { %4425 = vsyncadd (%p6071_p11), [#allocation15], 4294967280  ;;  %v6032_v0 = vmov 0.0   ;;  %v697_v1 = vld [vmem:[%s4802_s9 + $0x2] sm:$0x1]  ;;  %v550_v5 = vld [vmem:[#allocation10 + $0x68] sm:$0xff] }
  0xdb   : > { %558 = vmatprep.subr.mxu0 %v6032_v0  ;;  %3420 = vmatprep.subr.mxu1 %v6032_v0  ;;  %v695_v2 = vld [vmem:[%s4802_s9] sm:$0x1]  ;;  %v549_v6 = vld [vmem:[#allocation10 + $0x60] sm:$0xff]  ;;  %vm554_vm0 = vcmask 64512   ;;  %v546_v10 = vld [vmem:[#allocation10 + $0x48] sm:$0xff]  ;;  %v4463_v24 = vmov 0  }
  0xdc   : > { %767 = vxpose.xlu1.b32.start.end [1/1] (short) %v697_v1, 128  ;;  %703 = vxpose.xlu0.b32.start.end [1/1] (short) %v695_v2, 128  ;;  %v552_v3 = vld [vmem:[#allocation10 + $0x78] sm:$0xff]  ;;  %v551_v4 = vld [vmem:[#allocation10 + $0x70] sm:$0xff]  ;;  %v545_v11 = vld [vmem:[#allocation10 + $0x40] sm:$0xff]  ;;  %vm4465_vm1 = vmmov 0   ;;  %vm2879_vm3 = vcmask 1040384   ;;  %s5889_s15 = scalar_lea.vmem [#allocation16], %s4791_s14 }
  0xdd   : > { %559 = vmatpush1.msra.mxu0 %v552_v3  ;;  %v548_v7 = vld [vmem:[#allocation10 + $0x58] sm:$0xff]  ;;  %v547_v9 = vld [vmem:[#allocation10 + $0x50] sm:$0xff]  ;;  %v542_v14 = vld [vmem:[#allocation10 + $0x28] sm:$0xff]  ;;  %s5895_s5 = scalar_lea.vmem [#allocation17], %s4791_s14  ;;  %s3282_s22 = sshll.u32 %s4541_s13, 7 }
  0xde   : > { %560 = vmatprep.subr.mxu0 %v6032_v0  ;;  %v536_v8 = vld [vmem:[%s4804_s1 + $0x8] sm:$0xff]  ;;  %v543_v13 = vld [vmem:[#allocation10 + $0x30] sm:$0xff]  ;;  %v541_v15 = vld [vmem:[#allocation10 + $0x20] sm:$0xff]  ;;  %s3011_s29 = sshll.u32 %s5889_s15, 4  ;;  %s5920_s27 = scalar_lea.hbm %s6011_s8, %s3282_s22  ;;  %s5922_s29 = int_to_ptr.vmem [resolvable:$true] %s3011_s29 }
  0xdf   : > { %561 = vmatpush1.msra.mxu0 %v551_v4  ;;  %3267 = vmatprep.mubr.msk.f32.mxu0 %vm554_vm0, %v536_v8  ;;  %v544_v12 = vld [vmem:[#allocation10 + $0x38] sm:$0xff]  ;;  %v539_v17 = vld [vmem:[#allocation10 + $0x10] sm:$0xff]  ;;  %v538_v18 = vld [vmem:[#allocation10 + $0x8] sm:$0xff]  ;;  %s3027_s23 = sshll.u32 %s5895_s5, 4  ;;  %s6097_s25 = sld [smem:[#allocation47_spill]]  ;;  %s5933_s23 = int_to_ptr.vmem [resolvable:$true] %s3027_s23 }
  0xe0   : > { %562 = vmatprep.subr.mxu0 %v6032_v0  ;;  %v540_v16 = vld [vmem:[#allocation10 + $0x18] sm:$0xff]  ;;  %v537_v19 = vld [vmem:[#allocation10] sm:$0xff]  ;;  %s4334_s17 = scalar_lea.vmem %s5922_s29, 128  ;;  %p6098_p3 = scmp.ne.s32.totalorder %s6050_s26, 0 }
  0xe1   : > { %563 = vmatpush1.msra.mxu0 %v550_v5  ;;  %v553_v20 = vld [vmem:[#allocation10 + $0x80] sm:$0xff]  ;;  %v698_v22 = vld [vmem:[%s4802_s9 + $0x3] sm:$0x1]  ;;  %v696_v23 = vld [vmem:[%s4802_s9 + $0x1] sm:$0x1]  ;;  %p4335_p0 = scmp.ne.s32.totalorder %s5922_s29, %s4334_s17  ;;  %s4466_s14 = smov [#allocation16]  }
  0xe2   : > { %564 = vmatprep.subr.mxu0 %v6032_v0  ;;  %v535_v21 = vld [vmem:[%s4804_s1] sm:$0xff]  ;;  %v701_v25 = vld [vmem:[%s4802_s9 + $0x6] sm:$0x1]  ;;  %s4338_s28 = sshll.u32 %s4466_s14, 4  ;;  %s4339_s28 = int_to_ptr.vmem [resolvable:$false] %s4338_s28 }
  0xe3   : > { %565 = vmatpush1.msra.mxu0 %v549_v6  ;;  %p4336_p5 = pnand %p4335_p0, %p6098_p3  ;;  %p4341_p7 = scmp.lt.s32.totalorder %s5922_s29, %s4339_s28 }
  0xe4   : > { %566 = vmatprep.subr.mxu0 %v6032_v0 }
  0xe5   : > { %567 = vmatpush1.msra.mxu0 %v548_v7  ;;  %s5931_s4 = scalar_lea.hbm %s6097_s25, %s3282_s22  ;;  %p4337_p4 = pneg %p4336_p5 }
  0xe6   : > { %568 = vmatprep.subr.mxu0 %v6032_v0 }
  0xe7   : > { %569 = vmatpush1.msra.mxu0 %v547_v9  ;;  %v4464_v9 = vmov 1966171168  }
  0xe8   : > { %570 = vmatprep.subr.mxu0 %v6032_v0 }
  0xe9   : > { %571 = vmatpush1.msra.mxu0 %v546_v10  ;;  %v631_v10 = vunpack.c.l.s4 %v4464_v9 }
  0xea   : > { %572 = vmatprep.subr.mxu0 %v6032_v0 }
  0xeb   : > { %573 = vmatpush1.msra.mxu0 %v545_v11  ;;  %v633_v11 = vlaneseq }
  0xec   : > { %574 = vmatprep.subr.mxu0 %v6032_v0 }
  0xed   : > { %575 = vmatpush1.msra.mxu0 %v544_v12 }
  0xee   : > { %576 = vmatprep.subr.mxu0 %v6032_v0 }
  0xef   : > { %577 = vmatpush1.msra.mxu0 %v543_v13 }
  0xf0   : > { %578 = vmatprep.subr.mxu0 %v6032_v0 }
  0xf1   : > { %579 = vmatpush1.msra.mxu0 %v542_v14  ;;  %v632_v14 = vunpack.c.0.s8 %v631_v10 }
  0xf2   : > { %580 = vmatprep.subr.mxu0 %v6032_v0 }
  0xf3   : > { %581 = vmatpush1.msra.mxu0 %v541_v15  ;;  %v634_v15 = vshrl.u32 %v633_v11, 7 }
  0xf4   : > { %582 = vmatprep.subr.mxu0 %v6032_v0 }
  0xf5   : > { %583 = vmatpush1.msra.mxu0 %v540_v16 }
  0xf6   : > { %584 = vmatprep.subr.mxu0 %v6032_v0 }
  0xf7   : > { %585 = vmatpush1.msra.mxu0 %v539_v17 }
  0xf8   : > { %586 = vmatprep.subr.mxu0 %v6032_v0 }
  0xf9   : > { %587 = vmatpush1.msra.mxu0 %v538_v18  ;;  %v635_v18 = vsub.s32 %v632_v14, %v634_v15 }
  0xfa   : > { %588 = vmatprep.subr.mxu0 %v6032_v0 }
  0xfb   : > { %589 = vmatpush1.msra.mxu0 %v537_v19 }
  0xfc   : > { %620 = vmatprep.subr.mxu0 %v6032_v0 }
  0xfd   : > { %621 = vmatpush2.msra.mxu0 %v553_v20 }
  0xfe   : > { %623 = vmatmul.mubr.f32.vlgmr.msra.gmra.mxu0 %v535_v21  ;;  %3455 = vmatprep.subr.mxu0 %v6032_v0 }
 0x119   : > { %799 = vxpose.xlu1.b32.start.end [1/1] (short) %v698_v22, 128  ;;  %735 = vxpose.xlu0.b32.start.end [1/1] (short) %v696_v23, 128 }
 0x142   : > { %3817 = vset.pattern.permute.xlu0 %v4463_v24 }
 0x156   : > { %895 = vxpose.xlu1.b32.start.end [1/1] (short) %v701_v25, 128 }
 0x158   : > { %v4848_v26 = vpop.trf.xlu0  ;;  %v4850_v27 = vpop.trf.xlu1 }
 0x159   : > { %6072 = vst [vmem:[#allocation32_spill] sm:$0xff] %v4850_v27 }
 0x15c   : > { %v4852_v28 = vpop.trf.xlu0  ;;  %v4854_v29 = vpop.trf.xlu1 }
 0x15d   : > { %6073 = vst [vmem:[#allocation33_spill] sm:$0xff] %v4854_v29 }
 0x160   : > { %v4856_v30 = vpop.trf.xlu0  ;;  %v4858_v31 = vpop.trf.xlu1 }
 0x161   : > { %6074 = vst [vmem:[#allocation34_spill] sm:$0xff] %v4858_v31 }
 0x164   : > { %v4860_v32 = vpop.trf.xlu0  ;;  %v4862_v33 = vpop.trf.xlu1 }
 0x165   : > { %6075 = vst [vmem:[#allocation35_spill] sm:$0xff] %v4862_v33 }
 0x168   : > { %v4864_v34 = vpop.trf.xlu0  ;;  %v4866_v35 = vpop.trf.xlu1 }
 0x169   : > { %6076 = vst [vmem:[#allocation36_spill] sm:$0xff] %v4866_v35 }
 0x16c   : > { %v4868_v36 = vpop.trf.xlu0  ;;  %v4870_v37 = vpop.trf.xlu1 }
 0x170   : > { %v4872_v38 = vpop.trf.xlu0  ;;  %v4874_v39 = vpop.trf.xlu1 }
 0x174   : > { %v4876_v40 = vpop.trf.xlu0  ;;  %v4878_v41 = vpop.trf.xlu1  ;;  %3818 = vset.pattern.permute.xlu1 %v4463_v24 }
 0x178   : > { %v4880_v42 = vpop.trf.xlu0  ;;  %v4882_v43 = vpop.trf.xlu1 }
 0x17c   : > { %v4884_v44 = vpop.trf.xlu0  ;;  %v4886_v45 = vpop.trf.xlu1 }
 0x180   : > { %v4888_v46 = vpop.trf.xlu0  ;;  %v4890_v47 = vpop.trf.xlu1 }
 0x184   : > { %v4892_v48 = vpop.trf.xlu0  ;;  %v4894_v49 = vpop.trf.xlu1 }
 0x188   : > { %v4896_v50 = vpop.trf.xlu0  ;;  %v4898_v51 = vpop.trf.xlu1 }
 0x18c   : > { %v4900_v52 = vpop.trf.xlu0  ;;  %v4902_v53 = vpop.trf.xlu1 }
 0x190   : > { %v733_v54 = vpop.trf.xlu0  ;;  %v4904_v55 = vpop.trf.xlu1 }
 0x194   : > { %v734_v56 = vpop.trf.xlu0  ;;  %v4906_v57 = vpop.trf.xlu1 }
 0x198   : > { %v4908_v58 = vpop.trf.xlu0  ;;  %v4910_v59 = vpop.trf.xlu1 }
 0x199   : > { %6077 = vst [vmem:[#allocation37_spill] sm:$0xff] %v4910_v59 }
 0x19c   : > { %v4912_v60 = vpop.trf.xlu0  ;;  %v4914_v61 = vpop.trf.xlu1 }
 0x19d   : > { %6078 = vst [vmem:[#allocation38_spill] sm:$0xff] %v4914_v61 }
 0x1a0   : > { %v4916_v62 = vpop.trf.xlu0  ;;  %v4918_v63 = vpop.trf.xlu1 }
 0x1a1   : > { %6079 = vst [vmem:[#allocation39_spill] sm:$0xff] %v4918_v63 }
 0x1a4   : > { %v4920_v1 = vpop.trf.xlu0  ;;  %v4922_v2 = vpop.trf.xlu1 }
 0x1a5   : > { %6080 = vst [vmem:[#allocation40_spill] sm:$0xff] %v4922_v2 }
 0x1a8   : > { %v4924_v3 = vpop.trf.xlu0  ;;  %v4926_v4 = vpop.trf.xlu1 }
 0x1a9   : > { %6081 = vst [vmem:[#allocation41_spill] sm:$0xff] %v4926_v4 }
 0x1ac   : > { %v4928_v5 = vpop.trf.xlu0  ;;  %v4930_v6 = vpop.trf.xlu1 }
 0x1b0   : > { %1341 = vperm.xlu1 %3818, %v734_v56   ;;  %v4932_v7 = vpop.trf.xlu0  ;;  %v4934_v8 = vpop.trf.xlu1 }
 0x1b4   : > { %1336 = vperm.xlu1 %3818, %v733_v54   ;;  %v4936_v12 = vpop.trf.xlu0  ;;  %v4938_v13 = vpop.trf.xlu1 }
 0x1b8   : > { %v4940_v16 = vpop.trf.xlu0  ;;  %v4942_v17 = vpop.trf.xlu1 }
 0x1bc   : > { %v4944_v19 = vpop.trf.xlu0  ;;  %v4946_v20 = vpop.trf.xlu1 }
 0x1be   : > { %v624_v21 = vpop.f32.mrf.mxu0 }
 0x1bf   : > { %v629_v22 = vcombine.high %v624_v21, %v624_v21  ;;  %v636_v23 = vrot.slane %v624_v21, %v635_v18 }
 0x1c0   : > { %v761_v24 = vpop.trf.xlu0  ;;  %v4948_v25 = vpop.trf.xlu1 }
 0x1c1   : > { %v643_v54 = vrot.slane %v629_v22, %v635_v18  ;;  %v644_v56 = vcombine.high %v636_v23, %v636_v23  ;;  %v4950_v9 = vrot.slane %v636_v23, %v635_v18  ;;  %v626_v10 = vpop.f32.mrf.mxu0  ;;  %v4960_v22 = vld [vmem:[#allocation13] sm:$0x1] }
 0x1c3   : > { %v645_v11 = vcombine.high %v643_v54, %v643_v54  ;;  %v659_v0 = vrot.slane %v643_v54, %v635_v18  ;;  %v4952_v59 = vrot.slane %v644_v56, %v635_v18  ;;  %v674_v14 = vcombine.high %v4950_v9, %v4950_v9 }
 0x1c4   : > { %v762_v27 = vpop.trf.xlu0  ;;  %v4956_v61 = vpop.trf.xlu1  ;;  %v4964_v54 = vsub.s32 0, %v634_v15 }
 0x1c5   : > { %v673_v29 = vrot.slane %v645_v11, %v635_v18  ;;  %v675_v21 = vcombine.high %v659_v0, %v659_v0  ;;  %v676_v63 = vcombine.high %v4952_v59, %v4952_v59  ;;  %v689_v23 = vadd.f32 %v4960_v22, %v674_v14 }
 0x1c6   : > { %v691_v10 = vadd.f32 %v4960_v22, %v659_v0 }
 0x1c7   : > { %v677_v56 = vcombine.high %v673_v29, %v673_v29  ;;  %v690_v31 = vadd.f32 %v4960_v22, %v676_v63  ;;  %v692_v2 = vadd.f32 %v4960_v22, %v673_v29  ;;  %v693_v33 = vadd.f32 %v4960_v22, %v675_v21 }
 0x1c8   : > { %v763_v18 = vpop.trf.xlu0  ;;  %v4969_v11 = vpop.trf.xlu1  ;;  %v4972_v4 = vrot.slane %v689_v23, %v4964_v54  ;;  %v4975_v35 = vrot.slane %v691_v10, %v4964_v54 }
 0x1c9   : > { %v694_v0 = vadd.f32 %v4960_v22, %v677_v56  ;;  %v4979_v15 = vrot.slane %v690_v31, %v4964_v54  ;;  %v4982_v63 = vrot.slane %v692_v2, %v4964_v54  ;;  %v4985_v29 = vrot.slane %v693_v33, %v4964_v54 }
 0x1ca   : > { %6082 = vst [vmem:[#allocation42_spill] sm:$0xff] %v4972_v4  ;;  %6083 = vst [vmem:[#allocation43_spill] sm:$0xff] %v4975_v35 }
 0x1cb   : > { %v4988_v14 = vrot.slane %v694_v0, %v4964_v54 }
 0x1cc   : > { %v764_v21 = vpop.trf.xlu0  ;;  %v4990_v23 = vpop.trf.xlu1 }
 0x1d0   : > { %v765_v4 = vpop.trf.xlu0  ;;  %v4992_v10 = vpop.trf.xlu1 }
 0x1d1   : > { %1416 = vperm.xlu1 %3818, %v765_v4  }
 0x1d4   : > { %v766_v56 = vpop.trf.xlu0  ;;  %v830_v35 = vpop.trf.xlu1 }
 0x1d5   : > { %1331 = vperm.xlu1 %3818, %v4900_v52   ;;  %1421 = vperm.xlu0 %3817, %v766_v56  }
 0x1d8   : > { %v4995_v31 = vpop.trf.xlu1 }
 0x1d9   : > { %1411 = vperm.xlu1 %3818, %v764_v21   ;;  %1291 = vperm.xlu0 %3817, %v4868_v36   ;;  %v989_v21 = vld [vmem:[%s4783_s19 + $0xf0] sm:$0xff] }
 0x1dc   : > { %v4998_v33 = vpop.trf.xlu1 }
 0x1dd   : > { %1326 = vperm.xlu1 %3818, %v4896_v50   ;;  %1286 = vperm.xlu0 %3817, %v4864_v34   ;;  %v974_v50 = vld [vmem:[%s4783_s19 + $0x78] sm:$0xff] }
 0x1e0   : > { %v5002_v2 = vpop.trf.xlu1 }
 0x1e1   : > { %1406 = vperm.xlu1 %3818, %v763_v18   ;;  %1281 = vperm.xlu0 %3817, %v4860_v32   ;;  %v990_v18 = vld [vmem:[%s4783_s19 + $0xf8] sm:$0xff] }
 0x1e4   : > { %v5005_v4 = vpop.trf.xlu1 }
 0x1e5   : > { %1321 = vperm.xlu1 %3818, %v4892_v48   ;;  %1276 = vperm.xlu0 %3817, %v4856_v30  }
 0x1e8   : > { %v5009_v52 = vpop.trf.xlu1 }
 0x1e9   : > { %1401 = vperm.xlu1 %3818, %v762_v27   ;;  %1271 = vperm.xlu0 %3817, %v4852_v28  }
 0x1ec   : > { %v5012_v36 = vpop.trf.xlu1 }
 0x1ed   : > { %1316 = vperm.xlu1 %3818, %v4888_v46   ;;  %1266 = vperm.xlu0 %3817, %v4848_v26  }
 0x1f0   : > { %v5016_v34 = vpop.trf.xlu1 }
 0x1f1   : > { %1396 = vperm.xlu1 %3818, %v761_v24   ;;  %1501 = vperm.xlu0 %3817, %v4906_v57   ;;  %v5059_v57 = vld [vmem:[#allocation11] ss:$0 sm:$0xff]  ;;  %v688_v24 = vadd.f32 %v4960_v22, %v4952_v59 }
 0x1f3   : > { %v5084_v0 = vrot.slane %v688_v24, %v4964_v54 }
 0x1f4   : > { %v5021_v30 = vpop.trf.xlu1 }
 0x1f5   : > { %1311 = vperm.xlu1 %3818, %v4884_v44   ;;  %1476 = vperm.xlu0 %3817, %v4890_v47   ;;  %v699_v44 = vld [vmem:[%s4802_s9 + $0x4] sm:$0x1] }
 0x1f8   : > { %v5024_v27 = vpop.trf.xlu1 }
 0x1f9   : > { %1391 = vperm.xlu1 %3818, %v4944_v19  }
 0x1fc   : > { %v5028_v26 = vpop.trf.xlu1 }
 0x1fd   : > { %1306 = vperm.xlu1 %3818, %v4880_v42  }
 0x200   : > { %v5031_v28 = vpop.trf.xlu1 }
 0x201   : > { %1386 = vperm.xlu1 %3818, %v4940_v16  }
 0x204   : > { %v5035_v32 = vpop.trf.xlu1 }
 0x205   : > { %1301 = vperm.xlu1 %3818, %v4876_v40  }
 0x208   : > { %v5039_v42 = vpop.trf.xlu1 }
 0x209   : > { %1381 = vperm.xlu1 %3818, %v4936_v12  }
 0x20c   : > { %v5043_v40 = vpop.trf.xlu1 }
 0x20d   : > { %1296 = vperm.xlu1 %3818, %v4872_v38   ;;  %v687_v38 = vadd.f32 %v4960_v22, %v4950_v9  ;;  %v972_v9 = vld [vmem:[%s4783_s19 + $0x68] sm:$0xff] }
 0x20f   : > { %v5055_v48 = vrot.slane %v687_v38, %v4964_v54  ;;  %v1165_v54 = vadd.f32 %v5084_v0, %v989_v21  ;;  %v988_v38 = vld [vmem:[%s4783_s19 + $0xe8] sm:$0xff] }
 0x210   : > { %v5046_v46 = vpop.trf.xlu1 }
 0x211   : > { %1376 = vperm.xlu1 %3818, %v4932_v7  }
 0x213   : > { %831 = vxpose.xlu0.b32.start.end [1/1] (short) %v699_v44, 128 }
 0x214   : > { %v5052_v47 = vpop.trf.xlu1 }
 0x215   : > { %1371 = vperm.xlu1 %3818, %v4928_v5   ;;  %v973_v5 = vld [vmem:[%s4783_s19 + $0x70] sm:$0xff] }
 0x219   : > { %1366 = vperm.xlu1 %3818, %v4924_v3  }
 0x21d   : > { %1361 = vperm.xlu1 %3818, %v4920_v1   ;;  %v1150_v1 = vadd.f32 %v5055_v48, %v974_v50 }
 0x221   : > { %1356 = vperm.xlu1 %3818, %v4916_v62  }
 0x225   : > { %1351 = vperm.xlu1 %3818, %v4912_v60   ;;  %v1149_v60 = vadd.f32 %v5055_v48, %v973_v5  ;;  %v1164_v5 = vadd.f32 %v5084_v0, %v988_v38  ;;  %v985_v38 = vld [vmem:[%s4783_s19 + $0xd0] sm:$0xff] }
 0x229   : > { %1346 = vperm.xlu1 %3818, %v4908_v58   ;;  %v6084_v58 = vmov 0.0  }
 0x22a   : > { %3452 = vmatprep.mubr.msk.f32.mxu1 %vm4465_vm1, %v6084_v58  ;;  %3487 = vmatprep.mubr.msk.f32.mxu0 %vm4465_vm1, %v6084_v58 }
 0x22b   : > { %v1342_v3 = vpop.permute.xlu1 %1341 }
 0x22c   : > { %v1925_v62 = vmul.f32 %v5059_v57, %v1342_v3 }
 0x22d   : > { %1581 = vperm.xlu1 %3818, %v830_v35  }
 0x22e   : > { %v2053_v7 = vadd.f32 %v1925_v62, %v1150_v1  ;;  %v971_v1 = vld [vmem:[%s4783_s19 + $0x60] sm:$0xff] }
 0x22f   : > { %v1337_v12 = vpop.permute.xlu1 %1336  ;;  %v1147_v62 = vadd.f32 %v5055_v48, %v971_v1 }
 0x230   : > { %3819 = vtanh.f32 %v2053_v7  ;;  %v1924_v16 = vmul.f32 %v5059_v57, %v1337_v12 }
 0x231   : > { %1496 = vperm.xlu1 %3818, %v4904_v55  }
 0x232   : > { %v2052_v19 = vadd.f32 %v1924_v16, %v1149_v60  ;;  %v987_v60 = vld [vmem:[%s4783_s19 + $0xe0] sm:$0xff] }
 0x234   : > { %3821 = vtanh.f32 %v2052_v19 }
 0x235   : > { %1576 = vperm.xlu1 %3818, %v4992_v10  }
 0x239   : > { %1491 = vperm.xlu1 %3818, %v4902_v53  }
 0x23d   : > { %v3820_v35 = vpop.eup %3819  ;;  %1571 = vperm.xlu1 %3818, %v4990_v23   ;;  %v1148_v23 = vadd.f32 %v5055_v48, %v972_v9 }
 0x23e   : > { %3421 = vmatpush3.xpose.msra.mxu1 %v3820_v35 }
 0x23f   : > { %3422 = vmatprep.subr.mxu1 %v6084_v58 }
 0x241   : > { %v3822_v55 = vpop.eup %3821  ;;  %1486 = vperm.xlu1 %3818, %v4898_v51   ;;  %v700_v51 = vld [vmem:[%s4802_s9 + $0x5] sm:$0x1] }
 0x242   : > { %3423 = vmatpush3.xpose.msra.mxu1 %v3822_v55  ;;  %v970_v55 = vld [vmem:[%s4783_s19 + $0x58] sm:$0xff] }
 0x243   : > { %3424 = vmatprep.subr.mxu1 %v6084_v58  ;;  %v1146_v9 = vadd.f32 %v5055_v48, %v970_v55 }
 0x245   : > { %1566 = vperm.xlu1 %3818, %v4969_v11   ;;  %v1166_v11 = vadd.f32 %v5084_v0, %v990_v18 }
 0x249   : > { %1481 = vperm.xlu1 %3818, %v4894_v49  }
 0x24c   : > { %v1417_v53 = vpop.permute.xlu1 %1416 }
 0x24d   : > { %1561 = vperm.xlu1 %3818, %v4956_v61   ;;  %v1940_v61 = vmul.f32 %v5059_v57, %v1417_v53 }
 0x24f   : > { %v2068_v3 = vadd.f32 %v1940_v61, %v1165_v54 }
 0x250   : > { %v1332_v10 = vpop.permute.xlu1 %1331  ;;  %863 = vxpose.xlu0.b32.start.end [1/1] (short) %v700_v51, 128  ;;  %v1422_v59 = vpop.permute.xlu0 %1421  ;;  %v986_v51 = vld [vmem:[%s4783_s19 + $0xd8] sm:$0xff] }
 0x251   : > { %v1923_v49 = vmul.f32 %v5059_v57, %v1332_v10  ;;  %v1941_v22 = vmul.f32 %v5059_v57, %v1422_v59  ;;  %1556 = vperm.xlu1 %3818, %v4948_v25  }
 0x253   : > { %v2051_v56 = vadd.f32 %v1923_v49, %v1148_v23  ;;  %v2069_v44 = vadd.f32 %v1941_v22, %v1166_v11  ;;  %v969_v49 = vld [vmem:[%s4783_s19 + $0x50] sm:$0xff] }
 0x254   : > { %v1412_v50 = vpop.permute.xlu1 %1411 }
 0x255   : > { %3823 = vtanh.f32 %v2051_v56  ;;  %1471 = vperm.xlu1 %3818, %v4886_v45   ;;  %v1939_v25 = vmul.f32 %v5059_v57, %v1412_v50  ;;  %v1163_v45 = vadd.f32 %v5084_v0, %v987_v60  ;;  %v1145_v56 = vadd.f32 %v5055_v48, %v969_v49 }
 0x256   : > { %3825 = vtanh.f32 %v2069_v44 }
 0x257   : > { %3827 = vtanh.f32 %v2068_v3  ;;  %v2067_v16 = vadd.f32 %v1939_v25, %v1164_v5  ;;  %v1161_v5 = vadd.f32 %v5084_v0, %v985_v38 }
 0x258   : > { %v1327_v7 = vpop.permute.xlu1 %1326 }
 0x259   : > { %v1922_v12 = vmul.f32 %v5059_v57, %v1327_v7  ;;  %1551 = vperm.xlu1 %3818, %v4946_v20   ;;  %v5111_v20 = vpop.permute.xlu0 %1291 }
 0x25b   : > { %v2050_v19 = vadd.f32 %v1922_v12, %v1147_v62  ;;  %v968_v62 = vld [vmem:[%s4783_s19 + $0x48] sm:$0xff] }
 0x25c   : > { %v1407_v35 = vpop.permute.xlu1 %1406 }
 0x25d   : > { %3829 = vtanh.f32 %v2050_v19  ;;  %v1938_v24 = vmul.f32 %v5059_v57, %v1407_v35  ;;  %1466 = vperm.xlu1 %3818, %v4882_v43   ;;  %v1162_v43 = vadd.f32 %v5084_v0, %v986_v51  ;;  %v5121_v54 = vpop.permute.xlu0 %1286 }
 0x25e   : > { %3831 = vtanh.f32 %v2067_v16  ;;  %v1144_v16 = vadd.f32 %v5055_v48, %v968_v62 }
 0x25f   : > { %v2066_v53 = vadd.f32 %v1938_v24, %v1163_v45  ;;  %v984_v45 = vld [vmem:[%s4783_s19 + $0xc8] sm:$0xff] }
 0x260   : > { %v1322_v18 = vpop.permute.xlu1 %1321 }
 0x261   : > { %3833 = vtanh.f32 %v2066_v53  ;;  %v1921_v21 = vmul.f32 %v5059_v57, %v1322_v18  ;;  %1546 = vperm.xlu1 %3818, %v4942_v17   ;;  %v5131_v7 = vpop.permute.xlu0 %1281  ;;  %v1160_v53 = vadd.f32 %v5084_v0, %v984_v45  ;;  %v967_v18 = vld [vmem:[%s4783_s19 + $0x40] sm:$0xff] }
 0x262   : > { %v3824_v23 = vpop.eup %3823 }
 0x263   : > { %v3826_v11 = vpop.eup %3825  ;;  %v2049_v10 = vadd.f32 %v1921_v21, %v1146_v9  ;;  %3425 = vmatpush3.xpose.msra.mxu1 %v3824_v23  ;;  %v1143_v23 = vadd.f32 %v5055_v48, %v967_v18 }
 0x264   : > { %3456 = vmatpush3.xpose.msra.mxu0 %v3826_v11  ;;  %v1402_v59 = vpop.permute.xlu1 %1401  ;;  %3426 = vmatprep.subr.mxu1 %v6084_v58  ;;  %v3828_v17 = vpop.eup %3827 }
 0x265   : > { %3835 = vtanh.f32 %v2049_v10  ;;  %v1937_v22 = vmul.f32 %v5059_v57, %v1402_v59  ;;  %1461 = vperm.xlu1 %3818, %v4878_v41   ;;  %3457 = vmatprep.subr.mxu0 %v6084_v58  ;;  %v983_v10 = vld [vmem:[%s4783_s19 + $0xc0] sm:$0xff] }
 0x267   : > { %v2065_v61 = vadd.f32 %v1937_v22, %v1162_v43  ;;  %v1159_v22 = vadd.f32 %v5084_v0, %v983_v10  ;;  %v6088_v10 = vld [vmem:[#allocation40_spill] sm:$0xff] }
 0x268   : > { %3458 = vmatpush3.xpose.msra.mxu0 %v3828_v17  ;;  %v1317_v44 = vpop.permute.xlu1 %1316 }
 0x269   : > { %3837 = vtanh.f32 %v2065_v61  ;;  %v1920_v50 = vmul.f32 %v5059_v57, %v1317_v44  ;;  %1541 = vperm.xlu1 %3818, %v4938_v13   ;;  %3459 = vmatprep.subr.mxu0 %v6084_v58  ;;  %v966_v61 = vld [vmem:[%s4783_s19 + $0x38] sm:$0xff]  ;;  %v6085_v44 = vld [vmem:[#allocation36_spill] sm:$0xff] }
 0x26a   : > { %v3830_v41 = vpop.eup %3829 }
 0x26b   : > { %v3832_v1 = vpop.eup %3831  ;;  %v2048_v3 = vadd.f32 %v1920_v50, %v1145_v56  ;;  %3427 = vmatpush3.xpose.msra.mxu1 %v3830_v41  ;;  %v1142_v41 = vadd.f32 %v5055_v48, %v966_v61 }
 0x26c   : > { %3460 = vmatpush3.xpose.msra.mxu0 %v3832_v1  ;;  %v1397_v25 = vpop.permute.xlu1 %1396  ;;  %3428 = vmatprep.subr.mxu1 %v6084_v58 }
 0x26d   : > { %3839 = vtanh.f32 %v2048_v3  ;;  %v1936_v60 = vmul.f32 %v5059_v57, %v1397_v25  ;;  %1456 = vperm.xlu1 %3818, %v4874_v39   ;;  %3461 = vmatprep.subr.mxu0 %v6084_v58  ;;  %v5141_v39 = vpop.permute.xlu0 %1276  ;;  %v982_v3 = vld [vmem:[%s4783_s19 + $0xb8] sm:$0xff] }
 0x26e   : > { %v3834_v13 = vpop.eup %3833  ;;  %v6086_v25 = vld [vmem:[#allocation41_spill] sm:$0xff] }
 0x26f   : > { %v2064_v12 = vadd.f32 %v1936_v60, %v1161_v5 }
 0x270   : > { %3462 = vmatpush3.xpose.msra.mxu0 %v3834_v13  ;;  %v1312_v19 = vpop.permute.xlu1 %1311  ;;  %v1158_v13 = vadd.f32 %v5084_v0, %v982_v3 }
 0x271   : > { %3841 = vtanh.f32 %v2064_v12  ;;  %v1919_v35 = vmul.f32 %v5059_v57, %v1312_v19  ;;  %1536 = vperm.xlu1 %3818, %v4934_v8   ;;  %3463 = vmatprep.subr.mxu0 %v6084_v58  ;;  %v5151_v43 = vpop.permute.xlu0 %1271  ;;  %v964_v19 = vld [vmem:[%s4783_s19 + $0x28] sm:$0xff] }
 0x272   : > { %v3836_v55 = vpop.eup %3835  ;;  %v1140_v18 = vadd.f32 %v5055_v48, %v964_v19  ;;  %v961_v19 = vld [vmem:[%s4783_s19 + $0x10] sm:$0xff] }
 0x273   : > { %v2047_v24 = vadd.f32 %v1919_v35, %v1144_v16  ;;  %3429 = vmatpush3.xpose.msra.mxu1 %v3836_v55  ;;  %v965_v16 = vld [vmem:[%s4783_s19 + $0x30] sm:$0xff]  ;;  %v6087_v55 = vld [vmem:[#allocation35_spill] sm:$0xff] }
 0x274   : > { %v1392_v9 = vpop.permute.xlu1 %1391  ;;  %3430 = vmatprep.subr.mxu1 %v6084_v58 }
 0x275   : > { %3843 = vtanh.f32 %v2047_v24  ;;  %v1935_v51 = vmul.f32 %v5059_v57, %v1392_v9  ;;  %1451 = vperm.xlu1 %3818, %v4870_v37   ;;  %v5160_v50 = vpop.permute.xlu0 %1266  ;;  %v1141_v9 = vadd.f32 %v5055_v48, %v965_v16  ;;  %v979_v16 = vld [vmem:[%s4783_s19 + $0xa0] sm:$0xff] }
 0x276   : > { %v3838_v8 = vpop.eup %3837 }
 0x277   : > { %v2063_v21 = vadd.f32 %v1935_v51, %v1160_v53  ;;  %3464 = vmatpush3.xpose.msra.mxu0 %v3838_v8  ;;  %v1915_v51 = vmul.f32 %v5059_v57, %v5111_v20 }
 0x278   : > { %v1307_v11 = vpop.permute.xlu1 %1306  ;;  %3465 = vmatprep.subr.mxu0 %v6084_v58 }
 0x279   : > { %3845 = vtanh.f32 %v2063_v21  ;;  %v1918_v59 = vmul.f32 %v5059_v57, %v1307_v11  ;;  %1531 = vperm.xlu1 %3818, %v4930_v6   ;;  %v5171_v45 = vpop.permute.xlu0 %1501  ;;  %v981_v21 = vld [vmem:[%s4783_s19 + $0xb0] sm:$0xff] }
 0x27a   : > { %v3840_v49 = vpop.eup %3839  ;;  %v1157_v20 = vadd.f32 %v5084_v0, %v981_v21 }
 0x27b   : > { %v2046_v37 = vadd.f32 %v1918_v59, %v1143_v23  ;;  %3431 = vmatpush3.xpose.msra.mxu1 %v3840_v49  ;;  %v963_v23 = vld [vmem:[%s4783_s19 + $0x20] sm:$0xff]  ;;  %v702_v49 = vld [vmem:[%s4802_s9 + $0x7] sm:$0x1] }
 0x27c   : > { %v1387_v17 = vpop.permute.xlu1 %1386  ;;  %3432 = vmatprep.subr.mxu1 %v6084_v58  ;;  %v1139_v61 = vadd.f32 %v5055_v48, %v963_v23  ;;  %v978_v23 = vld [vmem:[%s4783_s19 + $0x98] sm:$0xff] }
 0x27d   : > { %3847 = vtanh.f32 %v2046_v37  ;;  %v1934_v56 = vmul.f32 %v5059_v57, %v1387_v17  ;;  %1446 = vperm.xlu1 %3818, %v6085_v44   ;;  %v5185_v37 = vpop.permute.xlu0 %1476  ;;  %v2043_v17 = vadd.f32 %v1915_v51, %v1140_v18  ;;  %v1155_v18 = vadd.f32 %v5084_v0, %v979_v16  ;;  %v976_v16 = vld [vmem:[%s4783_s19 + $0x88] sm:$0xff] }
 0x27e   : > { %v3842_v38 = vpop.eup %3841  ;;  %v1137_v51 = vadd.f32 %v5055_v48, %v961_v19 }
 0x27f   : > { %v2062_v6 = vadd.f32 %v1934_v56, %v1159_v22  ;;  %3466 = vmatpush3.xpose.msra.mxu0 %v3842_v38  ;;  %v1914_v56 = vmul.f32 %v5059_v57, %v5121_v54  ;;  %v980_v38 = vld [vmem:[%s4783_s19 + $0xa8] sm:$0xff] }
 0x280   : > { %v1302_v1 = vpop.permute.xlu1 %1301  ;;  %3467 = vmatprep.subr.mxu0 %v6084_v58  ;;  %v1156_v54 = vadd.f32 %v5084_v0, %v980_v38  ;;  %v977_v38 = vld [vmem:[%s4783_s19 + $0x90] sm:$0xff] }
 0x281   : > { %3849 = vtanh.f32 %v2062_v6  ;;  %v1917_v5 = vmul.f32 %v5059_v57, %v1302_v1  ;;  %1526 = vperm.xlu1 %3818, %v6086_v25   ;;  %v962_v6 = vld [vmem:[%s4783_s19 + $0x18] sm:$0xff] }
 0x282   : > { %v3844_v62 = vpop.eup %3843  ;;  %v6089_v1 = vld [vmem:[#allocation34_spill] sm:$0xff] }
 0x283   : > { %v2045_v60 = vadd.f32 %v1917_v5, %v1142_v41  ;;  %3433 = vmatpush3.xpose.msra.mxu1 %v3844_v62  ;;  %v2042_v62 = vadd.f32 %v1914_v56, %v1139_v61  ;;  %v1911_v56 = vmul.f32 %v5059_v57, %v5151_v43 }
 0x284   : > { %v1382_v12 = vpop.permute.xlu1 %1381  ;;  %3434 = vmatprep.subr.mxu1 %v6084_v58 }
 0x285   : > { %3851 = vtanh.f32 %v2045_v60  ;;  %v1933_v35 = vmul.f32 %v5059_v57, %v1382_v12  ;;  %1441 = vperm.xlu1 %3818, %v6087_v55   ;;  %v1138_v60 = vadd.f32 %v5055_v48, %v962_v6  ;;  %v6090_v55 = vld [vmem:[#allocation39_spill] sm:$0xff] }
 0x286   : > { %v3846_v24 = vpop.eup %3845  ;;  %v959_v6 = vld [vmem:[%s4783_s19] sm:$0xff] }
 0x287   : > { %v2061_v53 = vadd.f32 %v1933_v35, %v1158_v13  ;;  %3468 = vmatpush3.xpose.msra.mxu0 %v3846_v24  ;;  %v1913_v13 = vmul.f32 %v5059_v57, %v5131_v7 }
 0x288   : > { %v1297_v8 = vpop.permute.xlu1 %1296  ;;  %3469 = vmatprep.subr.mxu0 %v6084_v58 }
 0x289   : > { %3853 = vtanh.f32 %v2061_v53  ;;  %v1916_v11 = vmul.f32 %v5059_v57, %v1297_v8  ;;  %1521 = vperm.xlu1 %3818, %v6088_v10   ;;  %v2041_v7 = vadd.f32 %v1913_v13, %v1138_v60  ;;  %v1912_v8 = vmul.f32 %v5059_v57, %v5141_v39 }
 0x28a   : > { %v3848_v59 = vpop.eup %3847  ;;  %v1135_v60 = vadd.f32 %v5055_v48, %v959_v6  ;;  %v1910_v13 = vmul.f32 %v5059_v57, %v5160_v50 }
 0x28b   : > { %v2044_v22 = vadd.f32 %v1916_v11, %v1141_v9  ;;  %3435 = vmatpush3.xpose.msra.mxu1 %v3848_v59  ;;  %v960_v11 = vld [vmem:[%s4783_s19 + $0x8] sm:$0xff]  ;;  %v6091_v59 = vld [vmem:[#allocation33_spill] sm:$0xff]  ;;  %v2040_v39 = vadd.f32 %v1912_v8, %v1137_v51  ;;  %v6094_v51 = vld [vmem:[#allocation42_spill] sm:$0xff] }
 0x28c   : > { %v1377_v44 = vpop.permute.xlu1 %1376  ;;  %3436 = vmatprep.subr.mxu1 %v6084_v58  ;;  %v1136_v61 = vadd.f32 %v5055_v48, %v960_v11  ;;  %v1152_v48 = vadd.f32 %v5084_v0, %v976_v16  ;;  %v2038_v50 = vadd.f32 %v1910_v13, %v1135_v60  ;;  %v975_v11 = vld [vmem:[%s4783_s19 + $0x80] sm:$0xff] }
 0x28d   : > { %3855 = vtanh.f32 %v2044_v22  ;;  %v1932_v41 = vmul.f32 %v5059_v57, %v1377_v44  ;;  %1436 = vperm.xlu1 %3818, %v6089_v1   ;;  %927 = vxpose.xlu0.b32.start.end [1/1] (short) %v702_v49, 128  ;;  %v6092_v1 = vld [vmem:[#allocation38_spill] sm:$0xff] }
 0x28e   : > { %v3850_v3 = vpop.eup %3849  ;;  %3857 = vtanh.f32 %v2043_v17  ;;  %v1154_v17 = vadd.f32 %v5084_v0, %v978_v23  ;;  %v2039_v43 = vadd.f32 %v1911_v56, %v1136_v61 }
 0x28f   : > { %v2060_v5 = vadd.f32 %v1932_v41, %v1157_v20  ;;  %v5196_v25 = vpop.trf.xlu0  ;;  %3470 = vmatpush3.xpose.msra.mxu0 %v3850_v3 }
 0x290   : > { %v1372_v12 = vpop.permute.xlu1 %1371  ;;  %3471 = vmatprep.subr.mxu0 %v6084_v58 }
 0x291   : > { %3859 = vtanh.f32 %v2060_v5  ;;  %v1931_v35 = vmul.f32 %v5059_v57, %v1372_v12  ;;  %1516 = vperm.xlu1 %3818, %v6090_v55  }
 0x292   : > { %v3852_v24 = vpop.eup %3851  ;;  %3861 = vtanh.f32 %v2042_v62  ;;  %v1153_v62 = vadd.f32 %v5084_v0, %v977_v38 }
 0x293   : > { %v2059_v53 = vadd.f32 %v1931_v35, %v1156_v54  ;;  %v5207_v9 = vpop.trf.xlu0  ;;  %3437 = vmatpush3.xpose.msra.mxu1 %v3852_v24  ;;  %v1006_v35 = vld [vmem:[%s4783_s19 + $0x178] sm:$0xff]  ;;  %v6093_v24 = vld [vmem:[#allocation32_spill] sm:$0xff] }
 0x294   : > { %v1367_v21 = vpop.permute.xlu1 %1366  ;;  %3438 = vmatprep.subr.mxu1 %v6084_v58  ;;  %v1182_v8 = vadd.f32 %v6094_v51, %v1006_v35 }
 0x295   : > { %3863 = vtanh.f32 %v2059_v53  ;;  %v1930_v10 = vmul.f32 %v5059_v57, %v1367_v21  ;;  %1431 = vperm.xlu1 %3818, %v6091_v59   ;;  %v1957_v21 = vmul.f32 %v5059_v57, %v5171_v45  ;;  %v1151_v45 = vadd.f32 %v5084_v0, %v975_v11 }
 0x296   : > { %v3854_v49 = vpop.eup %3853  ;;  %3865 = vtanh.f32 %v2041_v7 }
 0x297   : > { %v2058_v22 = vadd.f32 %v1930_v10, %v1155_v18  ;;  %v5218_v20 = vpop.trf.xlu0  ;;  %3472 = vmatpush3.xpose.msra.mxu0 %v3854_v49  ;;  %v6095_v49 = vld [vmem:[#allocation37_spill] sm:$0xff]  ;;  %v2085_v61 = vadd.f32 %v1957_v21, %v1182_v8 }
 0x298   : > { %v1362_v44 = vpop.permute.xlu1 %1361  ;;  %3473 = vmatprep.subr.mxu0 %v6084_v58 }
 0x299   : > { %3867 = vtanh.f32 %v2058_v22  ;;  %v1929_v41 = vmul.f32 %v5059_v57, %v1362_v44  ;;  %1511 = vperm.xlu1 %3818, %v6092_v1   ;;  %v1022_v44 = vld [vmem:[%s4783_s19 + $0x1f8] sm:$0xff] }
 0x29a   : > { %v3856_v3 = vpop.eup %3855  ;;  %3869 = vtanh.f32 %v2040_v39  ;;  %v1198_v0 = vadd.f32 %v4979_v15, %v1022_v44 }
 0x29b   : > { %v2057_v5 = vadd.f32 %v1929_v41, %v1154_v17  ;;  %v5229_v54 = vpop.trf.xlu0  ;;  %3439 = vmatpush3.xpose.msra.mxu1 %v3856_v3  ;;  %v3858_v19 = vpop.eup %3857 }
 0x29c   : > { %v1357_v12 = vpop.permute.xlu1 %1356  ;;  %3440 = vmatprep.subr.mxu1 %v6084_v58 }
 0x29d   : > { %3871 = vtanh.f32 %v2057_v5  ;;  %v1928_v55 = vmul.f32 %v5059_v57, %v1357_v12  ;;  %1426 = vperm.xlu1 %3818, %v6093_v24  }
 0x29e   : > { %v3860_v53 = vpop.eup %3859  ;;  %3873 = vtanh.f32 %v2039_v43 }
 0x29f   : > { %v2056_v18 = vadd.f32 %v1928_v55, %v1153_v62  ;;  %v5240_v7 = vpop.trf.xlu0  ;;  %3441 = vmatpush3.xpose.msra.mxu1 %v3858_v19  ;;  %3474 = vmatpush3.xpose.msra.mxu0 %v3860_v53  ;;  %v3862_v10 = vpop.eup %3861  ;;  %v1005_v62 = vld [vmem:[%s4783_s19 + $0x170] sm:$0xff] }
 0x2a0   : > { %v1352_v23 = vpop.permute.xlu1 %1351  ;;  %3442 = vmatprep.subr.mxu1 %v6084_v58  ;;  %3475 = vmatprep.subr.mxu0 %v6084_v58  ;;  %v1181_v19 = vadd.f32 %v6094_v51, %v1005_v62  ;;  %v1021_v55 = vld [vmem:[%s4783_s19 + $0x1f0] sm:$0xff]  ;;  %v1003_v62 = vld [vmem:[%s4783_s19 + $0x160] sm:$0xff] }
 0x2a1   : > { %3875 = vtanh.f32 %v2056_v18  ;;  %v1927_v59 = vmul.f32 %v5059_v57, %v1352_v23  ;;  %1506 = vperm.xlu1 %3818, %v6095_v49   ;;  %v1197_v8 = vadd.f32 %v4979_v15, %v1021_v55  ;;  %v1004_v23 = vld [vmem:[%s4783_s19 + $0x168] sm:$0xff]  ;;  %v1019_v55 = vld [vmem:[%s4783_s19 + $0x1e0] sm:$0xff] }
 0x2a2   : > { %v3864_v22 = vpop.eup %3863  ;;  %3877 = vtanh.f32 %v2038_v50 }
 0x2a3   : > { %v2055_v17 = vadd.f32 %v1927_v59, %v1152_v48  ;;  %v5251_v39 = vpop.trf.xlu0  ;;  %3443 = vmatpush3.xpose.msra.mxu1 %v3862_v10  ;;  %3476 = vmatpush3.xpose.msra.mxu0 %v3864_v22  ;;  %v3866_v38 = vpop.eup %3865 }
 0x2a4   : > { %v1347_v56 = vpop.permute.xlu1 %1346  ;;  %3444 = vmatprep.subr.mxu1 %v6084_v58  ;;  %3477 = vmatprep.subr.mxu0 %v6084_v58 }
 0x2a5   : > { %3879 = vtanh.f32 %v2055_v17  ;;  %v1926_v6 = vmul.f32 %v5059_v57, %v1347_v56  ;;  %v1180_v17 = vadd.f32 %v6094_v51, %v1004_v23  ;;  %v1020_v56 = vld [vmem:[%s4783_s19 + $0x1e8] sm:$0xff]  ;;  %v1002_v23 = vld [vmem:[%s4783_s19 + $0x158] sm:$0xff] }
 0x2a6   : > { %v3868_v41 = vpop.eup %3867  ;;  %3881 = vtanh.f32 %v2085_v61 }
 0x2a7   : > { %v2054_v1 = vadd.f32 %v1926_v6, %v1151_v45  ;;  %v5258_v3 = vpop.trf.xlu0  ;;  %3445 = vmatpush3.xpose.msra.mxu1 %v3866_v38  ;;  %3478 = vmatpush3.xpose.msra.mxu0 %v3868_v41  ;;  %v3870_v43 = vpop.eup %3869  ;;  %v5282_v45 = vld [vmem:[#allocation14] sm:$0x1] }
 0x2a8   : > { %v1582_v5 = vpop.permute.xlu1 %1581  ;;  %3446 = vmatprep.subr.mxu1 %v6084_v58  ;;  %3479 = vmatprep.subr.mxu0 %v6084_v58 }
 0x2a9   : > { %3883 = vtanh.f32 %v2054_v1  ;;  %v1973_v60 = vmul.f32 %v5059_v57, %v1582_v5 }
 0x2aa   : > { %v3872_v13 = vpop.eup %3871 }
 0x2ab   : > { %v2101_v12 = vadd.f32 %v1973_v60, %v1198_v0  ;;  %v5265_v16 = vpop.trf.xlu0  ;;  %3447 = vmatpush3.xpose.msra.mxu1 %v3870_v43  ;;  %3480 = vmatpush3.xpose.msra.mxu0 %v3872_v13  ;;  %v3874_v24 = vpop.eup %3873  ;;  %v1196_v0 = vadd.f32 %v4979_v15, %v1020_v56 }
 0x2ac   : > { %v1497_v35 = vpop.permute.xlu1 %1496  ;;  %3448 = vmatprep.subr.mxu1 %v6084_v58  ;;  %3481 = vmatprep.subr.mxu0 %v6084_v58 }
 0x2ad   : > { %3885 = vtanh.f32 %v2101_v12  ;;  %v1956_v53 = vmul.f32 %v5059_v57, %v1497_v35 }
 0x2ae   : > { %v3876_v18 = vpop.eup %3875 }
 0x2af   : > { %v2084_v48 = vadd.f32 %v1956_v53, %v1181_v19  ;;  %v5272_v50 = vpop.trf.xlu0  ;;  %3449 = vmatpush3.xpose.msra.mxu1 %v3874_v24  ;;  %3482 = vmatpush3.xpose.msra.mxu0 %v3876_v18  ;;  %v3878_v11 = vpop.eup %3877  ;;  %v1179_v19 = vadd.f32 %v6094_v51, %v1003_v62 }
 0x2b0   : > { %v1577_v21 = vpop.permute.xlu1 %1576  ;;  %3450 = vmatprep.subr.mxu1 %v6084_v58  ;;  %3483 = vmatprep.subr.mxu0 %v6084_v58 }
 0x2b1   : > { %3887 = vtanh.f32 %v2084_v48  ;;  %v1972_v10 = vmul.f32 %v5059_v57, %v1577_v21 }
 0x2b2   : > { %v3880_v59 = vpop.eup %3879 }
 0x2b3   : > { %v2100_v49 = vadd.f32 %v1972_v10, %v1197_v8  ;;  %v5279_v22 = vpop.trf.xlu0  ;;  %3451 = vmatpush3.xpose.msra.mxu1 %v3878_v11  ;;  %3484 = vmatpush3.xpose.msra.mxu0 %v3880_v59  ;;  %v3882_v44 = vpop.eup %3881  ;;  %v1195_v8 = vadd.f32 %v4979_v15, %v1019_v55  ;;  %v1001_v11 = vld [vmem:[%s4783_s19 + $0x150] sm:$0xff] }
 0x2b4   : > { %v1492_v61 = vpop.permute.xlu1 %1491  ;;  %3485 = vmatprep.subr.mxu0 %v6084_v58  ;;  %3490 = vmatprep.subr.mxu1 %v6084_v58  ;;  %v1177_v56 = vadd.f32 %v6094_v51, %v1001_v11 }
 0x2b5   : > { %3889 = vtanh.f32 %v2100_v49  ;;  %v1955_v38 = vmul.f32 %v5059_v57, %v1492_v61  ;;  %v1178_v61 = vadd.f32 %v6094_v51, %v1002_v23 }
 0x2b6   : > { %v3884_v6 = vpop.eup %3883  ;;  %3453 = vmatmul.mubr.f32.vlgmr.msra.gmra.mxu1 %v5282_v45 }
 0x2b7   : > { %v2083_v41 = vadd.f32 %v1955_v38, %v1180_v17  ;;  %v5289_v1 = vpop.trf.xlu0  ;;  %3486 = vmatpush3.xpose.msra.mxu0 %v3884_v6  ;;  %3491 = vmatpush3.xpose.msra.mxu1 %v3882_v44  ;;  %v1952_v44 = vmul.f32 %v5059_v57, %v5185_v37  ;;  %v1018_v6 = vld [vmem:[%s4783_s19 + $0x1d8] sm:$0xff] }
 0x2b8   : > { %v1572_v5 = vpop.permute.xlu1 %1571  ;;  %3525 = vmatprep.subr.mxu0 %v6084_v58  ;;  %3492 = vmatprep.subr.mxu1 %v6084_v58 }
 0x2b9   : > { %3891 = vtanh.f32 %v2083_v41  ;;  %v1971_v43 = vmul.f32 %v5059_v57, %v1572_v5  ;;  %3522 = vmatprep.mubr.msk.f32.mxu1 %vm4465_vm1, %v6084_v58 }
 0x2ba   : > { %v3886_v60 = vpop.eup %3885  ;;  %3488 = vmatmul.mubr.f32.vlgmr.msra.gmra.mxu0 %v5282_v45 }
 0x2bb   : > { %v2099_v13 = vadd.f32 %v1971_v43, %v1196_v0  ;;  %v5299_v12 = vpop.trf.xlu0  ;;  %3526 = vmatpush3.xpose.msra.mxu0 %v3886_v60  ;;  %3557 = vmatprep.mubr.msk.f32.mxu0 %vm4465_vm1, %v6084_v58  ;;  %v1194_v43 = vadd.f32 %v4979_v15, %v1018_v6  ;;  %v2080_v60 = vadd.f32 %v1952_v44, %v1177_v56 }
 0x2bc   : > { %v1487_v35 = vpop.permute.xlu1 %1486  ;;  %3527 = vmatprep.subr.mxu0 %v6084_v58 }
 0x2bd   : > { %3893 = vtanh.f32 %v2099_v13  ;;  %v1954_v24 = vmul.f32 %v5059_v57, %v1487_v35 }
 0x2be   : > { %v3888_v53 = vpop.eup %3887 }
 0x2bf   : > { %v2082_v18 = vadd.f32 %v1954_v24, %v1179_v19  ;;  %v5307_v48 = vpop.trf.xlu0  ;;  %3493 = vmatpush3.xpose.msra.mxu1 %v3888_v53  ;;  %v1017_v19 = vld [vmem:[%s4783_s19 + $0x1d0] sm:$0xff] }
 0x2c0   : > { %v1567_v21 = vpop.permute.xlu1 %1566  ;;  %3494 = vmatprep.subr.mxu1 %v6084_v58  ;;  %v1193_v53 = vadd.f32 %v4979_v15, %v1017_v19 }
 0x2c1   : > { %3895 = vtanh.f32 %v2082_v18  ;;  %v1970_v10 = vmul.f32 %v5059_v57, %v1567_v21 }
 0x2c2   : > { %v3890_v59 = vpop.eup %3889 }
 0x2c3   : > { %v2098_v49 = vadd.f32 %v1970_v10, %v1195_v8  ;;  %v5314_v17 = vpop.trf.xlu0  ;;  %3528 = vmatpush3.xpose.msra.mxu0 %v3890_v59  ;;  %v1000_v8 = vld [vmem:[%s4783_s19 + $0x148] sm:$0xff] }
 0x2c4   : > { %v1482_v38 = vpop.permute.xlu1 %1481  ;;  %3529 = vmatprep.subr.mxu0 %v6084_v58  ;;  %v1176_v59 = vadd.f32 %v6094_v51, %v1000_v8 }
 0x2c5   : > { %3897 = vtanh.f32 %v2098_v49  ;;  %v1953_v41 = vmul.f32 %v5059_v57, %v1482_v38 }
 0x2c6   : > { %v3892_v0 = vpop.eup %3891 }
 0x2c7   : > { %v2081_v5 = vadd.f32 %v1953_v41, %v1178_v61  ;;  %v5323_v62 = vpop.trf.xlu0  ;;  %3495 = vmatpush3.xpose.msra.mxu1 %v3892_v0  ;;  %v1016_v61 = vld [vmem:[%s4783_s19 + $0x1c8] sm:$0xff] }
 0x2c8   : > { %v1562_v13 = vpop.permute.xlu1 %1561  ;;  %3496 = vmatprep.subr.mxu1 %v6084_v58  ;;  %v1192_v41 = vadd.f32 %v4979_v15, %v1016_v61 }
 0x2c9   : > { %3899 = vtanh.f32 %v2081_v5  ;;  %v1969_v37 = vmul.f32 %v5059_v57, %v1562_v13  ;;  %v999_v5 = vld [vmem:[%s4783_s19 + $0x140] sm:$0xff] }
 0x2ca   : > { %v3894_v35 = vpop.eup %3893  ;;  %3901 = vtanh.f32 %v2080_v60 }
 0x2cb   : > { %v2097_v55 = vadd.f32 %v1969_v37, %v1194_v43  ;;  %v862_v24 = vpop.trf.xlu0  ;;  %3530 = vmatpush3.xpose.msra.mxu0 %v3894_v35  ;;  %v1175_v37 = vadd.f32 %v6094_v51, %v999_v5 }
 0x2cc   : > { %v1557_v18 = vpop.permute.xlu1 %1556  ;;  %1661 = vperm.xlu1 %3818, %v862_v24   ;;  %3531 = vmatprep.subr.mxu0 %v6084_v58 }
 0x2cd   : > { %3903 = vtanh.f32 %v2097_v55  ;;  %v1968_v21 = vmul.f32 %v5059_v57, %v1557_v18  ;;  %v1015_v55 = vld [vmem:[%s4783_s19 + $0x1c0] sm:$0xff] }
 0x2ce   : > { %v3896_v23 = vpop.eup %3895 }
 0x2cf   : > { %v2096_v11 = vadd.f32 %v1968_v21, %v1193_v53  ;;  %v5333_v10 = vpop.trf.xlu0  ;;  %3497 = vmatpush3.xpose.msra.mxu1 %v3896_v23  ;;  %v1191_v23 = vadd.f32 %v4979_v15, %v1015_v55  ;;  %v997_v55 = vld [vmem:[%s4783_s19 + $0x130] sm:$0xff] }
 0x2d0   : > { %v1472_v49 = vpop.permute.xlu1 %1471  ;;  %3498 = vmatprep.subr.mxu1 %v6084_v58 }
 0x2d1   : > { %3905 = vtanh.f32 %v2096_v11  ;;  %v1951_v56 = vmul.f32 %v5059_v57, %v1472_v49 }
 0x2d2   : > { %v3898_v44 = vpop.eup %3897 }
 0x2d3   : > { %v2079_v38 = vadd.f32 %v1951_v56, %v1176_v59  ;;  %v5339_v6 = vpop.trf.xlu0  ;;  %3532 = vmatpush3.xpose.msra.mxu0 %v3898_v44  ;;  %v998_v59 = vld [vmem:[%s4783_s19 + $0x138] sm:$0xff] }
 0x2d4   : > { %v1552_v0 = vpop.permute.xlu1 %1551  ;;  %3533 = vmatprep.subr.mxu0 %v6084_v58 }
 0x2d5   : > { %3907 = vtanh.f32 %v2079_v38  ;;  %v1967_v43 = vmul.f32 %v5059_v57, %v1552_v0  ;;  %v1174_v38 = vadd.f32 %v6094_v51, %v998_v59  ;;  %v1014_v0 = vld [vmem:[%s4783_s19 + $0x1b8] sm:$0xff]  ;;  %v1013_v59 = vld [vmem:[%s4783_s19 + $0x1b0] sm:$0xff] }
 0x2d6   : > { %v3900_v60 = vpop.eup %3899 }
 0x2d7   : > { %v2095_v13 = vadd.f32 %v1967_v43, %v1192_v41  ;;  %v5345_v19 = vpop.trf.xlu0  ;;  %3499 = vmatpush3.xpose.msra.mxu1 %v3900_v60  ;;  %v3902_v24 = vpop.eup %3901 }
 0x2d8   : > { %v1467_v35 = vpop.permute.xlu1 %1466  ;;  %3500 = vmatprep.subr.mxu1 %v6084_v58 }
 0x2d9   : > { %3909 = vtanh.f32 %v2095_v13  ;;  %v1950_v53 = vmul.f32 %v5059_v57, %v1467_v35 }
 0x2da   : > { %v3904_v18 = vpop.eup %3903 }
 0x2db   : > { %v2078_v8 = vadd.f32 %v1950_v53, %v1175_v37  ;;  %v5351_v21 = vpop.trf.xlu0  ;;  %3501 = vmatpush3.xpose.msra.mxu1 %v3902_v24  ;;  %3534 = vmatpush3.xpose.msra.mxu0 %v3904_v18  ;;  %v1190_v37 = vadd.f32 %v4979_v15, %v1014_v0 }
 0x2dc   : > { %v1547_v11 = vpop.permute.xlu1 %1546  ;;  %3535 = vmatprep.subr.mxu0 %v6084_v58  ;;  %3502 = vmatprep.subr.mxu1 %v6084_v58 }
 0x2dd   : > { %3911 = vtanh.f32 %v2078_v8  ;;  %v1966_v49 = vmul.f32 %v5059_v57, %v1547_v11 }
 0x2de   : > { %v3906_v61 = vpop.eup %3905 }
 0x2df   : > { %v2094_v56 = vadd.f32 %v1966_v49, %v1191_v23  ;;  %v5358_v44 = vpop.trf.xlu0  ;;  %3536 = vmatpush3.xpose.msra.mxu0 %v3906_v61  ;;  %v1173_v23 = vadd.f32 %v6094_v51, %v997_v55 }
 0x2e0   : > { %v1462_v41 = vpop.permute.xlu1 %1461  ;;  %3537 = vmatprep.subr.mxu0 %v6084_v58 }
 0x2e1   : > { %3913 = vtanh.f32 %v2094_v56  ;;  %v1949_v5 = vmul.f32 %v5059_v57, %v1462_v41  ;;  %v1189_v41 = vadd.f32 %v4979_v15, %v1013_v59 }
 0x2e2   : > { %v3908_v43 = vpop.eup %3907 }
 0x2e3   : > { %v2077_v60 = vadd.f32 %v1949_v5, %v1174_v38  ;;  %v5364_v13 = vpop.trf.xlu0  ;;  %3503 = vmatpush3.xpose.msra.mxu1 %v3908_v43  ;;  %v996_v5 = vld [vmem:[%s4783_s19 + $0x128] sm:$0xff] }
 0x2e4   : > { %v1542_v35 = vpop.permute.xlu1 %1541  ;;  %3504 = vmatprep.subr.mxu1 %v6084_v58  ;;  %v5381_v43 = vld [vmem:[#allocation11] ss:$0 sm:$0xff]  ;;  %v1172_v55 = vadd.f32 %v6094_v51, %v996_v5 }
 0x2e5   : > { %3915 = vtanh.f32 %v2077_v60  ;;  %v1965_v24 = vmul.f32 %v5059_v57, %v1542_v35 }
 0x2e6   : > { %v3910_v53 = vpop.eup %3909 }
 0x2e7   : > { %v2093_v18 = vadd.f32 %v1965_v24, %v1190_v37  ;;  %v5370_v8 = vpop.trf.xlu0  ;;  %3538 = vmatpush3.xpose.msra.mxu0 %v3910_v53  ;;  %v1012_v53 = vld [vmem:[%s4783_s19 + $0x1a8] sm:$0xff] }
 0x2e8   : > { %v1457_v11 = vpop.permute.xlu1 %1456  ;;  %3539 = vmatprep.subr.mxu0 %v6084_v58 }
 0x2e9   : > { %3917 = vtanh.f32 %v2093_v18  ;;  %v1948_v49 = vmul.f32 %v5059_v57, %v1457_v11 }
 0x2ea   : > { %v3912_v61 = vpop.eup %3911 }
 0x2eb   : > { %v2076_v56 = vadd.f32 %v1948_v49, %v1173_v23  ;;  %v5376_v38 = vpop.trf.xlu0  ;;  %3505 = vmatpush3.xpose.msra.mxu1 %v3912_v61  ;;  %v1188_v49 = vadd.f32 %v4979_v15, %v1012_v53 }
 0x2ec   : > { %v1537_v0 = vpop.permute.xlu1 %1536  ;;  %3506 = vmatprep.subr.mxu1 %v6084_v58 }
 0x2ed   : > { %3919 = vtanh.f32 %v2076_v56  ;;  %v1964_v60 = vmul.f32 %v5381_v43, %v1537_v0  ;;  %v995_v56 = vld [vmem:[%s4783_s19 + $0x120] sm:$0xff] }
 0x2ee   : > { %v3914_v37 = vpop.eup %3913 }
 0x2ef   : > { %v2092_v35 = vadd.f32 %v1964_v60, %v1189_v41  ;;  %v5384_v57 = vpop.trf.xlu0  ;;  %3540 = vmatpush3.xpose.msra.mxu0 %v3914_v37  ;;  %v1171_v60 = vadd.f32 %v6094_v51, %v995_v56 }
 0x2f0   : > { %v1452_v24 = vpop.permute.xlu1 %1451  ;;  %3541 = vmatprep.subr.mxu0 %v6084_v58 }
 0x2f1   : > { %3921 = vtanh.f32 %v2092_v35  ;;  %v1947_v18 = vmul.f32 %v5381_v43, %v1452_v24  ;;  %v1011_v35 = vld [vmem:[%s4783_s19 + $0x1a0] sm:$0xff] }
 0x2f2   : > { %v3916_v23 = vpop.eup %3915  ;;  %1656 = vperm.xlu0 %3817, %v5323_v62  }
 0x2f3   : > { %v2075_v11 = vadd.f32 %v1947_v18, %v1172_v55  ;;  %v5391_v59 = vpop.trf.xlu0  ;;  %3507 = vmatpush3.xpose.msra.mxu1 %v3916_v23  ;;  %v1187_v18 = vadd.f32 %v4979_v15, %v1011_v35 }
 0x2f4   : > { %v1532_v61 = vpop.permute.xlu1 %1531  ;;  %3508 = vmatprep.subr.mxu1 %v6084_v58 }
 0x2f5   : > { %3923 = vtanh.f32 %v2075_v11  ;;  %v1963_v41 = vmul.f32 %v5381_v43, %v1532_v61  ;;  %v994_v11 = vld [vmem:[%s4783_s19 + $0x118] sm:$0xff] }
 0x2f6   : > { %v3918_v0 = vpop.eup %3917  ;;  %1646 = vperm.xlu0 %3817, %v5307_v48  }
 0x2f7   : > { %v2091_v5 = vadd.f32 %v1963_v41, %v1188_v49  ;;  %v5398_v62 = vpop.trf.xlu0  ;;  %3542 = vmatpush3.xpose.msra.mxu0 %v3918_v0  ;;  %v1170_v41 = vadd.f32 %v6094_v51, %v994_v11 }
 0x2f8   : > { %v1447_v37 = vpop.permute.xlu1 %1446  ;;  %3543 = vmatprep.subr.mxu0 %v6084_v58 }
 0x2f9   : > { %3925 = vtanh.f32 %v2091_v5  ;;  %v1946_v55 = vmul.f32 %v5381_v43, %v1447_v37  ;;  %v1010_v5 = vld [vmem:[%s4783_s19 + $0x198] sm:$0xff] }
 0x2fa   : > { %v3920_v24 = vpop.eup %3919  ;;  %1641 = vperm.xlu0 %3817, %v5299_v12  }
 0x2fb   : > { %v2074_v53 = vadd.f32 %v1946_v55, %v1171_v60  ;;  %v5405_v48 = vpop.trf.xlu0  ;;  %3509 = vmatpush3.xpose.msra.mxu1 %v3920_v24  ;;  %v1186_v55 = vadd.f32 %v4979_v15, %v1010_v5 }
 0x2fc   : > { %v1527_v23 = vpop.permute.xlu1 %1526  ;;  %3510 = vmatprep.subr.mxu1 %v6084_v58 }
 0x2fd   : > { %3927 = vtanh.f32 %v2074_v53  ;;  %v1962_v49 = vmul.f32 %v5381_v43, %v1527_v23  ;;  %v993_v53 = vld [vmem:[%s4783_s19 + $0x110] sm:$0xff] }
 0x2fe   : > { %v3922_v61 = vpop.eup %3921  ;;  %1636 = vperm.xlu0 %3817, %v5289_v1  }
 0x2ff   : > { %v2090_v56 = vadd.f32 %v1962_v49, %v1187_v18  ;;  %v5412_v12 = vpop.trf.xlu0  ;;  %3544 = vmatpush3.xpose.msra.mxu0 %v3922_v61 }
 0x300   : > { %v1442_v0 = vpop.permute.xlu1 %1441  ;;  %3545 = vmatprep.subr.mxu0 %v6084_v58 }
 0x301   : > { %3929 = vtanh.f32 %v2090_v56  ;;  %v1945_v60 = vmul.f32 %v5381_v43, %v1442_v0  ;;  %v1009_v56 = vld [vmem:[%s4783_s19 + $0x190] sm:$0xff] }
 0x302   : > { %v3924_v37 = vpop.eup %3923  ;;  %1631 = vperm.xlu0 %3817, %v5279_v22   ;;  %v1169_v22 = vadd.f32 %v6094_v51, %v993_v53 }
 0x303   : > { %v2073_v35 = vadd.f32 %v1945_v60, %v1170_v41  ;;  %v892_v1 = vpop.trf.xlu0  ;;  %3511 = vmatpush3.xpose.msra.mxu1 %v3924_v37 }
 0x304   : > { %v1522_v24 = vpop.permute.xlu1 %1521  ;;  %3512 = vmatprep.subr.mxu1 %v6084_v58 }
 0x305   : > { %3931 = vtanh.f32 %v2073_v35  ;;  %v1961_v18 = vmul.f32 %v5381_v43, %v1522_v24  ;;  %v992_v24 = vld [vmem:[%s4783_s19 + $0x108] sm:$0xff] }
 0x306   : > { %v3926_v23 = vpop.eup %3925  ;;  %1626 = vperm.xlu0 %3817, %v5272_v50   ;;  %v1185_v50 = vadd.f32 %v4979_v15, %v1009_v56 }
 0x307   : > { %v2089_v11 = vadd.f32 %v1961_v18, %v1186_v55  ;;  %v893_v49 = vpop.trf.xlu0  ;;  %3546 = vmatpush3.xpose.msra.mxu0 %v3926_v23  ;;  %v1168_v23 = vadd.f32 %v6094_v51, %v992_v24  ;;  %v1007_v24 = vld [vmem:[%s4783_s19 + $0x180] sm:$0xff] }
 0x308   : > { %v1437_v61 = vpop.permute.xlu1 %1436  ;;  %3547 = vmatprep.subr.mxu0 %v6084_v58 }
 0x309   : > { %3933 = vtanh.f32 %v2089_v11  ;;  %v1944_v41 = vmul.f32 %v5381_v43, %v1437_v61  ;;  %v1008_v61 = vld [vmem:[%s4783_s19 + $0x188] sm:$0xff] }
 0x30a   : > { %v3928_v0 = vpop.eup %3927  ;;  %1621 = vperm.xlu0 %3817, %v5265_v16  }
 0x30b   : > { %v2072_v5 = vadd.f32 %v1944_v41, %v1169_v22  ;;  %v894_v60 = vpop.trf.xlu0  ;;  %3513 = vmatpush3.xpose.msra.mxu1 %v3928_v0 }
 0x30c   : > { %v1517_v37 = vpop.permute.xlu1 %1516  ;;  %1741 = vperm.xlu1 %3818, %v894_v60   ;;  %3514 = vmatprep.subr.mxu1 %v6084_v58 }
 0x30d   : > { %3935 = vtanh.f32 %v2072_v5  ;;  %v1960_v35 = vmul.f32 %v5381_v43, %v1517_v37 }
 0x30e   : > { %v3930_v55 = vpop.eup %3929  ;;  %1616 = vperm.xlu0 %3817, %v5258_v3  }
 0x30f   : > { %v2088_v53 = vadd.f32 %v1960_v35, %v1185_v50  ;;  %3548 = vmatpush3.xpose.msra.mxu0 %v3930_v55  ;;  %v5434_v16 = vpop.trf.xlu0 }
 0x310   : > { %v1432_v18 = vpop.permute.xlu1 %1431  ;;  %1736 = vperm.xlu1 %3818, %v893_v49   ;;  %3549 = vmatprep.subr.mxu0 %v6084_v58  ;;  %v1184_v49 = vadd.f32 %v4979_v15, %v1008_v61 }
 0x311   : > { %3937 = vtanh.f32 %v2088_v53  ;;  %v1943_v11 = vmul.f32 %v5381_v43, %v1432_v18 }
 0x312   : > { %v3932_v22 = vpop.eup %3931  ;;  %1611 = vperm.xlu0 %3817, %v5251_v39   ;;  %v991_v39 = vld [vmem:[%s4783_s19 + $0x100] sm:$0xff] }
 0x313   : > { %v2071_v3 = vadd.f32 %v1943_v11, %v1168_v23  ;;  %3515 = vmatpush3.xpose.msra.mxu1 %v3932_v22  ;;  %v5441_v56 = vpop.trf.xlu0 }
 0x314   : > { %v1512_v41 = vpop.permute.xlu1 %1511  ;;  %1651 = vperm.xlu1 %3818, %v5314_v17   ;;  %3516 = vmatprep.subr.mxu1 %v6084_v58  ;;  %v1167_v17 = vadd.f32 %v6094_v51, %v991_v39  ;;  %v1054_v39 = vld [vmem:[%s4783_s19 + $0x2f8] sm:$0xff] }
 0x315   : > { %3939 = vtanh.f32 %v2071_v3  ;;  %v1959_v0 = vmul.f32 %v5381_v43, %v1512_v41 }
 0x316   : > { %v3934_v5 = vpop.eup %3933  ;;  %1606 = vperm.xlu0 %3817, %v5240_v7  }
 0x317   : > { %v2087_v60 = vadd.f32 %v1959_v0, %v1184_v49  ;;  %3550 = vmatpush3.xpose.msra.mxu0 %v3934_v5  ;;  %v5449_v50 = vpop.trf.xlu0 }
 0x318   : > { %v1427_v37 = vpop.permute.xlu1 %1426  ;;  %1731 = vperm.xlu1 %3818, %v892_v1   ;;  %3551 = vmatprep.subr.mxu0 %v6084_v58  ;;  %v1183_v1 = vadd.f32 %v4979_v15, %v1007_v24 }
 0x319   : > { %3941 = vtanh.f32 %v2087_v60  ;;  %v1942_v35 = vmul.f32 %v5381_v43, %v1427_v37  ;;  %v1230_v37 = vadd.f32 %v4982_v63, %v1054_v39  ;;  %v1031_v39 = vld [vmem:[%s4783_s19 + $0x240] sm:$0xff] }
 0x31a   : > { %v3936_v55 = vpop.eup %3935  ;;  %1601 = vperm.xlu0 %3817, %v5229_v54  }
 0x31b   : > { %v2070_v53 = vadd.f32 %v1942_v35, %v1167_v17  ;;  %3517 = vmatpush3.xpose.msra.mxu1 %v3936_v55  ;;  %v5456_v7 = vpop.trf.xlu0  ;;  %v1053_v55 = vld [vmem:[%s4783_s19 + $0x2f0] sm:$0xff] }
 0x31c   : > { %v1507_v18 = vpop.permute.xlu1 %1506  ;;  %1726 = vperm.xlu1 %3818, %v5412_v12   ;;  %3518 = vmatprep.subr.mxu1 %v6084_v58 }
 0x31d   : > { %3943 = vtanh.f32 %v2070_v53  ;;  %v1958_v51 = vmul.f32 %v5381_v43, %v1507_v18 }
 0x31e   : > { %v3938_v23 = vpop.eup %3937  ;;  %1596 = vperm.xlu0 %3817, %v5218_v20  }
 0x31f   : > { %v2086_v11 = vadd.f32 %v1958_v51, %v1183_v1  ;;  %3552 = vmatpush3.xpose.msra.mxu0 %v3938_v23  ;;  %v5463_v54 = vpop.trf.xlu0  ;;  %v1036_v1 = vld [vmem:[%s4783_s19 + $0x268] sm:$0xff]  ;;  %v1035_v51 = vld [vmem:[%s4783_s19 + $0x260] sm:$0xff] }
 0x320   : > { %1721 = vperm.xlu1 %3818, %v5405_v48   ;;  %3553 = vmatprep.subr.mxu0 %v6084_v58 }
 0x321   : > { %3945 = vtanh.f32 %v2086_v11 }
 0x322   : > { %v3940_v12 = vpop.eup %3939  ;;  %1591 = vperm.xlu0 %3817, %v5207_v9  }
 0x323   : > { %3519 = vmatpush3.xpose.msra.mxu1 %v3940_v12  ;;  %v5468_v22 = vpop.trf.xlu0 }
 0x324   : > { %1716 = vperm.xlu1 %3818, %v5398_v62   ;;  %3520 = vmatprep.subr.mxu1 %v6084_v58 }
 0x326   : > { %v3942_v15 = vpop.eup %3941  ;;  %1586 = vperm.xlu0 %3817, %v5196_v25  }
 0x327   : > { %3554 = vmatpush3.xpose.msra.mxu0 %v3942_v15  ;;  %v5473_v20 = vpop.trf.xlu0 }
 0x328   : > { %1711 = vperm.xlu1 %3818, %v5391_v59   ;;  %3555 = vmatprep.subr.mxu0 %v6084_v58 }
 0x32a   : > { %v3944_v48 = vpop.eup %3943  ;;  %1821 = vperm.xlu0 %3817, %v5052_v47  }
 0x32b   : > { %3521 = vmatpush3.xpose.msra.mxu1 %v3944_v48  ;;  %v5478_v9 = vpop.trf.xlu0 }
 0x32c   : > { %1706 = vperm.xlu1 %3818, %v5384_v57   ;;  %3560 = vmatprep.subr.mxu1 %v6084_v58  ;;  %v6096_v57 = vld [vmem:[#allocation43_spill] sm:$0xff] }
 0x32e   : > { %v3946_v62 = vpop.eup %3945  ;;  %1816 = vperm.xlu0 %3817, %v5046_v46   ;;  %3523 = vmatmul.mubr.f32.vlgmr.msra.gmra.mxu1 %v5282_v45 }
 0x32f   : > { %3556 = vmatpush3.xpose.msra.mxu0 %v3946_v62  ;;  %v951_v25 = vpop.trf.xlu0  ;;  %3592 = vmatprep.mubr.msk.f32.mxu1 %vm4465_vm1, %v6084_v58 }
 0x330   : > { %1701 = vperm.xlu1 %3818, %v5376_v38   ;;  %3595 = vmatprep.subr.mxu0 %v6084_v58 }
 0x332   : > { %1811 = vperm.xlu0 %3817, %v5043_v40   ;;  %3558 = vmatmul.mubr.f32.vlgmr.msra.gmra.mxu0 %v5282_v45 }
 0x333   : > { %v952_v47 = vpop.trf.xlu0  ;;  %3627 = vmatprep.mubr.msk.f32.mxu0 %vm4465_vm1, %v6084_v58 }
 0x334   : > { %1696 = vperm.xlu1 %3818, %v5370_v8   ;;  %v1038_v8 = vld [vmem:[%s4783_s19 + $0x278] sm:$0xff] }
 0x336   : > { %1806 = vperm.xlu0 %3817, %v5039_v42  }
 0x337   : > { %v953_v46 = vpop.trf.xlu0 }
 0x338   : > { %1691 = vperm.xlu1 %3818, %v5364_v13  }
 0x33a   : > { %1801 = vperm.xlu0 %3817, %v5035_v32   ;;  %v1214_v32 = vadd.f32 %v6096_v57, %v1038_v8  ;;  %v1033_v8 = vld [vmem:[%s4783_s19 + $0x250] sm:$0xff] }
 0x33b   : > { %v954_v38 = vpop.trf.xlu0 }
 0x33c   : > { %1686 = vperm.xlu1 %3818, %v5358_v44  }
 0x33e   : > { %1796 = vperm.xlu0 %3817, %v5031_v28  }
 0x33f   : > { %v955_v40 = vpop.trf.xlu0 }
 0x340   : > { %1681 = vperm.xlu1 %3818, %v5351_v21  }
 0x342   : > { %1791 = vperm.xlu0 %3817, %v5028_v26  }
 0x343   : > { %v956_v45 = vpop.trf.xlu0 }
 0x344   : > { %1676 = vperm.xlu1 %3818, %v5345_v19   ;;  %v2855_v19 = vld [vmem:[%s4794_s24] sm:$0x1] }
 0x345   : > { %vm2863_vm2 = vcmp.eq.f32.partialorder %v2855_v19, 0.0 }
 0x346   : > { %1786 = vperm.xlu0 %3817, %v5024_v27  }
 0x347   : > { %v1662_v42 = vpop.permute.xlu1 %1661  ;;  %v957_v13 = vpop.trf.xlu0 }
 0x348   : > { %v1989_v59 = vmul.f32 %v5381_v43, %v1662_v42  ;;  %1671 = vperm.xlu1 %3818, %v5339_v6  }
 0x34a   : > { %v2117_v28 = vadd.f32 %v1989_v59, %v1214_v32  ;;  %1781 = vperm.xlu0 %3817, %v5021_v30  }
 0x34b   : > { %v958_v26 = vpop.trf.xlu0 }
 0x34c   : > { %3947 = vtanh.f32 %v2117_v28  ;;  %1666 = vperm.xlu1 %3818, %v5333_v10  }
 0x34e   : > { %1776 = vperm.xlu0 %3817, %v5016_v34  }
 0x350   : > { %1901 = vperm.xlu1 %3818, %v958_v26  }
 0x352   : > { %1771 = vperm.xlu0 %3817, %v5012_v36   ;;  %v1037_v36 = vld [vmem:[%s4783_s19 + $0x270] sm:$0xff] }
 0x353   : > { %v1213_v34 = vadd.f32 %v6096_v57, %v1037_v36  ;;  %v1209_v36 = vadd.f32 %v6096_v57, %v1033_v8 }
 0x354   : > { %1896 = vperm.xlu1 %3818, %v957_v13  }
 0x356   : > { %1766 = vperm.xlu0 %3817, %v5009_v52  }
 0x358   : > { %1891 = vperm.xlu1 %3818, %v956_v45   ;;  %v1051_v45 = vld [vmem:[%s4783_s19 + $0x2e0] sm:$0xff] }
 0x359   : > { %v3948_v27 = vpop.eup %3947  ;;  %v1227_v28 = vadd.f32 %v4982_v63, %v1051_v45 }
 0x35a   : > { %1761 = vperm.xlu0 %3817, %v5005_v4   ;;  %3561 = vmatpush3.xpose.msra.mxu1 %v3948_v27 }
 0x35b   : > { %3562 = vmatprep.subr.mxu1 %v6084_v58 }
 0x35c   : > { %1886 = vperm.xlu1 %3818, %v955_v40  }
 0x35e   : > { %1756 = vperm.xlu0 %3817, %v5002_v2  }
 0x360   : > { %1881 = vperm.xlu1 %3818, %v954_v38  }
 0x362   : > { %1751 = vperm.xlu0 %3817, %v4998_v33  }
 0x364   : > { %1876 = vperm.xlu1 %3818, %v953_v46  }
 0x366   : > { %1746 = vperm.xlu0 %3817, %v4995_v31  }
 0x368   : > { %1871 = vperm.xlu1 %3818, %v952_v47  }
 0x36c   : > { %1866 = vperm.xlu1 %3818, %v951_v25  }
 0x36d   : > { %v1657_v52 = vpop.permute.xlu0 %1656 }
 0x36e   : > { %v1988_v4 = vmul.f32 %v5381_v43, %v1657_v52 }
 0x370   : > { %v2116_v30 = vadd.f32 %v1988_v4, %v1213_v34  ;;  %1861 = vperm.xlu1 %3818, %v5478_v9   ;;  %v1050_v34 = vld [vmem:[%s4783_s19 + $0x2d8] sm:$0xff]  ;;  %v1032_v4 = vld [vmem:[%s4783_s19 + $0x248] sm:$0xff] }
 0x371   : > { %v1647_v10 = vpop.permute.xlu0 %1646 }
 0x372   : > { %3949 = vtanh.f32 %v2116_v30 }
 0x374   : > { %1856 = vperm.xlu1 %3818, %v5473_v20   ;;  %v1034_v20 = vld [vmem:[%s4783_s19 + $0x258] sm:$0xff] }
 0x375   : > { %v1642_v33 = vpop.permute.xlu0 %1641  ;;  %v1210_v38 = vadd.f32 %v6096_v57, %v1034_v20 }
 0x376   : > { %v2361_v2 = vpop.f32.mrf.mxu1  ;;  %v1985_v62 = vmul.f32 %v5381_v43, %v1642_v33 }
 0x377   : > { %v5528_v41 = vsel %vm2863_vm2, -1e+30, %v2361_v2 }
 0x378   : > { %1851 = vperm.xlu1 %3818, %v5468_v22   ;;  %v3454_v31 = vpop.f32.mrf.mxu1  ;;  %v2880_v0 = vsel %vm2879_vm3, %v5528_v41, -inf  ;;  %v1211_v22 = vadd.f32 %v6096_v57, %v1035_v51  ;;  %v2113_v13 = vadd.f32 %v1985_v62, %v1210_v38  ;;  %v1030_v51 = vld [vmem:[%s4783_s19 + $0x238] sm:$0xff]  ;;  %v1047_v62 = vld [vmem:[%s4783_s19 + $0x2c0] sm:$0xff] }
 0x379   : > { %v1637_v6 = vpop.permute.xlu0 %1636  ;;  %v1226_v31 = vadd.f32 %v4982_v63, %v1050_v34  ;;  %v1223_v8 = vadd.f32 %v4982_v63, %v1047_v62 }
 0x37a   : > { %v5523_v21 = vpop.f32.mrf.mxu0  ;;  %v1984_v32 = vmul.f32 %v5381_v43, %v1637_v6 }
 0x37c   : > { %1846 = vperm.xlu1 %3818, %v5463_v54   ;;  %v3489_v44 = vpop.f32.mrf.mxu0  ;;  %v1212_v54 = vadd.f32 %v6096_v57, %v1036_v1  ;;  %v1048_v1 = vld [vmem:[%s4783_s19 + $0x2c8] sm:$0xff] }
 0x37d   : > { %v5526_v61 = vpop.permute.xlu0 %1631  ;;  %v1208_v44 = vadd.f32 %v6096_v57, %v1032_v4 }
 0x37e   : > { %v1983_v33 = vmul.f32 %v5381_v43, %v5526_v61 }
 0x37f   : > { %v3950_v3 = vpop.eup %3949 }
 0x380   : > { %1841 = vperm.xlu1 %3818, %v5456_v7   ;;  %3563 = vmatpush3.xpose.msra.mxu1 %v3950_v3  ;;  %v2111_v61 = vadd.f32 %v1983_v33, %v1208_v44 }
 0x381   : > { %v5531_v49 = vpop.permute.xlu0 %1626  ;;  %3564 = vmatprep.subr.mxu1 %v6084_v58 }
 0x384   : > { %1836 = vperm.xlu1 %3818, %v5449_v50   ;;  %v1229_v50 = vadd.f32 %v4982_v63, %v1053_v55 }
 0x385   : > { %v5537_v5 = vpop.permute.xlu0 %1621  ;;  %2881 = vmax.xlane.f32.xlu0 %v2880_v0  ;;  %v1049_v0 = vld [vmem:[%s4783_s19 + $0x2d0] sm:$0xff] }
 0x386   : > { %v1225_v55 = vadd.f32 %v4982_v63, %v1049_v0 }
 0x387   : > { %v1742_v60 = vpop.permute.xlu1 %1741 }
 0x388   : > { %v2005_v17 = vmul.f32 %v5381_v43, %v1742_v60  ;;  %1831 = vperm.xlu1 %3818, %v5441_v56   ;;  %v1986_v56 = vmul.f32 %v5381_v43, %v1647_v10  ;;  %v2112_v10 = vadd.f32 %v1984_v32, %v1209_v36 }
 0x389   : > { %v5543_v35 = vpop.permute.xlu0 %1616 }
 0x38a   : > { %v2133_v24 = vadd.f32 %v2005_v17, %v1230_v37  ;;  %v2114_v9 = vadd.f32 %v1986_v56, %v1211_v22  ;;  %v1982_v37 = vmul.f32 %v5381_v43, %v5531_v49  ;;  %v1981_v56 = vmul.f32 %v5381_v43, %v5537_v5 }
 0x38b   : > { %v1737_v53 = vpop.permute.xlu1 %1736 }
 0x38c   : > { %3951 = vtanh.f32 %v2133_v24  ;;  %v2004_v7 = vmul.f32 %v5381_v43, %v1737_v53  ;;  %1826 = vperm.xlu1 %3818, %v5434_v16   ;;  %v1052_v16 = vld [vmem:[%s4783_s19 + $0x2e8] sm:$0xff] }
 0x38d   : > { %v5549_v18 = vpop.permute.xlu0 %1611  ;;  %v1228_v47 = vadd.f32 %v4982_v63, %v1052_v16  ;;  %v2856_v16 = vld [vmem:[%s4794_s24 + $0x1] sm:$0x1] }
 0x38e   : > { %v2132_v23 = vadd.f32 %v2004_v7, %v1229_v50  ;;  %v1207_v50 = vadd.f32 %v6096_v57, %v1031_v39  ;;  %vm2864_vm4 = vcmp.eq.f32.partialorder %v2856_v16, 0.0  ;;  %v1979_v34 = vmul.f32 %v5381_v43, %v5549_v18  ;;  %v1043_v16 = vld [vmem:[%s4783_s19 + $0x2a0] sm:$0xff] }
 0x38f   : > { %v1652_v11 = vpop.permute.xlu1 %1651 }
 0x390   : > { %3953 = vtanh.f32 %v2132_v23  ;;  %v1987_v12 = vmul.f32 %v5381_v43, %v1652_v11  ;;  %v2110_v49 = vadd.f32 %v1982_v37, %v1207_v50  ;;  %v1026_v50 = vld [vmem:[%s4783_s19 + $0x218] sm:$0xff] }
 0x391   : > { %v5557_v15 = vpop.permute.xlu0 %1606 }
 0x392   : > { %v2115_v48 = vadd.f32 %v1987_v12, %v1212_v54  ;;  %v1224_v12 = vadd.f32 %v4982_v63, %v1048_v1  ;;  %v1978_v39 = vmul.f32 %v5381_v43, %v5557_v15 }
 0x393   : > { %v1732_v25 = vpop.permute.xlu1 %1731 }
 0x394   : > { %3955 = vtanh.f32 %v2115_v48  ;;  %v2003_v46 = vmul.f32 %v5381_v43, %v1732_v25  ;;  %v1206_v48 = vadd.f32 %v6096_v57, %v1030_v51  ;;  %v1029_v25 = vld [vmem:[%s4783_s19 + $0x230] sm:$0xff] }
 0x395   : > { %v5565_v40 = vpop.permute.xlu0 %1601  ;;  %3957 = vtanh.f32 %v2114_v9  ;;  %v1205_v32 = vadd.f32 %v6096_v57, %v1029_v25 }
 0x396   : > { %v2131_v42 = vadd.f32 %v2003_v46, %v1228_v47  ;;  %v2109_v5 = vadd.f32 %v1981_v56, %v1206_v48  ;;  %v1980_v46 = vmul.f32 %v5381_v43, %v5543_v35  ;;  %v1977_v51 = vmul.f32 %v5381_v43, %v5565_v40 }
 0x397   : > { %v1727_v59 = vpop.permute.xlu1 %1726 }
 0x398   : > { %3959 = vtanh.f32 %v2131_v42  ;;  %v2002_v26 = vmul.f32 %v5381_v43, %v1727_v59  ;;  %v2108_v36 = vadd.f32 %v1980_v46, %v1205_v32 }
 0x399   : > { %v3952_v27 = vpop.eup %3951  ;;  %v5573_v52 = vpop.permute.xlu0 %1596  ;;  %3961 = vtanh.f32 %v2113_v13 }
 0x39a   : > { %v2130_v30 = vadd.f32 %v2002_v26, %v1227_v28  ;;  %3596 = vmatpush3.xpose.msra.mxu0 %v3952_v27  ;;  %v1046_v28 = vld [vmem:[%s4783_s19 + $0x2b8] sm:$0xff]  ;;  %v1028_v26 = vld [vmem:[%s4783_s19 + $0x228] sm:$0xff]  ;;  %v5620_v27 = vsel %vm2864_vm4, -1e+30, %v5523_v21  ;;  %v1976_v62 = vmul.f32 %v5381_v43, %v5573_v52 }
 0x39b   : > { %v1722_v2 = vpop.permute.xlu1 %1721  ;;  %3597 = vmatprep.subr.mxu0 %v6084_v58  ;;  %v1204_v21 = vadd.f32 %v6096_v57, %v1028_v26 }
 0x39c   : > { %3963 = vtanh.f32 %v2130_v30  ;;  %v2001_v6 = vmul.f32 %v5381_v43, %v1722_v2 }
 0x39d   : > { %v3954_v19 = vpop.eup %3953  ;;  %v5583_v3 = vpop.permute.xlu0 %1591  ;;  %3965 = vtanh.f32 %v2112_v10  ;;  %v1222_v10 = vadd.f32 %v4982_v63, %v1046_v28  ;;  %v2107_v0 = vadd.f32 %v1979_v34, %v1204_v21 }
 0x39e   : > { %v2129_v60 = vadd.f32 %v2001_v6, %v1226_v31  ;;  %3598 = vmatpush3.xpose.msra.mxu0 %v3954_v19  ;;  %v2883_v31 = vsel %vm2879_vm3, %v5620_v27, -inf  ;;  %v1045_v6 = vld [vmem:[%s4783_s19 + $0x2b0] sm:$0xff]  ;;  %v1027_v19 = vld [vmem:[%s4783_s19 + $0x220] sm:$0xff]  ;;  %v1975_v28 = vmul.f32 %v5381_v43, %v5583_v3 }
 0x39f   : > { %v1717_v17 = vpop.permute.xlu1 %1716  ;;  %3599 = vmatprep.subr.mxu0 %v6084_v58  ;;  %v1221_v37 = vadd.f32 %v4982_v63, %v1045_v6 }
 0x3a0   : > { %3967 = vtanh.f32 %v2129_v60  ;;  %v2000_v24 = vmul.f32 %v5381_v43, %v1717_v17 }
 0x3a1   : > { %v3956_v53 = vpop.eup %3955  ;;  %v5593_v7 = vpop.permute.xlu0 %1586  ;;  %3969 = vtanh.f32 %v2111_v61 }
 0x3a2   : > { %v2128_v23 = vadd.f32 %v2000_v24, %v1225_v55  ;;  %3565 = vmatpush3.xpose.msra.mxu1 %v3956_v53  ;;  %v3958_v54 = vpop.eup %3957  ;;  %v1203_v24 = vadd.f32 %v6096_v57, %v1027_v19  ;;  %v1044_v53 = vld [vmem:[%s4783_s19 + $0x2a8] sm:$0xff]  ;;  %v1974_v21 = vmul.f32 %v5381_v43, %v5593_v7 }
 0x3a3   : > { %v1712_v11 = vpop.permute.xlu1 %1711  ;;  %3566 = vmatprep.subr.mxu1 %v6084_v58 }
 0x3a4   : > { %3971 = vtanh.f32 %v2128_v23  ;;  %v1999_v22 = vmul.f32 %v5381_v43, %v1712_v11  ;;  %v2106_v15 = vadd.f32 %v1978_v39, %v1203_v24  ;;  %v1220_v11 = vadd.f32 %v4982_v63, %v1044_v53 }
 0x3a5   : > { %v3960_v20 = vpop.eup %3959  ;;  %v5604_v9 = vpop.permute.xlu0 %1821  ;;  %3973 = vtanh.f32 %v2110_v49 }
 0x3a6   : > { %v2127_v47 = vadd.f32 %v1999_v22, %v1224_v12  ;;  %3567 = vmatpush3.xpose.msra.mxu1 %v3958_v54  ;;  %3600 = vmatpush3.xpose.msra.mxu0 %v3960_v20  ;;  %v3962_v45 = vpop.eup %3961  ;;  %v1202_v22 = vadd.f32 %v6096_v57, %v1026_v50  ;;  %v1025_v20 = vld [vmem:[%s4783_s19 + $0x210] sm:$0xff] }
 0x3a7   : > { %v1707_v38 = vpop.permute.xlu1 %1706  ;;  %3568 = vmatprep.subr.mxu1 %v6084_v58  ;;  %3601 = vmatprep.subr.mxu0 %v6084_v58 }
 0x3a8   : > { %3975 = vtanh.f32 %v2127_v47  ;;  %v1998_v42 = vmul.f32 %v5381_v43, %v1707_v38  ;;  %v2105_v48 = vadd.f32 %v1977_v51, %v1202_v22  ;;  %v1039_v51 = vld [vmem:[%s4783_s19 + $0x280] sm:$0xff] }
 0x3a9   : > { %v3964_v13 = vpop.eup %3963  ;;  %v5615_v59 = vpop.permute.xlu0 %1816  ;;  %3977 = vtanh.f32 %v2109_v5  ;;  %v1219_v5 = vadd.f32 %v4982_v63, %v1043_v16  ;;  %v1215_v16 = vadd.f32 %v4982_v63, %v1039_v51 }
 0x3aa   : > { %v2126_v35 = vadd.f32 %v1998_v42, %v1223_v8  ;;  %3569 = vmatpush3.xpose.msra.mxu1 %v3962_v45  ;;  %3602 = vmatpush3.xpose.msra.mxu0 %v3964_v13  ;;  %v3966_v30 = vpop.eup %3965  ;;  %v1201_v45 = vadd.f32 %v6096_v57, %v1025_v20  ;;  %v1042_v8 = vld [vmem:[%s4783_s19 + $0x298] sm:$0xff]  ;;  %v1024_v42 = vld [vmem:[%s4783_s19 + $0x208] sm:$0xff] }
 0x3ab   : > { %v1702_v4 = vpop.permute.xlu1 %1701  ;;  %3570 = vmatprep.subr.mxu1 %v6084_v58  ;;  %3603 = vmatprep.subr.mxu0 %v6084_v58 }
 0x3ac   : > { %3979 = vtanh.f32 %v2126_v35  ;;  %v1997_v33 = vmul.f32 %v5381_v43, %v1702_v4  ;;  %v2104_v32 = vadd.f32 %v1976_v62, %v1201_v45  ;;  %v1086_v62 = vld [vmem:[%s4783_s19 + $0x3f8] sm:$0xff] }
 0x3ad   : > { %v3968_v2 = vpop.eup %3967  ;;  %v5633_v44 = vpop.permute.xlu0 %1811  ;;  %3981 = vtanh.f32 %v2108_v36  ;;  %v1218_v36 = vadd.f32 %v4982_v63, %v1042_v8  ;;  %v1262_v45 = vadd.f32 %v4988_v14, %v1086_v62 }
 0x3ae   : > { %v2125_v18 = vadd.f32 %v1997_v33, %v1222_v10  ;;  %3571 = vmatpush3.xpose.msra.mxu1 %v3966_v30  ;;  %3604 = vmatpush3.xpose.msra.mxu0 %v3968_v2  ;;  %v3970_v61 = vpop.eup %3969  ;;  %v1200_v30 = vadd.f32 %v6096_v57, %v1024_v42  ;;  %v1041_v10 = vld [vmem:[%s4783_s19 + $0x290] sm:$0xff]  ;;  %v1023_v33 = vld [vmem:[%s4783_s19 + $0x200] sm:$0xff] }
 0x3af   : > { %v1697_v60 = vpop.permute.xlu1 %1696  ;;  %3572 = vmatprep.subr.mxu1 %v6084_v58  ;;  %3605 = vmatprep.subr.mxu0 %v6084_v58 }
 0x3b0   : > { %3983 = vtanh.f32 %v2125_v18  ;;  %v1996_v17 = vmul.f32 %v5381_v43, %v1697_v60  ;;  %2884 = vmax.xlane.f32.xlu1 %v2883_v31  ;;  %v2103_v3 = vadd.f32 %v1975_v28, %v1200_v30  ;;  %v1217_v18 = vadd.f32 %v4982_v63, %v1041_v10  ;;  %v1067_v28 = vld [vmem:[%s4783_s19 + $0x360] sm:$0xff] }
 0x3b1   : > { %v3972_v55 = vpop.eup %3971  ;;  %3985 = vtanh.f32 %v2107_v0  ;;  %v5648_v56 = vpop.permute.xlu0 %1806  ;;  %v1199_v60 = vadd.f32 %v6096_v57, %v1023_v33  ;;  %v1243_v33 = vadd.f32 %v4985_v29, %v1067_v28 }
 0x3b2   : > { %v2124_v1 = vadd.f32 %v1996_v17, %v1221_v37  ;;  %3573 = vmatpush3.xpose.msra.mxu1 %v3970_v61  ;;  %3606 = vmatpush3.xpose.msra.mxu0 %v3972_v55  ;;  %v3974_v49 = vpop.eup %3973  ;;  %v1040_v61 = vld [vmem:[%s4783_s19 + $0x288] sm:$0xff]  ;;  %v1070_v37 = vld [vmem:[%s4783_s19 + $0x378] sm:$0xff]  ;;  %v2021_v55 = vmul.f32 %v5381_v43, %v5604_v9 }
 0x3b3   : > { %v1692_v23 = vpop.permute.xlu1 %1691  ;;  %3574 = vmatprep.subr.mxu1 %v6084_v58  ;;  %3607 = vmatprep.subr.mxu0 %v6084_v58  ;;  %v2102_v17 = vadd.f32 %v1974_v21, %v1199_v60  ;;  %v1216_v57 = vadd.f32 %v4982_v63, %v1040_v61 }
 0x3b4   : > { %3987 = vtanh.f32 %v2124_v1  ;;  %v1995_v54 = vmul.f32 %v5381_v43, %v1692_v23  ;;  %v1069_v23 = vld [vmem:[%s4783_s19 + $0x370] sm:$0xff] }
 0x3b5   : > { %v3976_v12 = vpop.eup %3975  ;;  %3989 = vtanh.f32 %v2106_v15  ;;  %v5664_v13 = vpop.permute.xlu0 %1801  ;;  %v1246_v15 = vadd.f32 %v4985_v29, %v1070_v37 }
 0x3b6   : > { %v2123_v40 = vadd.f32 %v1995_v54, %v1220_v11  ;;  %3575 = vmatpush3.xpose.msra.mxu1 %v3974_v49  ;;  %3608 = vmatpush3.xpose.msra.mxu0 %v3976_v12  ;;  %v3978_v47 = vpop.eup %3977  ;;  %v2020_v54 = vmul.f32 %v5381_v43, %v5615_v59 }
 0x3b7   : > { %v1687_v25 = vpop.permute.xlu1 %1686  ;;  %3576 = vmatprep.subr.mxu1 %v6084_v58  ;;  %3609 = vmatprep.subr.mxu0 %v6084_v58  ;;  %v2149_v11 = vadd.f32 %v2021_v55, %v1246_v15 }
 0x3b8   : > { %3991 = vtanh.f32 %v2123_v40  ;;  %v1994_v46 = vmul.f32 %v5381_v43, %v1687_v25  ;;  %v1068_v25 = vld [vmem:[%s4783_s19 + $0x368] sm:$0xff] }
 0x3b9   : > { %v3980_v38 = vpop.eup %3979  ;;  %3993 = vtanh.f32 %v2105_v48  ;;  %v5679_v19 = vpop.permute.xlu0 %1796  ;;  %v1245_v48 = vadd.f32 %v4985_v29, %v1069_v23 }
 0x3ba   : > { %v2122_v52 = vadd.f32 %v1994_v46, %v1219_v5  ;;  %3577 = vmatpush3.xpose.msra.mxu1 %v3978_v47  ;;  %3610 = vmatpush3.xpose.msra.mxu0 %v3980_v38  ;;  %v3982_v35 = vpop.eup %3981  ;;  %v5706_v5 = vld [vmem:[#allocation11] ss:$0 sm:$0xff] }
 0x3bb   : > { %v1682_v26 = vpop.permute.xlu1 %1681  ;;  %3578 = vmatprep.subr.mxu1 %v6084_v58  ;;  %3611 = vmatprep.subr.mxu0 %v6084_v58  ;;  %v2148_v59 = vadd.f32 %v2020_v54, %v1245_v48  ;;  %v2019_v46 = vmul.f32 %v5706_v5, %v5633_v44 }
 0x3bc   : > { %3995 = vtanh.f32 %v2122_v52  ;;  %v1993_v34 = vmul.f32 %v5381_v43, %v1682_v26  ;;  %v1244_v52 = vadd.f32 %v4985_v29, %v1068_v25 }
 0x3bd   : > { %v3984_v4 = vpop.eup %3983  ;;  %3997 = vtanh.f32 %v2104_v32  ;;  %v5695_v49 = vpop.permute.xlu0 %1791  ;;  %v1085_v32 = vld [vmem:[%s4783_s19 + $0x3f0] sm:$0xff] }
 0x3be   : > { %v2121_v2 = vadd.f32 %v1993_v34, %v1218_v36  ;;  %3579 = vmatpush3.xpose.msra.mxu1 %v3982_v35  ;;  %3612 = vmatpush3.xpose.msra.mxu0 %v3984_v4  ;;  %v3986_v6 = vpop.eup %3985  ;;  %v2147_v26 = vadd.f32 %v2019_v46, %v1244_v52  ;;  %v2018_v35 = vmul.f32 %v5706_v5, %v5648_v56 }
 0x3bf   : > { %v1677_v31 = vpop.permute.xlu1 %1676  ;;  %3580 = vmatprep.subr.mxu1 %v6084_v58  ;;  %3613 = vmatprep.subr.mxu0 %v6084_v58  ;;  %v1261_v4 = vadd.f32 %v4988_v14, %v1085_v32 }
 0x3c0   : > { %3999 = vtanh.f32 %v2121_v2  ;;  %v1992_v0 = vmul.f32 %v5381_v43, %v1677_v31  ;;  %v1084_v2 = vld [vmem:[%s4783_s19 + $0x3e8] sm:$0xff]  ;;  %v2146_v31 = vadd.f32 %v2018_v35, %v1243_v33 }
 0x3c1   : > { %v3988_v39 = vpop.eup %3987  ;;  %4001 = vtanh.f32 %v2103_v3  ;;  %v5712_v38 = vpop.permute.xlu0 %1786  ;;  %v1066_v3 = vld [vmem:[%s4783_s19 + $0x358] sm:$0xff] }
 0x3c2   : > { %v2120_v7 = vadd.f32 %v1992_v0, %v1217_v18  ;;  %3581 = vmatpush3.xpose.msra.mxu1 %v3986_v6  ;;  %3614 = vmatpush3.xpose.msra.mxu0 %v3988_v39  ;;  %v3990_v53 = vpop.eup %3989  ;;  %v2017_v6 = vmul.f32 %v5706_v5, %v5664_v13  ;;  %v1260_v39 = vadd.f32 %v4988_v14, %v1084_v2 }
 0x3c3   : > { %v1672_v24 = vpop.permute.xlu1 %1671  ;;  %3582 = vmatprep.subr.mxu1 %v6084_v58  ;;  %3615 = vmatprep.subr.mxu0 %v6084_v58  ;;  %v1242_v37 = vadd.f32 %v4985_v29, %v1066_v3 }
 0x3c4   : > { %4003 = vtanh.f32 %v2120_v7  ;;  %v1991_v50 = vmul.f32 %v5381_v43, %v1672_v24  ;;  %v1083_v7 = vld [vmem:[%s4783_s19 + $0x3e0] sm:$0xff]  ;;  %v2016_v24 = vmul.f32 %v5706_v5, %v5679_v19  ;;  %v1082_v19 = vld [vmem:[%s4783_s19 + $0x3d8] sm:$0xff] }
 0x3c5   : > { %v3992_v1 = vpop.eup %3991  ;;  %4005 = vtanh.f32 %v2102_v17  ;;  %v5728_v21 = vpop.permute.xlu0 %1781  ;;  %v1065_v17 = vld [vmem:[%s4783_s19 + $0x350] sm:$0xff]  ;;  %v2145_v13 = vadd.f32 %v2017_v6, %v1242_v37 }
 0x3c6   : > { %v2119_v9 = vadd.f32 %v1991_v50, %v1216_v57  ;;  %3583 = vmatpush3.xpose.msra.mxu1 %v3990_v53  ;;  %3616 = vmatpush3.xpose.msra.mxu0 %v3992_v1  ;;  %v3994_v22 = vpop.eup %3993  ;;  %v1259_v1 = vadd.f32 %v4988_v14, %v1083_v7  ;;  %v1241_v23 = vadd.f32 %v4985_v29, %v1065_v17  ;;  %v1078_v17 = vld [vmem:[%s4783_s19 + $0x3b8] sm:$0xff] }
 0x3c7   : > { %v1667_v12 = vpop.permute.xlu1 %1666  ;;  %3584 = vmatprep.subr.mxu1 %v6084_v58  ;;  %3617 = vmatprep.subr.mxu0 %v6084_v58 }
 0x3c8   : > { %4007 = vtanh.f32 %v2119_v9  ;;  %v1990_v20 = vmul.f32 %v5381_v43, %v1667_v12  ;;  %v5748_v9 = vld [vmem:[#allocation14] sm:$0x1]  ;;  %v2144_v12 = vadd.f32 %v2016_v24, %v1241_v23  ;;  %v1254_v23 = vadd.f32 %v4988_v14, %v1078_v17  ;;  %v1074_v17 = vld [vmem:[%s4783_s19 + $0x398] sm:$0xff] }
 0x3c9   : > { %v3996_v40 = vpop.eup %3995  ;;  %4009 = vtanh.f32 %v2149_v11  ;;  %v5743_v50 = vpop.permute.xlu0 %1776  ;;  %v1064_v11 = vld [vmem:[%s4783_s19 + $0x348] sm:$0xff] }
 0x3ca   : > { %v2118_v47 = vadd.f32 %v1990_v20, %v1215_v16  ;;  %3585 = vmatpush3.xpose.msra.mxu1 %v3994_v22  ;;  %3618 = vmatpush3.xpose.msra.mxu0 %v3996_v40  ;;  %v3998_v43 = vpop.eup %3997  ;;  %v2015_v22 = vmul.f32 %v5706_v5, %v5695_v49  ;;  %v1258_v40 = vadd.f32 %v4988_v14, %v1082_v19  ;;  %v1081_v49 = vld [vmem:[%s4783_s19 + $0x3d0] sm:$0xff] }
 0x3cb   : > { %v1902_v63 = vpop.permute.xlu1 %1901  ;;  %3586 = vmatprep.subr.mxu1 %v6084_v58  ;;  %3619 = vmatprep.subr.mxu0 %v6084_v58  ;;  %v1240_v25 = vadd.f32 %v4985_v29, %v1064_v11 }
 0x3cc   : > { %4011 = vtanh.f32 %v2118_v47  ;;  %v2037_v8 = vmul.f32 %v5706_v5, %v1902_v63  ;;  %v1063_v47 = vld [vmem:[%s4783_s19 + $0x340] sm:$0xff] }
 0x3cd   : > { %v4000_v42 = vpop.eup %3999  ;;  %4013 = vtanh.f32 %v2148_v59  ;;  %v1772_v59 = vpop.permute.xlu0 %1771  ;;  %v2143_v63 = vadd.f32 %v2015_v22, %v1240_v25  ;;  %v1239_v28 = vadd.f32 %v4985_v29, %v1063_v47  ;;  %v1059_v22 = vld [vmem:[%s4783_s19 + $0x320] sm:$0xff] }
 0x3ce   : > { %v2165_v44 = vadd.f32 %v2037_v8, %v1262_v45  ;;  %3587 = vmatpush3.xpose.msra.mxu1 %v3998_v43  ;;  %3620 = vmatpush3.xpose.msra.mxu0 %v4000_v42  ;;  %v4002_v34 = vpop.eup %4001  ;;  %v2014_v43 = vmul.f32 %v5706_v5, %v5712_v38  ;;  %v1257_v42 = vadd.f32 %v4988_v14, %v1081_v49 }
 0x3cf   : > { %v1897_v36 = vpop.permute.xlu1 %1896  ;;  %3588 = vmatprep.subr.mxu1 %v6084_v58  ;;  %3621 = vmatprep.subr.mxu0 %v6084_v58 }
 0x3d0   : > { %4015 = vtanh.f32 %v2165_v44  ;;  %v2036_v30 = vmul.f32 %v5706_v5, %v1897_v36  ;;  %v1080_v44 = vld [vmem:[%s4783_s19 + $0x3c8] sm:$0xff]  ;;  %v2142_v35 = vadd.f32 %v2014_v43, %v1239_v28  ;;  %v2013_v36 = vmul.f32 %v5706_v5, %v5728_v21 }
 0x3d1   : > { %v4004_v10 = vpop.eup %4003  ;;  %4017 = vtanh.f32 %v2147_v26  ;;  %v1062_v26 = vld [vmem:[%s4783_s19 + $0x338] sm:$0xff] }
 0x3d2   : > { %v2164_v56 = vadd.f32 %v2036_v30, %v1261_v4  ;;  %3589 = vmatpush3.xpose.msra.mxu1 %v4002_v34  ;;  %3622 = vmatpush3.xpose.msra.mxu0 %v4004_v10  ;;  %v4006_v0 = vpop.eup %4005  ;;  %v1767_v30 = vpop.permute.xlu0 %1766  ;;  %v1256_v10 = vadd.f32 %v4988_v14, %v1080_v44  ;;  %v1238_v3 = vadd.f32 %v4985_v29, %v1062_v26 }
 0x3d3   : > { %v1892_v18 = vpop.permute.xlu1 %1891  ;;  %3590 = vmatprep.subr.mxu1 %v6084_v58  ;;  %3623 = vmatprep.subr.mxu0 %v6084_v58 }
 0x3d4   : > { %4019 = vtanh.f32 %v2164_v56  ;;  %v2035_v60 = vmul.f32 %v5706_v5, %v1892_v18  ;;  %v1079_v56 = vld [vmem:[%s4783_s19 + $0x3c0] sm:$0xff]  ;;  %v2141_v21 = vadd.f32 %v2013_v36, %v1238_v3  ;;  %v2012_v18 = vmul.f32 %v5706_v5, %v5743_v50 }
 0x3d5   : > { %v4008_v61 = vpop.eup %4007  ;;  %4021 = vtanh.f32 %v2146_v31  ;;  %v1061_v31 = vld [vmem:[%s4783_s19 + $0x330] sm:$0xff]  ;;  %v2011_v50 = vmul.f32 %v5706_v5, %v1772_v59  ;;  %v1075_v3 = vld [vmem:[%s4783_s19 + $0x3a0] sm:$0xff] }
 0x3d6   : > { %v2163_v55 = vadd.f32 %v2035_v60, %v1260_v39  ;;  %3591 = vmatpush3.xpose.msra.mxu1 %v4006_v0  ;;  %3624 = vmatpush3.xpose.msra.mxu0 %v4008_v61  ;;  %v4010_v57 = vpop.eup %4009  ;;  %v1255_v60 = vadd.f32 %v4988_v14, %v1079_v56  ;;  %v1237_v7 = vadd.f32 %v4985_v29, %v1061_v31  ;;  %v1762_v24 = vpop.permute.xlu0 %1761  ;;  %v1057_v56 = vld [vmem:[%s4783_s19 + $0x310] sm:$0xff] }
 0x3d7   : > { %v1887_v53 = vpop.permute.xlu1 %1886  ;;  %3625 = vmatprep.subr.mxu0 %v6084_v58  ;;  %3630 = vmatprep.subr.mxu1 %v6084_v58  ;;  %v2009_v26 = vmul.f32 %v5706_v5, %v1762_v24 }
 0x3d8   : > { %4023 = vtanh.f32 %v2163_v55  ;;  %v2034_v15 = vmul.f32 %v5706_v5, %v1887_v53  ;;  %v2857_v55 = vld [vmem:[%s4794_s24 + $0x2] sm:$0x1] }
 0x3d9   : > { %v4012_v51 = vpop.eup %4011  ;;  %3593 = vmatmul.mubr.f32.vlgmr.msra.gmra.mxu1 %v5748_v9  ;;  %4025 = vtanh.f32 %v2145_v13  ;;  %v1060_v13 = vld [vmem:[%s4783_s19 + $0x328] sm:$0xff]  ;;  %vm2865_vm5 = vcmp.eq.f32.partialorder %v2857_v55, 0.0 }
 0x3da   : > { %v2162_v54 = vadd.f32 %v2034_v15, %v1259_v1  ;;  %3626 = vmatpush3.xpose.msra.mxu0 %v4012_v51  ;;  %3631 = vmatpush3.xpose.msra.mxu1 %v4010_v57  ;;  %v4014_v20 = vpop.eup %4013  ;;  %v2140_v57 = vadd.f32 %v2012_v18, %v1237_v7  ;;  %v1077_v15 = vld [vmem:[%s4783_s19 + $0x3b0] sm:$0xff]  ;;  %v1757_v59 = vpop.permute.xlu0 %1756  ;;  %v1233_v7 = vadd.f32 %v4985_v29, %v1057_v56  ;;  %v1056_v55 = vld [vmem:[%s4783_s19 + $0x308] sm:$0xff] }
 0x3db   : > { %v1882_v16 = vpop.permute.xlu1 %1881  ;;  %3632 = vmatprep.subr.mxu1 %v6084_v58  ;;  %3665 = vmatprep.subr.mxu0 %v6084_v58  ;;  %v2008_v18 = vmul.f32 %v5706_v5, %v1757_v59  ;;  %v1072_v59 = vld [vmem:[%s4783_s19 + $0x388] sm:$0xff] }
 0x3dc   : > { %4027 = vtanh.f32 %v2162_v54  ;;  %v2033_v48 = vmul.f32 %v5706_v5, %v1882_v16  ;;  %3662 = vmatprep.mubr.msk.f32.mxu1 %vm4465_vm1, %v6084_v58  ;;  %v1236_v54 = vadd.f32 %v4985_v29, %v1060_v13  ;;  %v2860_v56 = vld [vmem:[%s4794_s24 + $0x5] sm:$0x1] }
 0x3dd   : > { %v4016_v62 = vpop.eup %4015  ;;  %3628 = vmatmul.mubr.f32.vlgmr.msra.gmra.mxu0 %v5748_v9  ;;  %4029 = vtanh.f32 %v2144_v12  ;;  %v2858_v12 = vld [vmem:[%s4794_s24 + $0x3] sm:$0x1]  ;;  %v2136_v24 = vadd.f32 %v2008_v18, %v1233_v7  ;;  %vm2868_vm8 = vcmp.eq.f32.partialorder %v2860_v56, 0.0  ;;  %v4110_v56 = vld [vmem:[%s4802_s9] sm:$0x1] }
 0x3de   : > { %v2161_v46 = vadd.f32 %v2033_v48, %v1258_v40  ;;  %3633 = vmatpush3.xpose.msra.mxu1 %v4014_v20  ;;  %3666 = vmatpush3.xpose.msra.mxu0 %v4016_v62  ;;  %v4018_v8 = vpop.eup %4017  ;;  %v1253_v40 = vadd.f32 %v4988_v14, %v1077_v15  ;;  %v2139_v48 = vadd.f32 %v2011_v50, %v1236_v54  ;;  %vm2866_vm6 = vcmp.eq.f32.partialorder %v2858_v12, 0.0  ;;  %v1752_v31 = vpop.permute.xlu0 %1751  ;;  %v1055_v54 = vld [vmem:[%s4783_s19 + $0x300] sm:$0xff] }
 0x3df   : > { %v1877_v45 = vpop.permute.xlu1 %1876  ;;  %3634 = vmatprep.subr.mxu1 %v6084_v58  ;;  %3667 = vmatprep.subr.mxu0 %v6084_v58  ;;  %v2010_v62 = vmul.f32 %v5706_v5, %v1767_v30  ;;  %v1250_v15 = vadd.f32 %v4988_v14, %v1074_v17 }
 0x3e0   : > { %4031 = vtanh.f32 %v2161_v46  ;;  %v2032_v52 = vmul.f32 %v5706_v5, %v1877_v45  ;;  %3697 = vmatprep.mubr.msk.f32.mxu0 %vm4465_vm1, %v6084_v58 }
 0x3e1   : > { %v4020_v32 = vpop.eup %4019  ;;  %4033 = vtanh.f32 %v2143_v63 }
 0x3e2   : > { %v2160_v38 = vadd.f32 %v2032_v52, %v1257_v42  ;;  %3635 = vmatpush3.xpose.msra.mxu1 %v4018_v8  ;;  %3668 = vmatpush3.xpose.msra.mxu0 %v4020_v32  ;;  %v4022_v4 = vpop.eup %4021  ;;  %v1235_v8 = vadd.f32 %v4985_v29, %v1059_v22  ;;  %v1076_v42 = vld [vmem:[%s4783_s19 + $0x3a8] sm:$0xff]  ;;  %v1058_v52 = vld [vmem:[%s4783_s19 + $0x318] sm:$0xff] }
 0x3e3   : > { %v1872_v34 = vpop.permute.xlu1 %1871  ;;  %3636 = vmatprep.subr.mxu1 %v6084_v58  ;;  %3669 = vmatprep.subr.mxu0 %v6084_v58 }
 0x3e4   : > { %4035 = vtanh.f32 %v2160_v38  ;;  %v2031_v33 = vmul.f32 %v5706_v5, %v1872_v34  ;;  %v2138_v44 = vadd.f32 %v2010_v62, %v1235_v8  ;;  %v1248_v8 = vadd.f32 %v4988_v14, %v1072_v59 }
 0x3e5   : > { %v4024_v2 = vpop.eup %4023  ;;  %4037 = vtanh.f32 %v2142_v35 }
 0x3e6   : > { %v2159_v6 = vadd.f32 %v2031_v33, %v1256_v10  ;;  %3637 = vmatpush3.xpose.msra.mxu1 %v4022_v4  ;;  %3670 = vmatpush3.xpose.msra.mxu0 %v4024_v2  ;;  %v4026_v39 = vpop.eup %4025  ;;  %v1252_v4 = vadd.f32 %v4988_v14, %v1076_v42  ;;  %v1234_v2 = vadd.f32 %v4985_v29, %v1058_v52 }
 0x3e7   : > { %v1867_v0 = vpop.permute.xlu1 %1866  ;;  %3638 = vmatprep.subr.mxu1 %v6084_v58  ;;  %3671 = vmatprep.subr.mxu0 %v6084_v58 }
 0x3e8   : > { %4039 = vtanh.f32 %v2159_v6  ;;  %v2030_v61 = vmul.f32 %v5706_v5, %v1867_v0 }
 0x3e9   : > { %v4028_v37 = vpop.eup %4027  ;;  %4041 = vtanh.f32 %v2141_v21  ;;  %v2137_v21 = vadd.f32 %v2009_v26, %v1234_v2 }
 0x3ea   : > { %v2158_v53 = vadd.f32 %v2030_v61, %v1255_v60  ;;  %3639 = vmatpush3.xpose.msra.mxu1 %v4026_v39  ;;  %3672 = vmatpush3.xpose.msra.mxu0 %v4028_v37  ;;  %v4030_v51 = vpop.eup %4029  ;;  %v1251_v60 = vadd.f32 %v4988_v14, %v1075_v3  ;;  %v2859_v3 = vld [vmem:[%s4794_s24 + $0x4] sm:$0x1] }
 0x3eb   : > { %v1862_v1 = vpop.permute.xlu1 %1861  ;;  %3640 = vmatprep.subr.mxu1 %v6084_v58  ;;  %3673 = vmatprep.subr.mxu0 %v6084_v58  ;;  %vm2867_vm7 = vcmp.eq.f32.partialorder %v2859_v3, 0.0 }
 0x3ec   : > { %4043 = vtanh.f32 %v2158_v53  ;;  %v2029_v19 = vmul.f32 %v5706_v5, %v1862_v1  ;;  %v2007_v53 = vmul.f32 %v5706_v5, %v1752_v31  ;;  %v1747_v1 = vpop.permute.xlu0 %1746 }
 0x3ed   : > { %v4032_v11 = vpop.eup %4031  ;;  %4045 = vtanh.f32 %v2140_v57 }
 0x3ee   : > { %v2157_v16 = vadd.f32 %v2029_v19, %v1254_v23  ;;  %v2501_v20 = vpop.f32.mrf.mxu1  ;;  %3641 = vmatpush3.xpose.msra.mxu1 %v4030_v51  ;;  %3674 = vmatpush3.xpose.msra.mxu0 %v4032_v11  ;;  %v4034_v47 = vpop.eup %4033  ;;  %v1232_v19 = vadd.f32 %v4985_v29, %v1056_v55  ;;  %v1073_v11 = vld [vmem:[%s4783_s19 + $0x390] sm:$0xff] }
 0x3ef   : > { %v5806_v25 = vsel %vm2865_vm5, -1e+30, %v2501_v20  ;;  %v1857_v49 = vpop.permute.xlu1 %1856  ;;  %3642 = vmatprep.subr.mxu1 %v6084_v58  ;;  %3675 = vmatprep.subr.mxu0 %v6084_v58 }
 0x3f0   : > { %4047 = vtanh.f32 %v2157_v16  ;;  %v2886_v46 = vsel %vm2879_vm3, %v5806_v25, -inf  ;;  %v2028_v63 = vmul.f32 %v5706_v5, %v1857_v49  ;;  %v3524_v43 = vpop.f32.mrf.mxu1  ;;  %v2135_v22 = vadd.f32 %v2007_v53, %v1232_v19 }
 0x3f1   : > { %v4036_v45 = vpop.eup %4035  ;;  %2887 = vmax.xlane.f32.xlu0 %v2886_v46  ;;  %4049 = vtanh.f32 %v2139_v48  ;;  %v2006_v16 = vmul.f32 %v5706_v5, %v1747_v1  ;;  %v1249_v48 = vadd.f32 %v4988_v14, %v1073_v11 }
 0x3f2   : > { %v2156_v32 = vadd.f32 %v2028_v63, %v1253_v40  ;;  %v2571_v28 = vpop.f32.mrf.mxu0  ;;  %3643 = vmatpush3.xpose.msra.mxu1 %v4034_v47  ;;  %3676 = vmatpush3.xpose.msra.mxu0 %v4036_v45  ;;  %v4038_v36 = vpop.eup %4037  ;;  %v1231_v47 = vadd.f32 %v4985_v29, %v1055_v54 }
 0x3f3   : > { %v5817_v38 = vsel %vm2866_vm6, -1e+30, %v2571_v28  ;;  %v1852_v35 = vpop.permute.xlu1 %1851  ;;  %3644 = vmatprep.subr.mxu1 %v6084_v58  ;;  %3677 = vmatprep.subr.mxu0 %v6084_v58 }
 0x3f4   : > { %4051 = vtanh.f32 %v2156_v32  ;;  %v2889_v34 = vsel %vm2879_vm3, %v5817_v38, -inf  ;;  %v2027_v30 = vmul.f32 %v5706_v5, %v1852_v35  ;;  %v3559_v10 = vpop.f32.mrf.mxu0  ;;  %v2134_v63 = vadd.f32 %v2006_v16, %v1231_v47  ;;  %v1071_v32 = vld [vmem:[%s4783_s19 + $0x380] sm:$0xff]  ;;  %s2993_s19 = scalar_lea.sflag [#allocation4], %s4779_s11 }
 0x3f5   : > { %v4040_v33 = vpop.eup %4039  ;;  %2890 = vmax.xlane.f32.xlu0 %v2889_v34  ;;  %4053 = vtanh.f32 %v2138_v44  ;;  %v1247_v26 = vadd.f32 %v4988_v14, %v1071_v32 }
 0x3f6   : > { %v2155_v6 = vadd.f32 %v2027_v30, %v1252_v4  ;;  %3645 = vmatpush3.xpose.msra.mxu1 %v4038_v36  ;;  %3678 = vmatpush3.xpose.msra.mxu0 %v4040_v33  ;;  %v4042_v39 = vpop.eup %4041 }
 0x3f7   : > { %v1847_v0 = vpop.permute.xlu1 %1846  ;;  %3646 = vmatprep.subr.mxu1 %v6084_v58  ;;  %3679 = vmatprep.subr.mxu0 %v6084_v58 }
 0x3f8   : > { %4055 = vtanh.f32 %v2155_v6  ;;  %v2026_v61 = vmul.f32 %v5706_v5, %v1847_v0 }
 0x3f9   : > { %v4044_v37 = vpop.eup %4043  ;;  %4057 = vtanh.f32 %v2137_v21 }
 0x3fa   : > { %v2154_v13 = vadd.f32 %v2026_v61, %v1251_v60  ;;  %3647 = vmatpush3.xpose.msra.mxu1 %v4042_v39  ;;  %3680 = vmatpush3.xpose.msra.mxu0 %v4044_v37  ;;  %v4046_v50 = vpop.eup %4045 }
 0x3fb   : > { %v1842_v57 = vpop.permute.xlu1 %1841  ;;  %3648 = vmatprep.subr.mxu1 %v6084_v58  ;;  %3681 = vmatprep.subr.mxu0 %v6084_v58 }
 0x3fc   : > { %4059 = vtanh.f32 %v2154_v13  ;;  %v2025_v51 = vmul.f32 %v5706_v5, %v1842_v57 }
 0x3fd   : > { %v4048_v23 = vpop.eup %4047  ;;  %4061 = vtanh.f32 %v2136_v24 }
 0x3fe   : > { %v2153_v12 = vadd.f32 %v2025_v51, %v1250_v15  ;;  %3649 = vmatpush3.xpose.msra.mxu1 %v4046_v50  ;;  %3682 = vmatpush3.xpose.msra.mxu0 %v4048_v23  ;;  %v4050_v40 = vpop.eup %4049  ;;  %v2861_v15 = vld [vmem:[%s4794_s24 + $0x6] sm:$0x1] }
 0x3ff   : > { %v1837_v20 = vpop.permute.xlu1 %1836  ;;  %3650 = vmatprep.subr.mxu1 %v6084_v58  ;;  %3683 = vmatprep.subr.mxu0 %v6084_v58  ;;  %vm2869_vm9 = vcmp.eq.f32.partialorder %v2861_v15, 0.0 }
 0x400   : > { %4063 = vtanh.f32 %v2153_v12  ;;  %v2024_v62 = vmul.f32 %v5706_v5, %v1837_v20 }
 0x401   : > { %v4052_v49 = vpop.eup %4051  ;;  %4065 = vtanh.f32 %v2135_v22 }
 0x402   : > { %v2152_v46 = vadd.f32 %v2024_v62, %v1249_v48  ;;  %3651 = vmatpush3.xpose.msra.mxu1 %v4050_v40  ;;  %3684 = vmatpush3.xpose.msra.mxu0 %v4052_v49  ;;  %v4054_v45 = vpop.eup %4053 }
 0x403   : > { %v1832_v43 = vpop.permute.xlu1 %1831  ;;  %3652 = vmatprep.subr.mxu1 %v6084_v58  ;;  %3685 = vmatprep.subr.mxu0 %v6084_v58 }
 0x404   : > { %4067 = vtanh.f32 %v2152_v46  ;;  %v2023_v42 = vmul.f32 %v5706_v5, %v1832_v43 }
 0x405   : > { %v4056_v52 = vpop.eup %4055  ;;  %4069 = vtanh.f32 %v2134_v63 }
 0x406   : > { %v2151_v29 = vadd.f32 %v2023_v42, %v1248_v8  ;;  %3653 = vmatpush3.xpose.msra.mxu1 %v4054_v45  ;;  %3686 = vmatpush3.xpose.msra.mxu0 %v4056_v52  ;;  %v4058_v44 = vpop.eup %4057 }
 0x407   : > { %v1827_v28 = vpop.permute.xlu1 %1826  ;;  %3654 = vmatprep.subr.mxu1 %v6084_v58  ;;  %3687 = vmatprep.subr.mxu0 %v6084_v58 }
 0x408   : > { %4071 = vtanh.f32 %v2151_v29  ;;  %v2022_v35 = vmul.f32 %v5706_v5, %v1827_v28 }
 0x409   : > { %v4060_v36 = vpop.eup %4059 }
 0x40a   : > { %v2150_v34 = vadd.f32 %v2022_v35, %v1247_v26  ;;  %3655 = vmatpush3.xpose.msra.mxu1 %v4058_v44  ;;  %3688 = vmatpush3.xpose.msra.mxu0 %v4060_v36  ;;  %v4062_v4 = vpop.eup %4061 }
 0x40b   : > { %3656 = vmatprep.subr.mxu1 %v6084_v58  ;;  %3689 = vmatprep.subr.mxu0 %v6084_v58 }
 0x40c   : > { %4073 = vtanh.f32 %v2150_v34 }
 0x40d   : > { %v4064_v30 = vpop.eup %4063 }
 0x40e   : > { %3657 = vmatpush3.xpose.msra.mxu1 %v4062_v4  ;;  %3690 = vmatpush3.xpose.msra.mxu0 %v4064_v30  ;;  %v4066_v14 = vpop.eup %4065  ;;  %v2882_v61 = vpop.xlane.xlu0 %2881 }
 0x40f   : > { %3658 = vmatprep.subr.mxu1 %v6084_v58  ;;  %3691 = vmatprep.subr.mxu0 %v6084_v58 }
 0x411   : > { %v4068_v5 = vpop.eup %4067 }
 0x412   : > { %3659 = vmatpush3.xpose.msra.mxu1 %v4066_v14  ;;  %3692 = vmatpush3.xpose.msra.mxu0 %v4068_v5  ;;  %v4070_v10 = vpop.eup %4069 }
 0x413   : > { %3660 = vmatprep.subr.mxu1 %v6084_v58  ;;  %3693 = vmatprep.subr.mxu0 %v6084_v58 }
 0x415   : > { %v4072_v33 = vpop.eup %4071 }
 0x416   : > { %3661 = vmatpush3.xpose.msra.mxu1 %v4070_v10  ;;  %3694 = vmatpush3.xpose.msra.mxu0 %v4072_v33 }
 0x417   : > { %3695 = vmatprep.subr.mxu0 %v6084_v58 }
 0x419   : > { %v4074_v2 = vpop.eup %4073  ;;  %3663 = vmatmul.mubr.f32.vlgmr.msra.gmra.mxu1 %v5748_v9 }
 0x41a   : > { %3696 = vmatpush3.xpose.msra.mxu0 %v4074_v2 }
 0x41d   : > { %3698 = vmatmul.mubr.f32.vlgmr.msra.gmra.mxu0 %v5748_v9  ;;  %v2904_v9 = vsub.f32 %v5528_v41, %v2882_v61  ;;  %v2862_v41 = vld [vmem:[%s4794_s24 + $0x7] sm:$0x1]  ;;  %s4340_s24 = scalar_lea.vmem %s4339_s28, 256 }
 0x41e   : > { %vm2870_vm10 = vcmp.eq.f32.partialorder %v2862_v41, 0.0  ;;  %p4342_p2 = scmp.lt.s32.totalorder %s4340_s24, %s4334_s17 }
 0x41f   : > { %v2912_v55 = vmul.f32 1.442695, %v2904_v9 }
 0x420   : > { %p4343_p13 = por %p4342_p2, %p4341_p7 }
 0x421   : > { %4075 = vpow2.f32 %v2912_v55 }
 0x422   : > { %p4344_p12 = pnand %p4343_p13, %p4337_p4 }
 0x439   : > { %v2885_v7 = vpop.xlane.xlu1 %2884 }
 0x43a   : > { %v2905_v17 = vsub.f32 %v5620_v27, %v2885_v7 }
 0x43c   : > { %v2914_v53 = vmul.f32 1.442695, %v2905_v17  ;;  %v4113_v17 = vld [vmem:[%s4802_s9 + $0x3] sm:$0x1] }
 0x43e   : > { %4077 = vpow2.f32 %v2914_v53 }
 0x47a   : > { %v2888_v37 = vpop.xlane.xlu0 %2887 }
 0x47b   : > { %v2906_v13 = vsub.f32 %v5806_v25, %v2888_v37  ;;  %v4076_v25 = vpop.eup %4075  ;;  %v4112_v37 = vld [vmem:[%s4802_s9 + $0x1] sm:$0x1] }
 0x47c   : > { %v4078_v12 = vpop.eup %4077  ;;  %v2928_v16 = vsel %vm2879_vm3, %v4076_v25, 0.0 }
 0x47d   : > { %v2916_v57 = vmul.f32 1.442695, %v2906_v13  ;;  %v2931_v48 = vsel %vm2879_vm3, %v4078_v12, 0.0 }
 0x47e   : > { %v2891_v24 = vpop.xlane.xlu0 %2890 }
 0x47f   : > { %v2907_v50 = vsub.f32 %v5817_v38, %v2891_v24  ;;  %4079 = vpow2.f32 %v2916_v57 }
 0x481   : > { %v2918_v1 = vmul.f32 1.442695, %v2907_v50  ;;  %v4114_v50 = vld [vmem:[%s4802_s9 + $0x4] sm:$0x1] }
 0x483   : > { %4081 = vpow2.f32 %v2918_v1 }
 0x48c   : > { %v4080_v20 = vpop.eup %4079 }
 0x48d   : > { %v2934_v40 = vsel %vm2879_vm3, %v4080_v20, 0.0 }
 0x490   : > { %v4082_v62 = vpop.eup %4081 }
 0x491   : > { %v2937_v49 = vsel %vm2879_vm3, %v4082_v62, 0.0 }
 0x499   : > { %v2641_v31 = vpop.f32.mrf.mxu1 }
 0x49a   : > { %v2875_v6 = vsel %vm2867_vm7, -1e+30, %v2641_v31 }
 0x49b   : > { %v2892_v21 = vsel %vm2879_vm3, %v2875_v6, -inf  ;;  %v3594_v18 = vpop.f32.mrf.mxu1 }
 0x49c   : > { %2893 = vmax.xlane.f32.xlu1 %v2892_v21 }
 0x49d   : > { %v2711_v0 = vpop.f32.mrf.mxu0 }
 0x49e   : > { %v2876_v39 = vsel %vm2868_vm8, -1e+30, %v2711_v0 }
 0x49f   : > { %v2895_v58 = vsel %vm2879_vm3, %v2876_v39, -inf  ;;  %v3629_v60 = vpop.f32.mrf.mxu0 }
 0x4a0   : > { %2896 = vmax.xlane.f32.xlu0 %v2895_v58  ;;  %v4111_v60 = vld [vmem:[%s4802_s9 + $0x2] sm:$0x1] }
 0x4d9   : > { %v2781_v51 = vpop.f32.mrf.mxu1 }
 0x4da   : > { %v2877_v23 = vsel %vm2869_vm9, -1e+30, %v2781_v51  ;;  %v4115_v51 = vld [vmem:[%s4802_s9 + $0x5] sm:$0x1] }
 0x4db   : > { %v2898_v27 = vsel %vm2879_vm3, %v2877_v23, -inf  ;;  %v3664_v19 = vpop.f32.mrf.mxu1 }
 0x4dc   : > { %2899 = vmax.xlane.f32.xlu1 %v2898_v27 }
 0x4dd   : > { %v2851_v11 = vpop.f32.mrf.mxu0 }
 0x4de   : > { %v2878_v54 = vsel %vm2870_vm10, -1e+30, %v2851_v11 }
 0x4df   : > { %v2901_v38 = vsel %vm2879_vm3, %v2878_v54, -inf  ;;  %v3699_v22 = vpop.f32.mrf.mxu0 }
 0x4e0   : > { %2929 = vadd.xlane.f32.xlu1 %v2928_v16  ;;  %2902 = vmax.xlane.f32.xlu0 %v2901_v38  ;;  %v4117_v16 = vld [vmem:[%s4802_s9 + $0x7] sm:$0x1] }
 0x4e4   : > { %2935 = vadd.xlane.f32.xlu1 %v2934_v40  ;;  %2932 = vadd.xlane.f32.xlu0 %v2931_v48 }
 0x4e8   : > { %2938 = vadd.xlane.f32.xlu0 %v2937_v49 }
 0x525   : > { %v2894_v47 = vpop.xlane.xlu1 %2893 }
 0x526   : > { %v2908_v59 = vsub.f32 %v2875_v6, %v2894_v47 }
 0x528   : > { %v2920_v46 = vmul.f32 1.442695, %v2908_v59 }
 0x529   : > { %v2897_v63 = vpop.xlane.xlu0 %2896 }
 0x52a   : > { %4083 = vpow2.f32 %v2920_v46  ;;  %v2909_v43 = vsub.f32 %v2876_v39, %v2897_v63 }
 0x52c   : > { %v2922_v45 = vmul.f32 1.442695, %v2909_v43 }
 0x52e   : > { %4085 = vpow2.f32 %v2922_v45 }
 0x537   : > { %v4084_v8 = vpop.eup %4083 }
 0x538   : > { %v2940_v42 = vsel %vm2879_vm3, %v4084_v8, 0.0 }
 0x539   : > { %2941 = vadd.xlane.f32.xlu1 %v2940_v42 }
 0x53b   : > { %v4086_v52 = vpop.eup %4085 }
 0x53c   : > { %v2943_v32 = vsel %vm2879_vm3, %v4086_v52, 0.0 }
 0x53d   : > { %2944 = vadd.xlane.f32.xlu0 %v2943_v32 }
 0x565   : > { %v2900_v29 = vpop.xlane.xlu1 %2899 }
 0x566   : > { %v2910_v28 = vsub.f32 %v2877_v23, %v2900_v29 }
 0x568   : > { %v2924_v44 = vmul.f32 1.442695, %v2910_v28 }
 0x569   : > { %v2930_v26 = vpop.xlane.xlu1 %2929  ;;  %v2903_v35 = vpop.xlane.xlu0 %2902 }
 0x56a   : > { %4087 = vpow2.f32 %v2924_v44  ;;  %v2911_v36 = vsub.f32 %v2878_v54, %v2903_v35  ;;  %v4116_v54 = vld [vmem:[%s4802_s9 + $0x6] sm:$0x1] }
 0x56b   : > { %4089 = vrcp.f32 %v2930_v26 }
 0x56c   : > { %v2926_v34 = vmul.f32 1.442695, %v2911_v36 }
 0x56d   : > { %v2936_v4 = vpop.xlane.xlu1 %2935  ;;  %v2933_v30 = vpop.xlane.xlu0 %2932 }
 0x56e   : > { %4091 = vpow2.f32 %v2926_v34 }
 0x56f   : > { %4093 = vrcp.f32 %v2936_v4 }
 0x570   : > { %4095 = vrcp.f32 %v2933_v30 }
 0x571   : > { %v2939_v14 = vpop.xlane.xlu0 %2938 }
 0x572   : > { %4097 = vrcp.f32 %v2939_v14 }
 0x577   : > { %v4088_v5 = vpop.eup %4087 }
 0x578   : > { %v4090_v10 = vpop.eup %4089  ;;  %v2946_v33 = vsel %vm2879_vm3, %v4088_v5, 0.0 }
 0x579   : > { %v2953_v2 = vmul.f32 %v4090_v10, %v4076_v25  ;;  %2947 = vadd.xlane.f32.xlu1 %v2946_v33 }
 0x57b   : > { %v4092_v3 = vpop.eup %4091  ;;  %2968 = vst [vmem:[%s5889_s15] sm:$0x1] %v2953_v2  ;;  %v2976_v31 = vadd.f32 %v4110_v56, %v2953_v2 }
 0x57c   : > { %v4094_v6 = vpop.eup %4093  ;;  %v2949_v21 = vsel %vm2879_vm3, %v4092_v3, 0.0 }
 0x57d   : > { %v4096_v18 = vpop.eup %4095  ;;  %2984 = vst [vmem:[%s5895_s5] sm:$0x1] %v2976_v31  ;;  %v2957_v0 = vmul.f32 %v4094_v6, %v4080_v20  ;;  %2950 = vadd.xlane.f32.xlu0 %v2949_v21 }
 0x57e   : > { %v2955_v39 = vmul.f32 %v4096_v18, %v4078_v12 }
 0x57f   : > { %v4098_v58 = vpop.eup %4097  ;;  %2970 = vst [vmem:[%s5889_s15 + $0x2] sm:$0x1] %v2957_v0  ;;  %v2978_v61 = vadd.f32 %v4111_v60, %v2957_v0 }
 0x580   : > { %2969 = vst [vmem:[%s5889_s15 + $0x1] sm:$0x1] %v2955_v39  ;;  %v2977_v9 = vadd.f32 %v4112_v37, %v2955_v39  ;;  %v2959_v7 = vmul.f32 %v4098_v58, %v4082_v62 }
 0x581   : > { %2986 = vst [vmem:[%s5895_s5 + $0x2] sm:$0x1] %v2978_v61 }
 0x582   : > { %2985 = vst [vmem:[%s5895_s5 + $0x1] sm:$0x1] %v2977_v9  ;;  %2971 = vst [vmem:[%s5889_s15 + $0x3] sm:$0x1] %v2959_v7  ;;  %v2979_v55 = vadd.f32 %v4113_v17, %v2959_v7 }
 0x584   : > { %2987 = vst [vmem:[%s5895_s5 + $0x3] sm:$0x1] %v2979_v55 }
 0x5c2   : > { %v2942_v13 = vpop.xlane.xlu1 %2941 }
 0x5c3   : > { %4099 = vrcp.f32 %v2942_v13 }
 0x5c6   : > { %v2945_v24 = vpop.xlane.xlu0 %2944 }
 0x5c7   : > { %4101 = vrcp.f32 %v2945_v24 }
 0x5d0   : > { %v4100_v53 = vpop.eup %4099 }
 0x5d1   : > { %v2961_v57 = vmul.f32 %v4100_v53, %v4084_v8 }
 0x5d3   : > { %2972 = vst [vmem:[%s5889_s15 + $0x4] sm:$0x1] %v2961_v57  ;;  %v2980_v1 = vadd.f32 %v4114_v50, %v2961_v57 }
 0x5d4   : > { %v4102_v15 = vpop.eup %4101 }
 0x5d5   : > { %2988 = vst [vmem:[%s5895_s5 + $0x4] sm:$0x1] %v2980_v1  ;;  %v2963_v41 = vmul.f32 %v4102_v15, %v4086_v52 }
 0x5d7   : > { %2973 = vst [vmem:[%s5889_s15 + $0x5] sm:$0x1] %v2963_v41  ;;  %v2981_v23 = vadd.f32 %v4115_v51, %v2963_v41 }
 0x5d9   : > { %2989 = vst [vmem:[%s5895_s5 + $0x5] sm:$0x1] %v2981_v23 }
 0x602   : > { %v2948_v27 = vpop.xlane.xlu1 %2947 }
 0x603   : > { %4103 = vrcp.f32 %v2948_v27 }
 0x606   : > { %v2951_v19 = vpop.xlane.xlu0 %2950 }
 0x607   : > { %4105 = vrcp.f32 %v2951_v19 }
 0x610   : > { %v4104_v25 = vpop.eup %4103 }
 0x611   : > { %v2965_v11 = vmul.f32 %v4104_v25, %v4088_v5 }
 0x613   : > { %2974 = vst [vmem:[%s5889_s15 + $0x6] sm:$0x1] %v2965_v11  ;;  %v2982_v12 = vadd.f32 %v4116_v54, %v2965_v11 }
 0x614   : > { %v4106_v38 = vpop.eup %4105 }
 0x615   : > { %2990 = vst [vmem:[%s5895_s5 + $0x6] sm:$0x1] %v2982_v12  ;;  %v2967_v22 = vmul.f32 %v4106_v38, %v4092_v3 }
 0x617   : > { %2975 = vst [vmem:[%s5889_s15 + $0x7] sm:$0x1] %v2967_v22  ;;  %v2983_v20 = vadd.f32 %v4117_v16, %v2967_v22 }
 0x618   : > { %4347 = shalt.err (!%p4344_p12)
}
 0x619   : > { %s4348_s16 = scalar_lea.hbm %s5920_s27, 128  ;;  %s4352_s1 = scalar_lea.hbm %s6011_s8, 512 }
 0x61a   : > { %p4349_p9 = scmp.ne.s32.totalorder %s5920_s27, %s4348_s16  ;;  %p4353_p8 = scmp.lt.s32.totalorder %s5920_s27, %s6011_s8 }
 0x61b   : > { %p4354_p10 = scmp.lt.s32.totalorder %s4352_s1, %s4348_s16 }
 0x61c   : > { %p4350_p1 = pnand %p4349_p9, %p6098_p3 }
 0x61d   : > { %p4355_p11 = por %p4354_p10, %p4353_p8 }
 0x61e   : > { %p4351_p6 = pneg %p4350_p1 }
 0x620   : > { %p4356_p0 = pnand %p4355_p11, %p4351_p6 }
 0x622   : > { %4359 = shalt.err (!%p4356_p0)
}
 0x623   : > { %s4467_s21 = smov 16   ;;  %s4468_s18 = smov 1   ;;  %2991 = vst [vmem:[%s5895_s5 + $0x7] sm:$0x1] %v2983_v20 }
 0x624   : > { %3724 = dma.vmem_to_hbm [thread:$0]  (%p6098_p3), %s5922_s29, 128, %s5920_s27, %s2993_s19, %s4467_s21, %s4467_s21, %s4468_s18  }
 0x625   : > { %s2998_s13 = scalar_lea.sflag [#allocation18], %s4779_s11  ;;  %s4360_s30 = scalar_lea.vmem %s5933_s23, 128 }
 0x626   : > { %p4361_p5 = scmp.ne.s32.totalorder %s5933_s23, %s4360_s30  ;;  %s4469_s17 = smov [#allocation17]  }
 0x627   : > { %s4364_s14 = sshll.u32 %s4469_s17, 4  ;;  %s4365_s14 = int_to_ptr.vmem [resolvable:$false] %s4364_s14 }
 0x628   : > { %p4362_p4 = pnand %p4361_p5, %p6098_p3  ;;  %s4366_s28 = scalar_lea.vmem %s4365_s14, 256 }
 0x629   : > { %p4367_p2 = scmp.lt.s32.totalorder %s5933_s23, %s4365_s14  ;;  %p4368_p13 = scmp.lt.s32.totalorder %s4366_s28, %s4360_s30 }
 0x62a   : > { %p4363_p7 = pneg %p4362_p4 }
 0x62b   : > { %p4369_p12 = por %p4368_p13, %p4367_p2 }
 0x62d   : > { %p4370_p9 = pnand %p4369_p12, %p4363_p7 }
 0x62f   : > { %4373 = shalt.err (!%p4370_p9)
}
 0x630   : > { %s4374_s5 = scalar_lea.hbm %s5931_s4, 128  ;;  %s4378_s27 = scalar_lea.hbm %s6097_s25, 512 }
 0x631   : > { %p4375_p1 = scmp.ne.s32.totalorder %s5931_s4, %s4374_s5  ;;  %p4379_p10 = scmp.lt.s32.totalorder %s5931_s4, %s6097_s25 }
 0x632   : > { %p4380_p11 = scmp.lt.s32.totalorder %s4378_s27, %s4374_s5 }
 0x633   : > { %p4376_p6 = pnand %p4375_p1, %p6098_p3 }
 0x634   : > { %p4381_p0 = por %p4380_p11, %p4379_p10 }
 0x635   : > { %p4377_p8 = pneg %p4376_p6 }
 0x637   : > { %p4382_p5 = pnand %p4381_p0, %p4377_p8 }
 0x639   : > { %4385 = shalt.err (!%p4382_p5)
}
 0x63a   : > { %3725 = dma.vmem_to_hbm [thread:$0]  (%p6098_p3), %s5933_s23, 128, %s5931_s4, %s2998_s13, %s4467_s21, %s4467_s21, %s4468_s18  }
 0x63b PF: > { %s6099_s16 = sld [smem:[#allocation27_spill]]  ;;  %p3770_p4 = scmp.ge.s32.totalorder %s4448_s12, 2 }
 0x63c   : > { %s6100_s9 = sld [smem:[#allocation29_spill]] }
 0x641   : > { %s3042_s20 = sand.u32 1, %s6099_s16  }
 0x642   : > { %p6101_p7 = scmp.ne.s32.totalorder %s6100_s9, 0  ;;  %s3043_s1 = scalar_lea.sflag [#allocation4], %s3042_s20 }
 0x644   : > { %p3755_p2 = pnand %p3770_p4, %p6101_p7 }
 0x646   : > { %p3756_p13 = pneg %p3755_p2 }
 0x648   : > { %4427 = dma.done.wait (%p3756_p13), %s3043_s1, 128  }
 0x649   : > { %4429 = vsyncadd (%p3756_p13), %s3043_s1, 4294967168  ;;  %s3052_s15 = scalar_lea.sflag [#allocation18], %s3042_s20 }
 0x64a   : > { %4431 = dma.done.wait (%p3756_p13), %s3052_s15, 128  }
 0x64b   : > { %4433 = vsyncadd (%p3756_p13), %s3052_s15, 4294967168  ;;  %s6102_s12 = sld [smem:[#allocation30_spill]]  ;;  %s6105_s30 = smov %s4440_s10 }
 0x64c   : > { %s6103_s26 = sld [smem:[#allocation28_spill]] }
 0x64d   : > { %s6104_s11 = sld [smem:[#allocation31_spill]] }
 0x651   : > { %p34_p3 = scmp.ge.s32.totalorder %s6102_s12, 6  }
 0x652   : > { %s6106_s10 = smov %s6103_s26 }
 0x653   :  { %36 = sbr.rel (!%p34_p3) target bundleno = 18 (0x12), region = 167 }
 0x658   :  { %3057 = vsyncpa [#allocation3], 1 }
 0x659   :  { %3059 = vsyncpa [#allocation3 + $0x1], 1 }
 0x65a   :  { %3060 = vsyncpa [#allocation6], 1 }
 0x65b   :  { %3062 = vsyncpa [#allocation6 + $0x1], 1 }
 0x65c   :  { %3063 = vsyncpa [#allocation9], 1 }
 0x65d   :  { %3065 = vsyncpa [#allocation9 + $0x1], 1 }
 0x65e   :  { %3066 = vsyncpa [#allocation12], 1 }
 0x65f   :  { %3067 = vsyncpa [#allocation15], 1 }
 0x660   :  { %3068 = vsyncpa [#allocation4], 1 }
 0x661   :  { %3070 = vsyncpa [#allocation4 + $0x1], 1 }
 0x662   :  { %3071 = vsyncpa [#allocation18], 1 }
 0x663   :  { %3073 = vsyncpa [#allocation18 + $0x1], 1 }

// kernel: tpu_custom_call.1
= control target key start
LH: loop header
LB: loop body
LE: loop exit
PB: predicated region body
PF: predicated region fallthrough
CT: control target
= control target key end

     0   :  { %s6444_s0 = inlined_call_operand.vmem [shape: f32[32,128,128], index: 0, kind: input, shape index: {}]   ;;  %s6445_s1 = inlined_call_operand.vmem [shape: f32[32,1,128], index: 1, kind: input, shape index: {}]   ;;  %s6446_s2 = inlined_call_operand.vmem [shape: f32[32,128,1], index: 2, kind: input, shape index: {}]   ;;  %s6447_s3 = inlined_call_operand.hbm [shape: f32[32,1,128], index: 3, kind: input, shape index: {}]   ;;  %s6448_s4 = inlined_call_operand.hbm [shape: f32[32,1,136], index: 4, kind: input, shape index: {}]   ;;  %s6449_s5 = inlined_call_operand.hbm [shape: f32[1,136,128], index: 5, kind: input, shape index: {}]   ;;  %s6450_s6 = inlined_call_operand.vmem [shape: f32[1,1,128], index: 6, kind: input, shape index: {}]   ;;  %s6451_s7 = inlined_call_operand.vmem [shape: f32[1,1,128], index: 7, kind: input, shape index: {}]   ;;  %s6452_s8 = inlined_call_operand.vmem [shape: f32[1,1,128], index: 8, kind: input, shape index: {}]   ;;  %s6453_s9 = inlined_call_operand.hbm [shape: f32[32,1,128], index: 9, kind: output, shape index: {0}]   ;;  %s6454_s10 = inlined_call_operand.hbm [shape: f32[32,1,128], index: 10, kind: output, shape index: {1}]  }
   0x1   :  { %6466 = sst [smem:[#allocation24_spill]] %s6447_s3 }
   0x2   :  { %6467 = sst [smem:[#allocation25_spill]] %s6449_s5 }
   0x3   :  { %6468 = sst [smem:[#allocation26_spill]] %s6454_s10 }
   0x4   :  { %16 = vsyncpa [#allocation3], 0 }
   0x5   :  { %18 = vsyncpa [#allocation3 + $0x1], 0 }
   0x6   :  { %19 = vsyncpa [#allocation6], 0 }
   0x7   :  { %21 = vsyncpa [#allocation6 + $0x1], 0 }
   0x8   :  { %22 = vsyncpa [#allocation4], 0 }
   0x9   :  { %24 = vsyncpa [#allocation4 + $0x1], 0 }
   0xa   :  { %25 = vsyncpa [#allocation10], 0 }
   0xb   :  { %27 = vsyncpa [#allocation10 + $0x1], 0  ;;  %s4651_s13 = smov 0   ;;  %s4653_s14 = smov 0  }
   0xc   :  { %s4655_s15 = smov 0   ;;  %s4657_s16 = smov 0  }
   0xd LB: > { %6469 = sst [smem:[#allocation16_spill]] %s4566_s13  ;;  %s4672_s17 = sadd.s32 4294967295, %s4578_s16   ;;  %s4578_s16 = sphi %s4657_s16, %s6499_s16   ;;  %s4574_s15 = sphi %s4655_s15, %s6501_s15   ;;  %s4570_s14 = sphi %s4653_s14, %s6503_s14   ;;  %s4566_s13 = sphi %s4651_s13, %s6502_s13  }
   0xe   : > { %6470 = sst [smem:[#allocation17_spill]] %s4574_s15  ;;  %s3558_s18 = sadd.s32 4294967294, %s4578_s16  }
   0xf   : > { %p131_p0 = scmp.ne.s32.totalorder %s4570_s14, %s4566_s13  ;;  %p6457_p1 = scmp.eq.s32.totalorder %s4672_s17, 0 }
  0x10   : > { %p271_p3 = scmp.eq.s32.totalorder %s3558_s18, 3  ;;  %p3559_p5 = scmp.ge.s32.totalorder %s4578_s16, 1 }
  0x11   : > { %p4681_p4 = por %p6457_p1, %p131_p0  ;;  %p304_p7 = scmp.lt.s32.totalorder %s4578_s16, 5 }
  0x12   : > { %p4686_p6 = por %p271_p3, %p131_p0  ;;  %s4580_s22 = smov [#allocation7]  }
  0x13   : > { %s6471_s19 = scalar_select %p4681_p4, 1, 0 }
  0x14   : > { %s6472_s20 = scalar_select %p4686_p6, 1, 0 }
  0x15   : > { %p4691_p8 = pnand %p3559_p5, %p304_p7  ;;  %s316_s23 = sshll.u32 %s4580_s22, 4  ;;  %s317_s23 = int_to_ptr.vmem [resolvable:$true] %s316_s23 }
  0x16   : > { %6473 = sst [smem:[#allocation18_spill]] %s6472_s20  ;;  %s4704_s25 = sadd.s32 1, %s4578_s16  }
  0x17   : > { %p4034_p9 = pneg %p4691_p8  ;;  %6476 = sst [smem:[#allocation19_spill]] %s4704_s25 }
  0x18   : > { %s118_s26 = sadd.s32 1, %s4574_s15  ;;  %s115_s27 = ssub.s32 %s4578_s16, %s4704_s25 }
  0x19   : > { %p4699_p10 = pnand %p4034_p9, %p6457_p1  ;;  %s4405_s28 = scalar_lea.vmem %s317_s23, 2176 }
  0x1a   : > { %p4406_p12 = scmp.ne.s32.totalorder %s317_s23, %s4405_s28  ;;  %p4413_p3 = scmp.lt.s32.totalorder %s317_s23, %s317_s23 }
  0x1b   : > { %p4396_p11 = pneg %p4699_p10  ;;  %p4414_p5 = scmp.lt.s32.totalorder %s4405_s28, %s4405_s28 }
  0x1d   : > { %p4408_p13 = pnand %p4406_p12, %p4396_p11  ;;  %p4415_p7 = por %p4414_p5, %p4413_p3 }
  0x1f   : > { %p4409_p0 = pneg %p4408_p13 }
  0x21   : > { %p4416_p2 = pnand %p4415_p7, %p4409_p0 }
  0x23   : > { %4419 = shalt.err (!%p4416_p2)
}
  0x24   : > { %s4581_s29 = smov 128   ;;  %s4582_s30 = smov 8  }
  0x25   : > { %s6477_s5 = sld [smem:[#allocation25_spill]]  ;;  %p116_p9 = scmp.eq.s32.totalorder %s115_s27, 0 }
  0x26   : > { %p125_p11 = scmp.ne.s32.totalorder %s4574_s15, %s4570_s14  ;;  %p126_p12 = scmp.eq.s32.totalorder %s4578_s16, 0 }
  0x27   : > { %p4053_p2 = scmp.lt.s32.totalorder %s4578_s16, 4  ;;  %p6479_p0 = scmp.eq.s32.totalorder %s4672_s17, 3 }
  0x28   : > { %s4721_s18 = scalar_select %p116_p9, %s4574_s15, %s118_s26  }
  0x29   : > { %p127_p13 = por %p126_p12, %p125_p11  ;;  %p4725_p3 = por %p6479_p0, %p125_p11 }
  0x2a   : > { %6478 = sst [smem:[#allocation20_spill]] %s4721_s18  ;;  %s4730_s28 = sand.u32 1, %s4574_s15  }
  0x2b   : > { %4037 = dma.hbm_to_vmem [thread:$0]  (!%p4699_p10), %s6477_s5, 2176, %s317_s23, [#allocation6], %s4581_s29, %s4581_s29, %s4582_s30  }
  0x2c   : > { %s6480_s22 = scalar_select %p4725_p3, 1, 0 }
  0x2d   : > { %s3599_s24 = sshll.u32 %s4578_s16, 7  ;;  %s3562_s25 = sshll.u32 %s4730_s28, 3 }
  0x2e   : > { %s6481_s3 = sld [smem:[#allocation24_spill]]  ;;  %s371_s26 = scalar_lea.vmem [#allocation2], %s3562_s25 }
  0x2f   : > { %s378_s29 = sshll.u32 %s371_s26, 4  ;;  %p4739_p10 = pnand %p4053_p2, %p127_p13  ;;  %s4743_s29 = int_to_ptr.vmem [resolvable:$true] %s378_s29 }
  0x31   : > { %p4422_p7 = pneg %p4739_p10 }
  0x34   : > { %s4737_s27 = scalar_lea.hbm %s6481_s3, %s3599_s24  ;;  %s4425_s11 = scalar_lea.hbm %s6481_s3, 512 }
  0x35   : > { %s4420_s5 = scalar_lea.hbm %s4737_s27, 128  ;;  %p4426_p12 = scmp.lt.s32.totalorder %s4737_s27, %s6481_s3 }
  0x36   : > { %p4421_p5 = scmp.ne.s32.totalorder %s4737_s27, %s4420_s5  ;;  %p4427_p2 = scmp.lt.s32.totalorder %s4425_s11, %s4420_s5 }
  0x38   : > { %p4423_p9 = pnand %p4422_p7, %p4421_p5  ;;  %p4428_p13 = por %p4427_p2, %p4426_p12 }
  0x3a   : > { %p4424_p11 = pneg %p4423_p9 }
  0x3c   : > { %p4429_p0 = pnand %p4428_p13, %p4424_p11 }
  0x3e   : > { %4432 = shalt.err (!%p4429_p0)
}
  0x3f   : > { %s4433_s12 = scalar_lea.vmem %s4743_s29, 128  ;;  %s4583_s24 = smov [#allocation2]  }
  0x40   : > { %p4434_p1 = scmp.ne.s32.totalorder %s4743_s29, %s4433_s12  ;;  %s4438_s25 = sshll.u32 %s4583_s24, 4  ;;  %s4439_s25 = int_to_ptr.vmem [resolvable:$false] %s4438_s25 }
  0x41   : > { %s4440_s18 = scalar_lea.vmem %s4439_s25, 256  ;;  %p4441_p6 = scmp.lt.s32.totalorder %s4743_s29, %s4439_s25 }
  0x42   : > { %p4436_p5 = pnand %p4434_p1, %p4422_p7  ;;  %p4442_p3 = scmp.lt.s32.totalorder %s4440_s18, %s4433_s12 }
  0x44   : > { %p4437_p9 = pneg %p4436_p5  ;;  %p4443_p4 = por %p4442_p3, %p4441_p6 }
  0x46   : > { %p4444_p12 = pnand %p4443_p4, %p4437_p9 }
  0x48   : > { %4447 = shalt.err (!%p4444_p12)
}
  0x49   : > { %s4584_s5 = smov 16   ;;  %s4585_s11 = smov 1  }
  0x4a   : > { %s6483_s23 = scalar_lea.sflag [#allocation3], %s4730_s28  ;;  %s388_s26 = sand.u32 1, %s4578_s16  }
  0x4b   : > { %4041 = dma.hbm_to_vmem [thread:$0]  (!%p4739_p10), %s4737_s27, 128, %s4743_s29, %s6483_s23, %s4584_s5, %s4584_s5, %s4585_s11  }
  0x4c   : > { %s3565_s24 = sshll.u32 %s4730_s28, 4  ;;  %s3601_s25 = sshll.u32 %s4578_s16, 8 }
  0x4d   : > { %s392_s18 = scalar_lea.vmem [#allocation5], %s3565_s24  ;;  %s4778_s20 = scalar_lea.hbm %s6448_s4, %s3601_s25 }
  0x4e   : > { %s400_s12 = sshll.u32 %s392_s18, 4  ;;  %s4782_s13 = scalar_lea.sflag [#allocation6], %s388_s26  ;;  %s4780_s12 = int_to_ptr.vmem [resolvable:$true] %s400_s12 }
  0x4f   : > { %s4448_s10 = scalar_lea.hbm %s4778_s20, 256  ;;  %s4453_s29 = scalar_lea.hbm %s6448_s4, 1024 }
  0x50   : > { %p4449_p1 = scmp.ne.s32.totalorder %s4778_s20, %s4448_s10  ;;  %p4454_p3 = scmp.lt.s32.totalorder %s4778_s20, %s6448_s4 }
  0x51   : > { %p4455_p11 = scmp.lt.s32.totalorder %s4453_s29, %s4448_s10 }
  0x52   : > { %p4451_p4 = pnand %p4449_p1, %p4422_p7 }
  0x53   : > { %p4456_p2 = por %p4455_p11, %p4454_p3 }
  0x54   : > { %p4452_p6 = pneg %p4451_p4 }
  0x56   : > { %p4457_p13 = pnand %p4456_p2, %p4452_p6 }
  0x58   : > { %4460 = shalt.err (!%p4457_p13)
}
  0x59   : > { %s4461_s5 = scalar_lea.vmem %s4780_s12, 256  ;;  %s4586_s11 = smov [#allocation5]  }
  0x5a   : > { %p4462_p0 = scmp.ne.s32.totalorder %s4780_s12, %s4461_s5  ;;  %s4466_s23 = sshll.u32 %s4586_s11, 4  ;;  %s4467_s23 = int_to_ptr.vmem [resolvable:$false] %s4466_s23 }
  0x5b   : > { %s4468_s26 = scalar_lea.vmem %s4467_s23, 512  ;;  %p4469_p12 = scmp.lt.s32.totalorder %s4780_s12, %s4467_s23 }
  0x5c   : > { %p4464_p5 = pnand %p4462_p0, %p4422_p7  ;;  %p4470_p1 = scmp.lt.s32.totalorder %s4468_s26, %s4461_s5 }
  0x5e   : > { %p4465_p9 = pneg %p4464_p5  ;;  %p4471_p4 = por %p4470_p1, %p4469_p12 }
  0x60   : > { %p4472_p3 = pnand %p4471_p4, %p4465_p9 }
  0x62   : > { %4475 = shalt.err (!%p4472_p3)
}
  0x63   : > { %s4587_s10 = smov 32   ;;  %s4588_s24 = smov 2  }
  0x64   : > { %4044 = dma.hbm_to_vmem [thread:$0]  (!%p4739_p10), %s4778_s20, 256, %s4780_s12, %s4782_s13, %s4587_s10, %s4587_s10, %s4588_s24  }
  0x65   : > { %412 = sbr.rel (%p4691_p8) target bundleno = 1176 (0x498), region = 56 }
  0x6a   : > { %s4810_s25 = sand.u32 1, %s4570_s14   ;;  %p6484_p7 = scmp.ne.s32.totalorder %s6471_s19, 0 }
  0x6b   : > { %s4813_s18 = sshll.u32 %s4810_s25, 3  ;;  %s415_s28 = scalar_lea.sflag [#allocation3], %s4810_s25 }
  0x6c   : > { %s4817_s27 = scalar_lea.vmem [#allocation2], %s4813_s18 }
  0x6d   : > { %4545 = dma.done.wait (%p6484_p7), %s415_s28, 128  }
  0x6e   : > { %4547 = vsyncadd (%p6484_p7), %s415_s28, 4294967168  ;;  %s423_s13 = sand.u32 1, %s4672_s17   ;;  %s3571_s20 = sshll.u32 %s4810_s25, 4 }
  0x6f   : > { %s424_s21 = scalar_lea.sflag [#allocation6], %s423_s13  ;;  %s4825_s30 = scalar_lea.vmem [#allocation5], %s3571_s20 }
  0x70   : > { %4549 = dma.done.wait (%p6484_p7), %s424_s21, 256  }
  0x71   : > { %4551 = vsyncadd (%p6484_p7), %s424_s21, 4294967040  ;;  %p6485_p8 = scmp.eq.s32.totalorder %s4672_s17, 0 }
  0x73   : > { %4553 = dma.done.wait (%p6485_p8), [#allocation6], 2176   ;;  %p6486_p10 = pmov %p6485_p8 }
  0x74   : > { %s3575_s12 = sshll.u32 %s4672_s17, 3  ;;  %v4589_v0 = vmov 0   ;;  %v6464_v1 = vmov 0.0   ;;  %v4850_v4 = vld [vmem:[#allocation7 + $0x78] sm:$0xff]  ;;  %v4852_v5 = vld [vmem:[#allocation7 + $0x70] sm:$0xff]  ;;  %v4862_v8 = vld [vmem:[#allocation7 + $0x68] sm:$0xff]  ;;  %v544_v26 = vlaneseq }
  0x75   : > { %4555 = vsyncadd (%p6486_p10), [#allocation6], 4294965120  ;;  %4101 = vset.pattern.permute.xlu1 %v4589_v0  ;;  %4100 = vset.pattern.permute.xlu0 %v4589_v0  ;;  %p495_p6 = scmp.lt.s32.totalorder %s3575_s12, 31  ;;  %v4866_v9 = vld [vmem:[#allocation7 + $0x60] sm:$0xff]  ;;  %v4876_v12 = vld [vmem:[#allocation7 + $0x58] sm:$0xff]  ;;  %vm553_vm0 = vcmask 64512  }
  0x76   : > { %556 = vmatprep.subr.mxu0 %v6464_v1  ;;  %638 = vmatprep.subr.mxu1 %v6464_v1  ;;  %v4880_v13 = vld [vmem:[#allocation7 + $0x50] sm:$0xff]  ;;  %v4890_v16 = vld [vmem:[#allocation7 + $0x48] sm:$0xff]  ;;  %v4894_v17 = vld [vmem:[#allocation7 + $0x40] sm:$0xff]  ;;  %v545_v30 = vshrl.u32 %v544_v26, 7  ;;  %vm4591_vm1 = vmmov 0   ;;  %vm3232_vm3 = vcmask 1040384  }
  0x77   : > { %s6505_s12 = smov (!%p495_p6, %s3575_s12), 31  ;;  %557 = vmatpush1.msra.mxu0 %v4850_v4  ;;  %639 = vmatpush1.msra.mxu1 %v4850_v4  ;;  %v4904_v20 = vld [vmem:[#allocation7 + $0x38] sm:$0xff]  ;;  %v4908_v21 = vld [vmem:[#allocation7 + $0x30] sm:$0xff]  ;;  %v4918_v24 = vld [vmem:[#allocation7 + $0x28] sm:$0xff]  ;;  %s6336_s24 = scalar_lea.vmem [#allocation9], %s4813_s18 }
  0x78   : > { %s3602_s19 = sshll.u32 %s6505_s12, 7  ;;  %558 = vmatprep.subr.mxu0 %v6464_v1  ;;  %640 = vmatprep.subr.mxu1 %v6464_v1  ;;  %v4922_v25 = vld [vmem:[#allocation7 + $0x20] sm:$0xff]  ;;  %v4932_v29 = vld [vmem:[#allocation7 + $0x18] sm:$0xff]  ;;  %v4936_v31 = vld [vmem:[#allocation7 + $0x10] sm:$0xff]  ;;  %v4948_v35 = vsub.s32 1, %v545_v30  ;;  %v4955_v38 = vsub.s32 0, %v545_v30 }
  0x79   : > { %s4846_s15 = scalar_lea.vmem %s6446_s2, %s3602_s19  ;;  %559 = vmatpush1.msra.mxu0 %v4852_v5  ;;  %641 = vmatpush1.msra.mxu1 %v4852_v5  ;;  %v4946_v34 = vld [vmem:[#allocation7 + $0x8] sm:$0xff]  ;;  %v534_v36 = vld [vmem:[%s4825_s30] sm:$0x3]  ;;  %v535_v39 = vld [vmem:[%s4825_s30 + $0x2] sm:$0x3]  ;;  %s5390_s10 = scalar_lea.vmem %s6444_s0, %s3602_s19 }
  0x7a   : > { %v1503_v2 = vld [vmem:[%s4846_s15 + $0x78] sm:$0xff]  ;;  %v1502_v3 = vld [vmem:[%s4846_s15 + $0x70] sm:$0xff]  ;;  %560 = vmatprep.subr.mxu0 %v6464_v1  ;;  %642 = vmatprep.subr.mxu1 %v6464_v1  ;;  %v1517_v10 = vld [vmem:[%s4846_s15 + $0xe8] sm:$0xff]  ;;  %v551_v42 = vrot.slane %v534_v36, %v4948_v35  ;;  %v634_v44 = vrot.slane %v535_v39, %v4948_v35  ;;  %v547_v45 = vrot.slane %v534_v36, %v4955_v38  ;;  %s6494_s29 = sld [smem:[#allocation26_spill]]  ;;  %p6495_p2 = scmp.ne.s32.totalorder %s6480_s22, 0 }
  0x7b   : > { %1694 = vperm.xlu0 %4100, %v1503_v2   ;;  %1689 = vperm.xlu1 %4101, %v1502_v3   ;;  %v1519_v6 = vld [vmem:[%s4846_s15 + $0xf8] sm:$0xff]  ;;  %v1518_v7 = vld [vmem:[%s4846_s15 + $0xf0] sm:$0xff]  ;;  %v1501_v11 = vld [vmem:[%s4846_s15 + $0x68] sm:$0xff]  ;;  %v630_v46 = vrot.slane %v535_v39, %v4955_v38  ;;  %s4592_s5 = smov [#allocation8]  }
  0x7c   : > { %561 = vmatpush1.msra.mxu0 %v4862_v8  ;;  %643 = vmatpush1.msra.mxu1 %v4862_v8  ;;  %v1516_v14 = vld [vmem:[%s4846_s15 + $0xe0] sm:$0xff]  ;;  %v1515_v18 = vld [vmem:[%s4846_s15 + $0xd8] sm:$0xff]  ;;  %v1514_v22 = vld [vmem:[%s4846_s15 + $0xd0] sm:$0xff]  ;;  %s4480_s11 = sshll.u32 %s4592_s5, 4  ;;  %s4481_s11 = int_to_ptr.vmem [resolvable:$false] %s4480_s11 }
  0x7d   : > { %562 = vmatprep.subr.mxu0 %v6464_v1  ;;  %644 = vmatprep.subr.mxu1 %v6464_v1  ;;  %v1500_v15 = vld [vmem:[%s4846_s15 + $0x60] sm:$0xff]  ;;  %v1499_v19 = vld [vmem:[%s4846_s15 + $0x58] sm:$0xff]  ;;  %v1498_v23 = vld [vmem:[%s4846_s15 + $0x50] sm:$0xff]  ;;  %s4482_s23 = scalar_lea.vmem %s4481_s11, 256 }
  0x7e   : > { %563 = vmatpush1.msra.mxu0 %v4866_v9  ;;  %645 = vmatpush1.msra.mxu1 %v4866_v9  ;;  %v1513_v27 = vld [vmem:[%s4846_s15 + $0xc8] sm:$0xff]  ;;  %v1512_v32 = vld [vmem:[%s4846_s15 + $0xc0] sm:$0xff]  ;;  %v4953_v37 = vld [vmem:[#allocation7] sm:$0xff] }
  0x7f   : > { %1774 = vperm.xlu0 %4100, %v1519_v6   ;;  %1769 = vperm.xlu1 %4101, %v1518_v7   ;;  %v1497_v28 = vld [vmem:[%s4846_s15 + $0x48] sm:$0xff]  ;;  %v1496_v33 = vld [vmem:[%s4846_s15 + $0x40] sm:$0xff]  ;;  %v1511_v40 = vld [vmem:[%s4846_s15 + $0xb8] sm:$0xff] }
  0x80   : > { %564 = vmatprep.subr.mxu0 %v6464_v1  ;;  %646 = vmatprep.subr.mxu1 %v6464_v1  ;;  %v1495_v41 = vld [vmem:[%s4846_s15 + $0x38] sm:$0xff]  ;;  %v4967_v43 = vld [vmem:[#allocation7 + $0x80] sm:$0xff]  ;;  %v1509_v49 = vld [vmem:[%s4846_s15 + $0xa8] sm:$0xff] }
  0x81   : > { %565 = vmatpush1.msra.mxu0 %v4876_v12  ;;  %647 = vmatpush1.msra.mxu1 %v4876_v12  ;;  %v1510_v47 = vld [vmem:[%s4846_s15 + $0xb0] sm:$0xff]  ;;  %v1493_v50 = vld [vmem:[%s4846_s15 + $0x28] sm:$0xff]  ;;  %v1508_v51 = vld [vmem:[%s4846_s15 + $0xa0] sm:$0xff] }
  0x82   : > { %566 = vmatprep.subr.mxu0 %v6464_v1  ;;  %648 = vmatprep.subr.mxu1 %v6464_v1  ;;  %v1494_v48 = vld [vmem:[%s4846_s15 + $0x30] sm:$0xff]  ;;  %v1492_v52 = vld [vmem:[%s4846_s15 + $0x20] sm:$0xff]  ;;  %v1507_v53 = vld [vmem:[%s4846_s15 + $0x98] sm:$0xff] }
  0x83   : > { %1764 = vperm.xlu1 %4101, %v1517_v10   ;;  %1684 = vperm.xlu0 %4100, %v1501_v11   ;;  %v1491_v54 = vld [vmem:[%s4846_s15 + $0x18] sm:$0xff]  ;;  %v1506_v55 = vld [vmem:[%s4846_s15 + $0x90] sm:$0xff]  ;;  %v1505_v57 = vld [vmem:[%s4846_s15 + $0x88] sm:$0xff] }
  0x84   : > { %567 = vmatpush1.msra.mxu0 %v4880_v13  ;;  %649 = vmatpush1.msra.mxu1 %v4880_v13  ;;  %v1490_v56 = vld [vmem:[%s4846_s15 + $0x10] sm:$0xff]  ;;  %v1489_v58 = vld [vmem:[%s4846_s15 + $0x8] sm:$0xff]  ;;  %v1504_v59 = vld [vmem:[%s4846_s15 + $0x80] sm:$0xff] }
  0x85   : > { %568 = vmatprep.subr.mxu0 %v6464_v1  ;;  %650 = vmatprep.subr.mxu1 %v6464_v1  ;;  %v1488_v60 = vld [vmem:[%s4846_s15] sm:$0xff]  ;;  %v1551_v62 = vld [vmem:[%s4846_s15 + $0x1f8] sm:$0xff]  ;;  %v1550_v10 = vld [vmem:[%s4846_s15 + $0x1f0] sm:$0xff] }
  0x86   : > { %569 = vmatpush1.msra.mxu0 %v4890_v16  ;;  %651 = vmatpush1.msra.mxu1 %v4890_v16  ;;  %v536_v61 = vld [vmem:[%s4825_s30 + $0x4] sm:$0x3]  ;;  %v1535_v63 = vld [vmem:[%s4846_s15 + $0x178] sm:$0xff]  ;;  %v537_v0 = vld [vmem:[%s4825_s30 + $0x6] sm:$0x3] }
  0x87   : > { %1759 = vperm.xlu1 %4101, %v1516_v14   ;;  %1679 = vperm.xlu0 %4100, %v1500_v15   ;;  %v716_v2 = vrot.slane %v536_v61, %v4948_v35  ;;  %v798_v3 = vrot.slane %v537_v0, %v4948_v35  ;;  %v712_v6 = vrot.slane %v536_v61, %v4955_v38  ;;  %v1534_v11 = vld [vmem:[%s4846_s15 + $0x170] sm:$0xff]  ;;  %v1549_v14 = vld [vmem:[%s4846_s15 + $0x1e8] sm:$0xff]  ;;  %v1543_v36 = vld [vmem:[%s4846_s15 + $0x1b8] sm:$0xff] }
  0x88   : > { %570 = vmatprep.subr.mxu0 %v6464_v1  ;;  %652 = vmatprep.subr.mxu1 %v6464_v1  ;;  %v794_v7 = vrot.slane %v537_v0, %v4955_v38  ;;  %v1533_v15 = vld [vmem:[%s4846_s15 + $0x168] sm:$0xff]  ;;  %v1546_v26 = vld [vmem:[%s4846_s15 + $0x1d0] sm:$0xff]  ;;  %v1527_v39 = vld [vmem:[%s4846_s15 + $0x138] sm:$0xff] }
  0x89   : > { %571 = vmatpush1.msra.mxu0 %v4894_v17  ;;  %653 = vmatpush1.msra.mxu1 %v4894_v17  ;;  %v1529_v30 = vld [vmem:[%s4846_s15 + $0x148] sm:$0xff] }
  0x8a   : > { %572 = vmatprep.subr.mxu0 %v6464_v1  ;;  %654 = vmatprep.subr.mxu1 %v6464_v1  ;;  %v1521_v0 = vld [vmem:[%s4846_s15 + $0x108] sm:$0xff] }
  0x8b   : > { %1754 = vperm.xlu1 %4101, %v1515_v18   ;;  %1674 = vperm.xlu0 %4100, %v1499_v19   ;;  %v1548_v18 = vld [vmem:[%s4846_s15 + $0x1e0] sm:$0xff] }
  0x8c   : > { %573 = vmatpush1.msra.mxu0 %v4904_v20  ;;  %655 = vmatpush1.msra.mxu1 %v4904_v20  ;;  %v1532_v19 = vld [vmem:[%s4846_s15 + $0x160] sm:$0xff] }
  0x8d   : > { %574 = vmatprep.subr.mxu0 %v6464_v1  ;;  %656 = vmatprep.subr.mxu1 %v6464_v1 }
  0x8e   : > { %575 = vmatpush1.msra.mxu0 %v4908_v21  ;;  %657 = vmatpush1.msra.mxu1 %v4908_v21 }
  0x8f   : > { %576 = vmatprep.subr.mxu0 %v6464_v1  ;;  %658 = vmatprep.subr.mxu1 %v6464_v1 }
  0x90   : > { %1749 = vperm.xlu1 %4101, %v1514_v22   ;;  %1669 = vperm.xlu0 %4100, %v1498_v23   ;;  %v1547_v22 = vld [vmem:[%s4846_s15 + $0x1d8] sm:$0xff] }
  0x91   : > { %577 = vmatpush1.msra.mxu0 %v4918_v24  ;;  %659 = vmatpush1.msra.mxu1 %v4918_v24  ;;  %v1531_v23 = vld [vmem:[%s4846_s15 + $0x158] sm:$0xff] }
  0x92   : > { %578 = vmatprep.subr.mxu0 %v6464_v1  ;;  %660 = vmatprep.subr.mxu1 %v6464_v1 }
  0x93   : > { %579 = vmatpush1.msra.mxu0 %v4922_v25  ;;  %661 = vmatpush1.msra.mxu1 %v4922_v25 }
  0x94   : > { %580 = vmatprep.subr.mxu0 %v6464_v1  ;;  %662 = vmatprep.subr.mxu1 %v6464_v1 }
  0x95   : > { %1744 = vperm.xlu1 %4101, %v1513_v27   ;;  %1664 = vperm.xlu0 %4100, %v1497_v28   ;;  %v1530_v27 = vld [vmem:[%s4846_s15 + $0x150] sm:$0xff]  ;;  %v1545_v28 = vld [vmem:[%s4846_s15 + $0x1c8] sm:$0xff] }
  0x96   : > { %581 = vmatpush1.msra.mxu0 %v4932_v29  ;;  %663 = vmatpush1.msra.mxu1 %v4932_v29 }
  0x97   : > { %582 = vmatprep.subr.mxu0 %v6464_v1  ;;  %664 = vmatprep.subr.mxu1 %v6464_v1 }
  0x98   : > { %583 = vmatpush1.msra.mxu0 %v4936_v31  ;;  %665 = vmatpush1.msra.mxu1 %v4936_v31 }
  0x99   : > { %584 = vmatprep.subr.mxu0 %v6464_v1  ;;  %666 = vmatprep.subr.mxu1 %v6464_v1 }
  0x9a   : > { %1739 = vperm.xlu1 %4101, %v1512_v32   ;;  %1659 = vperm.xlu0 %4100, %v1496_v33   ;;  %v1544_v32 = vld [vmem:[%s4846_s15 + $0x1c0] sm:$0xff] }
  0x9b   : > { %585 = vmatpush1.msra.mxu0 %v4946_v34  ;;  %667 = vmatpush1.msra.mxu1 %v4946_v34  ;;  %v1528_v33 = vld [vmem:[%s4846_s15 + $0x140] sm:$0xff] }
  0x9c   : > { %586 = vmatprep.subr.mxu0 %v6464_v1  ;;  %668 = vmatprep.subr.mxu1 %v6464_v1 }
  0x9d   : > { %587 = vmatpush1.msra.mxu0 %v4953_v37  ;;  %669 = vmatpush1.msra.mxu1 %v4953_v37 }
  0x9e   : > { %618 = vmatprep.subr.mxu0 %v6464_v1  ;;  %700 = vmatprep.subr.mxu1 %v6464_v1 }
  0x9f   : > { %1734 = vperm.xlu1 %4101, %v1511_v40   ;;  %1654 = vperm.xlu0 %4100, %v1495_v41   ;;  %v538_v40 = vld [vmem:[%s4825_s30 + $0x8] sm:$0x3] }
  0xa0   : > { %619 = vmatpush2.msra.mxu0 %v4967_v43  ;;  %3582 = vmatprep.mubr.msk.f32.mxu0 %vm553_vm0, %v551_v42 }
  0xa1   : > { %701 = vmatpush2.msra.mxu1 %v4967_v43  ;;  %3583 = vmatprep.mubr.msk.f32.mxu1 %vm553_vm0, %v634_v44  ;;  %v539_v44 = vld [vmem:[%s4825_s30 + $0xa] sm:$0x3] }
  0xa2   : > { %621 = vmatmul.mubr.f32.vlgmr.msra.gmra.mxu0 %v547_v45  ;;  %703 = vmatmul.mubr.f32.vlgmr.msra.gmra.mxu1 %v630_v46  ;;  %v1542_v45 = vld [vmem:[%s4846_s15 + $0x1b0] sm:$0xff] }
  0xa3   : > { %720 = vmatprep.subr.mxu0 %v6464_v1  ;;  %802 = vmatprep.subr.mxu1 %v6464_v1  ;;  %v1526_v46 = vld [vmem:[%s4846_s15 + $0x130] sm:$0xff] }
  0xa4   : > { %721 = vmatpush1.msra.mxu0 %v4850_v4  ;;  %803 = vmatpush1.msra.mxu1 %v4850_v4 }
  0xa5   : > { %722 = vmatprep.subr.mxu0 %v6464_v1  ;;  %804 = vmatprep.subr.mxu1 %v6464_v1 }
  0xa6   : > { %1729 = vperm.xlu1 %4101, %v1510_v47   ;;  %1649 = vperm.xlu0 %4100, %v1494_v48   ;;  %v880_v47 = vrot.slane %v538_v40, %v4948_v35  ;;  %v962_v48 = vrot.slane %v539_v44, %v4948_v35 }
  0xa7   : > { %723 = vmatpush1.msra.mxu0 %v4852_v5  ;;  %805 = vmatpush1.msra.mxu1 %v4852_v5 }
  0xa8   : > { %724 = vmatprep.subr.mxu0 %v6464_v1  ;;  %806 = vmatprep.subr.mxu1 %v6464_v1 }
  0xa9   : > { %725 = vmatpush1.msra.mxu0 %v4862_v8  ;;  %807 = vmatpush1.msra.mxu1 %v4862_v8 }
  0xaa   : > { %726 = vmatprep.subr.mxu0 %v6464_v1  ;;  %808 = vmatprep.subr.mxu1 %v6464_v1 }
  0xab   : > { %1724 = vperm.xlu1 %4101, %v1509_v49   ;;  %1644 = vperm.xlu0 %4100, %v1493_v50   ;;  %v876_v49 = vrot.slane %v538_v40, %v4955_v38  ;;  %v958_v50 = vrot.slane %v539_v44, %v4955_v38  ;;  %v1578_v40 = vld [vmem:[%s4846_s15 + $0x2d0] sm:$0xff] }
  0xac   : > { %727 = vmatpush1.msra.mxu0 %v4866_v9  ;;  %809 = vmatpush1.msra.mxu1 %v4866_v9  ;;  %v1562_v44 = vld [vmem:[%s4846_s15 + $0x250] sm:$0xff] }
  0xad   : > { %728 = vmatprep.subr.mxu0 %v6464_v1  ;;  %810 = vmatprep.subr.mxu1 %v6464_v1 }
  0xae   : > { %729 = vmatpush1.msra.mxu0 %v4876_v12  ;;  %811 = vmatpush1.msra.mxu1 %v4876_v12 }
  0xaf   : > { %730 = vmatprep.subr.mxu0 %v6464_v1  ;;  %812 = vmatprep.subr.mxu1 %v6464_v1 }
  0xb0   : > { %1719 = vperm.xlu1 %4101, %v1508_v51   ;;  %1639 = vperm.xlu0 %4100, %v1492_v52  }
  0xb1   : > { %731 = vmatpush1.msra.mxu0 %v4880_v13  ;;  %813 = vmatpush1.msra.mxu1 %v4880_v13 }
  0xb2   : > { %732 = vmatprep.subr.mxu0 %v6464_v1  ;;  %814 = vmatprep.subr.mxu1 %v6464_v1 }
  0xb3   : > { %733 = vmatpush1.msra.mxu0 %v4890_v16  ;;  %815 = vmatpush1.msra.mxu1 %v4890_v16 }
  0xb4   : > { %734 = vmatprep.subr.mxu0 %v6464_v1  ;;  %816 = vmatprep.subr.mxu1 %v6464_v1 }
  0xb5   : > { %1714 = vperm.xlu1 %4101, %v1507_v53   ;;  %1634 = vperm.xlu0 %4100, %v1491_v54   ;;  %v1541_v53 = vld [vmem:[%s4846_s15 + $0x1a8] sm:$0xff] }
  0xb6   : > { %735 = vmatpush1.msra.mxu0 %v4894_v17  ;;  %817 = vmatpush1.msra.mxu1 %v4894_v17  ;;  %v1525_v54 = vld [vmem:[%s4846_s15 + $0x128] sm:$0xff] }
  0xb7   : > { %736 = vmatprep.subr.mxu0 %v6464_v1  ;;  %818 = vmatprep.subr.mxu1 %v6464_v1 }
  0xb8   : > { %737 = vmatpush1.msra.mxu0 %v4904_v20  ;;  %819 = vmatpush1.msra.mxu1 %v4904_v20 }
  0xb9   : > { %738 = vmatprep.subr.mxu0 %v6464_v1  ;;  %820 = vmatprep.subr.mxu1 %v6464_v1 }
  0xba   : > { %1709 = vperm.xlu1 %4101, %v1506_v55   ;;  %1629 = vperm.xlu0 %4100, %v1490_v56  }
  0xbb   : > { %739 = vmatpush1.msra.mxu0 %v4908_v21  ;;  %821 = vmatpush1.msra.mxu1 %v4908_v21 }
  0xbc   : > { %740 = vmatprep.subr.mxu0 %v6464_v1  ;;  %822 = vmatprep.subr.mxu1 %v6464_v1 }
  0xbd   : > { %741 = vmatpush1.msra.mxu0 %v4918_v24  ;;  %823 = vmatpush1.msra.mxu1 %v4918_v24 }
  0xbe   : > { %742 = vmatprep.subr.mxu0 %v6464_v1  ;;  %824 = vmatprep.subr.mxu1 %v6464_v1 }
  0xbf   : > { %1704 = vperm.xlu1 %4101, %v1505_v57   ;;  %1624 = vperm.xlu0 %4100, %v1489_v58   ;;  %v1540_v57 = vld [vmem:[%s4846_s15 + $0x1a0] sm:$0xff] }
  0xc0   : > { %743 = vmatpush1.msra.mxu0 %v4922_v25  ;;  %825 = vmatpush1.msra.mxu1 %v4922_v25  ;;  %v1524_v58 = vld [vmem:[%s4846_s15 + $0x120] sm:$0xff] }
  0xc1   : > { %744 = vmatprep.subr.mxu0 %v6464_v1  ;;  %826 = vmatprep.subr.mxu1 %v6464_v1 }
  0xc2   : > { %745 = vmatpush1.msra.mxu0 %v4932_v29  ;;  %827 = vmatpush1.msra.mxu1 %v4932_v29 }
  0xc3   : > { %746 = vmatprep.subr.mxu0 %v6464_v1  ;;  %828 = vmatprep.subr.mxu1 %v6464_v1 }
  0xc4   : > { %1699 = vperm.xlu1 %4101, %v1504_v59   ;;  %1619 = vperm.xlu0 %4100, %v1488_v60   ;;  %v1523_v60 = vld [vmem:[%s4846_s15 + $0x118] sm:$0xff] }
  0xc5   : > { %747 = vmatpush1.msra.mxu0 %v4936_v31  ;;  %829 = vmatpush1.msra.mxu1 %v4936_v31 }
  0xc6   : > { %748 = vmatprep.subr.mxu0 %v6464_v1  ;;  %830 = vmatprep.subr.mxu1 %v6464_v1 }
  0xc7   : > { %749 = vmatpush1.msra.mxu0 %v4946_v34  ;;  %831 = vmatpush1.msra.mxu1 %v4946_v34 }
  0xc8   : > { %750 = vmatprep.subr.mxu0 %v6464_v1  ;;  %832 = vmatprep.subr.mxu1 %v6464_v1 }
  0xc9   : > { %1934 = vperm.xlu1 %4101, %v1551_v62   ;;  %1854 = vperm.xlu0 %4100, %v1535_v63   ;;  %v1522_v62 = vld [vmem:[%s4846_s15 + $0x110] sm:$0xff] }
  0xca   : > { %751 = vmatpush1.msra.mxu0 %v4953_v37  ;;  %833 = vmatpush1.msra.mxu1 %v4953_v37 }
  0xcb   : > { %782 = vmatprep.subr.mxu0 %v6464_v1  ;;  %864 = vmatprep.subr.mxu1 %v6464_v1 }
  0xcc   : > { %783 = vmatpush2.msra.mxu0 %v4967_v43  ;;  %3584 = vmatprep.mubr.msk.f32.mxu0 %vm553_vm0, %v716_v2 }
  0xcd   : > { %865 = vmatpush2.msra.mxu1 %v4967_v43  ;;  %3585 = vmatprep.mubr.msk.f32.mxu1 %vm553_vm0, %v798_v3  ;;  %v1520_v3 = vld [vmem:[%s4846_s15 + $0x100] sm:$0xff] }
  0xce   : > { %785 = vmatmul.mubr.f32.vlgmr.msra.gmra.mxu0 %v712_v6  ;;  %867 = vmatmul.mubr.f32.vlgmr.msra.gmra.mxu1 %v794_v7  ;;  %v1567_v7 = vld [vmem:[%s4846_s15 + $0x278] sm:$0xff] }
  0xcf   : > { %884 = vmatprep.subr.mxu0 %v6464_v1  ;;  %966 = vmatprep.subr.mxu1 %v6464_v1 }
  0xd0   : > { %1929 = vperm.xlu1 %4101, %v1550_v10   ;;  %1849 = vperm.xlu0 %4100, %v1534_v11   ;;  %v1566_v11 = vld [vmem:[%s4846_s15 + $0x270] sm:$0xff] }
  0xd1   : > { %885 = vmatpush1.msra.mxu0 %v4850_v4  ;;  %967 = vmatpush1.msra.mxu1 %v4850_v4 }
  0xd2   : > { %886 = vmatprep.subr.mxu0 %v6464_v1  ;;  %968 = vmatprep.subr.mxu1 %v6464_v1 }
  0xd3   : > { %887 = vmatpush1.msra.mxu0 %v4852_v5  ;;  %969 = vmatpush1.msra.mxu1 %v4852_v5 }
  0xd4   : > { %888 = vmatprep.subr.mxu0 %v6464_v1  ;;  %970 = vmatprep.subr.mxu1 %v6464_v1 }
  0xd5   : > { %1924 = vperm.xlu1 %4101, %v1549_v14   ;;  %1844 = vperm.xlu0 %4100, %v1533_v15   ;;  %v541_v14 = vld [vmem:[%s4825_s30 + $0xe] sm:$0x3] }
  0xd6   : > { %889 = vmatpush1.msra.mxu0 %v4862_v8  ;;  %971 = vmatpush1.msra.mxu1 %v4862_v8 }
  0xd7   : > { %890 = vmatprep.subr.mxu0 %v6464_v1  ;;  %972 = vmatprep.subr.mxu1 %v6464_v1 }
  0xd8   : > { %891 = vmatpush1.msra.mxu0 %v4866_v9  ;;  %973 = vmatpush1.msra.mxu1 %v4866_v9 }
  0xd9   : > { %892 = vmatprep.subr.mxu0 %v6464_v1  ;;  %974 = vmatprep.subr.mxu1 %v6464_v1 }
  0xda   : > { %1919 = vperm.xlu1 %4101, %v1548_v18   ;;  %1839 = vperm.xlu0 %4100, %v1532_v19   ;;  %v1126_v19 = vrot.slane %v541_v14, %v4948_v35 }
  0xdb   : > { %893 = vmatpush1.msra.mxu0 %v4876_v12  ;;  %975 = vmatpush1.msra.mxu1 %v4876_v12 }
  0xdc   : > { %894 = vmatprep.subr.mxu0 %v6464_v1  ;;  %976 = vmatprep.subr.mxu1 %v6464_v1 }
  0xdd   : > { %895 = vmatpush1.msra.mxu0 %v4880_v13  ;;  %977 = vmatpush1.msra.mxu1 %v4880_v13 }
  0xde   : > { %896 = vmatprep.subr.mxu0 %v6464_v1  ;;  %978 = vmatprep.subr.mxu1 %v6464_v1 }
  0xdf   : > { %1914 = vperm.xlu1 %4101, %v1547_v22   ;;  %1834 = vperm.xlu0 %4100, %v1531_v23   ;;  %v1122_v22 = vrot.slane %v541_v14, %v4955_v38  ;;  %v1581_v23 = vld [vmem:[%s4846_s15 + $0x2e8] sm:$0xff]  ;;  %v1555_v14 = vld [vmem:[%s4846_s15 + $0x218] sm:$0xff] }
  0xe0   : > { %897 = vmatpush1.msra.mxu0 %v4890_v16  ;;  %979 = vmatpush1.msra.mxu1 %v4890_v16 }
  0xe1   : > { %898 = vmatprep.subr.mxu0 %v6464_v1  ;;  %980 = vmatprep.subr.mxu1 %v6464_v1 }
  0xe2   : > { %899 = vmatpush1.msra.mxu0 %v4894_v17  ;;  %981 = vmatpush1.msra.mxu1 %v4894_v17 }
  0xe3   : > { %900 = vmatprep.subr.mxu0 %v6464_v1  ;;  %982 = vmatprep.subr.mxu1 %v6464_v1 }
  0xe4   : > { %1909 = vperm.xlu1 %4101, %v1546_v26   ;;  %1829 = vperm.xlu0 %4100, %v1530_v27   ;;  %v1580_v27 = vld [vmem:[%s4846_s15 + $0x2e0] sm:$0xff] }
  0xe5   : > { %901 = vmatpush1.msra.mxu0 %v4904_v20  ;;  %983 = vmatpush1.msra.mxu1 %v4904_v20 }
  0xe6   : > { %902 = vmatprep.subr.mxu0 %v6464_v1  ;;  %984 = vmatprep.subr.mxu1 %v6464_v1 }
  0xe7   : > { %903 = vmatpush1.msra.mxu0 %v4908_v21  ;;  %985 = vmatpush1.msra.mxu1 %v4908_v21 }
  0xe8   : > { %904 = vmatprep.subr.mxu0 %v6464_v1  ;;  %986 = vmatprep.subr.mxu1 %v6464_v1 }
  0xe9   : > { %1904 = vperm.xlu1 %4101, %v1545_v28   ;;  %1824 = vperm.xlu0 %4100, %v1529_v30   ;;  %v1564_v28 = vld [vmem:[%s4846_s15 + $0x260] sm:$0xff] }
  0xea   : > { %905 = vmatpush1.msra.mxu0 %v4918_v24  ;;  %987 = vmatpush1.msra.mxu1 %v4918_v24 }
  0xeb   : > { %906 = vmatprep.subr.mxu0 %v6464_v1  ;;  %988 = vmatprep.subr.mxu1 %v6464_v1 }
  0xec   : > { %907 = vmatpush1.msra.mxu0 %v4922_v25  ;;  %989 = vmatpush1.msra.mxu1 %v4922_v25 }
  0xed   : > { %908 = vmatprep.subr.mxu0 %v6464_v1  ;;  %990 = vmatprep.subr.mxu1 %v6464_v1 }
  0xee   : > { %1899 = vperm.xlu1 %4101, %v1544_v32   ;;  %1819 = vperm.xlu0 %4100, %v1528_v33   ;;  %v1579_v32 = vld [vmem:[%s4846_s15 + $0x2d8] sm:$0xff] }
  0xef   : > { %909 = vmatpush1.msra.mxu0 %v4932_v29  ;;  %991 = vmatpush1.msra.mxu1 %v4932_v29  ;;  %v1563_v33 = vld [vmem:[%s4846_s15 + $0x258] sm:$0xff] }
  0xf0   : > { %910 = vmatprep.subr.mxu0 %v6464_v1  ;;  %992 = vmatprep.subr.mxu1 %v6464_v1 }
  0xf1   : > { %911 = vmatpush1.msra.mxu0 %v4936_v31  ;;  %993 = vmatpush1.msra.mxu1 %v4936_v31 }
  0xf2   : > { %912 = vmatprep.subr.mxu0 %v6464_v1  ;;  %994 = vmatprep.subr.mxu1 %v6464_v1 }
  0xf3   : > { %1894 = vperm.xlu1 %4101, %v1543_v36   ;;  %1814 = vperm.xlu0 %4100, %v1527_v39  }
  0xf4   : > { %913 = vmatpush1.msra.mxu0 %v4946_v34  ;;  %995 = vmatpush1.msra.mxu1 %v4946_v34 }
  0xf5   : > { %914 = vmatprep.subr.mxu0 %v6464_v1  ;;  %996 = vmatprep.subr.mxu1 %v6464_v1 }
  0xf6   : > { %v5145_v41 = vpop.permute.xlu0 %1694  ;;  %v5147_v42 = vpop.permute.xlu1 %1689  ;;  %915 = vmatpush1.msra.mxu0 %v4953_v37  ;;  %997 = vmatpush1.msra.mxu1 %v4953_v37 }
  0xf7   : > { %946 = vmatprep.subr.mxu0 %v6464_v1  ;;  %1028 = vmatprep.subr.mxu1 %v6464_v1 }
  0xf8   : > { %1889 = vperm.xlu1 %4101, %v1542_v45   ;;  %1809 = vperm.xlu0 %4100, %v1526_v46   ;;  %v1577_v45 = vld [vmem:[%s4846_s15 + $0x2c8] sm:$0xff] }
  0xf9   : > { %947 = vmatpush2.msra.mxu0 %v4967_v43  ;;  %3586 = vmatprep.mubr.msk.f32.mxu0 %vm553_vm0, %v880_v47  ;;  %v1561_v46 = vld [vmem:[%s4846_s15 + $0x248] sm:$0xff] }
  0xfa   : > { %v5164_v51 = vpop.permute.xlu0 %1774  ;;  %v5166_v52 = vpop.permute.xlu1 %1769  ;;  %1029 = vmatpush2.msra.mxu1 %v4967_v43  ;;  %3587 = vmatprep.mubr.msk.f32.mxu1 %vm553_vm0, %v962_v48 }
  0xfb   : > { %949 = vmatmul.mubr.f32.vlgmr.msra.gmra.mxu0 %v876_v49  ;;  %1031 = vmatmul.mubr.f32.vlgmr.msra.gmra.mxu1 %v958_v50  ;;  %v1576_v49 = vld [vmem:[%s4846_s15 + $0x2c0] sm:$0xff] }
  0xfc   : > { %1048 = vmatprep.subr.mxu0 %v6464_v1  ;;  %1130 = vmatprep.subr.mxu1 %v6464_v1  ;;  %v1560_v50 = vld [vmem:[%s4846_s15 + $0x240] sm:$0xff] }
  0xfd   : > { %1049 = vmatpush1.msra.mxu0 %v4850_v4  ;;  %1131 = vmatpush1.msra.mxu1 %v4850_v4 }
  0xfe   : > { %v5176_v55 = vpop.permute.xlu1 %1764  ;;  %v5178_v56 = vpop.permute.xlu0 %1684  ;;  %1050 = vmatprep.subr.mxu0 %v6464_v1  ;;  %1132 = vmatprep.subr.mxu1 %v6464_v1 }
  0xff   : > { %1884 = vperm.xlu1 %4101, %v1541_v53   ;;  %1804 = vperm.xlu0 %4100, %v1525_v54  }
 0x100   : > { %1051 = vmatpush1.msra.mxu0 %v4852_v5  ;;  %1133 = vmatpush1.msra.mxu1 %v4852_v5  ;;  %v1539_v5 = vld [vmem:[%s4846_s15 + $0x198] sm:$0xff] }
 0x101   : > { %1052 = vmatprep.subr.mxu0 %v6464_v1  ;;  %1134 = vmatprep.subr.mxu1 %v6464_v1 }
 0x102   : > { %v5190_v59 = vpop.permute.xlu1 %1759  ;;  %v5192_v4 = vpop.permute.xlu0 %1679  ;;  %1053 = vmatpush1.msra.mxu0 %v4862_v8  ;;  %1135 = vmatpush1.msra.mxu1 %v4862_v8 }
 0x103   : > { %1054 = vmatprep.subr.mxu0 %v6464_v1  ;;  %1136 = vmatprep.subr.mxu1 %v6464_v1 }
 0x104   : > { %1879 = vperm.xlu1 %4101, %v1540_v57   ;;  %1799 = vperm.xlu0 %4100, %v1524_v58   ;;  %v1575_v57 = vld [vmem:[%s4846_s15 + $0x2b8] sm:$0xff] }
 0x105   : > { %1055 = vmatpush1.msra.mxu0 %v4866_v9  ;;  %1137 = vmatpush1.msra.mxu1 %v4866_v9  ;;  %v1538_v9 = vld [vmem:[%s4846_s15 + $0x190] sm:$0xff]  ;;  %v1559_v58 = vld [vmem:[%s4846_s15 + $0x238] sm:$0xff] }
 0x106   : > { %1056 = vmatprep.subr.mxu0 %v6464_v1  ;;  %1138 = vmatprep.subr.mxu1 %v6464_v1  ;;  %v5204_v61 = vpop.permute.xlu1 %1754  ;;  %v5206_v8 = vpop.permute.xlu0 %1674 }
 0x107   : > { %1057 = vmatpush1.msra.mxu0 %v4876_v12  ;;  %1139 = vmatpush1.msra.mxu1 %v4876_v12 }
 0x108   : > { %1058 = vmatprep.subr.mxu0 %v6464_v1  ;;  %1140 = vmatprep.subr.mxu1 %v6464_v1 }
 0x109   : > { %1874 = vperm.xlu1 %4101, %v1539_v5   ;;  %1794 = vperm.xlu0 %4100, %v1523_v60  }
 0x10a   : > { %1059 = vmatpush1.msra.mxu0 %v4880_v13  ;;  %1141 = vmatpush1.msra.mxu1 %v4880_v13  ;;  %v1537_v13 = vld [vmem:[%s4846_s15 + $0x188] sm:$0xff] }
 0x10b   : > { %1060 = vmatprep.subr.mxu0 %v6464_v1  ;;  %1142 = vmatprep.subr.mxu1 %v6464_v1  ;;  %v5218_v63 = vpop.permute.xlu1 %1749  ;;  %v5220_v12 = vpop.permute.xlu0 %1669 }
 0x10c   : > { %1061 = vmatpush1.msra.mxu0 %v4890_v16  ;;  %1143 = vmatpush1.msra.mxu1 %v4890_v16 }
 0x10d   : > { %1062 = vmatprep.subr.mxu0 %v6464_v1  ;;  %1144 = vmatprep.subr.mxu1 %v6464_v1 }
 0x10e   : > { %1869 = vperm.xlu1 %4101, %v1538_v9   ;;  %1789 = vperm.xlu0 %4100, %v1522_v62   ;;  %v1574_v9 = vld [vmem:[%s4846_s15 + $0x2b0] sm:$0xff] }
 0x10f   : > { %1063 = vmatpush1.msra.mxu0 %v4894_v17  ;;  %1145 = vmatpush1.msra.mxu1 %v4894_v17  ;;  %v1536_v17 = vld [vmem:[%s4846_s15 + $0x180] sm:$0xff]  ;;  %v1558_v62 = vld [vmem:[%s4846_s15 + $0x230] sm:$0xff] }
 0x110   : > { %1064 = vmatprep.subr.mxu0 %v6464_v1  ;;  %1146 = vmatprep.subr.mxu1 %v6464_v1  ;;  %v5232_v2 = vpop.permute.xlu1 %1744  ;;  %v5234_v16 = vpop.permute.xlu0 %1664 }
 0x111   : > { %1065 = vmatpush1.msra.mxu0 %v4904_v20  ;;  %1147 = vmatpush1.msra.mxu1 %v4904_v20 }
 0x112   : > { %1066 = vmatprep.subr.mxu0 %v6464_v1  ;;  %1148 = vmatprep.subr.mxu1 %v6464_v1 }
 0x113   : > { %1864 = vperm.xlu1 %4101, %v1537_v13   ;;  %1784 = vperm.xlu0 %4100, %v1521_v0   ;;  %v1573_v13 = vld [vmem:[%s4846_s15 + $0x2a8] sm:$0xff] }
 0x114   : > { %1067 = vmatpush1.msra.mxu0 %v4908_v21  ;;  %1149 = vmatpush1.msra.mxu1 %v4908_v21  ;;  %v1583_v21 = vld [vmem:[%s4846_s15 + $0x2f8] sm:$0xff]  ;;  %v1557_v0 = vld [vmem:[%s4846_s15 + $0x228] sm:$0xff] }
 0x115   : > { %1068 = vmatprep.subr.mxu0 %v6464_v1  ;;  %1150 = vmatprep.subr.mxu1 %v6464_v1  ;;  %v5246_v6 = vpop.permute.xlu1 %1739  ;;  %v5248_v20 = vpop.permute.xlu0 %1659 }
 0x116   : > { %1069 = vmatpush1.msra.mxu0 %v4918_v24  ;;  %1151 = vmatpush1.msra.mxu1 %v4918_v24 }
 0x117   : > { %1070 = vmatprep.subr.mxu0 %v6464_v1  ;;  %1152 = vmatprep.subr.mxu1 %v6464_v1 }
 0x118   : > { %1859 = vperm.xlu1 %4101, %v1536_v17   ;;  %1779 = vperm.xlu0 %4100, %v1520_v3  }
 0x119   : > { %1071 = vmatpush1.msra.mxu0 %v4922_v25  ;;  %1153 = vmatpush1.msra.mxu1 %v4922_v25  ;;  %v540_v25 = vld [vmem:[%s4825_s30 + $0xc] sm:$0x3] }
 0x11a   : > { %1072 = vmatprep.subr.mxu0 %v6464_v1  ;;  %1154 = vmatprep.subr.mxu1 %v6464_v1  ;;  %v5262_v24 = vpop.permute.xlu1 %1734  ;;  %v5264_v10 = vpop.permute.xlu0 %1654 }
 0x11b   : > { %1073 = vmatpush1.msra.mxu0 %v4932_v29  ;;  %1155 = vmatpush1.msra.mxu1 %v4932_v29  ;;  %v1582_v29 = vld [vmem:[%s4846_s15 + $0x2f0] sm:$0xff] }
 0x11c   : > { %1074 = vmatprep.subr.mxu0 %v6464_v1  ;;  %1156 = vmatprep.subr.mxu1 %v6464_v1 }
 0x11d   : > { %2094 = vperm.xlu1 %4101, %v1583_v21   ;;  %2014 = vperm.xlu0 %4100, %v1567_v7   ;;  %v1572_v21 = vld [vmem:[%s4846_s15 + $0x2a0] sm:$0xff] }
 0x11e   : > { %1075 = vmatpush1.msra.mxu0 %v4936_v31  ;;  %1157 = vmatpush1.msra.mxu1 %v4936_v31  ;;  %v1044_v31 = vrot.slane %v540_v25, %v4948_v35  ;;  %v1565_v35 = vld [vmem:[%s4846_s15 + $0x268] sm:$0xff]  ;;  %v1556_v7 = vld [vmem:[%s4846_s15 + $0x220] sm:$0xff] }
 0x11f   : > { %1076 = vmatprep.subr.mxu0 %v6464_v1  ;;  %1158 = vmatprep.subr.mxu1 %v6464_v1 }
 0x120   : > { %1077 = vmatpush1.msra.mxu0 %v4946_v34  ;;  %1159 = vmatpush1.msra.mxu1 %v4946_v34  ;;  %v1040_v34 = vrot.slane %v540_v25, %v4955_v38 }
 0x121   : > { %1078 = vmatprep.subr.mxu0 %v6464_v1  ;;  %1160 = vmatprep.subr.mxu1 %v6464_v1  ;;  %v5281_v15 = vpop.permute.xlu1 %1729  ;;  %v5283_v18 = vpop.permute.xlu0 %1649 }
 0x122   : > { %2089 = vperm.xlu1 %4101, %v1582_v29   ;;  %2009 = vperm.xlu0 %4100, %v1566_v11   ;;  %v1571_v11 = vld [vmem:[%s4846_s15 + $0x298] sm:$0xff] }
 0x123   : > { %1079 = vmatpush1.msra.mxu0 %v4953_v37  ;;  %1161 = vmatpush1.msra.mxu1 %v4953_v37 }
 0x124   : > { %1110 = vmatprep.subr.mxu0 %v6464_v1  ;;  %1192 = vmatprep.subr.mxu1 %v6464_v1 }
 0x125   : > { %1111 = vmatpush2.msra.mxu0 %v4967_v43  ;;  %3588 = vmatprep.mubr.msk.f32.mxu0 %vm553_vm0, %v1044_v31 }
 0x126   : > { %1193 = vmatpush2.msra.mxu1 %v4967_v43  ;;  %3589 = vmatprep.mubr.msk.f32.mxu1 %vm553_vm0, %v1126_v19  ;;  %v5298_v37 = vpop.permute.xlu1 %1724  ;;  %v5300_v26 = vpop.permute.xlu0 %1644 }
 0x127   : > { %1113 = vmatmul.mubr.f32.vlgmr.msra.gmra.mxu0 %v1040_v34  ;;  %1195 = vmatmul.mubr.f32.vlgmr.msra.gmra.mxu1 %v1122_v22  ;;  %v1570_v34 = vld [vmem:[%s4846_s15 + $0x290] sm:$0xff] }
 0x128   : > { %2084 = vperm.xlu1 %4101, %v1581_v23   ;;  %2004 = vperm.xlu0 %4100, %v1565_v35   ;;  %v1554_v22 = vld [vmem:[%s4846_s15 + $0x210] sm:$0xff]  ;;  %v1569_v23 = vld [vmem:[%s4846_s15 + $0x288] sm:$0xff] }
 0x129   : > { %3742 = vmatprep.subr.mxu0 %v6464_v1  ;;  %3777 = vmatprep.subr.mxu1 %v6464_v1  ;;  %v1553_v35 = vld [vmem:[%s4846_s15 + $0x208] sm:$0xff] }
 0x12a   : > { %3774 = vmatprep.mubr.msk.f32.mxu0 %vm4591_vm1, %v6464_v1  ;;  %3809 = vmatprep.mubr.msk.f32.mxu1 %vm4591_vm1, %v6464_v1 }
 0x12b   : > { %v5306_v43 = vpop.permute.xlu1 %1719  ;;  %v5308_v30 = vpop.permute.xlu0 %1639 }
 0x12c   : > { %2079 = vperm.xlu1 %4101, %v1580_v27   ;;  %1999 = vperm.xlu0 %4100, %v1564_v28  }
 0x130   : > { %2074 = vperm.xlu1 %4101, %v1579_v32   ;;  %1994 = vperm.xlu0 %4100, %v1563_v33   ;;  %v5312_v36 = vpop.permute.xlu1 %1714  ;;  %v5314_v39 = vpop.permute.xlu0 %1634  ;;  %v1568_v32 = vld [vmem:[%s4846_s15 + $0x280] sm:$0xff] }
 0x131   : > { %v1552_v33 = vld [vmem:[%s4846_s15 + $0x200] sm:$0xff] }
 0x134   : > { %2069 = vperm.xlu1 %4101, %v1578_v40   ;;  %1989 = vperm.xlu0 %4100, %v1562_v44  }
 0x135   : > { %v5320_v47 = vpop.permute.xlu1 %1709  ;;  %v5322_v48 = vpop.permute.xlu0 %1629 }
 0x138   : > { %2064 = vperm.xlu1 %4101, %v1577_v45   ;;  %1984 = vperm.xlu0 %4100, %v1561_v46   ;;  %v1615_v45 = vld [vmem:[%s4846_s15 + $0x3f8] sm:$0xff] }
 0x139   : > { %v1599_v46 = vld [vmem:[%s4846_s15 + $0x378] sm:$0xff] }
 0x13a   : > { %v5326_v53 = vpop.permute.xlu1 %1704  ;;  %v5328_v54 = vpop.permute.xlu0 %1624 }
 0x13c   : > { %2059 = vperm.xlu1 %4101, %v1576_v49   ;;  %1979 = vperm.xlu0 %4100, %v1560_v50  }
 0x13f   : > { %v5332_v5 = vpop.permute.xlu1 %1699  ;;  %v5334_v60 = vpop.permute.xlu0 %1619 }
 0x140   : > { %2054 = vperm.xlu1 %4101, %v1575_v57   ;;  %1974 = vperm.xlu0 %4100, %v1559_v58   ;;  %v5383_v57 = vld [vmem:[%s6451_s7] sm:$0x1]  ;;  %v1614_v58 = vld [vmem:[%s4846_s15 + $0x3f0] sm:$0xff] }
 0x144   : > { %2049 = vperm.xlu1 %4101, %v1574_v9   ;;  %1969 = vperm.xlu0 %4100, %v1558_v62   ;;  %v5340_v17 = vpop.permute.xlu1 %1934  ;;  %v5342_v3 = vpop.permute.xlu0 %1854  ;;  %v1598_v9 = vld [vmem:[%s4846_s15 + $0x370] sm:$0xff] }
 0x148   : > { %2044 = vperm.xlu1 %4101, %v1573_v13   ;;  %1964 = vperm.xlu0 %4100, %v1557_v0   ;;  %v5397_v0 = vld [vmem:[%s6450_s6] ss:$0 sm:$0xff] }
 0x14b   : > { %v5346_v25 = vpop.permute.xlu1 %1929  ;;  %v5348_v29 = vpop.permute.xlu0 %1849 }
 0x14c   : > { %2039 = vperm.xlu1 %4101, %v1572_v21   ;;  %1959 = vperm.xlu0 %4100, %v1556_v7  }
 0x150   : > { %2034 = vperm.xlu1 %4101, %v1571_v11   ;;  %1954 = vperm.xlu0 %4100, %v1555_v14   ;;  %v5352_v31 = vpop.permute.xlu1 %1924  ;;  %v5354_v19 = vpop.permute.xlu0 %1844  ;;  %v1215_v14 = vld [vmem:[%s5390_s10 + $0x78] sm:$0xff] }
 0x154   : > { %2029 = vperm.xlu1 %4101, %v1570_v34   ;;  %1949 = vperm.xlu0 %4100, %v1554_v22   ;;  %v1231_v34 = vld [vmem:[%s5390_s10 + $0xf8] sm:$0xff]  ;;  %v1214_v22 = vld [vmem:[%s5390_s10 + $0x70] sm:$0xff] }
 0x155   : > { %v5360_v27 = vpop.permute.xlu1 %1919  ;;  %v5362_v28 = vpop.permute.xlu0 %1839 }
 0x158   : > { %2024 = vperm.xlu1 %4101, %v1569_v23   ;;  %1944 = vperm.xlu0 %4100, %v1553_v35   ;;  %v1613_v23 = vld [vmem:[%s4846_s15 + $0x3e8] sm:$0xff] }
 0x159   : > { %v1597_v35 = vld [vmem:[%s4846_s15 + $0x368] sm:$0xff] }
 0x15a   : > { %v5370_v40 = vpop.permute.xlu1 %1914  ;;  %v5372_v44 = vpop.permute.xlu0 %1834 }
 0x15c   : > { %2019 = vperm.xlu1 %4101, %v1568_v32   ;;  %1939 = vperm.xlu0 %4100, %v1552_v33  }
 0x15f   : > { %v5376_v49 = vpop.permute.xlu0 %1829  ;;  %v5378_v50 = vpop.permute.xlu1 %1909 }
 0x160   : > { %2254 = vperm.xlu1 %4101, %v1615_v45   ;;  %2174 = vperm.xlu0 %4100, %v1599_v46   ;;  %6487 = vst [vmem:[#allocation21_spill] sm:$0xff] %v5378_v50 }
 0x162   : > { %v622_v62 = vpop.f32.mrf.mxu0  ;;  %v704_v13 = vpop.f32.mrf.mxu1 }
 0x163   : > { %v623_v21 = vadd.f32 %v622_v62, %v5383_v57  ;;  %v705_v7 = vadd.f32 %v704_v13, %v5383_v57  ;;  %v2277_v62 = vmul.f32 %v5397_v0, %v5147_v42  ;;  %v1612_v42 = vld [vmem:[%s4846_s15 + $0x3e0] sm:$0xff] }
 0x164   : > { %2249 = vperm.xlu1 %4101, %v1614_v58   ;;  %2169 = vperm.xlu0 %4100, %v1598_v9   ;;  %v5401_v11 = vpop.permute.xlu0 %1824  ;;  %v624_v45 = vpop.f32.mrf.mxu0  ;;  %v1230_v58 = vld [vmem:[%s5390_s10 + $0xf0] sm:$0xff]  ;;  %v2278_v9 = vmul.f32 %v5397_v0, %v5145_v41 }
 0x165   : > { %6488 = vst [vmem:[#allocation22_spill] sm:$0xff] %v5401_v11  ;;  %v5409_v32 = vrot.slane %v623_v21, %v4955_v38  ;;  %v5412_v33 = vrot.slane %v705_v7, %v4955_v38  ;;  %v706_v46 = vpop.f32.mrf.mxu1  ;;  %v5419_v13 = vpop.permute.xlu1 %1904  ;;  %v2294_v21 = vmul.f32 %v5397_v0, %v5164_v51  ;;  %v1213_v11 = vld [vmem:[%s5390_s10 + $0x68] sm:$0xff] }
 0x166   : > { %6489 = vst [vmem:[#allocation23_spill] sm:$0xff] %v5419_v13  ;;  %v2293_v46 = vmul.f32 %v5397_v0, %v5166_v52  ;;  %v1596_v13 = vld [vmem:[%s4846_s15 + $0x360] sm:$0xff] }
 0x167   : > { %v1375_v7 = vadd.f32 %v5409_v32, %v1215_v14  ;;  %v1391_v1 = vadd.f32 %v5412_v33, %v1231_v34  ;;  %v1374_v45 = vadd.f32 %v5409_v32, %v1214_v22  ;;  %v1390_v41 = vadd.f32 %v5412_v33, %v1230_v58  ;;  %v1229_v14 = vld [vmem:[%s5390_s10 + $0xe8] sm:$0xff] }
 0x168   : > { %2244 = vperm.xlu1 %4101, %v1613_v23   ;;  %2164 = vperm.xlu0 %4100, %v1597_v35   ;;  %v1373_v52 = vadd.f32 %v5409_v32, %v1213_v11  ;;  %v2292_v23 = vmul.f32 %v5397_v0, %v5176_v55  ;;  %v1595_v11 = vld [vmem:[%s4846_s15 + $0x358] sm:$0xff] }
 0x169   : > { %v2406_v50 = vadd.f32 %v2278_v9, %v1375_v7  ;;  %v2422_v51 = vadd.f32 %v2294_v21, %v1391_v1  ;;  %v5433_v34 = vpop.permute.xlu0 %1819  ;;  %v2405_v22 = vadd.f32 %v2277_v62, %v1374_v45  ;;  %v5438_v35 = vpop.permute.xlu1 %1899  ;;  %v2421_v58 = vadd.f32 %v2293_v46, %v1390_v41  ;;  %v1212_v9 = vld [vmem:[%s5390_s10 + $0x60] sm:$0xff]  ;;  %v1211_v41 = vld [vmem:[%s5390_s10 + $0x58] sm:$0xff] }
 0x16a   : > { %v1389_v1 = vadd.f32 %v5412_v33, %v1229_v14  ;;  %v2276_v21 = vmul.f32 %v5397_v0, %v5178_v56  ;;  %v1228_v62 = vld [vmem:[%s5390_s10 + $0xe0] sm:$0xff]  ;;  %v2291_v7 = vmul.f32 %v5397_v0, %v5190_v59  ;;  %v1594_v14 = vld [vmem:[%s4846_s15 + $0x350] sm:$0xff] }
 0x16b   : > { %4102 = vtanh.f32 %v2406_v50  ;;  %v1611_v50 = vld [vmem:[%s4846_s15 + $0x3d8] sm:$0xff]  ;;  %v1388_v56 = vadd.f32 %v5412_v33, %v1228_v62  ;;  %v1226_v62 = vld [vmem:[%s5390_s10 + $0xd0] sm:$0xff] }
 0x16c   : > { %2239 = vperm.xlu1 %4101, %v1612_v42   ;;  %2159 = vperm.xlu0 %4100, %v1596_v13   ;;  %4104 = vtanh.f32 %v2422_v51  ;;  %v2404_v55 = vadd.f32 %v2276_v21, %v1373_v52  ;;  %v1372_v13 = vadd.f32 %v5409_v32, %v1212_v9  ;;  %v2420_v46 = vadd.f32 %v2292_v23, %v1389_v1  ;;  %v1610_v51 = vld [vmem:[%s4846_s15 + $0x3d0] sm:$0xff] }
 0x16d   : > { %4106 = vtanh.f32 %v2405_v22  ;;  %v2275_v42 = vmul.f32 %v5397_v0, %v5192_v4  ;;  %v1227_v22 = vld [vmem:[%s5390_s10 + $0xd8] sm:$0xff]  ;;  %v2290_v23 = vmul.f32 %v5397_v0, %v5204_v61  ;;  %v2419_v1 = vadd.f32 %v2291_v7, %v1388_v56  ;;  %v1210_v9 = vld [vmem:[%s5390_s10 + $0x50] sm:$0xff] }
 0x16e   : > { %v5450_v45 = vpop.permute.xlu0 %1814  ;;  %4108 = vtanh.f32 %v2421_v58  ;;  %v5459_v59 = vpop.permute.xlu1 %1894  ;;  %v1371_v58 = vadd.f32 %v5409_v32, %v1211_v41  ;;  %v1387_v4 = vadd.f32 %v5412_v33, %v1227_v22  ;;  %v2274_v21 = vmul.f32 %v5397_v0, %v5206_v8  ;;  %v1608_v22 = vld [vmem:[%s4846_s15 + $0x3c0] sm:$0xff] }
 0x16f   : > { %4110 = vtanh.f32 %v2404_v55  ;;  %v2403_v52 = vadd.f32 %v2275_v42, %v1372_v13  ;;  %v1370_v13 = vadd.f32 %v5409_v32, %v1210_v9  ;;  %v1386_v41 = vadd.f32 %v5412_v33, %v1226_v62  ;;  %v1209_v42 = vld [vmem:[%s5390_s10 + $0x48] sm:$0xff] }
 0x170   : > { %2234 = vperm.xlu1 %4101, %v1611_v50   ;;  %2154 = vperm.xlu0 %4100, %v1595_v11   ;;  %4112 = vtanh.f32 %v2420_v46  ;;  %v1609_v50 = vld [vmem:[%s4846_s15 + $0x3c8] sm:$0xff]  ;;  %v2402_v61 = vadd.f32 %v2274_v21, %v1371_v58  ;;  %v2289_v46 = vmul.f32 %v5397_v0, %v5218_v63  ;;  %v2418_v56 = vadd.f32 %v2290_v23, %v1387_v4 }
 0x171   : > { %v1593_v11 = vld [vmem:[%s4846_s15 + $0x348] sm:$0xff]  ;;  %4114 = vtanh.f32 %v2403_v52  ;;  %v1592_v52 = vld [vmem:[%s4846_s15 + $0x340] sm:$0xff]  ;;  %v6490_v63 = vmov 0.0  }
 0x172   : > { %4116 = vtanh.f32 %v2419_v1  ;;  %v1225_v58 = vld [vmem:[%s5390_s10 + $0xc8] sm:$0xff]  ;;  %v1369_v1 = vadd.f32 %v5409_v32, %v1209_v42  ;;  %v2417_v21 = vadd.f32 %v2289_v46, %v1386_v41  ;;  %v1224_v42 = vld [vmem:[%s5390_s10 + $0xc0] sm:$0xff] }
 0x173   : > { %v5471_v55 = vpop.permute.xlu0 %1809  ;;  %v5476_v8 = vpop.permute.xlu1 %1889  ;;  %4118 = vtanh.f32 %v2402_v61  ;;  %v2272_v61 = vmul.f32 %v5397_v0, %v5234_v16 }
 0x174   : > { %2229 = vperm.xlu1 %4101, %v1610_v51   ;;  %2149 = vperm.xlu0 %4100, %v1594_v14   ;;  %v2273_v14 = vmul.f32 %v5397_v0, %v5220_v12  ;;  %v2288_v12 = vmul.f32 %v5397_v0, %v5232_v2  ;;  %4120 = vtanh.f32 %v2418_v56  ;;  %v2287_v56 = vmul.f32 %v5397_v0, %v5246_v6 }
 0x175   : > { %v2400_v2 = vadd.f32 %v2272_v61, %v1369_v1  ;;  %v1223_v1 = vld [vmem:[%s5390_s10 + $0xb8] sm:$0xff] }
 0x176   : > { %v2401_v23 = vadd.f32 %v2273_v14, %v1370_v13  ;;  %v1607_v13 = vld [vmem:[%s4846_s15 + $0x3b8] sm:$0xff]  ;;  %v1384_v14 = vadd.f32 %v5412_v33, %v1224_v42  ;;  %v1383_v61 = vadd.f32 %v5412_v33, %v1223_v1  ;;  %v2270_v42 = vmul.f32 %v5397_v0, %v5264_v10  ;;  %v1604_v1 = vld [vmem:[%s4846_s15 + $0x3a0] sm:$0xff] }
 0x177   : > { %v2285_v10 = vmul.f32 %v5397_v0, %v5281_v15 }
 0x178   : > { %v4103_v7 = vpop.eup %4102  ;;  %2224 = vperm.xlu1 %4101, %v1609_v50   ;;  %2144 = vperm.xlu0 %4100, %v1593_v11   ;;  %v1385_v50 = vadd.f32 %v5412_v33, %v1225_v58  ;;  %v1208_v11 = vld [vmem:[%s5390_s10 + $0x40] sm:$0xff]  ;;  %4122 = vtanh.f32 %v2401_v23  ;;  %v2271_v58 = vmul.f32 %v5397_v0, %v5248_v20  ;;  %v1606_v23 = vld [vmem:[%s4846_s15 + $0x3b0] sm:$0xff] }
 0x179   : > { %v4105_v51 = vpop.eup %4104  ;;  %3743 = vmatpush3.xpose.msra.mxu0 %v4103_v7  ;;  %v1591_v7 = vld [vmem:[%s4846_s15 + $0x338] sm:$0xff]  ;;  %v1368_v46 = vadd.f32 %v5409_v32, %v1208_v11  ;;  %4124 = vtanh.f32 %v2417_v21  ;;  %v2286_v21 = vmul.f32 %v5397_v0, %v5262_v24 }
 0x17a   : > { %3778 = vmatpush3.xpose.msra.mxu1 %v4105_v51  ;;  %3744 = vmatprep.subr.mxu0 %v6490_v63  ;;  %v4107_v4 = vpop.eup %4106  ;;  %v5490_v9 = vpop.permute.xlu0 %1804  ;;  %v2416_v41 = vadd.f32 %v2288_v12, %v1385_v50  ;;  %4126 = vtanh.f32 %v2400_v2  ;;  %v1605_v2 = vld [vmem:[%s4846_s15 + $0x3a8] sm:$0xff] }
 0x17b   : > { %3779 = vmatprep.subr.mxu1 %v6490_v63  ;;  %v4109_v62 = vpop.eup %4108  ;;  %v5499_v51 = vpop.permute.xlu1 %1884  ;;  %v2399_v6 = vadd.f32 %v2271_v58, %v1368_v46  ;;  %v1589_v46 = vld [vmem:[%s4846_s15 + $0x328] sm:$0xff] }
 0x17c   : > { %2219 = vperm.xlu1 %4101, %v1608_v22   ;;  %2139 = vperm.xlu0 %4100, %v1592_v52   ;;  %v4111_v16 = vpop.eup %4110  ;;  %v1207_v22 = vld [vmem:[%s5390_s10 + $0x38] sm:$0xff]  ;;  %4128 = vtanh.f32 %v2416_v41  ;;  %v1205_v58 = vld [vmem:[%s5390_s10 + $0x28] sm:$0xff] }
 0x17d   : > { %3745 = vmatpush3.xpose.msra.mxu0 %v4107_v4  ;;  %v4113_v52 = vpop.eup %4112  ;;  %v1590_v4 = vld [vmem:[%s4846_s15 + $0x330] sm:$0xff]  ;;  %v1367_v12 = vadd.f32 %v5409_v32, %v1207_v22  ;;  %4130 = vtanh.f32 %v2399_v6  ;;  %v2414_v22 = vadd.f32 %v2286_v21, %v1383_v61  ;;  %v1588_v6 = vld [vmem:[%s4846_s15 + $0x320] sm:$0xff]  ;;  %v1365_v21 = vadd.f32 %v5409_v32, %v1205_v58 }
 0x17e   : > { %3780 = vmatpush3.xpose.msra.mxu1 %v4109_v62  ;;  %3746 = vmatprep.subr.mxu0 %v6490_v63  ;;  %v4115_v20 = vpop.eup %4114  ;;  %v2415_v62 = vadd.f32 %v2287_v56, %v1384_v14 }
 0x17f   : > { %3781 = vmatprep.subr.mxu1 %v6490_v63  ;;  %v5513_v11 = vpop.permute.xlu0 %1799  ;;  %v5520_v50 = vpop.permute.xlu1 %1879  ;;  %v2398_v24 = vadd.f32 %v2270_v42, %v1367_v12  ;;  %v1221_v12 = vld [vmem:[%s5390_s10 + $0xa8] sm:$0xff] }
 0x180   : > { %2214 = vperm.xlu1 %4101, %v1607_v13   ;;  %2134 = vperm.xlu0 %4100, %v1591_v7   ;;  %v1206_v13 = vld [vmem:[%s5390_s10 + $0x30] sm:$0xff]  ;;  %v4117_v7 = vpop.eup %4116  ;;  %4132 = vtanh.f32 %v2415_v62  ;;  %v2284_v62 = vmul.f32 %v5397_v0, %v5298_v37 }
 0x181   : > { %3747 = vmatpush3.xpose.msra.mxu0 %v4111_v16  ;;  %v1222_v16 = vld [vmem:[%s5390_s10 + $0xb0] sm:$0xff]  ;;  %v1366_v56 = vadd.f32 %v5409_v32, %v1206_v13  ;;  %v4119_v41 = vpop.eup %4118  ;;  %4134 = vtanh.f32 %v2398_v24  ;;  %v1381_v13 = vadd.f32 %v5412_v33, %v1221_v12  ;;  %v1220_v24 = vld [vmem:[%s5390_s10 + $0xa0] sm:$0xff]  ;;  %v2267_v12 = vmul.f32 %v5397_v0, %v5308_v30 }
 0x182   : > { %3782 = vmatpush3.xpose.msra.mxu1 %v4113_v52  ;;  %3748 = vmatprep.subr.mxu0 %v6490_v63  ;;  %v1382_v52 = vadd.f32 %v5412_v33, %v1222_v16  ;;  %4136 = vtanh.f32 %v2414_v22  ;;  %v1587_v16 = vld [vmem:[%s4846_s15 + $0x318] sm:$0xff] }
 0x183   : > { %3783 = vmatprep.subr.mxu1 %v6490_v63 }
 0x184   : > { %2209 = vperm.xlu1 %4101, %v1606_v23   ;;  %2129 = vperm.xlu0 %4100, %v1590_v4   ;;  %v5534_v14 = vpop.permute.xlu0 %1794  ;;  %v4121_v23 = vpop.eup %4120  ;;  %v2269_v4 = vmul.f32 %v5397_v0, %v5283_v18  ;;  %v2413_v61 = vadd.f32 %v2285_v10, %v1382_v52  ;;  %v2283_v52 = vmul.f32 %v5397_v0, %v5306_v43  ;;  %v1219_v43 = vld [vmem:[%s5390_s10 + $0x98] sm:$0xff] }
 0x185   : > { %3749 = vmatpush3.xpose.msra.mxu0 %v4115_v20  ;;  %v5543_v20 = vpop.permute.xlu1 %1874  ;;  %v4123_v18 = vpop.eup %4122 }
 0x186   : > { %3784 = vmatpush3.xpose.msra.mxu1 %v4117_v7  ;;  %3750 = vmatprep.subr.mxu0 %v6490_v63  ;;  %v2397_v15 = vadd.f32 %v2269_v4, %v1366_v56  ;;  %v1204_v7 = vld [vmem:[%s5390_s10 + $0x20] sm:$0xff]  ;;  %v4125_v42 = vpop.eup %4124  ;;  %v1380_v4 = vadd.f32 %v5412_v33, %v1220_v24  ;;  %v2266_v24 = vmul.f32 %v5397_v0, %v5314_v39 }
 0x187   : > { %3785 = vmatprep.subr.mxu1 %v6490_v63  ;;  %v1364_v10 = vadd.f32 %v5409_v32, %v1204_v7  ;;  %v4127_v22 = vpop.eup %4126 }
 0x188   : > { %2204 = vperm.xlu1 %4101, %v1605_v2   ;;  %2124 = vperm.xlu0 %4100, %v1589_v46   ;;  %v2268_v2 = vmul.f32 %v5397_v0, %v5300_v26  ;;  %v1603_v46 = vld [vmem:[%s4846_s15 + $0x398] sm:$0xff]  ;;  %4138 = vtanh.f32 %v2397_v15  ;;  %v1602_v15 = vld [vmem:[%s4846_s15 + $0x390] sm:$0xff] }
 0x189   : > { %3751 = vmatpush3.xpose.msra.mxu0 %v4119_v41  ;;  %v5557_v56 = vpop.permute.xlu0 %1789  ;;  %v5568_v58 = vpop.permute.xlu1 %1869  ;;  %4140 = vtanh.f32 %v2413_v61 }
 0x18a   : > { %3786 = vmatpush3.xpose.msra.mxu1 %v4121_v23  ;;  %3752 = vmatprep.subr.mxu0 %v6490_v63  ;;  %v2396_v26 = vadd.f32 %v2268_v2, %v1365_v21  ;;  %v2412_v23 = vadd.f32 %v2284_v62, %v1381_v13  ;;  %v1586_v21 = vld [vmem:[%s4846_s15 + $0x310] sm:$0xff]  ;;  %v2395_v62 = vadd.f32 %v2267_v12, %v1364_v10  ;;  %v1601_v10 = vld [vmem:[%s4846_s15 + $0x388] sm:$0xff] }
 0x18b   : > { %3787 = vmatprep.subr.mxu1 %v6490_v63  ;;  %v2282_v13 = vmul.f32 %v5397_v0, %v5312_v36  ;;  %v1379_v2 = vadd.f32 %v5412_v33, %v1219_v43  ;;  %v1584_v43 = vld [vmem:[%s4846_s15 + $0x300] sm:$0xff] }
 0x18c   : > { %2199 = vperm.xlu1 %4101, %v1604_v1   ;;  %2119 = vperm.xlu0 %4100, %v1588_v6   ;;  %v1203_v1 = vld [vmem:[%s5390_s10 + $0x18] sm:$0xff]  ;;  %v4129_v6 = vpop.eup %4128  ;;  %4142 = vtanh.f32 %v2396_v26 }
 0x18d   : > { %3753 = vmatpush3.xpose.msra.mxu0 %v4123_v18  ;;  %v1363_v61 = vadd.f32 %v5409_v32, %v1203_v1  ;;  %v4131_v30 = vpop.eup %4130  ;;  %4144 = vtanh.f32 %v2412_v23  ;;  %v1218_v1 = vld [vmem:[%s5390_s10 + $0x90] sm:$0xff] }
 0x18e   : > { %3788 = vmatpush3.xpose.msra.mxu1 %v4125_v42  ;;  %3754 = vmatprep.subr.mxu0 %v6490_v63  ;;  %v5560_v37 = vpop.f32.mrf.mxu0  ;;  %v5562_v41 = vpop.f32.mrf.mxu1  ;;  %v2411_v42 = vadd.f32 %v2283_v52, %v1380_v4  ;;  %4146 = vtanh.f32 %v2395_v62  ;;  %v2281_v4 = vmul.f32 %v5397_v0, %v5320_v47  ;;  %v1378_v12 = vadd.f32 %v5412_v33, %v1218_v1  ;;  %v1217_v62 = vld [vmem:[%s5390_s10 + $0x88] sm:$0xff] }
 0x18f   : > { %3789 = vmatprep.subr.mxu1 %v6490_v63  ;;  %v5586_v26 = vpop.permute.xlu0 %1784  ;;  %v5592_v36 = vpop.permute.xlu1 %1864  ;;  %v2394_v52 = vadd.f32 %v2266_v24, %v1363_v61  ;;  %v2280_v61 = vmul.f32 %v5397_v0, %v5326_v53  ;;  %v869_v53 = vadd.f32 %v5562_v41, %v5383_v57  ;;  %v2279_v1 = vmul.f32 %v5397_v0, %v5332_v5 }
 0x190   : > { %2194 = vperm.xlu1 %4101, %v1603_v46   ;;  %2114 = vperm.xlu0 %4100, %v1587_v16   ;;  %v788_v18 = vpop.f32.mrf.mxu0  ;;  %v870_v7 = vpop.f32.mrf.mxu1  ;;  %v1202_v46 = vld [vmem:[%s5390_s10 + $0x10] sm:$0xff]  ;;  %4148 = vtanh.f32 %v2411_v42 }
 0x191   : > { %3755 = vmatpush3.xpose.msra.mxu0 %v4127_v22  ;;  %v4133_v16 = vpop.eup %4132  ;;  %v1585_v22 = vld [vmem:[%s4846_s15 + $0x308] sm:$0xff]  ;;  %v1362_v39 = vadd.f32 %v5409_v32, %v1202_v46  ;;  %v2265_v18 = vmul.f32 %v5397_v0, %v5322_v48  ;;  %v1600_v7 = vld [vmem:[%s4846_s15 + $0x380] sm:$0xff]  ;;  %4150 = vtanh.f32 %v2394_v52  ;;  %v1377_v46 = vadd.f32 %v5412_v33, %v1217_v62  ;;  %v1246_v62 = vld [vmem:[%s5390_s10 + $0x170] sm:$0xff] }
 0x192   : > { %3790 = vmatpush3.xpose.msra.mxu1 %v4129_v6  ;;  %3756 = vmatprep.subr.mxu0 %v6490_v63  ;;  %v4135_v23 = vpop.eup %4134  ;;  %v2410_v6 = vadd.f32 %v2282_v13, %v1379_v2  ;;  %v2409_v2 = vadd.f32 %v2281_v4, %v1378_v12  ;;  %v1247_v4 = vld [vmem:[%s5390_s10 + $0x178] sm:$0xff]  ;;  %v2263_v12 = vmul.f32 %v5397_v0, %v5334_v60 }
 0x193   : > { %3791 = vmatprep.subr.mxu1 %v6490_v63  ;;  %v5608_v47 = vpop.permute.xlu0 %1779  ;;  %v2393_v48 = vadd.f32 %v2265_v18, %v1362_v39  ;;  %v5632_v39 = vrot.slane %v869_v53, %v4955_v38 }
 0x194   : > { %2189 = vperm.xlu1 %4101, %v1602_v15   ;;  %2109 = vperm.xlu0 %4100, %v1586_v21   ;;  %v1201_v15 = vld [vmem:[%s5390_s10 + $0x8] sm:$0xff]  ;;  %v4137_v21 = vpop.eup %4136  ;;  %4152 = vtanh.f32 %v2410_v6 }
 0x195   : > { %3757 = vmatpush3.xpose.msra.mxu0 %v4131_v30  ;;  %v787_v30 = vadd.f32 %v5560_v37, %v5383_v57  ;;  %v1361_v13 = vadd.f32 %v5409_v32, %v1201_v15  ;;  %v4139_v42 = vpop.eup %4138  ;;  %v2264_v37 = vmul.f32 %v5397_v0, %v5328_v54  ;;  %4154 = vtanh.f32 %v2393_v48  ;;  %v1262_v48 = vld [vmem:[%s5390_s10 + $0x1f0] sm:$0xff] }
 0x196   : > { %3792 = vmatpush3.xpose.msra.mxu1 %v4133_v16  ;;  %3758 = vmatprep.subr.mxu0 %v6490_v63  ;;  %v1200_v16 = vld [vmem:[%s5390_s10] sm:$0xff]  ;;  %v4141_v24 = vpop.eup %4140  ;;  %4156 = vtanh.f32 %v2409_v2 }
 0x197   : > { %3793 = vmatprep.subr.mxu1 %v6490_v63  ;;  %v5627_v57 = vrot.slane %v787_v30, %v4955_v38  ;;  %v2392_v41 = vadd.f32 %v2264_v37, %v1361_v13  ;;  %v1360_v54 = vadd.f32 %v5409_v32, %v1200_v16  ;;  %v2310_v30 = vmul.f32 %v5397_v0, %v5342_v3 }
 0x198   : > { %2184 = vperm.xlu1 %4101, %v1601_v10   ;;  %2104 = vperm.xlu0 %4100, %v1585_v22   ;;  %v5620_v10 = vpop.permute.xlu1 %1859  ;;  %v1216_v22 = vld [vmem:[%s5390_s10 + $0x80] sm:$0xff]  ;;  %v5638_v15 = vpop.permute.xlu0 %2014  ;;  %v2326_v13 = vmul.f32 %v5397_v0, %v5340_v17  ;;  %v1422_v16 = vadd.f32 %v5632_v39, %v1262_v48  ;;  %v2309_v17 = vmul.f32 %v5397_v0, %v5348_v29  ;;  %v1259_v48 = vld [vmem:[%s5390_s10 + $0x1d8] sm:$0xff] }
 0x199   : > { %3759 = vmatpush3.xpose.msra.mxu0 %v4135_v23  ;;  %v4143_v52 = vpop.eup %4142  ;;  %v2408_v23 = vadd.f32 %v2280_v61, %v1377_v46  ;;  %v1376_v5 = vadd.f32 %v5412_v33, %v1216_v22  ;;  %4158 = vtanh.f32 %v2392_v41  ;;  %v2391_v33 = vadd.f32 %v2263_v12, %v1360_v54 }
 0x19a   : > { %3794 = vmatpush3.xpose.msra.mxu1 %v4137_v21  ;;  %3760 = vmatprep.subr.mxu0 %v6490_v63  ;;  %v4145_v6 = vpop.eup %4144  ;;  %v1263_v21 = vld [vmem:[%s5390_s10 + $0x1f8] sm:$0xff]  ;;  %v1407_v18 = vadd.f32 %v5627_v57, %v1247_v4  ;;  %v1406_v2 = vadd.f32 %v5627_v57, %v1246_v62  ;;  %v2325_v41 = vmul.f32 %v5397_v0, %v5346_v25  ;;  %v1244_v4 = vld [vmem:[%s5390_s10 + $0x160] sm:$0xff] }
 0x19b   : > { %3795 = vmatprep.subr.mxu1 %v6490_v63  ;;  %4160 = vtanh.f32 %v2408_v23  ;;  %v1423_v60 = vadd.f32 %v5632_v39, %v1263_v21  ;;  %v2308_v25 = vmul.f32 %v5397_v0, %v5354_v19  ;;  %v1260_v21 = vld [vmem:[%s5390_s10 + $0x1e0] sm:$0xff]  ;;  %v1404_v19 = vadd.f32 %v5627_v57, %v1244_v4  ;;  %v1241_v4 = vld [vmem:[%s5390_s10 + $0x148] sm:$0xff] }
 0x19c   : > { %2179 = vperm.xlu1 %4101, %v1600_v7   ;;  %2099 = vperm.xlu0 %4100, %v1584_v43   ;;  %v5642_v32 = vpop.permute.xlu1 %2094  ;;  %v4147_v7 = vpop.eup %4146  ;;  %v2407_v43 = vadd.f32 %v2279_v1, %v1376_v5  ;;  %4162 = vtanh.f32 %v2391_v33  ;;  %v2438_v53 = vadd.f32 %v2310_v30, %v1407_v18  ;;  %v1261_v1 = vld [vmem:[%s5390_s10 + $0x1e8] sm:$0xff]  ;;  %v2437_v54 = vadd.f32 %v2309_v17, %v1406_v2 }
 0x19d   : > { %3761 = vmatpush3.xpose.msra.mxu0 %v4139_v42  ;;  %v4149_v61 = vpop.eup %4148  ;;  %v5654_v42 = vpop.permute.xlu0 %2009  ;;  %v2454_v3 = vadd.f32 %v2326_v13, %v1423_v60  ;;  %v2453_v29 = vadd.f32 %v2325_v41, %v1422_v16  ;;  %v1421_v5 = vadd.f32 %v5632_v39, %v1261_v1  ;;  %v2324_v33 = vmul.f32 %v5397_v0, %v5352_v31  ;;  %v5705_v1 = vld [vmem:[%s6452_s8] sm:$0x1]  ;;  %v1258_v41 = vld [vmem:[%s5390_s10 + $0x1d0] sm:$0xff] }
 0x19e   : > { %3796 = vmatpush3.xpose.msra.mxu1 %v4141_v24  ;;  %3762 = vmatprep.subr.mxu0 %v6490_v63  ;;  %v4151_v46 = vpop.eup %4150  ;;  %4164 = vtanh.f32 %v2407_v43  ;;  %v1245_v24 = vld [vmem:[%s5390_s10 + $0x168] sm:$0xff]  ;;  %v1420_v62 = vadd.f32 %v5632_v39, %v1260_v21  ;;  %v2307_v31 = vmul.f32 %v5397_v0, %v5362_v28  ;;  %v2323_v13 = vmul.f32 %v5397_v0, %v5360_v27 }
 0x19f   : > { %3797 = vmatprep.subr.mxu1 %v6490_v63  ;;  %4166 = vtanh.f32 %v2438_v53  ;;  %v2452_v60 = vadd.f32 %v2324_v33, %v1421_v5  ;;  %v1419_v16 = vadd.f32 %v5632_v39, %v1259_v48  ;;  %v2306_v27 = vmul.f32 %v5397_v0, %v5372_v44  ;;  %v1257_v21 = vld [vmem:[%s5390_s10 + $0x1c8] sm:$0xff]  ;;  %v6491_v33 = vld [vmem:[#allocation21_spill] sm:$0xff]  ;;  %v1240_v48 = vld [vmem:[%s5390_s10 + $0x140] sm:$0xff] }
 0x1a0   : > { %v5662_v22 = vpop.permute.xlu1 %2089  ;;  %4168 = vtanh.f32 %v2454_v3  ;;  %v2435_v2 = vadd.f32 %v2307_v31, %v1404_v19  ;;  %v2451_v28 = vadd.f32 %v2323_v13, %v1420_v62  ;;  %v1418_v5 = vadd.f32 %v5632_v39, %v1258_v41 }
 0x1a1   : > { %3763 = vmatpush3.xpose.msra.mxu0 %v4143_v52  ;;  %v4153_v37 = vpop.eup %4152  ;;  %v1405_v52 = vadd.f32 %v5627_v57, %v1245_v24  ;;  %4170 = vtanh.f32 %v2437_v54  ;;  %v1242_v24 = vld [vmem:[%s5390_s10 + $0x150] sm:$0xff]  ;;  %v2322_v54 = vmul.f32 %v5397_v0, %v5370_v40  ;;  %v2305_v40 = vmul.f32 %v5397_v0, %v5376_v49 }
 0x1a2   : > { %3798 = vmatpush3.xpose.msra.mxu1 %v4145_v6  ;;  %3764 = vmatprep.subr.mxu0 %v6490_v63  ;;  %v4155_v23 = vpop.eup %4154  ;;  %4172 = vtanh.f32 %v2453_v29  ;;  %v1417_v31 = vadd.f32 %v5632_v39, %v1257_v21  ;;  %v2319_v21 = vmul.f32 %v5397_v0, %v5438_v35  ;;  %v2302_v35 = vmul.f32 %v5397_v0, %v5450_v45 }
 0x1a3   : > { %3799 = vmatprep.subr.mxu1 %v6490_v63  ;;  %v4157_v6 = vpop.eup %4156  ;;  %v5674_v12 = vpop.permute.xlu0 %2004  ;;  %v2450_v29 = vadd.f32 %v2322_v54, %v1419_v16  ;;  %v1400_v54 = vadd.f32 %v5627_v57, %v1240_v48  ;;  %v1254_v48 = vld [vmem:[%s5390_s10 + $0x1b0] sm:$0xff] }
 0x1a4   : > { %v5680_v18 = vpop.permute.xlu1 %2084 }
 0x1a5   : > { %3765 = vmatpush3.xpose.msra.mxu0 %v4147_v7  ;;  %v2436_v7 = vadd.f32 %v2308_v25, %v1405_v52  ;;  %v1402_v52 = vadd.f32 %v5627_v57, %v1242_v24 }
 0x1a6   : > { %3800 = vmatpush3.xpose.msra.mxu1 %v4149_v61  ;;  %3766 = vmatprep.subr.mxu0 %v6490_v63  ;;  %v4159_v43 = vpop.eup %4158  ;;  %v1243_v61 = vld [vmem:[%s5390_s10 + $0x158] sm:$0xff] }
 0x1a7   : > { %3801 = vmatprep.subr.mxu1 %v6490_v63  ;;  %v5692_v53 = vpop.permute.xlu0 %1999  ;;  %4174 = vtanh.f32 %v2436_v7  ;;  %v2321_v7 = vmul.f32 %v5397_v0, %v6491_v33  ;;  %v2433_v49 = vadd.f32 %v2305_v40, %v1402_v52  ;;  %v1255_v40 = vld [vmem:[%s5390_s10 + $0x1b8] sm:$0xff] }
 0x1a8   : > { %v4161_v30 = vpop.eup %4160  ;;  %4176 = vtanh.f32 %v2452_v60  ;;  %v5700_v17 = vpop.permute.xlu1 %2079 }
 0x1a9   : > { %3767 = vmatpush3.xpose.msra.mxu0 %v4151_v46  ;;  %v1403_v46 = vadd.f32 %v5627_v57, %v1243_v61  ;;  %v4163_v3 = vpop.eup %4162  ;;  %4178 = vtanh.f32 %v2435_v2  ;;  %v6492_v2 = vld [vmem:[#allocation22_spill] sm:$0xff] }
 0x1aa   : > { %3802 = vmatpush3.xpose.msra.mxu1 %v4153_v37  ;;  %3768 = vmatprep.subr.mxu0 %v6490_v63  ;;  %4180 = vtanh.f32 %v2451_v28  ;;  %v6493_v28 = vld [vmem:[#allocation23_spill] sm:$0xff] }
 0x1ab   : > { %3803 = vmatprep.subr.mxu1 %v6490_v63  ;;  %v4165_v37 = vpop.eup %4164  ;;  %v2434_v44 = vadd.f32 %v2306_v27, %v1403_v46  ;;  %v5718_v25 = vpop.permute.xlu0 %1994  ;;  %v2304_v46 = vmul.f32 %v5397_v0, %v6492_v2  ;;  %v2320_v16 = vmul.f32 %v5397_v0, %v6493_v28 }
 0x1ac   : > { %v5725_v19 = vpop.permute.xlu1 %2074 }
 0x1ad   : > { %3769 = vmatpush3.xpose.msra.mxu0 %v4155_v23  ;;  %v4167_v23 = vpop.eup %4166  ;;  %4182 = vtanh.f32 %v2434_v44  ;;  %v2448_v52 = vadd.f32 %v2320_v16, %v1417_v31  ;;  %v1414_v16 = vadd.f32 %v5632_v39, %v1254_v48 }
 0x1ae   : > { %3804 = vmatpush3.xpose.msra.mxu1 %v4157_v6  ;;  %3770 = vmatprep.subr.mxu0 %v6490_v63  ;;  %v4169_v6 = vpop.eup %4168  ;;  %4184 = vtanh.f32 %v2450_v29  ;;  %v1239_v29 = vld [vmem:[%s5390_s10 + $0x138] sm:$0xff] }
 0x1af   : > { %3805 = vmatprep.subr.mxu1 %v6490_v63  ;;  %v4171_v60 = vpop.eup %4170  ;;  %v5745_v27 = vpop.permute.xlu0 %1989  ;;  %4186 = vtanh.f32 %v2433_v49 }
 0x1b0   : > { %v4173_v13 = vpop.eup %4172 }
 0x1b1   : > { %3771 = vmatpush3.xpose.msra.mxu0 %v4159_v43  ;;  %v1401_v43 = vadd.f32 %v5627_v57, %v1241_v4  ;;  %v2303_v4 = vmul.f32 %v5397_v0, %v5433_v34 }
 0x1b2   : > { %3806 = vmatpush3.xpose.msra.mxu1 %v4161_v30  ;;  %3772 = vmatprep.subr.mxu0 %v6490_v63  ;;  %v2449_v30 = vadd.f32 %v2321_v7, %v1418_v5  ;;  %v1399_v7 = vadd.f32 %v5627_v57, %v1239_v29 }
 0x1b3   : > { %3807 = vmatprep.subr.mxu1 %v6490_v63  ;;  %v2432_v41 = vadd.f32 %v2304_v46, %v1401_v43  ;;  %v2431_v33 = vadd.f32 %v2303_v4, %v1400_v54  ;;  %v1415_v43 = vadd.f32 %v5632_v39, %v1255_v40  ;;  %v5765_v31 = vpop.permute.xlu0 %1984  ;;  %v2317_v54 = vmul.f32 %v5397_v0, %v5476_v8  ;;  %v1236_v4 = vld [vmem:[%s5390_s10 + $0x120] sm:$0xff] }
 0x1b4   : > { %v4175_v44 = vpop.eup %4174  ;;  %4188 = vtanh.f32 %v2449_v30  ;;  %v2430_v46 = vadd.f32 %v2302_v35, %v1399_v7  ;;  %v2300_v8 = vmul.f32 %v5397_v0, %v5490_v9  ;;  %v5797_v7 = vld [vmem:[%s6450_s6] ss:$0 sm:$0xff]  ;;  %v1396_v9 = vadd.f32 %v5627_v57, %v1236_v4  ;;  %v1233_v4 = vld [vmem:[%s5390_s10 + $0x108] sm:$0xff] }
 0x1b5   : > { %3773 = vmatpush3.xpose.msra.mxu0 %v4163_v3  ;;  %v1256_v3 = vld [vmem:[%s5390_s10 + $0x1c0] sm:$0xff]  ;;  %v4177_v5 = vpop.eup %4176  ;;  %4190 = vtanh.f32 %v2432_v41  ;;  %v1253_v41 = vld [vmem:[%s5390_s10 + $0x1a8] sm:$0xff] }
 0x1b6   : > { %3808 = vmatpush3.xpose.msra.mxu1 %v4165_v37  ;;  %3812 = vmatprep.subr.mxu0 %v6490_v63  ;;  %v4179_v49 = vpop.eup %4178  ;;  %4192 = vtanh.f32 %v2448_v52 }
 0x1b7   : > { %3847 = vmatprep.subr.mxu1 %v6490_v63  ;;  %v4181_v30 = vpop.eup %4180  ;;  %4194 = vtanh.f32 %v2431_v33  ;;  %v1252_v33 = vld [vmem:[%s5390_s10 + $0x1a0] sm:$0xff] }
 0x1b8   : > { %3775 = vmatmul.mubr.f32.vlgmr.msra.gmra.mxu0 %v5705_v1 }
 0x1b9   : > { %3810 = vmatmul.mubr.f32.vlgmr.msra.gmra.mxu1 %v5705_v1  ;;  %3813 = vmatpush3.xpose.msra.mxu0 %v4167_v23  ;;  %v1416_v23 = vadd.f32 %v5632_v39, %v1256_v3 }
 0x1ba   : > { %3848 = vmatpush3.xpose.msra.mxu1 %v4169_v6  ;;  %3814 = vmatprep.subr.mxu0 %v6490_v63  ;;  %v5753_v6 = vpop.permute.xlu1 %2069  ;;  %v4183_v3 = vpop.eup %4182 }
 0x1bb   : > { %3849 = vmatprep.subr.mxu1 %v6490_v63  ;;  %3844 = vmatprep.mubr.msk.f32.mxu0 %vm4591_vm1, %v6490_v63  ;;  %v5731_v62 = vpop.f32.mrf.mxu0  ;;  %v5733_v61 = vpop.f32.mrf.mxu1  ;;  %v2447_v34 = vadd.f32 %v2319_v21, %v1416_v23 }
 0x1bc   : > { %3879 = vmatprep.mubr.msk.f32.mxu1 %vm4591_vm1, %v6490_v63 }
 0x1bd   : > { %3815 = vmatpush3.xpose.msra.mxu0 %v4171_v60  ;;  %v952_v24 = vpop.f32.mrf.mxu0  ;;  %v1034_v37 = vpop.f32.mrf.mxu1  ;;  %v1238_v60 = vld [vmem:[%s5390_s10 + $0x130] sm:$0xff]  ;;  %4196 = vtanh.f32 %v2447_v34 }
 0x1be   : > { %3850 = vmatpush3.xpose.msra.mxu1 %v4173_v13  ;;  %3816 = vmatprep.subr.mxu0 %v6490_v63  ;;  %v2318_v13 = vmul.f32 %v5397_v0, %v5459_v59  ;;  %v5771_v2 = vpop.permute.xlu1 %2064  ;;  %v1398_v45 = vadd.f32 %v5627_v57, %v1238_v60  ;;  %v1237_v24 = vld [vmem:[%s5390_s10 + $0x128] sm:$0xff]  ;;  %v4185_v37 = vpop.eup %4184  ;;  %v2301_v59 = vmul.f32 %v5397_v0, %v5471_v55  ;;  %4198 = vtanh.f32 %v2430_v46 }
 0x1bf   : > { %3851 = vmatprep.subr.mxu1 %v6490_v63  ;;  %v1397_v23 = vadd.f32 %v5627_v57, %v1237_v24  ;;  %v4187_v29 = vpop.eup %4186  ;;  %v2445_v55 = vadd.f32 %v2317_v54, %v1414_v16  ;;  %v1412_v60 = vadd.f32 %v5632_v39, %v1252_v33  ;;  %v2315_v46 = vmul.f32 %v5797_v7, %v5520_v50  ;;  %v1249_v33 = vld [vmem:[%s5390_s10 + $0x188] sm:$0xff] }
 0x1c0   : > { %v2446_v28 = vadd.f32 %v2318_v13, %v1415_v43  ;;  %v2429_v52 = vadd.f32 %v2301_v59, %v1398_v45  ;;  %v1251_v13 = vld [vmem:[%s5390_s10 + $0x198] sm:$0xff]  ;;  %v2298_v50 = vmul.f32 %v5797_v7, %v5534_v14  ;;  %v2314_v54 = vmul.f32 %v5797_v7, %v5543_v20 }
 0x1c1   : > { %3817 = vmatpush3.xpose.msra.mxu0 %v4175_v44  ;;  %v5783_v44 = vpop.permute.xlu0 %1979  ;;  %v4189_v40 = vpop.eup %4188  ;;  %v2428_v0 = vadd.f32 %v2300_v8, %v1397_v23  ;;  %v2443_v16 = vadd.f32 %v2315_v46, %v1412_v60  ;;  %v1411_v24 = vadd.f32 %v5632_v39, %v1251_v13  ;;  %v2297_v20 = vmul.f32 %v5797_v7, %v5557_v56  ;;  %v1248_v46 = vld [vmem:[%s5390_s10 + $0x180] sm:$0xff] }
 0x1c2   : > { %3852 = vmatpush3.xpose.msra.mxu1 %v4177_v5  ;;  %3818 = vmatprep.subr.mxu0 %v6490_v63  ;;  %4200 = vtanh.f32 %v2446_v28  ;;  %v1413_v5 = vadd.f32 %v5632_v39, %v1253_v41  ;;  %v5791_v21 = vpop.permute.xlu1 %2059  ;;  %v4191_v34 = vpop.eup %4190  ;;  %v1250_v41 = vld [vmem:[%s5390_s10 + $0x190] sm:$0xff]  ;;  %v2296_v13 = vmul.f32 %v5797_v7, %v5586_v26 }
 0x1c3   : > { %3853 = vmatprep.subr.mxu1 %v6490_v63  ;;  %4202 = vtanh.f32 %v2429_v52  ;;  %v4193_v35 = vpop.eup %4192  ;;  %v2442_v14 = vadd.f32 %v2314_v54, %v1411_v24  ;;  %v1295_v54 = vld [vmem:[%s5390_s10 + $0x2f8] sm:$0xff] }
 0x1c4   : > { %4204 = vtanh.f32 %v2445_v55  ;;  %v4195_v28 = vpop.eup %4194 }
 0x1c5   : > { %3819 = vmatpush3.xpose.msra.mxu0 %v4179_v49  ;;  %v2316_v49 = vmul.f32 %v5797_v7, %v5499_v51  ;;  %v2299_v51 = vmul.f32 %v5797_v7, %v5513_v11  ;;  %v5808_v48 = vpop.permute.xlu0 %1974  ;;  %4206 = vtanh.f32 %v2428_v0  ;;  %v5843_v0 = vld [vmem:[%s6451_s7] sm:$0x1] }
 0x1c6   : > { %3854 = vmatpush3.xpose.msra.mxu1 %v4181_v30  ;;  %3820 = vmatprep.subr.mxu0 %v6490_v63  ;;  %v1235_v30 = vld [vmem:[%s5390_s10 + $0x118] sm:$0xff]  ;;  %v5814_v45 = vpop.permute.xlu1 %2054  ;;  %v951_v56 = vadd.f32 %v5843_v0, %v5731_v62 }
 0x1c7   : > { %3855 = vmatprep.subr.mxu1 %v6490_v63  ;;  %v2444_v43 = vadd.f32 %v2316_v49, %v1413_v5  ;;  %v1395_v11 = vadd.f32 %v5627_v57, %v1235_v30  ;;  %v1410_v5 = vadd.f32 %v5632_v39, %v1250_v41  ;;  %v2313_v49 = vmul.f32 %v5797_v7, %v5568_v58 }
 0x1c8   : > { %v1033_v58 = vadd.f32 %v5843_v0, %v5733_v61  ;;  %v1409_v30 = vadd.f32 %v5632_v39, %v1249_v33  ;;  %v2295_v41 = vmul.f32 %v5797_v7, %v5608_v47  ;;  %v2358_v33 = vmul.f32 %v5797_v7, %v5642_v32  ;;  %v1277_v32 = vld [vmem:[%s5390_s10 + $0x268] sm:$0xff] }
 0x1c9   : > { %3821 = vmatpush3.xpose.msra.mxu0 %v4183_v3  ;;  %v2427_v3 = vadd.f32 %v2299_v51, %v1396_v9  ;;  %4208 = vtanh.f32 %v2444_v43  ;;  %v5826_v52 = vpop.permute.xlu0 %1969  ;;  %v2426_v23 = vadd.f32 %v2298_v50, %v1395_v11  ;;  %v2441_v60 = vadd.f32 %v2313_v49, %v1410_v5  ;;  %v1278_v5 = vld [vmem:[%s5390_s10 + $0x270] sm:$0xff] }
 0x1ca   : > { %3856 = vmatpush3.xpose.msra.mxu1 %v4185_v37  ;;  %3822 = vmatprep.subr.mxu0 %v6490_v63  ;;  %v1234_v37 = vld [vmem:[%s5390_s10 + $0x110] sm:$0xff]  ;;  %v4197_v59 = vpop.eup %4196  ;;  %v5834_v8 = vpop.permute.xlu1 %2049  ;;  %v5864_v11 = vrot.slane %v951_v56, %v4955_v38  ;;  %v5869_v24 = vrot.slane %v1033_v58, %v4955_v38 }
 0x1cb   : > { %3857 = vmatprep.subr.mxu1 %v6490_v63  ;;  %4210 = vtanh.f32 %v2427_v3  ;;  %v4199_v55 = vpop.eup %4198  ;;  %v2312_v3 = vmul.f32 %v5797_v7, %v5592_v36 }
 0x1cc   : > { %4212 = vtanh.f32 %v2443_v16  ;;  %v1438_v56 = vadd.f32 %v5864_v11, %v1278_v5 }
 0x1cd   : > { %3823 = vmatpush3.xpose.msra.mxu0 %v4187_v29  ;;  %v1394_v29 = vadd.f32 %v5627_v57, %v1234_v37  ;;  %4214 = vtanh.f32 %v2426_v23  ;;  %v5855_v62 = vpop.permute.xlu0 %1964  ;;  %v2440_v36 = vadd.f32 %v2312_v3, %v1409_v30  ;;  %v1408_v37 = vadd.f32 %v5632_v39, %v1248_v46 }
 0x1ce   : > { %3858 = vmatpush3.xpose.msra.mxu1 %v4189_v40  ;;  %3824 = vmatprep.subr.mxu0 %v6490_v63  ;;  %4216 = vtanh.f32 %v2442_v14  ;;  %v5861_v61 = vpop.permute.xlu1 %2044  ;;  %v2311_v23 = vmul.f32 %v5797_v7, %v5620_v10  ;;  %v1455_v14 = vadd.f32 %v5869_v24, %v1295_v54  ;;  %v2342_v10 = vmul.f32 %v5797_v7, %v5638_v15 }
 0x1cf   : > { %3859 = vmatprep.subr.mxu1 %v6490_v63  ;;  %v4201_v40 = vpop.eup %4200  ;;  %v2425_v9 = vadd.f32 %v2297_v20, %v1394_v29  ;;  %v1294_v20 = vld [vmem:[%s5390_s10 + $0x2f0] sm:$0xff]  ;;  %v2341_v30 = vmul.f32 %v5797_v7, %v5654_v42  ;;  %v2356_v54 = vmul.f32 %v5797_v7, %v5680_v18  ;;  %v2339_v18 = vmul.f32 %v5797_v7, %v5692_v53 }
 0x1d0   : > { %v4203_v43 = vpop.eup %4202  ;;  %v2439_v47 = vadd.f32 %v2311_v23, %v1408_v37  ;;  %v1454_v58 = vadd.f32 %v5869_v24, %v1294_v20  ;;  %v2355_v20 = vmul.f32 %v5797_v7, %v5700_v17  ;;  %v1290_v17 = vld [vmem:[%s5390_s10 + $0x2d0] sm:$0xff] }
 0x1d1   : > { %3825 = vmatpush3.xpose.msra.mxu0 %v4191_v34  ;;  %v1393_v34 = vadd.f32 %v5627_v57, %v1233_v4  ;;  %v4205_v51 = vpop.eup %4204  ;;  %4218 = vtanh.f32 %v2425_v9  ;;  %v2469_v42 = vadd.f32 %v2341_v30, %v1438_v56 }
 0x1d2   : > { %3860 = vmatpush3.xpose.msra.mxu1 %v4193_v35  ;;  %3826 = vmatprep.subr.mxu0 %v6490_v63  ;;  %v1232_v35 = vld [vmem:[%s5390_s10 + $0x100] sm:$0xff]  ;;  %v4207_v16 = vpop.eup %4206  ;;  %4220 = vtanh.f32 %v2441_v60 }
 0x1d3   : > { %3861 = vmatprep.subr.mxu1 %v6490_v63  ;;  %v2424_v26 = vadd.f32 %v2296_v13, %v1393_v34  ;;  %v2357_v13 = vmul.f32 %v5797_v7, %v5662_v22  ;;  %v1276_v22 = vld [vmem:[%s5390_s10 + $0x260] sm:$0xff] }
 0x1d5   : > { %3827 = vmatpush3.xpose.msra.mxu0 %v4195_v28  ;;  %v1392_v28 = vadd.f32 %v5627_v57, %v1232_v35  ;;  %v5879_v57 = vpop.permute.xlu0 %1959  ;;  %4222 = vtanh.f32 %v2424_v26 }
 0x1d6   : > { %3862 = vmatpush3.xpose.msra.mxu1 %v4197_v59  ;;  %3828 = vmatprep.subr.mxu0 %v6490_v63  ;;  %v1279_v59 = vld [vmem:[%s5390_s10 + $0x278] sm:$0xff]  ;;  %v4209_v50 = vpop.eup %4208  ;;  %4224 = vtanh.f32 %v2440_v36  ;;  %v2485_v36 = vadd.f32 %v2357_v13, %v1454_v58 }
 0x1d7   : > { %3863 = vmatprep.subr.mxu1 %v6490_v63  ;;  %v2423_v39 = vadd.f32 %v2295_v41, %v1392_v28  ;;  %v1439_v29 = vadd.f32 %v5864_v11, %v1279_v59  ;;  %v1437_v28 = vadd.f32 %v5864_v11, %v1277_v32  ;;  %v1292_v41 = vld [vmem:[%s5390_s10 + $0x2e0] sm:$0xff]  ;;  %v2338_v32 = vmul.f32 %v5797_v7, %v5718_v25 }
 0x1d9   : > { %3829 = vmatpush3.xpose.msra.mxu0 %v4199_v55  ;;  %v4211_v55 = vpop.eup %4210  ;;  %4226 = vtanh.f32 %v2423_v39  ;;  %v2470_v49 = vadd.f32 %v2342_v10, %v1439_v29  ;;  %v5903_v35 = vpop.permute.xlu0 %1954  ;;  %v1436_v39 = vadd.f32 %v5864_v11, %v1276_v22  ;;  %v1291_v10 = vld [vmem:[%s5390_s10 + $0x2d8] sm:$0xff] }
 0x1da   : > { %3864 = vmatpush3.xpose.msra.mxu1 %v4201_v40  ;;  %3830 = vmatprep.subr.mxu0 %v6490_v63  ;;  %v4213_v4 = vpop.eup %4212  ;;  %v5887_v40 = vpop.permute.xlu1 %2039  ;;  %4228 = vtanh.f32 %v2439_v47  ;;  %v1452_v47 = vadd.f32 %v5869_v24, %v1292_v41  ;;  %v1272_v41 = vld [vmem:[%s5390_s10 + $0x240] sm:$0xff] }
 0x1db   : > { %3865 = vmatprep.subr.mxu1 %v6490_v63  ;;  %v4215_v9 = vpop.eup %4214  ;;  %4230 = vtanh.f32 %v2470_v49 }
 0x1dc   : > { %v4217_v60 = vpop.eup %4216  ;;  %v2483_v53 = vadd.f32 %v2355_v20, %v1452_v47 }
 0x1dd   : > { %3831 = vmatpush3.xpose.msra.mxu0 %v4203_v43  ;;  %v2486_v43 = vadd.f32 %v2358_v33, %v1455_v14  ;;  %v1275_v14 = vld [vmem:[%s5390_s10 + $0x258] sm:$0xff]  ;;  %v2467_v33 = vadd.f32 %v2339_v18, %v1436_v39 }
 0x1de   : > { %3866 = vmatpush3.xpose.msra.mxu1 %v4205_v51  ;;  %3832 = vmatprep.subr.mxu0 %v6490_v63  ;;  %v1293_v51 = vld [vmem:[%s5390_s10 + $0x2e8] sm:$0xff]  ;;  %v5909_v26 = vpop.permute.xlu1 %2034  ;;  %v1435_v49 = vadd.f32 %v5864_v11, %v1275_v14  ;;  %v1432_v14 = vadd.f32 %v5864_v11, %v1272_v41  ;;  %v1268_v41 = vld [vmem:[%s5390_s10 + $0x220] sm:$0xff] }
 0x1df   : > { %3867 = vmatprep.subr.mxu1 %v6490_v63  ;;  %4232 = vtanh.f32 %v2486_v43  ;;  %v1453_v37 = vadd.f32 %v5869_v24, %v1293_v51  ;;  %v1274_v43 = vld [vmem:[%s5390_s10 + $0x250] sm:$0xff] }
 0x1e0   : > { %4234 = vtanh.f32 %v2469_v42  ;;  %v2466_v13 = vadd.f32 %v2338_v32, %v1435_v49  ;;  %v1434_v25 = vadd.f32 %v5864_v11, %v1274_v43  ;;  %v1273_v42 = vld [vmem:[%s5390_s10 + $0x248] sm:$0xff]  ;;  %v2351_v49 = vmul.f32 %v5797_v7, %v5791_v21  ;;  %v1270_v21 = vld [vmem:[%s5390_s10 + $0x230] sm:$0xff] }
 0x1e1   : > { %3833 = vmatpush3.xpose.msra.mxu0 %v4207_v16  ;;  %v4219_v16 = vpop.eup %4218  ;;  %4236 = vtanh.f32 %v2485_v36  ;;  %v1289_v36 = vld [vmem:[%s5390_s10 + $0x2c8] sm:$0xff] }
 0x1e2   : > { %3868 = vmatpush3.xpose.msra.mxu1 %v4209_v50  ;;  %3834 = vmatprep.subr.mxu0 %v6490_v63  ;;  %v4221_v59 = vpop.eup %4220  ;;  %v2340_v50 = vmul.f32 %v5797_v7, %v5674_v12  ;;  %v2484_v12 = vadd.f32 %v2356_v54, %v1453_v37  ;;  %v2353_v37 = vmul.f32 %v5797_v7, %v5753_v6 }
 0x1e3   : > { %3869 = vmatprep.subr.mxu1 %v6490_v63  ;;  %v4223_v29 = vpop.eup %4222  ;;  %v1449_v6 = vadd.f32 %v5869_v24, %v1289_v36  ;;  %v2333_v36 = vmul.f32 %v5797_v7, %v5826_v52 }
 0x1e4   : > { %v2468_v23 = vadd.f32 %v2340_v50, %v1437_v28  ;;  %v4225_v5 = vpop.eup %4224 }
 0x1e5   : > { %3835 = vmatpush3.xpose.msra.mxu0 %v4211_v55  ;;  %v5922_v55 = vpop.permute.xlu0 %1949 }
 0x1e6   : > { %3870 = vmatpush3.xpose.msra.mxu1 %v4213_v4  ;;  %3836 = vmatprep.subr.mxu0 %v6490_v63  ;;  %v5929_v4 = vpop.permute.xlu1 %2029  ;;  %4238 = vtanh.f32 %v2468_v23  ;;  %v4227_v56 = vpop.eup %4226  ;;  %v2336_v23 = vmul.f32 %v5797_v7, %v5765_v31 }
 0x1e7   : > { %3871 = vmatprep.subr.mxu1 %v6490_v63  ;;  %v5895_v15 = vpop.f32.mrf.mxu0  ;;  %v5897_v34 = vpop.f32.mrf.mxu1  ;;  %4240 = vtanh.f32 %v2484_v12  ;;  %v2352_v12 = vmul.f32 %v5797_v7, %v5771_v2  ;;  %v1287_v2 = vld [vmem:[%s5390_s10 + $0x2b8] sm:$0xff] }
 0x1e8   : > { %v4229_v58 = vpop.eup %4228  ;;  %4242 = vtanh.f32 %v2467_v33  ;;  %v2335_v33 = vmul.f32 %v5797_v7, %v5783_v44  ;;  %v1447_v32 = vadd.f32 %v5869_v24, %v1287_v2  ;;  %v1283_v2 = vld [vmem:[%s5390_s10 + $0x298] sm:$0xff] }
 0x1e9   : > { %3837 = vmatpush3.xpose.msra.mxu0 %v4215_v9  ;;  %v1116_v46 = vpop.f32.mrf.mxu0  ;;  %v1198_v3 = vpop.f32.mrf.mxu1  ;;  %v1451_v9 = vadd.f32 %v5869_v24, %v1291_v10  ;;  %4244 = vtanh.f32 %v2483_v53  ;;  %v2480_v31 = vadd.f32 %v2352_v12, %v1449_v6  ;;  %v1271_v10 = vld [vmem:[%s5390_s10 + $0x238] sm:$0xff]  ;;  %v2348_v12 = vmul.f32 %v5797_v7, %v5861_v61 }
 0x1ea   : > { %3872 = vmatpush3.xpose.msra.mxu1 %v4217_v60  ;;  %3838 = vmatprep.subr.mxu0 %v6490_v63  ;;  %v2354_v60 = vmul.f32 %v5797_v7, %v5725_v19  ;;  %v5944_v30 = vpop.permute.xlu0 %1944  ;;  %v5947_v51 = vpop.permute.xlu1 %2024  ;;  %v1450_v19 = vadd.f32 %v5869_v24, %v1290_v17  ;;  %4246 = vtanh.f32 %v2466_v13  ;;  %v1431_v44 = vadd.f32 %v5864_v11, %v1271_v10  ;;  %v1286_v13 = vld [vmem:[%s5390_s10 + $0x2b0] sm:$0xff]  ;;  %v1267_v10 = vld [vmem:[%s5390_s10 + $0x218] sm:$0xff] }
 0x1eb   : > { %3873 = vmatprep.subr.mxu1 %v6490_v63  ;;  %v4231_v46 = vpop.eup %4230 }
 0x1ec   : > { %v2482_v3 = vadd.f32 %v2354_v60, %v1451_v9  ;;  %v4233_v28 = vpop.eup %4232  ;;  %v2481_v50 = vadd.f32 %v2353_v37, %v1450_v19  ;;  %v2463_v9 = vadd.f32 %v2335_v33, %v1432_v14  ;;  %v2334_v60 = vmul.f32 %v5797_v7, %v5808_v48 }
 0x1ed   : > { %3839 = vmatpush3.xpose.msra.mxu0 %v4219_v16  ;;  %v2337_v16 = vmul.f32 %v5797_v7, %v5745_v27  ;;  %v1428_v14 = vadd.f32 %v5864_v11, %v1268_v41  ;;  %v2331_v33 = vmul.f32 %v5797_v7, %v5879_v57  ;;  %v1264_v41 = vld [vmem:[%s5390_s10 + $0x200] sm:$0xff] }
 0x1ee   : > { %3874 = vmatpush3.xpose.msra.mxu1 %v4221_v59  ;;  %3840 = vmatprep.subr.mxu0 %v6490_v63  ;;  %v1433_v59 = vadd.f32 %v5864_v11, %v1273_v42  ;;  %v5965_v27 = vpop.permute.xlu0 %1939  ;;  %4248 = vtanh.f32 %v2482_v3  ;;  %v5973_v39 = vpop.permute.xlu1 %2019  ;;  %v1430_v3 = vadd.f32 %v5864_v11, %v1270_v21  ;;  %v1266_v21 = vld [vmem:[%s5390_s10 + $0x210] sm:$0xff] }
 0x1ef   : > { %3875 = vmatprep.subr.mxu1 %v6490_v63  ;;  %v2465_v22 = vadd.f32 %v2337_v16, %v1434_v25  ;;  %v2350_v25 = vmul.f32 %v5797_v7, %v5814_v45  ;;  %v1269_v16 = vld [vmem:[%s5390_s10 + $0x228] sm:$0xff] }
 0x1f0   : > { %v2464_v47 = vadd.f32 %v2336_v23, %v1433_v59  ;;  %v2349_v59 = vmul.f32 %v5797_v7, %v5834_v8  ;;  %v2332_v8 = vmul.f32 %v5797_v7, %v5855_v62 }
 0x1f1   : > { %3841 = vmatpush3.xpose.msra.mxu0 %v4223_v29  ;;  %v1288_v29 = vld [vmem:[%s5390_s10 + $0x2c0] sm:$0xff]  ;;  %4250 = vtanh.f32 %v2465_v22  ;;  %v2478_v48 = vadd.f32 %v2350_v25, %v1447_v32  ;;  %v1285_v22 = vld [vmem:[%s5390_s10 + $0x2a8] sm:$0xff]  ;;  %v1443_v32 = vadd.f32 %v5869_v24, %v1283_v2 }
 0x1f2   : > { %3876 = vmatpush3.xpose.msra.mxu1 %v4225_v5  ;;  %3842 = vmatprep.subr.mxu0 %v6490_v63  ;;  %4252 = vtanh.f32 %v2481_v50  ;;  %v1448_v18 = vadd.f32 %v5869_v24, %v1288_v29  ;;  %v5991_v53 = vpop.permute.xlu1 %2254  ;;  %v1429_v50 = vadd.f32 %v5864_v11, %v1269_v16  ;;  %v1284_v29 = vld [vmem:[%s5390_s10 + $0x2a0] sm:$0xff] }
 0x1f3   : > { %3877 = vmatprep.subr.mxu1 %v6490_v63  ;;  %4254 = vtanh.f32 %v2464_v47 }
 0x1f4   : > { %4256 = vtanh.f32 %v2480_v31  ;;  %v2460_v31 = vadd.f32 %v2332_v8, %v1429_v50  ;;  %v2328_v50 = vmul.f32 %v5797_v7, %v5944_v30  ;;  %v2344_v8 = vmul.f32 %v5797_v7, %v5947_v51 }
 0x1f5   : > { %3843 = vmatpush3.xpose.msra.mxu0 %v4227_v56  ;;  %v5988_v56 = vpop.permute.xlu0 %2174  ;;  %4258 = vtanh.f32 %v2463_v9  ;;  %v2459_v9 = vadd.f32 %v2331_v33, %v1428_v14 }
 0x1f6   : > { %3878 = vmatpush3.xpose.msra.mxu1 %v4229_v58  ;;  %3882 = vmatprep.subr.mxu0 %v6490_v63  ;;  %v2479_v58 = vadd.f32 %v2351_v49, %v1448_v18  ;;  %v6011_v37 = vpop.permute.xlu1 %2249  ;;  %v1444_v18 = vadd.f32 %v5869_v24, %v1284_v29  ;;  %v2347_v49 = vmul.f32 %v5797_v7, %v5887_v40 }
 0x1f7   : > { %3917 = vmatprep.subr.mxu1 %v6490_v63  ;;  %v2346_v40 = vmul.f32 %v5797_v7, %v5909_v26  ;;  %v1281_v26 = vld [vmem:[%s5390_s10 + $0x288] sm:$0xff]  ;;  %v1197_v29 = vadd.f32 %v5843_v0, %v5897_v34 }
 0x1f8   : > { %3845 = vmatmul.mubr.f32.vlgmr.msra.gmra.mxu0 %v5705_v1  ;;  %4260 = vtanh.f32 %v2479_v58  ;;  %v2475_v57 = vadd.f32 %v2347_v49, %v1444_v18  ;;  %v1311_v18 = vld [vmem:[%s5390_s10 + $0x378] sm:$0xff]  ;;  %v1310_v49 = vld [vmem:[%s5390_s10 + $0x370] sm:$0xff] }
 0x1f9   : > { %3880 = vmatmul.mubr.f32.vlgmr.msra.gmra.mxu1 %v5705_v1  ;;  %3883 = vmatpush3.xpose.msra.mxu0 %v4231_v46  ;;  %v4235_v1 = vpop.eup %4234  ;;  %v2462_v46 = vadd.f32 %v2334_v60, %v1431_v44  ;;  %v6005_v42 = vpop.permute.xlu0 %2169  ;;  %v1427_v44 = vadd.f32 %v5864_v11, %v1267_v10 }
 0x1fa   : > { %3918 = vmatpush3.xpose.msra.mxu1 %v4233_v28  ;;  %3884 = vmatprep.subr.mxu0 %v6490_v63  ;;  %v4237_v54 = vpop.eup %4236  ;;  %v1446_v28 = vadd.f32 %v5869_v24, %v1286_v13  ;;  %v1282_v13 = vld [vmem:[%s5390_s10 + $0x290] sm:$0xff] }
 0x1fb   : > { %3919 = vmatprep.subr.mxu1 %v6490_v63  ;;  %3914 = vmatprep.mubr.msk.f32.mxu0 %vm4591_vm1, %v6490_v63  ;;  %v4239_v5 = vpop.eup %4238  ;;  %4262 = vtanh.f32 %v2462_v46  ;;  %v1426_v46 = vadd.f32 %v5864_v11, %v1266_v21  ;;  %v1442_v16 = vadd.f32 %v5869_v24, %v1282_v13 }
 0x1fc   : > { %3949 = vmatprep.mubr.msk.f32.mxu1 %vm4591_vm1, %v6490_v63  ;;  %v4241_v20 = vpop.eup %4240  ;;  %4264 = vtanh.f32 %v2478_v48  ;;  %v2477_v52 = vadd.f32 %v2349_v59, %v1446_v28  ;;  %v2474_v28 = vadd.f32 %v2346_v40, %v1443_v32 }
 0x1fd   : > { %3885 = vmatpush3.xpose.msra.mxu0 %v4235_v1  ;;  %v4243_v43 = vpop.eup %4242  ;;  %v2461_v1 = vadd.f32 %v2333_v36, %v1430_v3  ;;  %v6026_v47 = vpop.permute.xlu0 %2164  ;;  %v2329_v3 = vmul.f32 %v5797_v7, %v5922_v55 }
 0x1fe   : > { %3920 = vmatpush3.xpose.msra.mxu1 %v4237_v54  ;;  %3886 = vmatprep.subr.mxu0 %v6490_v63  ;;  %v4245_v17 = vpop.eup %4244  ;;  %v1445_v54 = vadd.f32 %v5869_v24, %v1285_v22  ;;  %v1441_v22 = vadd.f32 %v5869_v24, %v1281_v26  ;;  %v2389_v26 = vmul.f32 %v5797_v7, %v6011_v37 }
 0x1ff   : > { %3921 = vmatprep.subr.mxu1 %v6490_v63  ;;  %v4247_v19 = vpop.eup %4246  ;;  %4266 = vtanh.f32 %v2461_v1  ;;  %v2457_v1 = vadd.f32 %v2329_v3, %v1426_v46  ;;  %v2373_v46 = vmul.f32 %v5797_v7, %v6005_v42  ;;  %v1325_v3 = vld [vmem:[%s5390_s10 + $0x3e8] sm:$0xff] }
 0x200   : > { %v4249_v45 = vpop.eup %4248  ;;  %4268 = vtanh.f32 %v2477_v52  ;;  %v2476_v61 = vadd.f32 %v2348_v12, %v1445_v54  ;;  %v2472_v34 = vadd.f32 %v2344_v8, %v1441_v22  ;;  %v2372_v22 = vmul.f32 %v5797_v7, %v6026_v47 }
 0x201   : > { %3887 = vmatpush3.xpose.msra.mxu0 %v4239_v5  ;;  %v4251_v6 = vpop.eup %4250  ;;  %v6030_v5 = vpop.permute.xlu1 %2244  ;;  %4270 = vtanh.f32 %v2460_v31  ;;  %v2327_v31 = vmul.f32 %v5797_v7, %v5965_v27 }
 0x202   : > { %3922 = vmatpush3.xpose.msra.mxu1 %v4241_v20  ;;  %3888 = vmatprep.subr.mxu0 %v6490_v63  ;;  %v4253_v23 = vpop.eup %4252  ;;  %4272 = vtanh.f32 %v2476_v61  ;;  %v1327_v61 = vld [vmem:[%s5390_s10 + $0x3f8] sm:$0xff] }
 0x203   : > { %3923 = vmatprep.subr.mxu1 %v6490_v63  ;;  %v4255_v62 = vpop.eup %4254  ;;  %4274 = vtanh.f32 %v2459_v9 }
 0x204   : > { %v4257_v20 = vpop.eup %4256  ;;  %4276 = vtanh.f32 %v2475_v57 }
 0x205   : > { %3889 = vmatpush3.xpose.msra.mxu0 %v4243_v43  ;;  %v2330_v43 = vmul.f32 %v5797_v7, %v5903_v35  ;;  %v4259_v58 = vpop.eup %4258  ;;  %v6052_v25 = vpop.permute.xlu1 %2239 }
 0x206   : > { %3924 = vmatpush3.xpose.msra.mxu1 %v4245_v17  ;;  %3890 = vmatprep.subr.mxu0 %v6490_v63  ;;  %v6049_v17 = vpop.permute.xlu0 %2159  ;;  %v4261_v60 = vpop.eup %4260 }
 0x207   : > { %3925 = vmatprep.subr.mxu1 %v6490_v63  ;;  %v2458_v35 = vadd.f32 %v2330_v43, %v1427_v44  ;;  %v2374_v44 = vmul.f32 %v5797_v7, %v5988_v56  ;;  %v1326_v43 = vld [vmem:[%s5390_s10 + $0x3f0] sm:$0xff] }
 0x208   : > { %v4263_v48 = vpop.eup %4262 }
 0x209   : > { %3891 = vmatpush3.xpose.msra.mxu0 %v4247_v19  ;;  %v1265_v19 = vld [vmem:[%s5390_s10 + $0x208] sm:$0xff]  ;;  %v4265_v36 = vpop.eup %4264  ;;  %4278 = vtanh.f32 %v2458_v35  ;;  %v6075_v52 = vpop.permute.xlu1 %2234 }
 0x20a   : > { %3926 = vmatpush3.xpose.msra.mxu1 %v4249_v45  ;;  %3892 = vmatprep.subr.mxu0 %v6490_v63  ;;  %v2345_v45 = vmul.f32 %v5797_v7, %v5929_v4  ;;  %v1425_v55 = vadd.f32 %v5864_v11, %v1265_v19  ;;  %v6066_v59 = vpop.permute.xlu0 %2154  ;;  %v1115_v4 = vadd.f32 %v5843_v0, %v5895_v15  ;;  %4280 = vtanh.f32 %v2474_v28 }
 0x20b   : > { %3927 = vmatprep.subr.mxu1 %v6490_v63  ;;  %v1424_v15 = vadd.f32 %v5864_v11, %v1264_v41  ;;  %4282 = vtanh.f32 %v2457_v1  ;;  %v2343_v11 = vmul.f32 %v5797_v7, %v5973_v39  ;;  %v1324_v1 = vld [vmem:[%s5390_s10 + $0x3e0] sm:$0xff] }
 0x20c   : > { %v4267_v54 = vpop.eup %4266  ;;  %v2456_v14 = vadd.f32 %v2328_v50, %v1425_v55  ;;  %v6088_v51 = vrot.slane %v1115_v4, %v4955_v38  ;;  %v2388_v50 = vmul.f32 %v5797_v7, %v6030_v5  ;;  %v1323_v5 = vld [vmem:[%s5390_s10 + $0x3d8] sm:$0xff] }
 0x20d   : > { %3893 = vmatpush3.xpose.msra.mxu0 %v4251_v6  ;;  %v1280_v6 = vld [vmem:[%s5390_s10 + $0x280] sm:$0xff]  ;;  %v4269_v12 = vpop.eup %4268  ;;  %v6099_v27 = vpop.permute.xlu1 %2229 }
 0x20e   : > { %3928 = vmatpush3.xpose.msra.mxu1 %v4253_v23  ;;  %3894 = vmatprep.subr.mxu0 %v6490_v63  ;;  %v2473_v23 = vadd.f32 %v2345_v45, %v1442_v16  ;;  %v1440_v30 = vadd.f32 %v5869_v24, %v1280_v6  ;;  %v4271_v0 = vpop.eup %4270  ;;  %v6094_v24 = vrot.slane %v1197_v29, %v4955_v38 }
 0x20f   : > { %3929 = vmatprep.subr.mxu1 %v6490_v63  ;;  %v4273_v10 = vpop.eup %4272  ;;  %v1471_v38 = vadd.f32 %v6088_v51, %v1311_v18  ;;  %v1470_v56 = vadd.f32 %v6088_v51, %v1310_v49  ;;  %v2371_v29 = vmul.f32 %v5797_v7, %v6049_v17  ;;  %v1305_v49 = vld [vmem:[%s5390_s10 + $0x348] sm:$0xff] }
 0x210   : > { %4284 = vtanh.f32 %v2473_v23  ;;  %v4275_v39 = vpop.eup %4274  ;;  %v2471_v33 = vadd.f32 %v2343_v11, %v1440_v30  ;;  %v1487_v2 = vadd.f32 %v6094_v24, %v1327_v61  ;;  %v1486_v13 = vadd.f32 %v6094_v24, %v1326_v43  ;;  %v1306_v11 = vld [vmem:[%s5390_s10 + $0x350] sm:$0xff]  ;;  %v1321_v43 = vld [vmem:[%s5390_s10 + $0x3c8] sm:$0xff] }
 0x211   : > { %3895 = vmatpush3.xpose.msra.mxu0 %v4255_v62  ;;  %v6096_v62 = vpop.permute.xlu0 %2149  ;;  %4286 = vtanh.f32 %v2456_v14  ;;  %v4277_v9 = vpop.eup %4276  ;;  %v2502_v40 = vadd.f32 %v2374_v44, %v1471_v38  ;;  %v2501_v19 = vadd.f32 %v2373_v46, %v1470_v56  ;;  %v1485_v45 = vadd.f32 %v6094_v24, %v1325_v3  ;;  %v1322_v61 = vld [vmem:[%s5390_s10 + $0x3d0] sm:$0xff]  ;;  %v6178_v44 = vld [vmem:[%s6452_s8] sm:$0x1] }
 0x212   : > { %3930 = vmatpush3.xpose.msra.mxu1 %v4257_v20  ;;  %3896 = vmatprep.subr.mxu0 %v6490_v63  ;;  %v2455_v20 = vadd.f32 %v2327_v31, %v1424_v15  ;;  %4288 = vtanh.f32 %v2472_v34  ;;  %v6115_v32 = vpop.permute.xlu1 %2224  ;;  %v2517_v42 = vadd.f32 %v2389_v26, %v1486_v13  ;;  %v1484_v23 = vadd.f32 %v6094_v24, %v1324_v1  ;;  %v1320_v3 = vld [vmem:[%s5390_s10 + $0x3c0] sm:$0xff] }
 0x213   : > { %3931 = vmatprep.subr.mxu1 %v6490_v63  ;;  %v2516_v47 = vadd.f32 %v2388_v50, %v1485_v45  ;;  %v2370_v14 = vmul.f32 %v5797_v7, %v6066_v59  ;;  %v2386_v34 = vmul.f32 %v5797_v7, %v6075_v52  ;;  %v2369_v38 = vmul.f32 %v5797_v7, %v6096_v62 }
 0x214   : > { %4290 = vtanh.f32 %v2455_v20  ;;  %v1466_v20 = vadd.f32 %v6088_v51, %v1306_v11  ;;  %v1481_v13 = vadd.f32 %v6094_v24, %v1321_v43  ;;  %v1480_v45 = vadd.f32 %v6094_v24, %v1320_v3  ;;  %v1317_v11 = vld [vmem:[%s5390_s10 + $0x3a8] sm:$0xff] }
 0x215   : > { %3897 = vmatpush3.xpose.msra.mxu0 %v4259_v58  ;;  %v2390_v58 = vmul.f32 %v5797_v7, %v5991_v53  ;;  %v6112_v57 = vpop.permute.xlu0 %2144  ;;  %4292 = vtanh.f32 %v2471_v33  ;;  %v1309_v53 = vld [vmem:[%s5390_s10 + $0x368] sm:$0xff]  ;;  %v1482_v33 = vadd.f32 %v6094_v24, %v1322_v61 }
 0x216   : > { %3932 = vmatpush3.xpose.msra.mxu1 %v4261_v60  ;;  %3898 = vmatprep.subr.mxu0 %v6490_v63  ;;  %v4279_v21 = vpop.eup %4278  ;;  %4294 = vtanh.f32 %v2502_v40  ;;  %v6135_v55 = vpop.permute.xlu1 %2219  ;;  %v1465_v40 = vadd.f32 %v6088_v51, %v1305_v49  ;;  %v2368_v56 = vmul.f32 %v5797_v7, %v6112_v57 }
 0x217   : > { %3933 = vmatprep.subr.mxu1 %v6490_v63  ;;  %v2518_v60 = vadd.f32 %v2390_v58, %v1487_v2  ;;  %v4281_v35 = vpop.eup %4280  ;;  %v2385_v2 = vmul.f32 %v5797_v7, %v6099_v27  ;;  %v2497_v27 = vadd.f32 %v2369_v38, %v1466_v20 }
 0x218   : > { %v4283_v28 = vpop.eup %4282  ;;  %v2496_v26 = vadd.f32 %v2368_v56, %v1465_v40 }
 0x219   : > { %3899 = vmatpush3.xpose.msra.mxu0 %v4263_v48  ;;  %v1469_v48 = vadd.f32 %v6088_v51, %v1309_v53  ;;  %v6129_v16 = vpop.permute.xlu0 %2139  ;;  %4296 = vtanh.f32 %v2518_v60  ;;  %v2513_v60 = vadd.f32 %v2385_v2, %v1482_v33  ;;  %v2384_v53 = vmul.f32 %v5797_v7, %v6115_v32  ;;  %v1300_v2 = vld [vmem:[%s5390_s10 + $0x320] sm:$0xff] }
 0x21a   : > { %3934 = vmatpush3.xpose.msra.mxu1 %v4265_v36  ;;  %3900 = vmatprep.subr.mxu0 %v6490_v63  ;;  %v1308_v36 = vld [vmem:[%s5390_s10 + $0x360] sm:$0xff]  ;;  %4298 = vtanh.f32 %v2501_v19  ;;  %v6156_v31 = vpop.permute.xlu1 %2214  ;;  %v2367_v32 = vmul.f32 %v5797_v7, %v6129_v16  ;;  %v1460_v43 = vadd.f32 %v6088_v51, %v1300_v2 }
 0x21b   : > { %3935 = vmatprep.subr.mxu1 %v6490_v63  ;;  %v2500_v6 = vadd.f32 %v2372_v22, %v1469_v48  ;;  %v1468_v41 = vadd.f32 %v6088_v51, %v1308_v36  ;;  %4300 = vtanh.f32 %v2517_v42  ;;  %v2512_v42 = vadd.f32 %v2384_v53, %v1481_v13  ;;  %v6208_v36 = vld [vmem:[%s6450_s6] ss:$0 sm:$0xff]  ;;  %v1303_v22 = vld [vmem:[%s5390_s10 + $0x338] sm:$0xff] }
 0x21c   : > { %v1463_v50 = vadd.f32 %v6088_v51, %v1303_v22 }
 0x21d   : > { %3901 = vmatpush3.xpose.msra.mxu0 %v4267_v54  ;;  %v4285_v37 = vpop.eup %4284  ;;  %v1307_v54 = vld [vmem:[%s5390_s10 + $0x358] sm:$0xff]  ;;  %v6150_v30 = vpop.permute.xlu0 %2134  ;;  %4302 = vtanh.f32 %v2500_v6  ;;  %v2499_v17 = vadd.f32 %v2371_v29, %v1468_v41  ;;  %v1318_v29 = vld [vmem:[%s5390_s10 + $0x3b0] sm:$0xff] }
 0x21e   : > { %3936 = vmatpush3.xpose.msra.mxu1 %v4269_v12  ;;  %3902 = vmatprep.subr.mxu0 %v6490_v63  ;;  %v4287_v4 = vpop.eup %4286  ;;  %v2387_v12 = vmul.f32 %v5797_v7, %v6052_v25  ;;  %v1467_v15 = vadd.f32 %v6088_v51, %v1307_v54  ;;  %v1483_v25 = vadd.f32 %v6094_v24, %v1323_v5  ;;  %4304 = vtanh.f32 %v2516_v47  ;;  %v6182_v58 = vpop.permute.xlu1 %2209  ;;  %v1319_v7 = vld [vmem:[%s5390_s10 + $0x3b8] sm:$0xff]  ;;  %v1302_v47 = vld [vmem:[%s5390_s10 + $0x330] sm:$0xff] }
 0x21f   : > { %3937 = vmatprep.subr.mxu1 %v6490_v63  ;;  %v4289_v8 = vpop.eup %4288  ;;  %4306 = vtanh.f32 %v2499_v17  ;;  %v2366_v6 = vmul.f32 %v6208_v36, %v6150_v30  ;;  %v2382_v54 = vmul.f32 %v6208_v36, %v6156_v31  ;;  %v1462_v30 = vadd.f32 %v6088_v51, %v1302_v47 }
 0x220   : > { %v2515_v18 = vadd.f32 %v2387_v12, %v1484_v23  ;;  %v2498_v59 = vadd.f32 %v2370_v14, %v1467_v15  ;;  %v1478_v17 = vadd.f32 %v6094_v24, %v1318_v29 }
 0x221   : > { %3903 = vmatpush3.xpose.msra.mxu0 %v4271_v0  ;;  %v4291_v0 = vpop.eup %4290  ;;  %v2494_v12 = vadd.f32 %v2366_v6, %v1463_v50 }
 0x222   : > { %3938 = vmatpush3.xpose.msra.mxu1 %v4273_v10  ;;  %3904 = vmatprep.subr.mxu0 %v6490_v63  ;;  %v4293_v10 = vpop.eup %4292  ;;  %4308 = vtanh.f32 %v2515_v18  ;;  %v2205_v48 = vpop.permute.xlu1 %2204 }
 0x223   : > { %3939 = vmatprep.subr.mxu1 %v6490_v63  ;;  %v4295_v52 = vpop.eup %4294  ;;  %4310 = vtanh.f32 %v2498_v59  ;;  %v2380_v33 = vmul.f32 %v6208_v36, %v2205_v48 }
 0x225   : > { %3905 = vmatpush3.xpose.msra.mxu0 %v4275_v39  ;;  %v2514_v39 = vadd.f32 %v2386_v34, %v1483_v25  ;;  %v1301_v25 = vld [vmem:[%s5390_s10 + $0x328] sm:$0xff] }
 0x226   : > { %3940 = vmatpush3.xpose.msra.mxu1 %v4277_v9  ;;  %3906 = vmatprep.subr.mxu0 %v6490_v63  ;;  %v6173_v9 = vpop.permute.xlu0 %2129  ;;  %v4297_v62 = vpop.eup %4296  ;;  %v1461_v61 = vadd.f32 %v6088_v51, %v1301_v25 }
 0x227   : > { %3941 = vmatprep.subr.mxu1 %v6490_v63  ;;  %4312 = vtanh.f32 %v2514_v39  ;;  %v2200_v5 = vpop.permute.xlu1 %2199  ;;  %v2365_v15 = vmul.f32 %v6208_v36, %v6173_v9  ;;  %v1477_v39 = vadd.f32 %v6094_v24, %v1317_v11  ;;  %v1316_v9 = vld [vmem:[%s5390_s10 + $0x3a0] sm:$0xff] }
 0x228   : > { %4314 = vtanh.f32 %v2497_v27  ;;  %v1476_v56 = vadd.f32 %v6094_v24, %v1316_v9 }
 0x229   : > { %3907 = vmatpush3.xpose.msra.mxu0 %v4279_v21  ;;  %v4299_v21 = vpop.eup %4298  ;;  %4316 = vtanh.f32 %v2513_v60  ;;  %v2508_v40 = vadd.f32 %v2380_v33, %v1477_v39  ;;  %v1299_v60 = vld [vmem:[%s5390_s10 + $0x318] sm:$0xff] }
 0x22a   : > { %3942 = vmatpush3.xpose.msra.mxu1 %v4281_v35  ;;  %3908 = vmatprep.subr.mxu0 %v6490_v63  ;;  %v1304_v35 = vld [vmem:[%s5390_s10 + $0x340] sm:$0xff]  ;;  %v4301_v46 = vpop.eup %4300  ;;  %v2125_v57 = vpop.permute.xlu0 %2124  ;;  %4318 = vtanh.f32 %v2496_v26 }
 0x22b   : > { %3943 = vmatprep.subr.mxu1 %v6490_v63  ;;  %v1464_v19 = vadd.f32 %v6088_v51, %v1304_v35  ;;  %4320 = vtanh.f32 %v2512_v42  ;;  %v2364_v59 = vmul.f32 %v6208_v36, %v2125_v57  ;;  %v2195_v20 = vpop.permute.xlu1 %2194  ;;  %v1315_v35 = vld [vmem:[%s5390_s10 + $0x398] sm:$0xff]  ;;  %v1459_v57 = vadd.f32 %v6088_v51, %v1299_v60  ;;  %v1298_v42 = vld [vmem:[%s5390_s10 + $0x310] sm:$0xff] }
 0x22c   : > { %v1475_v48 = vadd.f32 %v6094_v24, %v1315_v35 }
 0x22d   : > { %3909 = vmatpush3.xpose.msra.mxu0 %v4283_v28  ;;  %v4303_v28 = vpop.eup %4302  ;;  %v2495_v16 = vadd.f32 %v2367_v32, %v1464_v19 }
 0x22e   : > { %3944 = vmatpush3.xpose.msra.mxu1 %v4285_v37  ;;  %3910 = vmatprep.subr.mxu0 %v6490_v63  ;;  %v2383_v37 = vmul.f32 %v6208_v36, %v6135_v55  ;;  %v4305_v1 = vpop.eup %4304  ;;  %v2120_v23 = vpop.permute.xlu0 %2119 }
 0x22f   : > { %3945 = vmatprep.subr.mxu1 %v6490_v63  ;;  %v4307_v41 = vpop.eup %4306  ;;  %4322 = vtanh.f32 %v2495_v16 }
 0x230   : > { %v2511_v55 = vadd.f32 %v2383_v37, %v1480_v45  ;;  %v1314_v37 = vld [vmem:[%s5390_s10 + $0x390] sm:$0xff] }
 0x231   : > { %3911 = vmatpush3.xpose.msra.mxu0 %v4287_v4  ;;  %v1479_v4 = vadd.f32 %v6094_v24, %v1319_v7  ;;  %v1458_v7 = vadd.f32 %v6088_v51, %v1298_v42 }
 0x232   : > { %3946 = vmatpush3.xpose.msra.mxu1 %v4289_v8  ;;  %3912 = vmatprep.subr.mxu0 %v6490_v63  ;;  %v4309_v8 = vpop.eup %4308  ;;  %4324 = vtanh.f32 %v2511_v55  ;;  %v2115_v18 = vpop.permute.xlu0 %2114  ;;  %v1474_v55 = vadd.f32 %v6094_v24, %v1314_v37 }
 0x233   : > { %3947 = vmatprep.subr.mxu1 %v6490_v63  ;;  %v4311_v14 = vpop.eup %4310  ;;  %v2510_v31 = vadd.f32 %v2382_v54, %v1479_v4  ;;  %4326 = vtanh.f32 %v2494_v12  ;;  %v2362_v26 = vmul.f32 %v6208_v36, %v2115_v18  ;;  %v1297_v54 = vld [vmem:[%s5390_s10 + $0x308] sm:$0xff] }
 0x234   : > { %v4313_v34 = vpop.eup %4312  ;;  %v1457_v29 = vadd.f32 %v6088_v51, %v1297_v54 }
 0x235   : > { %3913 = vmatpush3.xpose.msra.mxu0 %v4291_v0  ;;  %v2381_v0 = vmul.f32 %v6208_v36, %v6182_v58  ;;  %v4315_v38 = vpop.eup %4314  ;;  %4328 = vtanh.f32 %v2510_v31  ;;  %v2363_v58 = vmul.f32 %v6208_v36, %v2120_v23  ;;  %v1313_v23 = vld [vmem:[%s5390_s10 + $0x388] sm:$0xff] }
 0x236   : > { %3948 = vmatpush3.xpose.msra.mxu1 %v4293_v10  ;;  %3952 = vmatprep.subr.mxu0 %v6490_v63  ;;  %v2493_v10 = vadd.f32 %v2365_v15, %v1462_v30  ;;  %v4317_v49 = vpop.eup %4316  ;;  %v2110_v13 = vpop.permute.xlu0 %2109  ;;  %v1473_v15 = vadd.f32 %v6094_v24, %v1313_v23 }
 0x237   : > { %3987 = vmatprep.subr.mxu1 %v6490_v63  ;;  %v4319_v27 = vpop.eup %4318  ;;  %v2491_v3 = vadd.f32 %v2363_v58, %v1460_v43  ;;  %v2361_v16 = vmul.f32 %v6208_v36, %v2110_v13 }
 0x238   : > { %3915 = vmatmul.mubr.f32.vlgmr.msra.gmra.mxu0 %v6178_v44  ;;  %4330 = vtanh.f32 %v2493_v10  ;;  %v4321_v53 = vpop.eup %4320 }
 0x239   : > { %3950 = vmatmul.mubr.f32.vlgmr.msra.gmra.mxu1 %v6178_v44  ;;  %3953 = vmatpush3.xpose.msra.mxu0 %v4295_v52  ;;  %v2509_v52 = vadd.f32 %v2381_v0, %v1478_v17  ;;  %v1296_v17 = vld [vmem:[%s5390_s10 + $0x300] sm:$0xff] }
 0x23a   : > { %3988 = vmatpush3.xpose.msra.mxu1 %v4297_v62  ;;  %3954 = vmatprep.subr.mxu0 %v6490_v63  ;;  %v2492_v62 = vadd.f32 %v2364_v59, %v1461_v61  ;;  %v2105_v22 = vpop.permute.xlu0 %2104  ;;  %v1456_v18 = vadd.f32 %v6088_v51, %v1296_v17 }
 0x23b   : > { %3989 = vmatprep.subr.mxu1 %v6490_v63  ;;  %3984 = vmatprep.mubr.msk.f32.mxu0 %vm4591_vm1, %v6490_v63  ;;  %4332 = vtanh.f32 %v2509_v52 }
 0x23c   : > { %4019 = vmatprep.mubr.msk.f32.mxu1 %vm4591_vm1, %v6490_v63  ;;  %4334 = vtanh.f32 %v2492_v62  ;;  %v4323_v19 = vpop.eup %4322 }
 0x23d   : > { %3955 = vmatpush3.xpose.msra.mxu0 %v4299_v21  ;;  %v2379_v21 = vmul.f32 %v6208_v36, %v2200_v5  ;;  %4336 = vtanh.f32 %v2508_v40  ;;  %v2360_v5 = vmul.f32 %v6208_v36, %v2105_v22 }
 0x23e   : > { %3990 = vmatpush3.xpose.msra.mxu1 %v4301_v46  ;;  %3956 = vmatprep.subr.mxu0 %v6490_v63  ;;  %v2190_v46 = vpop.permute.xlu1 %2189  ;;  %4338 = vtanh.f32 %v2491_v3  ;;  %v2100_v31 = vpop.permute.xlu0 %2099 }
 0x23f   : > { %3991 = vmatprep.subr.mxu1 %v6490_v63  ;;  %v2507_v32 = vadd.f32 %v2379_v21, %v1476_v56  ;;  %v4325_v45 = vpop.eup %4324  ;;  %v2377_v4 = vmul.f32 %v6208_v36, %v2190_v46  ;;  %v2488_v11 = vadd.f32 %v2360_v5, %v1457_v29  ;;  %v2359_v10 = vmul.f32 %v6208_v36, %v2100_v31 }
 0x240   : > { %v4327_v6 = vpop.eup %4326 }
 0x241   : > { %3957 = vmatpush3.xpose.msra.mxu0 %v4303_v28  ;;  %v2378_v28 = vmul.f32 %v6208_v36, %v2195_v20  ;;  %4340 = vtanh.f32 %v2507_v32  ;;  %v2505_v30 = vadd.f32 %v2377_v4, %v1474_v55  ;;  %v2487_v39 = vadd.f32 %v2359_v10, %v1456_v18 }
 0x242   : > { %3992 = vmatpush3.xpose.msra.mxu1 %v4305_v1  ;;  %3958 = vmatprep.subr.mxu0 %v6490_v63  ;;  %v2490_v1 = vadd.f32 %v2362_v26, %v1459_v57  ;;  %v2185_v50 = vpop.permute.xlu1 %2184  ;;  %v4329_v47 = vpop.eup %4328 }
 0x243   : > { %3993 = vmatprep.subr.mxu1 %v6490_v63 }
 0x244   : > { %4342 = vtanh.f32 %v2490_v1 }
 0x245   : > { %3959 = vmatpush3.xpose.msra.mxu0 %v4307_v41  ;;  %v2506_v41 = vadd.f32 %v2378_v28, %v1475_v48  ;;  %v4331_v12 = vpop.eup %4330 }
 0x246   : > { %3994 = vmatpush3.xpose.msra.mxu1 %v4309_v8  ;;  %3960 = vmatprep.subr.mxu0 %v6490_v63  ;;  %v2489_v8 = vadd.f32 %v2361_v16, %v1458_v7  ;;  %v2180_v25 = vpop.permute.xlu1 %2179 }
 0x247   : > { %3995 = vmatprep.subr.mxu1 %v6490_v63  ;;  %4344 = vtanh.f32 %v2506_v41 }
 0x248   : > { %v4333_v0 = vpop.eup %4332  ;;  %4346 = vtanh.f32 %v2489_v8 }
 0x249   : > { %3961 = vmatpush3.xpose.msra.mxu0 %v4311_v14  ;;  %v2376_v14 = vmul.f32 %v6208_v36, %v2185_v50  ;;  %v4335_v61 = vpop.eup %4334  ;;  %4348 = vtanh.f32 %v2505_v30 }
 0x24a   : > { %3996 = vmatpush3.xpose.msra.mxu1 %v4313_v34  ;;  %3962 = vmatprep.subr.mxu0 %v6490_v63  ;;  %v1312_v34 = vld [vmem:[%s5390_s10 + $0x380] sm:$0xff]  ;;  %v4337_v52 = vpop.eup %4336  ;;  %4350 = vtanh.f32 %v2488_v11  ;;  %s6292_s10 = scalar_lea.vmem %s6445_s1, %s6505_s12  ;;  %s6331_s12 = scalar_lea.vmem [#allocation8], %s4813_s18 }
 0x24b   : > { %3997 = vmatprep.subr.mxu1 %v6490_v63  ;;  %v2504_v59 = vadd.f32 %v2376_v14, %v1473_v15  ;;  %v1472_v20 = vadd.f32 %v6094_v24, %v1312_v34  ;;  %v4339_v51 = vpop.eup %4338  ;;  %v3208_v58 = vld [vmem:[%s6292_s10] sm:$0x1]  ;;  %v3209_v40 = vld [vmem:[%s6292_s10 + $0x1] sm:$0x1]  ;;  %v3210_v57 = vld [vmem:[%s6292_s10 + $0x2] sm:$0x1] }
 0x24c   : > { %vm3216_vm2 = vcmp.eq.f32.partialorder %v3208_v58, 0.0  ;;  %vm3217_vm4 = vcmp.eq.f32.partialorder %v3209_v40, 0.0  ;;  %v3211_v26 = vld [vmem:[%s6292_s10 + $0x3] sm:$0x1]  ;;  %vm3218_vm5 = vcmp.eq.f32.partialorder %v3210_v57, 0.0  ;;  %s3604_s18 = sshll.u32 %s4672_s17, 7 }
 0x24d   : > { %3963 = vmatpush3.xpose.msra.mxu0 %v4315_v38  ;;  %v2375_v38 = vmul.f32 %v6208_v36, %v2180_v25  ;;  %4352 = vtanh.f32 %v2504_v59  ;;  %vm3219_vm6 = vcmp.eq.f32.partialorder %v3211_v26, 0.0  ;;  %v3212_v22 = vld [vmem:[%s6292_s10 + $0x4] sm:$0x1]  ;;  %v3213_v1 = vld [vmem:[%s6292_s10 + $0x5] sm:$0x1]  ;;  %s3372_s28 = sshll.u32 %s6331_s12, 4  ;;  %s6358_s21 = scalar_lea.hbm %s6453_s9, %s3604_s18  ;;  %s6362_s28 = int_to_ptr.vmem [resolvable:$true] %s3372_s28 }
 0x24e   : > { %3998 = vmatpush3.xpose.msra.mxu1 %v4317_v49  ;;  %3964 = vmatprep.subr.mxu0 %v6490_v63  ;;  %v4341_v2 = vpop.eup %4340  ;;  %4354 = vtanh.f32 %v2487_v39  ;;  %vm3220_vm7 = vcmp.eq.f32.partialorder %v3212_v22, 0.0  ;;  %vm3221_vm8 = vcmp.eq.f32.partialorder %v3213_v1, 0.0  ;;  %v3214_v30 = vld [vmem:[%s6292_s10 + $0x6] sm:$0x1]  ;;  %v3215_v15 = vld [vmem:[%s6292_s10 + $0x7] sm:$0x1]  ;;  %s6371_s3 = scalar_lea.hbm %s6494_s29, %s3604_s18  ;;  %p4483_p5 = scmp.lt.s32.totalorder %s6362_s28, %s4481_s11 }
 0x24f   : > { %3999 = vmatprep.subr.mxu1 %v6490_v63  ;;  %v2503_v33 = vadd.f32 %v2375_v38, %v1472_v20  ;;  %vm3222_vm9 = vcmp.eq.f32.partialorder %v3214_v30, 0.0  ;;  %vm3223_vm10 = vcmp.eq.f32.partialorder %v3215_v15, 0.0  ;;  %s3388_s17 = sshll.u32 %s6336_s24, 4  ;;  %s4476_s15 = scalar_lea.vmem %s6362_s28, 128  ;;  %s6373_s17 = int_to_ptr.vmem [resolvable:$true] %s3388_s17 }
 0x250   : > { %p4477_p11 = scmp.ne.s32.totalorder %s6362_s28, %s4476_s15  ;;  %p4484_p9 = scmp.lt.s32.totalorder %s4482_s23, %s4476_s15 }
 0x251   : > { %3965 = vmatpush3.xpose.msra.mxu0 %v4319_v27  ;;  %v4343_v24 = vpop.eup %4342  ;;  %4356 = vtanh.f32 %v2503_v33 }
 0x252   : > { %4000 = vmatpush3.xpose.msra.mxu1 %v4321_v53  ;;  %3966 = vmatprep.subr.mxu0 %v6490_v63  ;;  %p4478_p13 = pnand %p4477_p11, %p6495_p2  ;;  %p4485_p12 = por %p4484_p9, %p4483_p5 }
 0x253   : > { %4001 = vmatprep.subr.mxu1 %v6490_v63 }
 0x254   : > { %v4345_v36 = vpop.eup %4344  ;;  %p4479_p0 = pneg %p4478_p13 }
 0x255   : > { %3967 = vmatpush3.xpose.msra.mxu0 %v4323_v19  ;;  %v4347_v49 = vpop.eup %4346 }
 0x256   : > { %4002 = vmatpush3.xpose.msra.mxu1 %v4325_v45  ;;  %3968 = vmatprep.subr.mxu0 %v6490_v63  ;;  %v4349_v9 = vpop.eup %4348  ;;  %p4486_p1 = pnand %p4485_p12, %p4479_p0 }
 0x257   : > { %4003 = vmatprep.subr.mxu1 %v6490_v63  ;;  %v4351_v62 = vpop.eup %4350 }
 0x259   : > { %3969 = vmatpush3.xpose.msra.mxu0 %v4327_v6 }
 0x25a   : > { %4004 = vmatpush3.xpose.msra.mxu1 %v4329_v47  ;;  %3970 = vmatprep.subr.mxu0 %v6490_v63  ;;  %v4353_v43 = vpop.eup %4352 }
 0x25b   : > { %4005 = vmatprep.subr.mxu1 %v6490_v63  ;;  %v4355_v27 = vpop.eup %4354 }
 0x25d   : > { %3971 = vmatpush3.xpose.msra.mxu0 %v4331_v12 }
 0x25e   : > { %4006 = vmatpush3.xpose.msra.mxu1 %v4333_v0  ;;  %3972 = vmatprep.subr.mxu0 %v6490_v63  ;;  %v4357_v56 = vpop.eup %4356 }
 0x25f   : > { %4007 = vmatprep.subr.mxu1 %v6490_v63 }
 0x261   : > { %3973 = vmatpush3.xpose.msra.mxu0 %v4335_v61 }
 0x262   : > { %4008 = vmatpush3.xpose.msra.mxu1 %v4337_v52  ;;  %3974 = vmatprep.subr.mxu0 %v6490_v63 }
 0x263   : > { %4009 = vmatprep.subr.mxu1 %v6490_v63 }
 0x265   : > { %3975 = vmatpush3.xpose.msra.mxu0 %v4339_v51 }
 0x266   : > { %4010 = vmatpush3.xpose.msra.mxu1 %v4341_v2  ;;  %3976 = vmatprep.subr.mxu0 %v6490_v63 }
 0x267   : > { %4011 = vmatprep.subr.mxu1 %v6490_v63 }
 0x269   : > { %3977 = vmatpush3.xpose.msra.mxu0 %v4343_v24 }
 0x26a   : > { %4012 = vmatpush3.xpose.msra.mxu1 %v4345_v36  ;;  %3978 = vmatprep.subr.mxu0 %v6490_v63 }
 0x26b   : > { %4013 = vmatprep.subr.mxu1 %v6490_v63 }
 0x26d   : > { %3979 = vmatpush3.xpose.msra.mxu0 %v4347_v49 }
 0x26e   : > { %4014 = vmatpush3.xpose.msra.mxu1 %v4349_v9  ;;  %3980 = vmatprep.subr.mxu0 %v6490_v63 }
 0x26f   : > { %4015 = vmatprep.subr.mxu1 %v6490_v63 }
 0x271   : > { %3981 = vmatpush3.xpose.msra.mxu0 %v4351_v62 }
 0x272   : > { %4016 = vmatpush3.xpose.msra.mxu1 %v4353_v43  ;;  %3982 = vmatprep.subr.mxu0 %v6490_v63 }
 0x273   : > { %4017 = vmatprep.subr.mxu1 %v6490_v63 }
 0x275   : > { %3983 = vmatpush3.xpose.msra.mxu0 %v4355_v27 }
 0x276   : > { %4018 = vmatpush3.xpose.msra.mxu1 %v4357_v56 }
 0x278   : > { %v2714_v21 = vpop.f32.mrf.mxu0  ;;  %3985 = vmatmul.mubr.f32.vlgmr.msra.gmra.mxu0 %v6178_v44 }
 0x279   : > { %v3224_v60 = vsel %vm3216_vm2, -1e+30, %v2714_v21  ;;  %v2784_v13 = vpop.f32.mrf.mxu1  ;;  %4020 = vmatmul.mubr.f32.vlgmr.msra.gmra.mxu1 %v6178_v44 }
 0x27a   : > { %v3233_v63 = vsel %vm3232_vm3, %v3224_v60, -inf  ;;  %v3225_v53 = vsel %vm3217_vm4, -1e+30, %v2784_v13  ;;  %v3776_v35 = vpop.f32.mrf.mxu0 }
 0x27b   : > { %v3236_v46 = vsel %vm3232_vm3, %v3225_v53, -inf  ;;  %v3811_v3 = vpop.f32.mrf.mxu1  ;;  %3234 = vmax.xlane.f32.xlu0 %v3233_v63 }
 0x27c   : > { %3237 = vmax.xlane.f32.xlu1 %v3236_v46 }
 0x2b8   : > { %v2854_v19 = vpop.f32.mrf.mxu0 }
 0x2b9   : > { %v3226_v32 = vsel %vm3218_vm5, -1e+30, %v2854_v19  ;;  %v2924_v48 = vpop.f32.mrf.mxu1 }
 0x2ba   : > { %v3239_v44 = vsel %vm3232_vm3, %v3226_v32, -inf  ;;  %v3846_v28 = vpop.f32.mrf.mxu0  ;;  %v3227_v42 = vsel %vm3219_vm6, -1e+30, %v2924_v48 }
 0x2bb   : > { %v3881_v45 = vpop.f32.mrf.mxu1  ;;  %3240 = vmax.xlane.f32.xlu0 %v3239_v44  ;;  %v3242_v37 = vsel %vm3232_vm3, %v3227_v42, -inf }
 0x2bc   : > { %v3330_v45 = vld [vmem:[%s4817_s27 + $0x1] sm:$0x1] }
 0x2bf   : > { %3243 = vmax.xlane.f32.xlu0 %v3242_v37 }
 0x2f8   : > { %v2994_v7 = vpop.f32.mrf.mxu0 }
 0x2f9   : > { %v3228_v16 = vsel %vm3220_vm7, -1e+30, %v2994_v7  ;;  %v3064_v50 = vpop.f32.mrf.mxu1  ;;  %v3329_v7 = vld [vmem:[%s4817_s27] sm:$0x1] }
 0x2fa   : > { %v3245_v6 = vsel %vm3232_vm3, %v3228_v16, -inf  ;;  %v3229_v41 = vsel %vm3221_vm8, -1e+30, %v3064_v50  ;;  %v3916_v55 = vpop.f32.mrf.mxu0 }
 0x2fb   : > { %v3248_v4 = vsel %vm3232_vm3, %v3229_v41, -inf  ;;  %v3951_v54 = vpop.f32.mrf.mxu1  ;;  %3246 = vmax.xlane.f32.xlu1 %v3245_v6 }
 0x2fc   : > { %3249 = vmax.xlane.f32.xlu0 %v3248_v4  ;;  %v3331_v54 = vld [vmem:[%s4817_s27 + $0x2] sm:$0x1] }
 0x304   : > { %v3235_v47 = vpop.xlane.xlu0 %3234 }
 0x305   : > { %v3238_v23 = vpop.xlane.xlu1 %3237  ;;  %v3257_v8 = vsub.f32 %v3224_v60, %v3235_v47 }
 0x306   : > { %v3258_v29 = vsub.f32 %v3225_v53, %v3238_v23 }
 0x307   : > { %v3265_v5 = vmul.f32 1.442695, %v3257_v8 }
 0x308   : > { %v3267_v12 = vmul.f32 1.442695, %v3258_v29  ;;  %v3332_v29 = vld [vmem:[%s4817_s27 + $0x3] sm:$0x1] }
 0x309   : > { %4358 = vpow2.f32 %v3265_v5 }
 0x30a   : > { %4360 = vpow2.f32 %v3267_v12 }
 0x316   : > { %v4359_v11 = vpop.eup %4358 }
 0x317   : > { %v4361_v61 = vpop.eup %4360  ;;  %v3281_v59 = vsel %vm3232_vm3, %v4359_v11, 0.0 }
 0x318   : > { %v3284_v20 = vsel %vm3232_vm3, %v4361_v61, 0.0 }
 0x338   : > { %v3134_v14 = vpop.f32.mrf.mxu0 }
 0x339   : > { %v3230_v31 = vsel %vm3222_vm9, -1e+30, %v3134_v14  ;;  %v3204_v17 = vpop.f32.mrf.mxu1 }
 0x33a   : > { %v3251_v0 = vsel %vm3232_vm3, %v3230_v31, -inf  ;;  %v3231_v25 = vsel %vm3223_vm10, -1e+30, %v3204_v17  ;;  %v3986_v34 = vpop.f32.mrf.mxu0 }
 0x33b   : > { %v3254_v18 = vsel %vm3232_vm3, %v3231_v25, -inf  ;;  %v4021_v10 = vpop.f32.mrf.mxu1  ;;  %3252 = vmax.xlane.f32.xlu1 %v3251_v0  ;;  %v3334_v0 = vld [vmem:[%s4817_s27 + $0x5] sm:$0x1] }
 0x33c   : > { %3255 = vmax.xlane.f32.xlu0 %v3254_v18 }
 0x33f   : > { %3282 = vadd.xlane.f32.xlu1 %v3281_v59 }
 0x340   : > { %3285 = vadd.xlane.f32.xlu0 %v3284_v20  ;;  %v3335_v20 = vld [vmem:[%s4817_s27 + $0x6] sm:$0x1] }
 0x344   : > { %v3241_v38 = vpop.xlane.xlu0 %3240 }
 0x345   : > { %v3259_v52 = vsub.f32 %v3226_v32, %v3241_v38 }
 0x347   : > { %v3269_v39 = vmul.f32 1.442695, %v3259_v52  ;;  %v3336_v52 = vld [vmem:[%s4817_s27 + $0x7] sm:$0x1] }
 0x348   : > { %v3244_v51 = vpop.xlane.xlu0 %3243 }
 0x349   : > { %4362 = vpow2.f32 %v3269_v39  ;;  %v3260_v33 = vsub.f32 %v3227_v42, %v3244_v51 }
 0x34b   : > { %v3271_v2 = vmul.f32 1.442695, %v3260_v33 }
 0x34d   : > { %4364 = vpow2.f32 %v3271_v2 }
 0x356   : > { %v4363_v24 = vpop.eup %4362 }
 0x357   : > { %v3287_v36 = vsel %vm3232_vm3, %v4363_v24, 0.0 }
 0x358   : > { %3288 = vadd.xlane.f32.xlu1 %v3287_v36 }
 0x35a   : > { %v4365_v49 = vpop.eup %4364 }
 0x35b   : > { %v3290_v9 = vsel %vm3232_vm3, %v4365_v49, 0.0 }
 0x35c   : > { %3291 = vadd.xlane.f32.xlu0 %v3290_v9 }
 0x384   : > { %v3247_v62 = vpop.xlane.xlu1 %3246 }
 0x385   : > { %v3250_v43 = vpop.xlane.xlu0 %3249  ;;  %v3261_v58 = vsub.f32 %v3228_v16, %v3247_v62 }
 0x386   : > { %v3262_v27 = vsub.f32 %v3229_v41, %v3250_v43 }
 0x387   : > { %v3273_v40 = vmul.f32 1.442695, %v3261_v58 }
 0x388   : > { %v3275_v56 = vmul.f32 1.442695, %v3262_v27 }
 0x389   : > { %4366 = vpow2.f32 %v3273_v40 }
 0x38a   : > { %4368 = vpow2.f32 %v3275_v56 }
 0x396   : > { %v4367_v21 = vpop.eup %4366 }
 0x397   : > { %v4369_v60 = vpop.eup %4368  ;;  %v3293_v13 = vsel %vm3232_vm3, %v4367_v21, 0.0 }
 0x398   : > { %v3296_v63 = vsel %vm3232_vm3, %v4369_v60, 0.0  ;;  %3294 = vadd.xlane.f32.xlu1 %v3293_v13 }
 0x399   : > { %3297 = vadd.xlane.f32.xlu0 %v3296_v63 }
 0x3c4   : > { %v3253_v53 = vpop.xlane.xlu1 %3252 }
 0x3c5   : > { %v3256_v35 = vpop.xlane.xlu0 %3255  ;;  %v3263_v46 = vsub.f32 %v3230_v31, %v3253_v53  ;;  %v3333_v31 = vld [vmem:[%s4817_s27 + $0x4] sm:$0x1]  ;;  %s3354_s27 = scalar_lea.sflag [#allocation4], %s4810_s25 }
 0x3c6   : > { %v3264_v3 = vsub.f32 %v3231_v25, %v3256_v35 }
 0x3c7   : > { %v3277_v57 = vmul.f32 1.442695, %v3263_v46 }
 0x3c8   : > { %v3279_v26 = vmul.f32 1.442695, %v3264_v3  ;;  %v3283_v32 = vpop.xlane.xlu1 %3282 }
 0x3c9   : > { %4370 = vpow2.f32 %v3277_v57  ;;  %v3286_v19 = vpop.xlane.xlu0 %3285 }
 0x3ca   : > { %4372 = vpow2.f32 %v3279_v26 }
 0x3cb   : > { %4374 = vrcp.f32 %v3286_v19 }
 0x3cc   : > { %4376 = vrcp.f32 %v3283_v32 }
 0x3d6   : > { %v6320_v48 = vpop.eup %4370 }
 0x3d7   : > { %v6322_v44 = vpop.eup %4372  ;;  %v3299_v28 = vsel %vm3232_vm3, %v6320_v48, 0.0 }
 0x3d8   : > { %v4375_v42 = vpop.eup %4374  ;;  %v3302_v37 = vsel %vm3232_vm3, %v6322_v44, 0.0  ;;  %3300 = vadd.xlane.f32.xlu1 %v3299_v28 }
 0x3d9   : > { %v4377_v22 = vpop.eup %4376  ;;  %v3308_v1 = vmul.f32 %v4375_v42, %v4361_v61  ;;  %3303 = vadd.xlane.f32.xlu0 %v3302_v37 }
 0x3da   : > { %v3306_v16 = vmul.f32 %v4377_v22, %v4359_v11 }
 0x3db   : > { %3322 = vst [vmem:[%s6331_s12 + $0x1] sm:$0x1] %v3308_v1  ;;  %v3338_v50 = vadd.f32 %v3330_v45, %v3308_v1 }
 0x3dc   : > { %3321 = vst [vmem:[%s6331_s12] sm:$0x1] %v3306_v16  ;;  %v3337_v6 = vadd.f32 %v3329_v7, %v3306_v16 }
 0x3dd   : > { %3346 = vst [vmem:[%s6336_s24 + $0x1] sm:$0x1] %v3338_v50 }
 0x3de   : > { %3345 = vst [vmem:[%s6336_s24] sm:$0x1] %v3337_v6 }
 0x3e1   : > { %v3289_v41 = vpop.xlane.xlu1 %3288 }
 0x3e2   : > { %4378 = vrcp.f32 %v3289_v41 }
 0x3e5   : > { %v3292_v55 = vpop.xlane.xlu0 %3291 }
 0x3e6   : > { %4380 = vrcp.f32 %v3292_v55 }
 0x3ef   : > { %v4379_v4 = vpop.eup %4378 }
 0x3f0   : > { %v3310_v47 = vmul.f32 %v4379_v4, %v4363_v24 }
 0x3f2   : > { %3323 = vst [vmem:[%s6331_s12 + $0x2] sm:$0x1] %v3310_v47  ;;  %v3339_v23 = vadd.f32 %v3331_v54, %v3310_v47 }
 0x3f3   : > { %v4381_v8 = vpop.eup %4380 }
 0x3f4   : > { %3347 = vst [vmem:[%s6336_s24 + $0x2] sm:$0x1] %v3339_v23  ;;  %v3312_v5 = vmul.f32 %v4381_v8, %v4365_v49 }
 0x3f6   : > { %3324 = vst [vmem:[%s6331_s12 + $0x3] sm:$0x1] %v3312_v5  ;;  %v3340_v12 = vadd.f32 %v3332_v29, %v3312_v5 }
 0x3f8   : > { %3348 = vst [vmem:[%s6336_s24 + $0x3] sm:$0x1] %v3340_v12 }
 0x421   : > { %v3295_v30 = vpop.xlane.xlu1 %3294 }
 0x422   : > { %v3298_v15 = vpop.xlane.xlu0 %3297  ;;  %4382 = vrcp.f32 %v3295_v30 }
 0x423   : > { %4384 = vrcp.f32 %v3298_v15 }
 0x42f   : > { %v4383_v14 = vpop.eup %4382 }
 0x430   : > { %v4385_v17 = vpop.eup %4384  ;;  %v3314_v25 = vmul.f32 %v4383_v14, %v4367_v21 }
 0x431   : > { %v3316_v34 = vmul.f32 %v4385_v17, %v4369_v60 }
 0x432   : > { %3325 = vst [vmem:[%s6331_s12 + $0x4] sm:$0x1] %v3314_v25  ;;  %v3341_v11 = vadd.f32 %v3333_v31, %v3314_v25 }
 0x433   : > { %3326 = vst [vmem:[%s6331_s12 + $0x5] sm:$0x1] %v3316_v34  ;;  %v3342_v18 = vadd.f32 %v3334_v0, %v3316_v34 }
 0x434   : > { %3349 = vst [vmem:[%s6336_s24 + $0x4] sm:$0x1] %v3341_v11 }
 0x435   : > { %3350 = vst [vmem:[%s6336_s24 + $0x5] sm:$0x1] %v3342_v18 }
 0x461   : > { %v3301_v10 = vpop.xlane.xlu1 %3300 }
 0x462   : > { %v3304_v61 = vpop.xlane.xlu0 %3303  ;;  %4386 = vrcp.f32 %v3301_v10 }
 0x463   : > { %4388 = vrcp.f32 %v3304_v61 }
 0x46f   : > { %v4387_v59 = vpop.eup %4386 }
 0x470   : > { %v4389_v38 = vpop.eup %4388  ;;  %v3318_v39 = vmul.f32 %v4387_v59, %v6320_v48 }
 0x471   : > { %v3320_v51 = vmul.f32 %v4389_v38, %v6322_v44 }
 0x472   : > { %3327 = vst [vmem:[%s6331_s12 + $0x6] sm:$0x1] %v3318_v39  ;;  %v3343_v33 = vadd.f32 %v3335_v20, %v3318_v39 }
 0x473   : > { %3328 = vst [vmem:[%s6331_s12 + $0x7] sm:$0x1] %v3320_v51  ;;  %v3344_v2 = vadd.f32 %v3336_v52, %v3320_v51 }
 0x474   : > { %3351 = vst [vmem:[%s6336_s24 + $0x6] sm:$0x1] %v3343_v33 }
 0x475   : > { %4489 = shalt.err (!%p4486_p1)
}
 0x476   : > { %s4490_s26 = scalar_lea.hbm %s6358_s21, 128  ;;  %s4494_s18 = scalar_lea.hbm %s6453_s9, 512 }
 0x477   : > { %p4491_p4 = scmp.ne.s32.totalorder %s6358_s21, %s4490_s26  ;;  %p4495_p8 = scmp.lt.s32.totalorder %s6358_s21, %s6453_s9 }
 0x478   : > { %p4496_p10 = scmp.lt.s32.totalorder %s4494_s18, %s4490_s26 }
 0x479   : > { %p4492_p3 = pnand %p4491_p4, %p6495_p2 }
 0x47a   : > { %p4497_p6 = por %p4496_p10, %p4495_p8 }
 0x47b   : > { %p4493_p7 = pneg %p4492_p3 }
 0x47d   : > { %p4498_p11 = pnand %p4497_p6, %p4493_p7 }
 0x47f   : > { %4501 = shalt.err (!%p4498_p11)
}
 0x480   : > { %s4593_s30 = smov 16   ;;  %s4594_s19 = smov 1   ;;  %3352 = vst [vmem:[%s6336_s24 + $0x7] sm:$0x1] %v3344_v2 }
 0x481   : > { %4030 = dma.vmem_to_hbm [thread:$0]  (%p6495_p2), %s6362_s28, 128, %s6358_s21, %s3354_s27, %s4593_s30, %s4593_s30, %s4594_s19  }
 0x482   : > { %s3359_s15 = scalar_lea.sflag [#allocation10], %s4810_s25  ;;  %s4502_s5 = scalar_lea.vmem %s6373_s17, 128 }
 0x483   : > { %p4503_p13 = scmp.ne.s32.totalorder %s6373_s17, %s4502_s5  ;;  %s4595_s11 = smov [#allocation9]  }
 0x484   : > { %s4506_s23 = sshll.u32 %s4595_s11, 4  ;;  %s4507_s23 = int_to_ptr.vmem [resolvable:$false] %s4506_s23 }
 0x485   : > { %p4504_p0 = pnand %p4503_p13, %p6495_p2  ;;  %s4508_s26 = scalar_lea.vmem %s4507_s23, 256 }
 0x486   : > { %p4509_p9 = scmp.lt.s32.totalorder %s6373_s17, %s4507_s23  ;;  %p4510_p12 = scmp.lt.s32.totalorder %s4508_s26, %s4502_s5 }
 0x487   : > { %p4505_p5 = pneg %p4504_p0 }
 0x488   : > { %p4511_p1 = por %p4510_p12, %p4509_p9 }
 0x48a   : > { %p4512_p4 = pnand %p4511_p1, %p4505_p5 }
 0x48c   : > { %4515 = shalt.err (!%p4512_p4)
}
 0x48d   : > { %s4516_s24 = scalar_lea.hbm %s6371_s3, 128  ;;  %s4520_s21 = scalar_lea.hbm %s6494_s29, 512 }
 0x48e   : > { %p4517_p3 = scmp.ne.s32.totalorder %s6371_s3, %s4516_s24  ;;  %p4521_p10 = scmp.lt.s32.totalorder %s6371_s3, %s6494_s29 }
 0x48f   : > { %p4522_p6 = scmp.lt.s32.totalorder %s4520_s21, %s4516_s24 }
 0x490   : > { %p4518_p7 = pnand %p4517_p3, %p6495_p2 }
 0x491   : > { %p4523_p11 = por %p4522_p6, %p4521_p10 }
 0x492   : > { %p4519_p8 = pneg %p4518_p7 }
 0x494   : > { %p4524_p13 = pnand %p4523_p11, %p4519_p8 }
 0x496   : > { %4527 = shalt.err (!%p4524_p13)
}
 0x497   : > { %4031 = dma.vmem_to_hbm [thread:$0]  (%p6495_p2), %s6373_s17, 128, %s6371_s3, %s3359_s15, %s4593_s30, %s4593_s30, %s4594_s19  }
 0x498 PF: > { %s6496_s12 = sld [smem:[#allocation16_spill]]  ;;  %p4055_p0 = scmp.ge.s32.totalorder %s4578_s16, 2 }
 0x499   : > { %s6497_s18 = sld [smem:[#allocation18_spill]] }
 0x49e   : > { %s3403_s13 = sand.u32 1, %s6496_s12  }
 0x49f   : > { %p6498_p5 = scmp.ne.s32.totalorder %s6497_s18, 0  ;;  %s3404_s20 = scalar_lea.sflag [#allocation4], %s3403_s13 }
 0x4a1   : > { %p4046_p9 = pnand %p4055_p0, %p6498_p5 }
 0x4a3   : > { %p4047_p12 = pneg %p4046_p9 }
 0x4a5   : > { %4557 = dma.done.wait (%p4047_p12), %s3404_s20, 128  }
 0x4a6   : > { %4559 = vsyncadd (%p4047_p12), %s3404_s20, 4294967168  ;;  %s3413_s5 = scalar_lea.sflag [#allocation10], %s3403_s13 }
 0x4a7   : > { %4561 = dma.done.wait (%p4047_p12), %s3413_s5, 128  }
 0x4a8   : > { %4563 = vsyncadd (%p4047_p12), %s3413_s5, 4294967168  ;;  %s6499_s16 = sld [smem:[#allocation19_spill]]  ;;  %s6502_s13 = smov %s4570_s14 }
 0x4a9   : > { %s6500_s22 = sld [smem:[#allocation17_spill]] }
 0x4aa   : > { %s6501_s15 = sld [smem:[#allocation20_spill]] }
 0x4ae   : > { %p30_p2 = scmp.ge.s32.totalorder %s6499_s16, 6  }
 0x4af   : > { %s6503_s14 = smov %s6500_s22 }
 0x4b0   :  { %32 = sbr.rel (!%p30_p2) target bundleno = 13 (0xd), region = 144 }
 0x4b5   :  { %3418 = vsyncpa [#allocation3], 1 }
 0x4b6   :  { %3420 = vsyncpa [#allocation3 + $0x1], 1 }
 0x4b7   :  { %3421 = vsyncpa [#allocation6], 1 }
 0x4b8   :  { %3423 = vsyncpa [#allocation6 + $0x1], 1 }
 0x4b9   :  { %3424 = vsyncpa [#allocation4], 1 }
 0x4ba   :  { %3426 = vsyncpa [#allocation4 + $0x1], 1 }
 0x4bb   :  { %3427 = vsyncpa [#allocation10], 1 }
 0x4bc   :  { %3429 = vsyncpa [#allocation10 + $0x1], 1 }

</bundles_post_ra>
